<compile_context>
chip_gen: v5e
topology: v5e:2x2
jax: 0.10.0
libtpu: 0.0.40
codegen_flags: <defaults>
</compile_context>

<pallas_src>
import functools
import math

import jax
import jax.numpy as jnp
from jax.experimental import pallas as pl
from jax.experimental.pallas import tpu as pltpu


def _hswish(x):
    # torch.nn.Hardswish: x * relu6(x + 3) / 6
    return x * jnp.clip(x + 3.0, 0.0, 6.0) * (1.0 / 6.0)


# ---------------------------------------------------------------------------
# Single fused kernel: input_conv + head_depth MBConv residual blocks.
# Activations live as flat (H*W, C) matrices (C on the 128-lane axis) for the
# whole kernel; the depthwise step uses rolls / row shifts on the flat layout.
# ---------------------------------------------------------------------------
def _decoder_kernel(x_ref, w0_ref, b0_ref, w1_ref, b1_ref, k_ref, b2_ref,
                    w3_ref, b3_ref, o_ref, *, H, W, depth):
    f32 = jnp.float32
    bf16 = jnp.bfloat16
    HW = H * W
    C4 = w1_ref.shape[2]

    # input_conv: 1x1 conv (BN scale folded into w0) + bias, no activation.
    # bf16 operands on the MXU, f32 accumulation / bias.
    xb = x_ref[0].astype(bf16)                                      # (HW, Cin)
    y = jnp.dot(xb, w0_ref[...], preferred_element_type=f32) + b0_ref[...]

    # Hoisted depthwise helpers (identical for every block): border masks for the
    # W-axis neighbour taps, and a zero image-row for the H-axis shifts.
    # (At production HW x C4 sizes these masks would be kept (HW, 1) instead.)
    col = jax.lax.broadcasted_iota(jnp.int32, (HW, C4), 0) % W
    has_left = col != 0                                             # a w-1 neighbour exists
    has_right = col != (W - 1)                                      # a w+1 neighbour exists
    zrow = jnp.zeros((W, C4), f32)

    for blk in range(depth):                                        # unrolled, static
        # ---- expand 1x1 (BN folded) + hardswish ---------------------------
        t = _hswish(jnp.dot(y.astype(bf16), w1_ref[blk],
                            preferred_element_type=f32) + b1_ref[blk])   # (HW, C4)

        # ---- depthwise 3x3, padding=1 (BN scale folded into k), f32 -------
        # W-axis neighbours: XLU roll of the flat rows + zeroed border
        # (no sublane-unaligned slice/concat, no (H,W,C) reshape).
        kk = k_ref[blk]                                             # (9, C4)
        wm1 = jnp.where(has_left, pltpu.roll(t, 1, axis=0), 0.0)        # t[h, w-1]
        wp1 = jnp.where(has_right, pltpu.roll(t, HW - 1, axis=0), 0.0)  # t[h, w+1]
        # Combine the three column taps per kernel row, then shift whole image
        # rows (W flat rows = sublane-tile aligned) and accumulate.
        rows = [wm1 * kk[3 * dh + 0] + t * kk[3 * dh + 1] + wp1 * kk[3 * dh + 2]
                for dh in range(3)]
        acc = rows[1]
        acc = acc + jnp.concatenate([zrow, rows[0][:HW - W]], axis=0)    # row h-1
        acc = acc + jnp.concatenate([rows[2][W:], zrow], axis=0)         # row h+1
        d = _hswish(acc + b2_ref[blk])                              # (HW, C4)

        # ---- project 1x1 (BN folded) + residual add (f32) -----------------
        p = jnp.dot(d.astype(bf16), w3_ref[blk],
                    preferred_element_type=f32) + b3_ref[blk]
        y = y + p

    o_ref[0] = y.astype(o_ref.dtype)                                # lane-dense store


# ---------------------------------------------------------------------------
# Glue: fused PixelShuffle (pure permutation) and full forward
# ---------------------------------------------------------------------------
def _pixel_shuffle_from_nhwc(y_nhwc, r):
    # NHWC -> PixelShuffle(r) -> NCHW in ONE permutation (no NCHW round trip).
    N, H, W, C = y_nhwc.shape
    Co = C // (r * r)
    y = y_nhwc.reshape(N, H, W, Co, r, r)
    y = jnp.transpose(y, (0, 3, 1, 4, 2, 5))
    return y.reshape(N, Co, H * r, W * r)


def pixel_shuffle_nchw(x, r):
    # Independent NCHW path, used only by the f32 reference.
    N, C, H, W = x.shape
    Co = C // (r * r)
    x = x.reshape(N, Co, r, r, H, W)
    x = jnp.transpose(x, (0, 1, 4, 2, 5, 3))
    return x.reshape(N, Co, H * r, W * r)


@jax.jit
def mask_feature_decoder_forward(x_nchw, packed):
    w0f, b0, w1s, b1s, ks, b2s, w3s, b3s = packed
    N, Cin, H, W = x_nchw.shape
    Cw = w0f.shape[1]
    C4 = w1s.shape[2]
    D = w1s.shape[0]
    assert W % 8 == 0, "W must be a multiple of 8 (sublane-aligned image rows)"
    assert Cw % 128 == 0 and C4 % 128 == 0, "channels must be lane-dense"

    # NCHW -> (N, H*W, Cin): channels on the lane axis, spatial folded into M.
    x2d = jnp.transpose(x_nchw, (0, 2, 3, 1)).reshape(N, H * W, Cin)
    x2d = x2d.astype(jnp.float32)

    def _full(shape):
        nd = len(shape)
        return pl.BlockSpec(shape, lambda n, _nd=nd: (0,) * _nd)

    kernel = functools.partial(_decoder_kernel, H=H, W=W, depth=D)

    # Scoped-VMEM budget: compiler-managed (H*W, C4) temporaries dominate; add
    # weights + double-buffered in/out blocks and 50% headroom.
    nbytes = lambda a: a.size * a.dtype.itemsize
    weight_bytes = sum(nbytes(a) for a in packed)
    act_bytes = H * W * max(C4, Cw, Cin) * 4
    io_bytes = 2 * (H * W * Cin * 4 + H * W * Cw * 4)
    vmem_limit = int(1.5 * (10 * act_bytes + 2 * weight_bytes + io_bytes))
    vmem_limit = max(32 * 1024 * 1024, min(vmem_limit, 100 * 1024 * 1024))

    y = pl.pallas_call(
        kernel,
        out_shape=jax.ShapeDtypeStruct((N, H * W, Cw), jnp.float32),
        grid_spec=pltpu.PrefetchScalarGridSpec(
            num_scalar_prefetch=0,
            grid=(N,),                                   # parallel over batch (v7x: 2 TCs)
            in_specs=[
                pl.BlockSpec((1, H * W, Cin), lambda n: (n, 0, 0)),
                _full((Cin, Cw)), _full((1, Cw)),        # input_conv (bf16, scale folded)
                _full((D, Cw, C4)), _full((D, 1, C4)),   # expand 1x1 (bf16)
                _full((D, 9, C4)), _full((D, 1, C4)),    # depthwise 3x3 (f32)
                _full((D, C4, Cw)), _full((D, 1, Cw)),   # project 1x1 (bf16)
            ],
            out_specs=pl.BlockSpec((1, H * W, Cw), lambda n: (n, 0, 0)),
        ),
        compiler_params=pltpu.CompilerParams(
            dimension_semantics=("parallel",),
            vmem_limit_bytes=vmem_limit,
        ),
    )(x2d, w0f, b0, w1s, b1s, ks, b2s, w3s, b3s)

    return _pixel_shuffle_from_nhwc(y.reshape(N, H, W, Cw), 8)


# ---------------------------------------------------------------------------
# Parameter init (raw conv + BN params) and offline folding/stacking
# ---------------------------------------------------------------------------
def init_params(key, in_channel, head_width, head_depth, expand_ratio):
    C4 = int(round(head_width * expand_ratio))
    keys = iter(jax.random.split(key, 64))

    def bn(c):
        gamma = 1.0 + 0.1 * jax.random.normal(next(keys), (c,), jnp.float32)
        beta = 0.1 * jax.random.normal(next(keys), (c,), jnp.float32)
        mean = 0.1 * jax.random.normal(next(keys), (c,), jnp.float32)
        var = 1.0 + 0.5 * jax.random.uniform(next(keys), (c,), jnp.float32)
        scale = gamma / jnp.sqrt(var + 1e-5)
        return scale, beta - mean * scale

    def conv1x1_w(cin, cout):
        return jax.random.normal(next(keys), (cin, cout), jnp.float32) / math.sqrt(cin)

    w0 = conv1x1_w(in_channel, head_width)
    s0, b0 = bn(head_width)
    blocks = []
    for _ in range(head_depth):
        w1 = conv1x1_w(head_width, C4)
        s1, b1 = bn(C4)
        k = jax.random.normal(next(keys), (3, 3, C4), jnp.float32) / 3.0
        s2, b2 = bn(C4)
        w3 = conv1x1_w(C4, head_width)
        s3, b3 = bn(head_width)
        blocks.append((w1, s1, b1, k, s2, b2, w3, s3, b3))
    return (w0, s0, b0), tuple(blocks)


def pack_params(params):
    """Fold BN scales into the conv / depthwise weights, stack blocks, and cast
    the matmul weights to bf16 (MXU operand precision)."""
    (w0, s0, b0), blocks = params
    w0f = (w0 * s0[None, :]).astype(jnp.bfloat16)
    b0p = b0.reshape(1, -1)
    w1s, b1s, ks, b2s, w3s, b3s = [], [], [], [], [], []
    for (w1, s1, b1, k, s2, b2, w3, s3, b3) in blocks:
        w1s.append((w1 * s1[None, :]).astype(jnp.bfloat16))
        b1s.append(b1.reshape(1, -1))
        ks.append((k * s2[None, None, :]).reshape(9, -1))   # (9, C4), row = 3*dh + dw
        b2s.append(b2.reshape(1, -1))
        w3s.append((w3 * s3[None, :]).astype(jnp.bfloat16))
        b3s.append(b3.reshape(1, -1))
    st = lambda xs: jnp.stack(xs, axis=0)
    return (w0f, b0p, st(w1s), st(b1s), st(ks), st(b2s), st(w3s), st(b3s))


# ---------------------------------------------------------------------------
# References for the numeric checks
# ---------------------------------------------------------------------------
def reference_forward(x_nchw, params):
    """Pure-JAX reference: unfolded BN, f32 HIGHEST precision, independent
    NCHW pixel-shuffle path."""
    hp = jax.lax.Precision.HIGHEST
    (w0, s0, b0), blocks = params
    y = jnp.transpose(x_nchw, (0, 2, 3, 1)).astype(jnp.float32)
    y = jnp.einsum('nhwc,cd->nhwd', y, w0, precision=hp) * s0 + b0
    N, H, W, _ = y.shape
    for (w1, s1, b1, k, s2, b2, w3, s3, b3) in blocks:
        t = _hswish(jnp.einsum('nhwc,cd->nhwd', y, w1, precision=hp) * s1 + b1)
        tp = jnp.pad(t, ((0, 0), (1, 1), (1, 1), (0, 0)))
        acc = jnp.zeros_like(t)
        for dh in range(3):
            for dw in range(3):
                acc = acc + tp[:, dh:dh + H, dw:dw + W, :] * k[dh, dw]
        d = _hswish(acc * s2 + b2)
        p = jnp.einsum('nhwc,cd->nhwd', d, w3, precision=hp) * s3 + b3
        y = y + p
    return pixel_shuffle_nchw(jnp.transpose(y, (0, 3, 1, 2)), 8)


def mixed_reference_forward(x_nchw, packed):
    """Pure-JAX forward with the SAME bf16-operand / f32-accumulate rounding as the
    kernel (folded-BN weights).  Validates the kernel algorithm bit-tightly."""
    f32, bf16 = jnp.float32, jnp.bfloat16
    w0f, b0, w1s, b1s, ks, b2s, w3s, b3s = packed
    N, Cin, H, W = x_nchw.shape
    D, _, C4 = w1s.shape
    Cw = w0f.shape[1]
    x = jnp.transpose(x_nchw, (0, 2, 3, 1)).astype(f32)
    y = jnp.einsum('nhwc,cd->nhwd', x.astype(bf16), w0f,
                   preferred_element_type=f32) + b0.reshape(1, 1, 1, Cw)
    for blk in range(D):
        t = _hswish(jnp.einsum('nhwc,cd->nhwd', y.astype(bf16), w1s[blk],
                               preferred_element_type=f32)
                    + b1s[blk].reshape(1, 1, 1, C4))
        k33 = ks[blk].reshape(3, 3, C4)
        tp = jnp.pad(t, ((0, 0), (1, 1), (1, 1), (0, 0)))
        acc = jnp.zeros_like(t)
        for dh in range(3):
            for dw in range(3):
                acc = acc + tp[:, dh:dh + H, dw:dw + W, :] * k33[dh, dw]
        d = _hswish(acc + b2s[blk].reshape(1, 1, 1, C4))
        p = jnp.einsum('nhwc,cd->nhwd', d.astype(bf16), w3s[blk],
                       preferred_element_type=f32) + b3s[blk].reshape(1, 1, 1, Cw)
        y = y + p
    return _pixel_shuffle_from_nhwc(y, 8)


if __name__ == "__main__":
    # Small shapes consistent with the module. head_width is a multiple of 128
    # (lane-dense channels / stores) and of 64 (PixelShuffle(8) divisibility).
    N, Cin, H, W = 2, 128, 8, 8
    head_width, head_depth, expand_ratio = 128, 2, 4

    key = jax.random.PRNGKey(0)
    kx, kp = jax.random.split(key)
    x_nchw = jax.random.normal(kx, (N, Cin, H, W), jnp.float32)
    params = init_params(kp, Cin, head_width, head_depth, expand_ratio)
    packed = pack_params(params)

    out = jax.block_until_ready(mask_feature_decoder_forward(x_nchw, packed))
    assert out.shape == (N, head_width // 64, H * 8, W * 8), out.shape

    # (a) Algorithmic check vs. a plain-JAX forward using the exact same
    #     bf16-operand / f32-accumulate rounding: must match very tightly.
    err_mixed = float(jnp.max(jnp.abs(out - mixed_reference_forward(x_nchw, packed))))
    assert err_mixed < 1e-3, f"kernel vs mixed-precision reference: {err_mixed}"

    # (b) End-to-end precision vs. the unfolded-BN f32 HIGHEST reference:
    #     bounds the bf16-matmul drift (outputs are O(1); bound is ~1% of range).
    err_f32 = float(jnp.max(jnp.abs(out - reference_forward(x_nchw, params))))
    assert err_f32 < 5e-2, f"bf16-matmul drift vs f32 reference too large: {err_f32}"

    print("KERNEL_OK")
</pallas_src>

<mosaic_0001>
module attributes {stable_mosaic.version = 11 : i64} {
  func.func @_decoder_kernel(%arg0: i32, %arg1: memref<1x64x128xf32, #tpu.memory_space<vmem>>, %arg2: memref<128x128xbf16, #tpu.memory_space<vmem>>, %arg3: memref<1x128xf32, #tpu.memory_space<vmem>>, %arg4: memref<2x128x512xbf16, #tpu.memory_space<vmem>>, %arg5: memref<2x1x512xf32, #tpu.memory_space<vmem>>, %arg6: memref<2x9x512xf32, #tpu.memory_space<vmem>>, %arg7: memref<2x1x512xf32, #tpu.memory_space<vmem>>, %arg8: memref<2x512x128xbf16, #tpu.memory_space<vmem>>, %arg9: memref<2x1x128xf32, #tpu.memory_space<vmem>>, %arg10: memref<1x64x128xf32, #tpu.memory_space<vmem>>) attributes {dimension_semantics = [#tpu.dimension_semantics<parallel>], iteration_bounds = array<i64: 2>, scalar_prefetch = 0 : i64, scratch_operands = 0 : i64, tpu.core_type = #tpu.core_type<tc>, window_params = [{transform_indices = @transform_0, window_bounds = array<i64: 1, 64, 128>}, {pipeline_mode = #tpu.pipeline_mode<synchronous>, transform_indices = @transform_1, window_bounds = array<i64: 128, 128>}, {pipeline_mode = #tpu.pipeline_mode<synchronous>, transform_indices = @transform_2, window_bounds = array<i64: 1, 128>}, {pipeline_mode = #tpu.pipeline_mode<synchronous>, transform_indices = @transform_3, window_bounds = array<i64: 2, 128, 512>}, {pipeline_mode = #tpu.pipeline_mode<synchronous>, transform_indices = @transform_4, window_bounds = array<i64: 2, 1, 512>}, {pipeline_mode = #tpu.pipeline_mode<synchronous>, transform_indices = @transform_5, window_bounds = array<i64: 2, 9, 512>}, {pipeline_mode = #tpu.pipeline_mode<synchronous>, transform_indices = @transform_6, window_bounds = array<i64: 2, 1, 512>}, {pipeline_mode = #tpu.pipeline_mode<synchronous>, transform_indices = @transform_7, window_bounds = array<i64: 2, 512, 128>}, {pipeline_mode = #tpu.pipeline_mode<synchronous>, transform_indices = @transform_8, window_bounds = array<i64: 2, 1, 128>}, {transform_indices = @transform_9, window_bounds = array<i64: 1, 64, 128>}]} {
    %c0 = arith.constant 0 : index
    %c0_0 = arith.constant 0 : index
    %c0_1 = arith.constant 0 : index
    %0 = vector.load %arg1[%c0, %c0_0, %c0_1] : memref<1x64x128xf32, #tpu.memory_space<vmem>>, vector<1x64x128xf32>
    %1 = vector.shape_cast %0 : vector<1x64x128xf32> to vector<64x128xf32>
    %2 = arith.truncf %1 : vector<64x128xf32> to vector<64x128xbf16>
    %c0_2 = arith.constant 0 : index
    %c0_3 = arith.constant 0 : index
    %3 = vector.load %arg2[%c0_2, %c0_3] : memref<128x128xbf16, #tpu.memory_space<vmem>>, vector<128x128xbf16>
    %cst = arith.constant dense<0.000000e+00> : vector<64x128xf32>
    %4 = tpu.matmul %2, %3, %cst {dimension_numbers = #tpu.dot_dimension_numbers<[1], [0], [0], [1], [0, 0, 1, 1], [], []>} : vector<64x128xbf16>, vector<128x128xbf16>, vector<64x128xf32> -> vector<64x128xf32>
    %c0_4 = arith.constant 0 : index
    %c0_5 = arith.constant 0 : index
    %5 = vector.load %arg3[%c0_4, %c0_5] : memref<1x128xf32, #tpu.memory_space<vmem>>, vector<1x128xf32>
    %6 = vector.broadcast %5 : vector<1x128xf32> to vector<64x128xf32>
    %7 = arith.addf %4, %6 : vector<64x128xf32>
    %8 = tpu.iota {dimensions = array<i32: 0>} : vector<64x512xi32>
    %c8_i32 = arith.constant 8 : i32
    %c0_i32 = arith.constant 0 : i32
    %9 = arith.cmpi eq, %c8_i32, %c0_i32 : i32
    %c1_i32 = arith.constant 1 : i32
    %10 = arith.select %9, %c1_i32, %c8_i32 : i32
    %11 = vector.broadcast %10 : i32 to vector<64x512xi32>
    %12 = arith.remsi %8, %11 : vector<64x512xi32>
    %c0_i32_6 = arith.constant 0 : i32
    %13 = vector.broadcast %c0_i32_6 : i32 to vector<64x512xi32>
    %14 = arith.cmpi ne, %12, %13 : vector<64x512xi32>
    %c0_i32_7 = arith.constant 0 : i32
    %15 = vector.broadcast %c0_i32_7 : i32 to vector<64x512xi32>
    %16 = arith.cmpi slt, %12, %15 : vector<64x512xi32>
    %c0_i32_8 = arith.constant 0 : i32
    %17 = arith.cmpi slt, %10, %c0_i32_8 : i32
    %18 = vector.broadcast %17 : i1 to vector<64x512xi1>
    %19 = vector.broadcast %18 : vector<64x512xi1> to vector<64x512xi1>
    %20 = arith.xori %16, %19 : vector<64x512xi1>
    %21 = arith.andi %20, %14 : vector<64x512xi1>
    %22 = vector.broadcast %10 : i32 to vector<64x512xi32>
    %23 = arith.addi %12, %22 : vector<64x512xi32>
    %24 = arith.select %21, %23, %12 : vector<64x512xi1>, vector<64x512xi32>
    %c0_i32_9 = arith.constant 0 : i32
    %25 = vector.broadcast %c0_i32_9 : i32 to vector<64x512xi32>
    %26 = arith.cmpi ne, %24, %25 : vector<64x512xi32>
    %c7_i32 = arith.constant 7 : i32
    %27 = vector.broadcast %c7_i32 : i32 to vector<64x512xi32>
    %28 = arith.cmpi ne, %24, %27 : vector<64x512xi32>
    %cst_10 = arith.constant 0.000000e+00 : f32
    %29 = vector.broadcast %cst_10 : f32 to vector<8x512xf32>
    %30 = arith.truncf %7 : vector<64x128xf32> to vector<64x128xbf16>
    %c0_11 = arith.constant 0 : index
    %c0_12 = arith.constant 0 : index
    %c0_13 = arith.constant 0 : index
    %31 = vector.load %arg4[%c0_11, %c0_12, %c0_13] : memref<2x128x512xbf16, #tpu.memory_space<vmem>>, vector<1x128x512xbf16>
    %32 = vector.shape_cast %31 : vector<1x128x512xbf16> to vector<128x512xbf16>
    %cst_14 = arith.constant dense<0.000000e+00> : vector<64x512xf32>
    %33 = tpu.matmul %30, %32, %cst_14 {dimension_numbers = #tpu.dot_dimension_numbers<[1], [0], [0], [1], [0, 0, 1, 1], [], []>} : vector<64x128xbf16>, vector<128x512xbf16>, vector<64x512xf32> -> vector<64x512xf32>
    %c0_15 = arith.constant 0 : index
    %c0_16 = arith.constant 0 : index
    %c0_17 = arith.constant 0 : index
    %34 = vector.load %arg5[%c0_15, %c0_16, %c0_17] : memref<2x1x512xf32, #tpu.memory_space<vmem>>, vector<1x1x512xf32>
    %35 = vector.shape_cast %34 : vector<1x1x512xf32> to vector<1x512xf32>
    %36 = vector.broadcast %35 : vector<1x512xf32> to vector<64x512xf32>
    %37 = arith.addf %33, %36 : vector<64x512xf32>
    %cst_18 = arith.constant 3.000000e+00 : f32
    %38 = vector.broadcast %cst_18 : f32 to vector<64x512xf32>
    %39 = arith.addf %37, %38 : vector<64x512xf32>
    %cst_19 = arith.constant 0.000000e+00 : f32
    %cst_20 = arith.constant 6.000000e+00 : f32
    %40 = vector.broadcast %cst_19 : f32 to vector<64x512xf32>
    %41 = arith.maximumf %40, %39 : vector<64x512xf32>
    %42 = vector.broadcast %cst_20 : f32 to vector<64x512xf32>
    %43 = arith.minimumf %42, %41 : vector<64x512xf32>
    %44 = arith.mulf %37, %43 : vector<64x512xf32>
    %cst_21 = arith.constant 0.166666672 : f32
    %45 = vector.broadcast %cst_21 : f32 to vector<64x512xf32>
    %46 = arith.mulf %44, %45 : vector<64x512xf32>
    %c0_22 = arith.constant 0 : index
    %c0_23 = arith.constant 0 : index
    %c0_24 = arith.constant 0 : index
    %47 = vector.load %arg6[%c0_22, %c0_23, %c0_24] : memref<2x9x512xf32, #tpu.memory_space<vmem>>, vector<1x9x512xf32>
    %48 = vector.shape_cast %47 : vector<1x9x512xf32> to vector<9x512xf32>
    %c1_i32_25 = arith.constant 1 : i32
    %49 = tpu.dynamic_rotate %46 by %c1_i32_25 dim 0 : vector<64x512xf32>, i32 -> vector<64x512xf32>
    %cst_26 = arith.constant 0.000000e+00 : f32
    %50 = vector.broadcast %cst_26 : f32 to vector<64x512xf32>
    %51 = arith.select %26, %49, %50 : vector<64x512xi1>, vector<64x512xf32>
    %c63_i32 = arith.constant 63 : i32
    %52 = tpu.dynamic_rotate %46 by %c63_i32 dim 0 : vector<64x512xf32>, i32 -> vector<64x512xf32>
    %cst_27 = arith.constant 0.000000e+00 : f32
    %53 = vector.broadcast %cst_27 : f32 to vector<64x512xf32>
    %54 = arith.select %28, %52, %53 : vector<64x512xi1>, vector<64x512xf32>
    %55 = vector.extract_strided_slice %48 {offsets = [0, 0], sizes = [1, 512], strides = [1, 1]} : vector<9x512xf32> to vector<1x512xf32>
    %56 = vector.shape_cast %55 : vector<1x512xf32> to vector<512xf32>
    %57 = vector.shape_cast %56 : vector<512xf32> to vector<1x512xf32>
    %58 = vector.broadcast %57 : vector<1x512xf32> to vector<64x512xf32>
    %59 = arith.mulf %51, %58 : vector<64x512xf32>
    %60 = vector.extract_strided_slice %48 {offsets = [1, 0], sizes = [1, 512], strides = [1, 1]} : vector<9x512xf32> to vector<1x512xf32>
    %61 = vector.shape_cast %60 : vector<1x512xf32> to vector<512xf32>
    %62 = vector.shape_cast %61 : vector<512xf32> to vector<1x512xf32>
    %63 = vector.broadcast %62 : vector<1x512xf32> to vector<64x512xf32>
    %64 = arith.mulf %46, %63 : vector<64x512xf32>
    %65 = arith.addf %59, %64 : vector<64x512xf32>
    %66 = vector.extract_strided_slice %48 {offsets = [2, 0], sizes = [1, 512], strides = [1, 1]} : vector<9x512xf32> to vector<1x512xf32>
    %67 = vector.shape_cast %66 : vector<1x512xf32> to vector<512xf32>
    %68 = vector.shape_cast %67 : vector<512xf32> to vector<1x512xf32>
    %69 = vector.broadcast %68 : vector<1x512xf32> to vector<64x512xf32>
    %70 = arith.mulf %54, %69 : vector<64x512xf32>
    %71 = arith.addf %65, %70 : vector<64x512xf32>
    %72 = vector.extract_strided_slice %48 {offsets = [3, 0], sizes = [1, 512], strides = [1, 1]} : vector<9x512xf32> to vector<1x512xf32>
    %73 = vector.shape_cast %72 : vector<1x512xf32> to vector<512xf32>
    %74 = vector.shape_cast %73 : vector<512xf32> to vector<1x512xf32>
    %75 = vector.broadcast %74 : vector<1x512xf32> to vector<64x512xf32>
    %76 = arith.mulf %51, %75 : vector<64x512xf32>
    %77 = vector.extract_strided_slice %48 {offsets = [4, 0], sizes = [1, 512], strides = [1, 1]} : vector<9x512xf32> to vector<1x512xf32>
    %78 = vector.shape_cast %77 : vector<1x512xf32> to vector<512xf32>
    %79 = vector.shape_cast %78 : vector<512xf32> to vector<1x512xf32>
    %80 = vector.broadcast %79 : vector<1x512xf32> to vector<64x512xf32>
    %81 = arith.mulf %46, %80 : vector<64x512xf32>
    %82 = arith.addf %76, %81 : vector<64x512xf32>
    %83 = vector.extract_strided_slice %48 {offsets = [5, 0], sizes = [1, 512], strides = [1, 1]} : vector<9x512xf32> to vector<1x512xf32>
    %84 = vector.shape_cast %83 : vector<1x512xf32> to vector<512xf32>
    %85 = vector.shape_cast %84 : vector<512xf32> to vector<1x512xf32>
    %86 = vector.broadcast %85 : vector<1x512xf32> to vector<64x512xf32>
    %87 = arith.mulf %54, %86 : vector<64x512xf32>
    %88 = arith.addf %82, %87 : vector<64x512xf32>
    %89 = vector.extract_strided_slice %48 {offsets = [6, 0], sizes = [1, 512], strides = [1, 1]} : vector<9x512xf32> to vector<1x512xf32>
    %90 = vector.shape_cast %89 : vector<1x512xf32> to vector<512xf32>
    %91 = vector.shape_cast %90 : vector<512xf32> to vector<1x512xf32>
    %92 = vector.broadcast %91 : vector<1x512xf32> to vector<64x512xf32>
    %93 = arith.mulf %51, %92 : vector<64x512xf32>
    %94 = vector.extract_strided_slice %48 {offsets = [7, 0], sizes = [1, 512], strides = [1, 1]} : vector<9x512xf32> to vector<1x512xf32>
    %95 = vector.shape_cast %94 : vector<1x512xf32> to vector<512xf32>
    %96 = vector.shape_cast %95 : vector<512xf32> to vector<1x512xf32>
    %97 = vector.broadcast %96 : vector<1x512xf32> to vector<64x512xf32>
    %98 = arith.mulf %46, %97 : vector<64x512xf32>
    %99 = arith.addf %93, %98 : vector<64x512xf32>
    %100 = vector.extract_strided_slice %48 {offsets = [8, 0], sizes = [1, 512], strides = [1, 1]} : vector<9x512xf32> to vector<1x512xf32>
    %101 = vector.shape_cast %100 : vector<1x512xf32> to vector<512xf32>
    %102 = vector.shape_cast %101 : vector<512xf32> to vector<1x512xf32>
    %103 = vector.broadcast %102 : vector<1x512xf32> to vector<64x512xf32>
    %104 = arith.mulf %54, %103 : vector<64x512xf32>
    %105 = arith.addf %99, %104 : vector<64x512xf32>
    %106 = vector.extract_strided_slice %71 {offsets = [0, 0], sizes = [56, 512], strides = [1, 1]} : vector<64x512xf32> to vector<56x512xf32>
    %107 = tpu.concatenate %29, %106 in 0 : vector<8x512xf32>, vector<56x512xf32> -> vector<64x512xf32>
    %108 = arith.addf %88, %107 : vector<64x512xf32>
    %109 = vector.extract_strided_slice %105 {offsets = [8, 0], sizes = [56, 512], strides = [1, 1]} : vector<64x512xf32> to vector<56x512xf32>
    %110 = tpu.concatenate %109, %29 in 0 : vector<56x512xf32>, vector<8x512xf32> -> vector<64x512xf32>
    %111 = arith.addf %108, %110 : vector<64x512xf32>
    %c0_28 = arith.constant 0 : index
    %c0_29 = arith.constant 0 : index
    %c0_30 = arith.constant 0 : index
    %112 = vector.load %arg7[%c0_28, %c0_29, %c0_30] : memref<2x1x512xf32, #tpu.memory_space<vmem>>, vector<1x1x512xf32>
    %113 = vector.shape_cast %112 : vector<1x1x512xf32> to vector<1x512xf32>
    %114 = vector.broadcast %113 : vector<1x512xf32> to vector<64x512xf32>
    %115 = arith.addf %111, %114 : vector<64x512xf32>
    %cst_31 = arith.constant 3.000000e+00 : f32
    %116 = vector.broadcast %cst_31 : f32 to vector<64x512xf32>
    %117 = arith.addf %115, %116 : vector<64x512xf32>
    %cst_32 = arith.constant 0.000000e+00 : f32
    %cst_33 = arith.constant 6.000000e+00 : f32
    %118 = vector.broadcast %cst_32 : f32 to vector<64x512xf32>
    %119 = arith.maximumf %118, %117 : vector<64x512xf32>
    %120 = vector.broadcast %cst_33 : f32 to vector<64x512xf32>
    %121 = arith.minimumf %120, %119 : vector<64x512xf32>
    %122 = arith.mulf %115, %121 : vector<64x512xf32>
    %cst_34 = arith.constant 0.166666672 : f32
    %123 = vector.broadcast %cst_34 : f32 to vector<64x512xf32>
    %124 = arith.mulf %122, %123 : vector<64x512xf32>
    %125 = arith.truncf %124 : vector<64x512xf32> to vector<64x512xbf16>
    %c0_35 = arith.constant 0 : index
    %c0_36 = arith.constant 0 : index
    %c0_37 = arith.constant 0 : index
    %126 = vector.load %arg8[%c0_35, %c0_36, %c0_37] : memref<2x512x128xbf16, #tpu.memory_space<vmem>>, vector<1x512x128xbf16>
    %127 = vector.shape_cast %126 : vector<1x512x128xbf16> to vector<512x128xbf16>
    %cst_38 = arith.constant dense<0.000000e+00> : vector<64x128xf32>
    %128 = tpu.matmul %125, %127, %cst_38 {dimension_numbers = #tpu.dot_dimension_numbers<[1], [0], [0], [1], [0, 0, 1, 1], [], []>} : vector<64x512xbf16>, vector<512x128xbf16>, vector<64x128xf32> -> vector<64x128xf32>
    %c0_39 = arith.constant 0 : index
    %c0_40 = arith.constant 0 : index
    %c0_41 = arith.constant 0 : index
    %129 = vector.load %arg9[%c0_39, %c0_40, %c0_41] : memref<2x1x128xf32, #tpu.memory_space<vmem>>, vector<1x1x128xf32>
    %130 = vector.shape_cast %129 : vector<1x1x128xf32> to vector<1x128xf32>
    %131 = vector.broadcast %130 : vector<1x128xf32> to vector<64x128xf32>
    %132 = arith.addf %128, %131 : vector<64x128xf32>
    %133 = arith.addf %7, %132 : vector<64x128xf32>
    %134 = arith.truncf %133 : vector<64x128xf32> to vector<64x128xbf16>
    %c1 = arith.constant 1 : index
    %c0_42 = arith.constant 0 : index
    %c0_43 = arith.constant 0 : index
    %135 = vector.load %arg4[%c1, %c0_42, %c0_43] : memref<2x128x512xbf16, #tpu.memory_space<vmem>>, vector<1x128x512xbf16>
    %136 = vector.shape_cast %135 : vector<1x128x512xbf16> to vector<128x512xbf16>
    %cst_44 = arith.constant dense<0.000000e+00> : vector<64x512xf32>
    %137 = tpu.matmul %134, %136, %cst_44 {dimension_numbers = #tpu.dot_dimension_numbers<[1], [0], [0], [1], [0, 0, 1, 1], [], []>} : vector<64x128xbf16>, vector<128x512xbf16>, vector<64x512xf32> -> vector<64x512xf32>
    %c1_45 = arith.constant 1 : index
    %c0_46 = arith.constant 0 : index
    %c0_47 = arith.constant 0 : index
    %138 = vector.load %arg5[%c1_45, %c0_46, %c0_47] : memref<2x1x512xf32, #tpu.memory_space<vmem>>, vector<1x1x512xf32>
    %139 = vector.shape_cast %138 : vector<1x1x512xf32> to vector<1x512xf32>
    %140 = vector.broadcast %139 : vector<1x512xf32> to vector<64x512xf32>
    %141 = arith.addf %137, %140 : vector<64x512xf32>
    %cst_48 = arith.constant 3.000000e+00 : f32
    %142 = vector.broadcast %cst_48 : f32 to vector<64x512xf32>
    %143 = arith.addf %141, %142 : vector<64x512xf32>
    %cst_49 = arith.constant 0.000000e+00 : f32
    %cst_50 = arith.constant 6.000000e+00 : f32
    %144 = vector.broadcast %cst_49 : f32 to vector<64x512xf32>
    %145 = arith.maximumf %144, %143 : vector<64x512xf32>
    %146 = vector.broadcast %cst_50 : f32 to vector<64x512xf32>
    %147 = arith.minimumf %146, %145 : vector<64x512xf32>
    %148 = arith.mulf %141, %147 : vector<64x512xf32>
    %cst_51 = arith.constant 0.166666672 : f32
    %149 = vector.broadcast %cst_51 : f32 to vector<64x512xf32>
    %150 = arith.mulf %148, %149 : vector<64x512xf32>
    %c1_52 = arith.constant 1 : index
    %c0_53 = arith.constant 0 : index
    %c0_54 = arith.constant 0 : index
    %151 = vector.load %arg6[%c1_52, %c0_53, %c0_54] : memref<2x9x512xf32, #tpu.memory_space<vmem>>, vector<1x9x512xf32>
    %152 = vector.shape_cast %151 : vector<1x9x512xf32> to vector<9x512xf32>
    %c1_i32_55 = arith.constant 1 : i32
    %153 = tpu.dynamic_rotate %150 by %c1_i32_55 dim 0 : vector<64x512xf32>, i32 -> vector<64x512xf32>
    %cst_56 = arith.constant 0.000000e+00 : f32
    %154 = vector.broadcast %cst_56 : f32 to vector<64x512xf32>
    %155 = arith.select %26, %153, %154 : vector<64x512xi1>, vector<64x512xf32>
    %c63_i32_57 = arith.constant 63 : i32
    %156 = tpu.dynamic_rotate %150 by %c63_i32_57 dim 0 : vector<64x512xf32>, i32 -> vector<64x512xf32>
    %cst_58 = arith.constant 0.000000e+00 : f32
    %157 = vector.broadcast %cst_58 : f32 to vector<64x512xf32>
    %158 = arith.select %28, %156, %157 : vector<64x512xi1>, vector<64x512xf32>
    %159 = vector.extract_strided_slice %152 {offsets = [0, 0], sizes = [1, 512], strides = [1, 1]} : vector<9x512xf32> to vector<1x512xf32>
    %160 = vector.shape_cast %159 : vector<1x512xf32> to vector<512xf32>
    %161 = vector.shape_cast %160 : vector<512xf32> to vector<1x512xf32>
    %162 = vector.broadcast %161 : vector<1x512xf32> to vector<64x512xf32>
    %163 = arith.mulf %155, %162 : vector<64x512xf32>
    %164 = vector.extract_strided_slice %152 {offsets = [1, 0], sizes = [1, 512], strides = [1, 1]} : vector<9x512xf32> to vector<1x512xf32>
    %165 = vector.shape_cast %164 : vector<1x512xf32> to vector<512xf32>
    %166 = vector.shape_cast %165 : vector<512xf32> to vector<1x512xf32>
    %167 = vector.broadcast %166 : vector<1x512xf32> to vector<64x512xf32>
    %168 = arith.mulf %150, %167 : vector<64x512xf32>
    %169 = arith.addf %163, %168 : vector<64x512xf32>
    %170 = vector.extract_strided_slice %152 {offsets = [2, 0], sizes = [1, 512], strides = [1, 1]} : vector<9x512xf32> to vector<1x512xf32>
    %171 = vector.shape_cast %170 : vector<1x512xf32> to vector<512xf32>
    %172 = vector.shape_cast %171 : vector<512xf32> to vector<1x512xf32>
    %173 = vector.broadcast %172 : vector<1x512xf32> to vector<64x512xf32>
    %174 = arith.mulf %158, %173 : vector<64x512xf32>
    %175 = arith.addf %169, %174 : vector<64x512xf32>
    %176 = vector.extract_strided_slice %152 {offsets = [3, 0], sizes = [1, 512], strides = [1, 1]} : vector<9x512xf32> to vector<1x512xf32>
    %177 = vector.shape_cast %176 : vector<1x512xf32> to vector<512xf32>
    %178 = vector.shape_cast %177 : vector<512xf32> to vector<1x512xf32>
    %179 = vector.broadcast %178 : vector<1x512xf32> to vector<64x512xf32>
    %180 = arith.mulf %155, %179 : vector<64x512xf32>
    %181 = vector.extract_strided_slice %152 {offsets = [4, 0], sizes = [1, 512], strides = [1, 1]} : vector<9x512xf32> to vector<1x512xf32>
    %182 = vector.shape_cast %181 : vector<1x512xf32> to vector<512xf32>
    %183 = vector.shape_cast %182 : vector<512xf32> to vector<1x512xf32>
    %184 = vector.broadcast %183 : vector<1x512xf32> to vector<64x512xf32>
    %185 = arith.mulf %150, %184 : vector<64x512xf32>
    %186 = arith.addf %180, %185 : vector<64x512xf32>
    %187 = vector.extract_strided_slice %152 {offsets = [5, 0], sizes = [1, 512], strides = [1, 1]} : vector<9x512xf32> to vector<1x512xf32>
    %188 = vector.shape_cast %187 : vector<1x512xf32> to vector<512xf32>
    %189 = vector.shape_cast %188 : vector<512xf32> to vector<1x512xf32>
    %190 = vector.broadcast %189 : vector<1x512xf32> to vector<64x512xf32>
    %191 = arith.mulf %158, %190 : vector<64x512xf32>
    %192 = arith.addf %186, %191 : vector<64x512xf32>
    %193 = vector.extract_strided_slice %152 {offsets = [6, 0], sizes = [1, 512], strides = [1, 1]} : vector<9x512xf32> to vector<1x512xf32>
    %194 = vector.shape_cast %193 : vector<1x512xf32> to vector<512xf32>
    %195 = vector.shape_cast %194 : vector<512xf32> to vector<1x512xf32>
    %196 = vector.broadcast %195 : vector<1x512xf32> to vector<64x512xf32>
    %197 = arith.mulf %155, %196 : vector<64x512xf32>
    %198 = vector.extract_strided_slice %152 {offsets = [7, 0], sizes = [1, 512], strides = [1, 1]} : vector<9x512xf32> to vector<1x512xf32>
    %199 = vector.shape_cast %198 : vector<1x512xf32> to vector<512xf32>
    %200 = vector.shape_cast %199 : vector<512xf32> to vector<1x512xf32>
    %201 = vector.broadcast %200 : vector<1x512xf32> to vector<64x512xf32>
    %202 = arith.mulf %150, %201 : vector<64x512xf32>
    %203 = arith.addf %197, %202 : vector<64x512xf32>
    %204 = vector.extract_strided_slice %152 {offsets = [8, 0], sizes = [1, 512], strides = [1, 1]} : vector<9x512xf32> to vector<1x512xf32>
    %205 = vector.shape_cast %204 : vector<1x512xf32> to vector<512xf32>
    %206 = vector.shape_cast %205 : vector<512xf32> to vector<1x512xf32>
    %207 = vector.broadcast %206 : vector<1x512xf32> to vector<64x512xf32>
    %208 = arith.mulf %158, %207 : vector<64x512xf32>
    %209 = arith.addf %203, %208 : vector<64x512xf32>
    %210 = vector.extract_strided_slice %175 {offsets = [0, 0], sizes = [56, 512], strides = [1, 1]} : vector<64x512xf32> to vector<56x512xf32>
    %211 = tpu.concatenate %29, %210 in 0 : vector<8x512xf32>, vector<56x512xf32> -> vector<64x512xf32>
    %212 = arith.addf %192, %211 : vector<64x512xf32>
    %213 = vector.extract_strided_slice %209 {offsets = [8, 0], sizes = [56, 512], strides = [1, 1]} : vector<64x512xf32> to vector<56x512xf32>
    %214 = tpu.concatenate %213, %29 in 0 : vector<56x512xf32>, vector<8x512xf32> -> vector<64x512xf32>
    %215 = arith.addf %212, %214 : vector<64x512xf32>
    %c1_59 = arith.constant 1 : index
    %c0_60 = arith.constant 0 : index
    %c0_61 = arith.constant 0 : index
    %216 = vector.load %arg7[%c1_59, %c0_60, %c0_61] : memref<2x1x512xf32, #tpu.memory_space<vmem>>, vector<1x1x512xf32>
    %217 = vector.shape_cast %216 : vector<1x1x512xf32> to vector<1x512xf32>
    %218 = vector.broadcast %217 : vector<1x512xf32> to vector<64x512xf32>
    %219 = arith.addf %215, %218 : vector<64x512xf32>
    %cst_62 = arith.constant 3.000000e+00 : f32
    %220 = vector.broadcast %cst_62 : f32 to vector<64x512xf32>
    %221 = arith.addf %219, %220 : vector<64x512xf32>
    %cst_63 = arith.constant 0.000000e+00 : f32
    %cst_64 = arith.constant 6.000000e+00 : f32
    %222 = vector.broadcast %cst_63 : f32 to vector<64x512xf32>
    %223 = arith.maximumf %222, %221 : vector<64x512xf32>
    %224 = vector.broadcast %cst_64 : f32 to vector<64x512xf32>
    %225 = arith.minimumf %224, %223 : vector<64x512xf32>
    %226 = arith.mulf %219, %225 : vector<64x512xf32>
    %cst_65 = arith.constant 0.166666672 : f32
    %227 = vector.broadcast %cst_65 : f32 to vector<64x512xf32>
    %228 = arith.mulf %226, %227 : vector<64x512xf32>
    %229 = arith.truncf %228 : vector<64x512xf32> to vector<64x512xbf16>
    %c1_66 = arith.constant 1 : index
    %c0_67 = arith.constant 0 : index
    %c0_68 = arith.constant 0 : index
    %230 = vector.load %arg8[%c1_66, %c0_67, %c0_68] : memref<2x512x128xbf16, #tpu.memory_space<vmem>>, vector<1x512x128xbf16>
    %231 = vector.shape_cast %230 : vector<1x512x128xbf16> to vector<512x128xbf16>
    %cst_69 = arith.constant dense<0.000000e+00> : vector<64x128xf32>
    %232 = tpu.matmul %229, %231, %cst_69 {dimension_numbers = #tpu.dot_dimension_numbers<[1], [0], [0], [1], [0, 0, 1, 1], [], []>} : vector<64x512xbf16>, vector<512x128xbf16>, vector<64x128xf32> -> vector<64x128xf32>
    %c1_70 = arith.constant 1 : index
    %c0_71 = arith.constant 0 : index
    %c0_72 = arith.constant 0 : index
    %233 = vector.load %arg9[%c1_70, %c0_71, %c0_72] : memref<2x1x128xf32, #tpu.memory_space<vmem>>, vector<1x1x128xf32>
    %234 = vector.shape_cast %233 : vector<1x1x128xf32> to vector<1x128xf32>
    %235 = vector.broadcast %234 : vector<1x128xf32> to vector<64x128xf32>
    %236 = arith.addf %232, %235 : vector<64x128xf32>
    %237 = arith.addf %133, %236 : vector<64x128xf32>
    %c0_73 = arith.constant 0 : index
    %c0_74 = arith.constant 0 : index
    %c0_75 = arith.constant 0 : index
    %238 = vector.load %arg10[%c0_73, %c0_74, %c0_75] : memref<1x64x128xf32, #tpu.memory_space<vmem>>, vector<1x64x128xf32>
    %239 = vector.shape_cast %238 : vector<1x64x128xf32> to vector<64x128xf32>
    %240 = vector.shape_cast %237 : vector<64x128xf32> to vector<1x64x128xf32>
    tpu.vector_store %arg10[%c0_73, %c0_74, %c0_75], %240 {strides = array<i32>} : memref<1x64x128xf32, #tpu.memory_space<vmem>>, vector<1x64x128xf32>,
    return
  }
  func.func @transform_0(%arg0: i32) -> (i32, i32, i32) {
    %c0_i32 = arith.constant 0 : i32
    %c0_i32_0 = arith.constant 0 : i32
    %c0_i32_1 = arith.constant 0 : i32
    return %arg0, %c0_i32, %c0_i32_0 : i32, i32, i32
  }
  func.func @transform_1(%arg0: i32) -> (i32, i32) {
    %c0_i32 = arith.constant 0 : i32
    %c0_i32_0 = arith.constant 0 : i32
    %c0_i32_1 = arith.constant 0 : i32
    return %c0_i32, %c0_i32_0 : i32, i32
  }
  func.func @transform_2(%arg0: i32) -> (i32, i32) {
    %c0_i32 = arith.constant 0 : i32
    %c0_i32_0 = arith.constant 0 : i32
    %c0_i32_1 = arith.constant 0 : i32
    return %c0_i32, %c0_i32_0 : i32, i32
  }
  func.func @transform_3(%arg0: i32) -> (i32, i32, i32) {
    %c0_i32 = arith.constant 0 : i32
    %c0_i32_0 = arith.constant 0 : i32
    %c0_i32_1 = arith.constant 0 : i32
    %c0_i32_2 = arith.constant 0 : i32
    return %c0_i32, %c0_i32_0, %c0_i32_1 : i32, i32, i32
  }
  func.func @transform_4(%arg0: i32) -> (i32, i32, i32) {
    %c0_i32 = arith.constant 0 : i32
    %c0_i32_0 = arith.constant 0 : i32
    %c0_i32_1 = arith.constant 0 : i32
    %c0_i32_2 = arith.constant 0 : i32
    return %c0_i32, %c0_i32_0, %c0_i32_1 : i32, i32, i32
  }
  func.func @transform_5(%arg0: i32) -> (i32, i32, i32) {
    %c0_i32 = arith.constant 0 : i32
    %c0_i32_0 = arith.constant 0 : i32
    %c0_i32_1 = arith.constant 0 : i32
    %c0_i32_2 = arith.constant 0 : i32
    return %c0_i32, %c0_i32_0, %c0_i32_1 : i32, i32, i32
  }
  func.func @transform_6(%arg0: i32) -> (i32, i32, i32) {
    %c0_i32 = arith.constant 0 : i32
    %c0_i32_0 = arith.constant 0 : i32
    %c0_i32_1 = arith.constant 0 : i32
    %c0_i32_2 = arith.constant 0 : i32
    return %c0_i32, %c0_i32_0, %c0_i32_1 : i32, i32, i32
  }
  func.func @transform_7(%arg0: i32) -> (i32, i32, i32) {
    %c0_i32 = arith.constant 0 : i32
    %c0_i32_0 = arith.constant 0 : i32
    %c0_i32_1 = arith.constant 0 : i32
    %c0_i32_2 = arith.constant 0 : i32
    return %c0_i32, %c0_i32_0, %c0_i32_1 : i32, i32, i32
  }
  func.func @transform_8(%arg0: i32) -> (i32, i32, i32) {
    %c0_i32 = arith.constant 0 : i32
    %c0_i32_0 = arith.constant 0 : i32
    %c0_i32_1 = arith.constant 0 : i32
    %c0_i32_2 = arith.constant 0 : i32
    return %c0_i32, %c0_i32_0, %c0_i32_1 : i32, i32, i32
  }
  func.func @transform_9(%arg0: i32) -> (i32, i32, i32) {
    %c0_i32 = arith.constant 0 : i32
    %c0_i32_0 = arith.constant 0 : i32
    %c0_i32_1 = arith.constant 0 : i32
    return %arg0, %c0_i32, %c0_i32_0 : i32, i32, i32
  }
}

</mosaic_0001>

<bundles_post_ra>
// kernel: mask_feature_decoder_forward.1
= control target key start
LH: loop header
LB: loop body
LE: loop exit
PB: predicated region body
PF: predicated region fallthrough
CT: control target
= control target key end

     0   :  { %14 = vsyncpa [#allocation3], 0  ;;  %s9187_s0 = inlined_call_operand.vmem [shape: f32[2,64,128], index: 0, kind: input, shape index: {}]   ;;  %s9188_s1 = inlined_call_operand.vmem [shape: bf16[128,128], index: 1, kind: input, shape index: {}]   ;;  %s9189_s2 = inlined_call_operand.hbm [shape: f32[1,128], index: 2, kind: input, shape index: {}]   ;;  %s9190_s3 = inlined_call_operand.hbm [shape: bf16[2,128,512], index: 3, kind: input, shape index: {}]   ;;  %s9191_s4 = inlined_call_operand.vmem [shape: f32[2,1,512], index: 4, kind: input, shape index: {}]   ;;  %s9192_s5 = inlined_call_operand.vmem [shape: f32[2,9,512], index: 5, kind: input, shape index: {}]   ;;  %s9193_s6 = inlined_call_operand.hbm [shape: f32[2,1,512], index: 6, kind: input, shape index: {}]   ;;  %s9194_s7 = inlined_call_operand.hbm [shape: bf16[2,512,128], index: 7, kind: input, shape index: {}]   ;;  %s9195_s8 = inlined_call_operand.vmem [shape: f32[2,1,128], index: 8, kind: input, shape index: {}]   ;;  %s9196_s9 = inlined_call_operand.vmem [shape: f32[2,64,128], index: 9, kind: output, shape index: {}]  }
   0x1   :  { %15 = vsyncpa [#allocation5], 0 }
   0x2   :  { %16 = vsyncpa [#allocation8], 0  ;;  %s5385_s30 = smov 0  }
   0x3 LB: > { %s273_s12 = sshll.u32 %s9190_s3, 4  ;;  %s5394_s13 = sadd.s32 4294967295, %s5325_s30   ;;  %s5325_s30 = sphi %s5385_s30, %s22_s30   ;;  %s274_s12 = int_to_ptr.hbm [resolvable:$true] %s273_s12 }
   0x4   : > { %p4390_p0 = scmp.ge.s32.totalorder %s5325_s30, 1  ;;  %p247_p1 = scmp.lt.s32.totalorder %s5325_s30, 3 }
   0x5   : > { %p5144_p2 = scmp.eq.s32.totalorder %s5394_s13, 0  ;;  %s5327_s15 = smov [#allocation4]  }
   0x6   : > { %p5399_p3 = pnand %p4390_p0, %p247_p1  ;;  %s275_s16 = sshll.u32 %s5327_s15, 4  ;;  %s276_s16 = int_to_ptr.vmem [resolvable:$true] %s275_s16 }
   0x7   : > { %s262_s19 = sshll.u32 %s9189_s2, 4  ;;  %s5328_s21 = smov [#allocation2]   ;;  %s263_s19 = int_to_ptr.hbm [resolvable:$true] %s262_s19 }
   0x8   : > { %p5131_p4 = pneg %p5399_p3  ;;  %s264_s22 = sshll.u32 %s5328_s21, 4  ;;  %s265_s22 = int_to_ptr.vmem [resolvable:$true] %s264_s22 }
   0x9   : > { %s293_s25 = sshll.u32 %s9193_s6, 4  ;;  %s5329_s26 = smov 256   ;;  %s294_s25 = int_to_ptr.hbm [resolvable:$true] %s293_s25 }
   0xa   : > { %p5410_p5 = pnand %p5144_p2, %p5131_p4  ;;  %s5330_s27 = smov 16  }
   0xb   : > { %s5331_s28 = smov [#allocation6]   ;;  %s5332_s10 = smov 64  }
   0xc   : > { %5137 = dma.hbm_to_vmem [thread:$0]  (!%p5410_p5), %s274_s12, 8192, %s276_s16, [#allocation5], %s5329_s26, %s5329_s26, %s5330_s27  }
   0xd   : > { %5134 = dma.hbm_to_vmem [thread:$0]  (!%p5410_p5), %s263_s19, 16, %s265_s22, [#allocation3]  }
   0xe   : > { %s295_s29 = sshll.u32 %s5331_s28, 4  ;;  %s5333_s11 = smov 4   ;;  %s296_s29 = int_to_ptr.vmem [resolvable:$true] %s295_s29 }
   0xf   : > { %5140 = dma.hbm_to_vmem [thread:$0]  (!%p5410_p5), %s294_s25, 128, %s296_s29, [#allocation5], %s5332_s10, %s5332_s10, %s5333_s11  }
  0x10   : > { %s307_s18 = sshll.u32 %s9194_s7, 4  ;;  %s5334_s21 = smov [#allocation7]   ;;  %s308_s18 = int_to_ptr.hbm [resolvable:$true] %s307_s18 }
  0x11   : > { %s309_s23 = sshll.u32 %s5334_s21, 4  ;;  %336 = sbr.rel (%p5399_p3) target bundleno = 1317 (0x525), region = 56  ;;  %s310_s23 = int_to_ptr.vmem [resolvable:$true] %s309_s23 }
  0x12   : > { %5143 = dma.hbm_to_vmem [thread:$0]  (!%p5410_p5), %s308_s18, 8192, %s310_s23, [#allocation8], %s5332_s10, %s5332_s10, %s5333_s11  }
  0x16   : > { %5312 = dma.done.wait (%p5144_p2), [#allocation3], 16  }
  0x17   : > { %5314 = vsyncadd (%p5144_p2), [#allocation3], 4294967280 }
  0x18   : > { %5316 = dma.done.wait (%p5144_p2), [#allocation5], 8320  }
  0x19   : > { %5318 = vsyncadd (%p5144_p2), [#allocation5], 4294958976 }
  0x1a   : > { %5320 = dma.done.wait (%p5144_p2), [#allocation8], 8192  }
  0x1b   : > { %5322 = vsyncadd (%p5144_p2), [#allocation8], 4294959104  ;;  %v4970_v0 = vld [vmem:[%s9188_s1 + $0x38] sm:$0xff]  ;;  %v4969_v1 = vld [vmem:[%s9188_s1 + $0x30] sm:$0xff]  ;;  %p388_p6 = scmp.lt.s32.totalorder %s5394_s13, 1 }
  0x1c   : > { %478 = vmatpush.bf16.msra.mxu0 %v4970_v0  ;;  %5099 = vmatpush.bf16.msra.mxu1 %v4970_v0  ;;  %v4968_v2 = vld [vmem:[%s9188_s1 + $0x28] sm:$0xff]  ;;  %v4967_v3 = vld [vmem:[%s9188_s1 + $0x20] sm:$0xff]  ;;  %v4966_v4 = vld [vmem:[%s9188_s1 + $0x18] sm:$0xff] }
  0x1d   : > { %s10592_s13 = smov (!%p388_p6, %s5394_s13), 1  ;;  %v4965_v5 = vld [vmem:[%s9188_s1 + $0x10] sm:$0xff]  ;;  %v4999_v6 = vld [vmem:[#allocation4 + $0xe4] sm:$0xf]  ;;  %v4559_v8 = vld [vmem:[#allocation4 + $0xe8] sm:$0xf] }
  0x1e   : > { %s4961_s10 = sshll.u32 %s10592_s13, 6  ;;  %v4553_v7 = vld [vmem:[#allocation4 + $0xf0] sm:$0xf0]  ;;  %v5002_v10 = vld [vmem:[#allocation4 + $0xf4] sm:$0xf0]  ;;  %v4964_v11 = vld [vmem:[%s9188_s1 + $0x8] sm:$0xff] }
  0x1f   : > { %v4556_v9 = vor.u32 %v4999_v6, %v4553_v7  ;;  %s5473_s21 = scalar_lea.vmem %s9187_s0, %s4961_s10  ;;  %v4560_v12 = vor.u32 %v5002_v10, %v4559_v8  ;;  %v4995_v13 = vld [vmem:[#allocation4 + $0xc4] sm:$0xf]  ;;  %v4537_v14 = vld [vmem:[#allocation4 + $0xd0] sm:$0xf0]  ;;  %v4543_v15 = vld [vmem:[#allocation4 + $0xc8] sm:$0xf]  ;;  %s9160_s22 = scalar_lea.vmem %s9196_s9, %s4961_s10 }
  0x20   : > { %479 = vmatpush.bf16.msra.mxu0 %v4969_v1  ;;  %5100 = vmatpush.bf16.msra.mxu1 %v4969_v1  ;;  %v4998_v16 = vld [vmem:[#allocation4 + $0xd4] sm:$0xf0]  ;;  %v4551_v17 = vld [vmem:[#allocation4 + $0xe0] sm:$0xf]  ;;  %v5001_v18 = vld [vmem:[#allocation4 + $0xec] sm:$0xf0]  ;;  %v4540_v19 = vor.u32 %v4995_v13, %v4537_v14 }
  0x21   : > { %863 = vmatpush.bf16.msra.mxu2 %v4556_v9  ;;  %892 = vmatpush.bf16.msra.mxu3 %v4560_v12  ;;  %v4544_v20 = vor.u32 %v4998_v16, %v4543_v15  ;;  %v4963_v21 = vld [vmem:[%s9188_s1] sm:$0xff]  ;;  %v5000_v23 = vld [vmem:[#allocation4 + $0xec] sm:$0xf]  ;;  %v4521_v26 = vld [vmem:[#allocation4 + $0xb0] sm:$0xf0]  ;;  %v4552_v32 = vor.u32 %v5001_v18, %v4551_v17 }
  0x22   : > { %v398_v22 = vld [vmem:[%s5473_s21] sm:$0xff]  ;;  %v4527_v27 = vld [vmem:[#allocation4 + $0xa8] sm:$0xf]  ;;  %v4994_v28 = vld [vmem:[#allocation4 + $0xb4] sm:$0xf0] }
  0x23   : > { %v4561_v24 = vld [vmem:[#allocation4 + $0xf8] sm:$0xf0]  ;;  %v4991_v25 = vld [vmem:[#allocation4 + $0xa4] sm:$0xf]  ;;  %v4535_v34 = vld [vmem:[#allocation4 + $0xc0] sm:$0xf]  ;;  %v4528_v39 = vor.u32 %v4994_v28, %v4527_v27 }
  0x24   : > { %480 = vmatpush.bf16.msra.mxu0 %v4968_v2  ;;  %5101 = vmatpush.bf16.msra.mxu1 %v4968_v2  ;;  %v399_v29 = vld [vmem:[%s5473_s21 + $0x8] sm:$0xff]  ;;  %v402_v30 = vld [vmem:[%s5473_s21 + $0x20] sm:$0xff]  ;;  %v4564_v33 = vor.u32 %v5000_v23, %v4561_v24  ;;  %v4997_v35 = vld [vmem:[#allocation4 + $0xcc] sm:$0xf0]  ;;  %v4524_v38 = vor.u32 %v4991_v25, %v4521_v26 }
  0x25   : > { %v403_v31 = vld [vmem:[%s5473_s21 + $0x28] sm:$0xff]  ;;  %864 = vmatpush.bf16.msra.mxu2 %v4540_v19  ;;  %893 = vmatpush.bf16.msra.mxu3 %v4544_v20  ;;  %v4545_v37 = vld [vmem:[#allocation4 + $0xd8] sm:$0xf0]  ;;  %v406_v41 = vpack.c.bf16 %v399_v29, %v398_v22  ;;  %v4505_v43 = vld [vmem:[#allocation4 + $0x90] sm:$0xf0]  ;;  %v4536_v46 = vor.u32 %v4997_v35, %v4535_v34 }
  0x26   : > { %v4996_v36 = vld [vmem:[#allocation4 + $0xcc] sm:$0xf]  ;;  %v4987_v40 = vld [vmem:[#allocation4 + $0x84] sm:$0xf]  ;;  %v408_v42 = vpack.c.bf16 %v403_v31, %v402_v30  ;;  %v4511_v44 = vld [vmem:[#allocation4 + $0x88] sm:$0xf] }
  0x27   : > { %v4990_v45 = vld [vmem:[#allocation4 + $0x94] sm:$0xf0]  ;;  %v4548_v47 = vor.u32 %v4996_v36, %v4545_v37  ;;  %v4519_v48 = vld [vmem:[#allocation4 + $0xa0] sm:$0xf]  ;;  %v4993_v49 = vld [vmem:[#allocation4 + $0xac] sm:$0xf0]  ;;  %v4508_v52 = vor.u32 %v4987_v40, %v4505_v43 }
  0x28   : > { %481 = vmatpush.bf16.msra.mxu0 %v4967_v3  ;;  %5102 = vmatpush.bf16.msra.mxu1 %v4967_v3  ;;  %v4992_v50 = vld [vmem:[#allocation4 + $0xac] sm:$0xf]  ;;  %v4529_v51 = vld [vmem:[#allocation4 + $0xb8] sm:$0xf0]  ;;  %v4512_v53 = vor.u32 %v4990_v45, %v4511_v44  ;;  %v4983_v54 = vld [vmem:[#allocation4 + $0x64] sm:$0xf]  ;;  %v4520_v58 = vor.u32 %v4993_v49, %v4519_v48 }
  0x29   : > { %865 = vmatpush.bf16.msra.mxu2 %v4524_v38  ;;  %894 = vmatpush.bf16.msra.mxu3 %v4528_v39  ;;  %v4489_v55 = vld [vmem:[#allocation4 + $0x70] sm:$0xf0]  ;;  %v4495_v56 = vld [vmem:[#allocation4 + $0x68] sm:$0xf]  ;;  %v4986_v57 = vld [vmem:[#allocation4 + $0x74] sm:$0xf0]  ;;  %v4532_v59 = vor.u32 %v4992_v50, %v4529_v51 }
  0x2a   : > { %v4503_v60 = vld [vmem:[#allocation4 + $0x80] sm:$0xf]  ;;  %v4989_v61 = vld [vmem:[#allocation4 + $0x8c] sm:$0xf0]  ;;  %v4988_v62 = vld [vmem:[#allocation4 + $0x8c] sm:$0xf]  ;;  %v4492_v0 = vor.u32 %v4983_v54, %v4489_v55  ;;  %v4496_v1 = vor.u32 %v4986_v57, %v4495_v56 }
  0x2b   : > { %v4513_v63 = vld [vmem:[#allocation4 + $0x98] sm:$0xf0]  ;;  %v4504_v2 = vor.u32 %v4989_v61, %v4503_v60  ;;  %v4984_v6 = vld [vmem:[#allocation4 + $0x6c] sm:$0xf]  ;;  %v4471_v16 = vld [vmem:[#allocation4 + $0x40] sm:$0xf] }
  0x2c   : > { %482 = vmatpush.bf16.msra.mxu0 %v4966_v4  ;;  %5103 = vmatpush.bf16.msra.mxu1 %v4966_v4  ;;  %v4516_v3 = vor.u32 %v4988_v62, %v4513_v63  ;;  %v4487_v4 = vld [vmem:[#allocation4 + $0x60] sm:$0xf]  ;;  %v4497_v7 = vld [vmem:[#allocation4 + $0x78] sm:$0xf0]  ;;  %v400_v8 = vld [vmem:[%s5473_s21 + $0x10] sm:$0xff] }
  0x2d   : > { %866 = vmatpush.bf16.msra.mxu2 %v4508_v52  ;;  %895 = vmatpush.bf16.msra.mxu3 %v4512_v53  ;;  %v401_v9 = vld [vmem:[%s5473_s21 + $0x18] sm:$0xff]  ;;  %v404_v10 = vld [vmem:[%s5473_s21 + $0x30] sm:$0xff]  ;;  %v4500_v13 = vor.u32 %v4984_v6, %v4497_v7  ;;  %v4979_v18 = vld [vmem:[#allocation4 + $0x44] sm:$0xf] }
  0x2e   : > { %v407_v14 = vpack.c.bf16 %v401_v9, %v400_v8  ;;  %v4981_v17 = vld [vmem:[#allocation4 + $0x4c] sm:$0xf0]  ;;  %v4473_v20 = vld [vmem:[#allocation4 + $0x50] sm:$0xf0]  ;;  %v4982_v22 = vld [vmem:[#allocation4 + $0x54] sm:$0xf0] }
  0x2f   : > { %v4472_v19 = vor.u32 %v4981_v17, %v4471_v16  ;;  %v4476_v23 = vor.u32 %v4979_v18, %v4473_v20  ;;  %v4980_v25 = vld [vmem:[#allocation4 + $0x4c] sm:$0xf]  ;;  %v4481_v26 = vld [vmem:[#allocation4 + $0x58] sm:$0xf0]  ;;  %v4455_v27 = vld [vmem:[#allocation4 + $0x20] sm:$0xf] }
  0x30   : > { %483 = vmatpush.bf16.msra.mxu0 %v4965_v5  ;;  %5104 = vmatpush.bf16.msra.mxu1 %v4965_v5  ;;  %v4985_v5 = vld [vmem:[#allocation4 + $0x6c] sm:$0xf0]  ;;  %v4484_v28 = vor.u32 %v4980_v25, %v4481_v26  ;;  %v4975_v30 = vld [vmem:[#allocation4 + $0x24] sm:$0xf]  ;;  %v4457_v31 = vld [vmem:[#allocation4 + $0x30] sm:$0xf0] }
  0x31   : > { %867 = vmatpush.bf16.msra.mxu2 %v4492_v0  ;;  %896 = vmatpush.bf16.msra.mxu3 %v4496_v1  ;;  %v4488_v12 = vor.u32 %v4985_v5, %v4487_v4  ;;  %v4977_v29 = vld [vmem:[#allocation4 + $0x2c] sm:$0xf0]  ;;  %v4463_v34 = vld [vmem:[#allocation4 + $0x28] sm:$0xf]  ;;  %v4978_v35 = vld [vmem:[#allocation4 + $0x34] sm:$0xf0] }
  0x32   : > { %v4976_v36 = vld [vmem:[#allocation4 + $0x2c] sm:$0xf]  ;;  %v4464_v37 = vor.u32 %v4978_v35, %v4463_v34  ;;  %v4465_v38 = vld [vmem:[#allocation4 + $0x38] sm:$0xf0]  ;;  %v4439_v40 = vld [vmem:[#allocation4] sm:$0xf] }
  0x33   : > { %v4468_v39 = vor.u32 %v4976_v36, %v4465_v38  ;;  %v4441_v44 = vld [vmem:[#allocation4 + $0x10] sm:$0xf0]  ;;  %v4447_v45 = vld [vmem:[#allocation4 + $0x8] sm:$0xf]  ;;  %v4972_v49 = vld [vmem:[#allocation4 + $0xc] sm:$0xf] }
  0x34   : > { %484 = vmatpush.bf16.msra.mxu0 %v4964_v11  ;;  %5105 = vmatpush.bf16.msra.mxu1 %v4964_v11  ;;  %v405_v11 = vld [vmem:[%s5473_s21 + $0x38] sm:$0xff]  ;;  %v5168_v53 = vld [vmem:[#allocation2] ss:$0 sm:$0xff] }
  0x35   : > { %v409_v15 = vpack.c.bf16 %v405_v11, %v404_v10  ;;  %868 = vmatpush.bf16.msra.mxu2 %v4476_v23  ;;  %v4449_v50 = vld [vmem:[#allocation4 + $0x18] sm:$0xf0]  ;;  %v507_v10 = vlaneseq }
  0x36   : > { %v4452_v51 = vor.u32 %v4972_v49, %v4449_v50  ;;  %v664_v9 = vld [vmem:[%s9191_s4] sm:$0xf]  ;;  %v5528_v18 = vld [vmem:[%s9192_s5 + $0x18] sm:$0xff] }
  0x37   : > { %v5513_v11 = vperm.slane %v664_v9, 0  ;;  %9575 = vst [vmem:[#allocation20_spill] sm:$0xff] %v5528_v18  ;;  %v5580_v49 = vperm.slane %v5528_v18, 3 }
  0x38   : > { %485 = vmatpush.bf16.msra.mxu0 %v4963_v21  ;;  %5106 = vmatpush.bf16.msra.mxu1 %v4963_v21  ;;  %v4479_v21 = vld [vmem:[#allocation4 + $0x48] sm:$0xf] }
  0x39   : > { %v4480_v24 = vor.u32 %v4982_v22, %v4479_v21  ;;  %v5534_v21 = vperm.slane %v664_v9, 1  ;;  %v1112_v22 = vld [vmem:[%s9192_s5 + $0x10] sm:$0xff]  ;;  %9587 = vst [vmem:[#allocation32_spill] sm:$0xff] %v5580_v49 }
  0x3a   : > { %v5560_v34 = vperm.slane %v1112_v22, 1  ;;  %v5562_v35 = vperm.slane %v1112_v22, 4 }
  0x3b   : > { %486 = vmatmul.bf16.vlgmr.msra.gmra.mxu0 %v406_v41  ;;  %496 = vmatmul.bf16.vlgmr.msra.gmra.mxu1 %v408_v42  ;;  %v4973_v41 = vld [vmem:[#allocation4 + $0xc] sm:$0xf0]  ;;  %v4971_v42 = vld [vmem:[#allocation4 + $0x4] sm:$0xf] }
  0x3c   : > { %834 = vmatpush.bf16.msrb.mxu1 %v4552_v32  ;;  %921 = vmatpush.bf16.msrb.mxu0 %v4564_v33  ;;  %v4456_v32 = vor.u32 %v4977_v29, %v4455_v27  ;;  %v4460_v33 = vor.u32 %v4975_v30, %v4457_v31  ;;  %v4440_v43 = vor.u32 %v4973_v41, %v4439_v40  ;;  %v5548_v27 = vperm.slane %v664_v9, 2 }
  0x3d   : > { %897 = vmatpush.bf16.msra.mxu3 %v4480_v24  ;;  %v5551_v29 = vperm.slane %v5528_v18, 1  ;;  %v5554_v30 = vperm.slane %v5528_v18, 4  ;;  %9582 = vst [vmem:[#allocation27_spill] sm:$0xff] %v5560_v34  ;;  %v5569_v40 = vperm.slane %v5528_v18, 7 }
  0x3e   : > { %869 = vmatpush.bf16.msra.mxu2 %v4460_v33  ;;  %9583 = vst [vmem:[#allocation28_spill] sm:$0xff] %v5562_v35 }
  0x3f   : > { %9578 = vst [vmem:[#allocation23_spill] sm:$0xff] %v5551_v29 }
  0x40   : > { %835 = vmatpush.bf16.msrb.mxu1 %v4536_v46  ;;  %922 = vmatpush.bf16.msrb.mxu0 %v4548_v47  ;;  %v4974_v46 = vld [vmem:[#allocation4 + $0x14] sm:$0xf0]  ;;  %v4444_v47 = vor.u32 %v4971_v42, %v4441_v44  ;;  %9579 = vst [vmem:[#allocation24_spill] sm:$0xff] %v5554_v30 }
  0x41   : > { %898 = vmatpush.bf16.msra.mxu3 %v4464_v37  ;;  %v4448_v48 = vor.u32 %v4974_v46, %v4447_v45  ;;  %9585 = vst [vmem:[#allocation30_spill] sm:$0xff] %v5569_v40 }
  0x42   : > { %870 = vmatpush.bf16.msra.mxu2 %v4444_v47 }
  0x44   : > { %836 = vmatpush.bf16.msrb.mxu1 %v4520_v58  ;;  %923 = vmatpush.bf16.msrb.mxu0 %v4532_v59 }
  0x45   : > { %899 = vmatpush.bf16.msra.mxu3 %v4448_v48 }
  0x48   : > { %837 = vmatpush.bf16.msrb.mxu1 %v4504_v2  ;;  %924 = vmatpush.bf16.msrb.mxu0 %v4516_v3 }
  0x4b   : > { %491 = vmatmul.bf16.gmra.mxu0 %v407_v14  ;;  %501 = vmatmul.bf16.gmra.mxu1 %v409_v15  ;;  %v5522_v15 = vld [vmem:[%s9192_s5] sm:$0xff] }
  0x4c   : > { %838 = vmatpush.bf16.msrb.mxu1 %v4488_v12  ;;  %925 = vmatpush.bf16.msrb.mxu0 %v4500_v13  ;;  %v5515_v12 = vperm.slane %v664_v9, 3  ;;  %v5517_v13 = vshrl.u32 %v507_v10, 7  ;;  %v5543_v25 = vperm.slane %v5522_v15, 1  ;;  %v5546_v26 = vperm.slane %v5522_v15, 4 }
  0x4d   : > { %v5573_v44 = vperm.slane %v5522_v15, 3  ;;  %v5583_v50 = vperm.slane %v5522_v15, 6 }
  0x4e   : > { %v5540_v23 = vadd.s32 8, %v5517_v13  ;;  %9576 = vst [vmem:[#allocation21_spill] sm:$0xff] %v5543_v25  ;;  %v5576_v45 = vadd.s32 16, %v5517_v13  ;;  %vm9414_vm0 = vcmp.lt.s32.totalorder %v5517_v13, 1  ;;  %vm9415_vm3 = vcmp.lt.s32.totalorder %v5517_v13, 7 }
  0x4f   : > { %9577 = vst [vmem:[#allocation22_spill] sm:$0xff] %v5546_v26 }
  0x50   : > { %839 = vmatpush.bf16.msrb.mxu1 %v4472_v19  ;;  %926 = vmatpush.bf16.msrb.mxu0 %v4484_v28  ;;  %v1111_v19 = vld [vmem:[%s9192_s5 + $0x8] sm:$0xff]  ;;  %v9197_v38 = vand.u32 7, %v5540_v23  ;;  %9586 = vst [vmem:[#allocation31_spill] sm:$0xff] %v5573_v44 }
  0x51   : > { %v5556_v31 = vperm.slane %v1111_v19, 1  ;;  %v5558_v33 = vperm.slane %v1111_v19, 4  ;;  %9588 = vst [vmem:[#allocation33_spill] sm:$0xff] %v5583_v50 }
  0x52   : > { %vm5627_vm1 = vcmp.ne.s32.totalorder %v9197_v38, 0 }
  0x53   : > { %9580 = vst [vmem:[#allocation25_spill] sm:$0xff] %v5556_v31 }
  0x54   : > { %840 = vmatpush.bf16.msrb.mxu1 %v4456_v32  ;;  %927 = vmatpush.bf16.msrb.mxu0 %v4468_v39  ;;  %9581 = vst [vmem:[#allocation26_spill] sm:$0xff] %v5558_v33  ;;  %v5566_v39 = vperm.slane %v5522_v15, 7 }
  0x56   : > { %9584 = vst [vmem:[#allocation29_spill] sm:$0xff] %v5566_v39 }
  0x58   : > { %841 = vmatpush.bf16.msrb.mxu1 %v4440_v43  ;;  %928 = vmatpush.bf16.msrb.mxu0 %v4452_v51 }
  0xb8   : > { %v487_v52 = vpop.f32.mrf.mxu0  ;;  %v497_v59 = vpop.f32.mrf.mxu1 }
  0xb9   : > { %v5486_v55 = vadd.f32 %v5168_v53, %v487_v52  ;;  %v5498_v1 = vadd.f32 %v5168_v53, %v497_v59 }
  0xbb   : > { %9567 = vst [vmem:[#allocation12_spill] sm:$0xff] %v5486_v55 }
  0xbc   : > { %9571 = vst [vmem:[#allocation16_spill] sm:$0xff] %v5498_v1 }
  0xc0   : > { %v489_v54 = vpop.f32.mrf.mxu0  ;;  %v499_v0 = vpop.f32.mrf.mxu1 }
  0xc1   : > { %v5488_v56 = vadd.f32 %v5168_v53, %v489_v54  ;;  %v5500_v2 = vadd.f32 %v5168_v53, %v499_v0 }
  0xc3   : > { %9568 = vst [vmem:[#allocation13_spill] sm:$0xff] %v5488_v56  ;;  %v628_v57 = vpack.c.bf16 %v5488_v56, %v5486_v55  ;;  %v630_v4 = vpack.c.bf16 %v5500_v2, %v5498_v1  ;;  %v9611_v56 = vand.u32 7, %v5576_v45 }
  0xc4   : > { %9572 = vst [vmem:[#allocation17_spill] sm:$0xff] %v5500_v2 }
  0xc5   : > { %842 = vmatmul.bf16.vlgmr.msrb.gmra.mxu1 %v628_v57  ;;  %871 = vmatmul.bf16.vlgmr.msra.gmra.mxu2 %v628_v57  ;;  %vm5689_vm2 = vcmp.ne.s32.totalorder %v9611_v56, 0 }
  0xc6   : > { %900 = vmatmul.bf16.vlgmr.msra.gmra.mxu3 %v628_v57  ;;  %929 = vmatmul.bf16.vlgmr.msrb.gmra.mxu0 %v628_v57  ;;  %v5587_v57 = vperm.slane %v5528_v18, 6 }
  0xc8   : > { %v492_v58 = vpop.f32.mrf.mxu0  ;;  %v502_v3 = vpop.f32.mrf.mxu1  ;;  %9589 = vst [vmem:[#allocation34_spill] sm:$0xff] %v5587_v57 }
  0xc9   : > { %v5492_v61 = vadd.f32 %v5168_v53, %v492_v58  ;;  %v5504_v6 = vadd.f32 %v5168_v53, %v502_v3 }
  0xcb   : > { %9569 = vst [vmem:[#allocation14_spill] sm:$0xff] %v5492_v61 }
  0xcc   : > { %9573 = vst [vmem:[#allocation18_spill] sm:$0xff] %v5504_v6 }
  0xd0   : > { %v494_v60 = vpop.f32.mrf.mxu0  ;;  %v504_v5 = vpop.f32.mrf.mxu1 }
  0xd1   : > { %v5494_v62 = vadd.f32 %v5168_v53, %v494_v60  ;;  %v5506_v7 = vadd.f32 %v5168_v53, %v504_v5 }
  0xd3   : > { %9570 = vst [vmem:[#allocation15_spill] sm:$0xff] %v5494_v62  ;;  %v629_v63 = vpack.c.bf16 %v5494_v62, %v5492_v61  ;;  %v631_v8 = vpack.c.bf16 %v5506_v7, %v5504_v6 }
  0xd4   : > { %9574 = vst [vmem:[#allocation19_spill] sm:$0xff] %v5506_v7 }
  0xd5   : > { %847 = vmatmul.bf16.gmra.mxu1 %v629_v63  ;;  %876 = vmatmul.bf16.gmra.mxu2 %v629_v63 }
  0xd6   : > { %905 = vmatmul.bf16.gmra.mxu3 %v629_v63  ;;  %934 = vmatmul.bf16.gmra.mxu0 %v629_v63  ;;  %v5590_v63 = vperm.slane %v1111_v19, 7  ;;  %v5605_v19 = vperm.slane %v5528_v18, 0 }
  0xd8   : > { %9590 = vst [vmem:[#allocation35_spill] sm:$0xff] %v5590_v63 }
  0xd9   : > { %9595 = vst [vmem:[#allocation40_spill] sm:$0xff] %v5605_v19 }
  0xe5   : > { %852 = vmatmul.bf16.gmra.mxu1 %v630_v4  ;;  %881 = vmatmul.bf16.gmra.mxu2 %v630_v4 }
  0xe6   : > { %910 = vmatmul.bf16.gmra.mxu3 %v630_v4  ;;  %939 = vmatmul.bf16.gmra.mxu0 %v630_v4 }
  0xf5   : > { %857 = vmatmul.bf16.gmra.mxu1 %v631_v8  ;;  %886 = vmatmul.bf16.gmra.mxu2 %v631_v8 }
  0xf6   : > { %915 = vmatmul.bf16.gmra.mxu3 %v631_v8  ;;  %944 = vmatmul.bf16.gmra.mxu0 %v631_v8 }
 0x142   : > { %v843_v14 = vpop.f32.mrf.mxu1 }
 0x143   : > { %v844_v16 = vadd.f32 %v843_v14, %v5513_v11  ;;  %v930_v17 = vpop.f32.mrf.mxu0  ;;  %v5597_v14 = vperm.slane %v1112_v22, 7 }
 0x144   : > { %v931_v20 = vadd.f32 %v930_v17, %v5515_v12 }
 0x145   : > { %v950_v24 = vadd.f32 3.0, %v844_v16  ;;  %9593 = vst [vmem:[#allocation38_spill] sm:$0xff] %v5597_v14 }
 0x146   : > { %v953_v28 = vadd.f32 3.0, %v931_v20 }
 0x147   : > { %v982_v32 = vmax.f32 %v950_v24, 0.0 }
 0x148   : > { %v985_v36 = vmax.f32 %v953_v28, 0.0  ;;  %v872_v37 = vpop.f32.mrf.mxu2 }
 0x149   : > { %v1014_v41 = vmin.f32 %v982_v32, 6.0  ;;  %v873_v42 = vadd.f32 %v872_v37, %v5534_v21  ;;  %v901_v43 = vpop.f32.mrf.mxu3 }
 0x14a   : > { %v1017_v46 = vmin.f32 %v985_v36, 6.0  ;;  %v902_v47 = vadd.f32 %v901_v43, %v5548_v27  ;;  %v845_v48 = vpop.f32.mrf.mxu1 }
 0x14b   : > { %v1046_v51 = vmul.f32 %v1014_v41, %v844_v16  ;;  %v951_v52 = vadd.f32 3.0, %v873_v42  ;;  %v846_v53 = vadd.f32 %v845_v48, %v5513_v11  ;;  %v932_v54 = vpop.f32.mrf.mxu0 }
 0x14c   : > { %v1049_v58 = vmul.f32 %v1017_v46, %v931_v20  ;;  %v952_v59 = vadd.f32 3.0, %v902_v47  ;;  %v933_v60 = vadd.f32 %v932_v54, %v5515_v12  ;;  %v5602_v20 = vperm.slane %v5522_v15, 0 }
 0x14d   : > { %v5592_v0 = vmul.f32 0.16666667, %v1046_v51  ;;  %v983_v3 = vmax.f32 %v951_v52, 0.0  ;;  %v954_v4 = vadd.f32 3.0, %v846_v53 }
 0x14e   : > { %v5595_v8 = vmul.f32 0.16666667, %v1049_v58  ;;  %v984_v9 = vmax.f32 %v952_v59, 0.0  ;;  %v957_v10 = vadd.f32 3.0, %v933_v60  ;;  %9594 = vst [vmem:[#allocation39_spill] sm:$0xff] %v5602_v20 }
 0x14f   : > { %9591 = vst [vmem:[#allocation36_spill] sm:$0xff] %v5592_v0  ;;  %v5610_v28 = vmul.f32 %v5543_v25, %v5592_v0  ;;  %v5614_v22 = vmul.f32 %v5546_v26, %v5592_v0  ;;  %v1015_v37 = vmin.f32 %v983_v3, 6.0  ;;  %v986_v43 = vmax.f32 %v954_v4, 0.0 }
 0x150   : > { %9592 = vst [vmem:[#allocation37_spill] sm:$0xff] %v5595_v8  ;;  %v874_v36 = vpop.f32.mrf.mxu2  ;;  %v1016_v41 = vmin.f32 %v984_v9, 6.0  ;;  %v989_v46 = vmax.f32 %v957_v10, 0.0  ;;  %v5620_v52 = vmul.f32 %v5551_v29, %v5595_v8  ;;  %v9598_v3 = vmov 0 }
 0x151   : > { %9596 = vst [vmem:[#allocation41_spill] sm:$0xff] %v5614_v22  ;;  %v903_v48 = vpop.f32.mrf.mxu3  ;;  %v875_v54 = vadd.f32 %v874_v36, %v5534_v21  ;;  %v1047_v24 = vmul.f32 %v1015_v37, %v873_v42  ;;  %v9599_v3 = vsel %vm5627_vm1, 4294967295, %v9598_v3  ;;  %v1018_v4 = vmin.f32 %v986_v43, 6.0 }
 0x152   : > { %9597 = vst [vmem:[#allocation42_spill] sm:$0xff] %v5620_v52  ;;  %v904_v58 = vadd.f32 %v903_v48, %v5548_v27  ;;  %v848_v59 = vpop.f32.mrf.mxu1  ;;  %v1048_v17 = vmul.f32 %v1016_v41, %v902_v47  ;;  %v1021_v9 = vmin.f32 %v989_v46, 6.0  ;;  %v5639_v43 = vmul.f32 %v5554_v30, %v5595_v8 }
 0x153   : > { %9600 = vst [vmem:[#allocation43_spill] sm:$0xff] %v9599_v3  ;;  %v935_v10 = vpop.f32.mrf.mxu0  ;;  %v955_v51 = vadd.f32 3.0, %v875_v54  ;;  %v849_v5 = vadd.f32 %v848_v59, %v5513_v11  ;;  %v5633_v16 = vmul.f32 0.16666667, %v1047_v24  ;;  %v1050_v42 = vmul.f32 %v1018_v4, %v846_v53 }
 0x154   : > { %v956_v32 = vadd.f32 3.0, %v904_v58  ;;  %v936_v36 = vadd.f32 %v935_v10, %v5515_v12  ;;  %v5635_v48 = vmul.f32 0.16666667, %v1048_v17  ;;  %v1053_v47 = vmul.f32 %v1021_v9, %v933_v60  ;;  %9603 = vst [vmem:[#allocation46_spill] sm:$0xff] %v5639_v43 }
 0x155   : > { %9601 = vst [vmem:[#allocation44_spill] sm:$0xff] %v5633_v16  ;;  %v987_v37 = vmax.f32 %v955_v51, 0.0  ;;  %v958_v38 = vadd.f32 3.0, %v849_v5  ;;  %v5645_v24 = vmul.f32 %v5556_v31, %v5633_v16  ;;  %v5649_v53 = vmul.f32 %v5558_v33, %v5633_v16 }
 0x156   : > { %9602 = vst [vmem:[#allocation45_spill] sm:$0xff] %v5635_v48  ;;  %v988_v41 = vmax.f32 %v956_v32, 0.0  ;;  %v961_v7 = vadd.f32 3.0, %v936_v36  ;;  %v5655_v32 = vmul.f32 %v5560_v34, %v5635_v48  ;;  %v5657_v4 = vmul.f32 0.16666667, %v1050_v42 }
 0x157   : > { %9604 = vst [vmem:[#allocation47_spill] sm:$0xff] %v5645_v24  ;;  %v5659_v9 = vmul.f32 0.16666667, %v1053_v47  ;;  %v1019_v10 = vmin.f32 %v987_v37, 6.0  ;;  %v5663_v6 = vmul.f32 %v5562_v35, %v5635_v48  ;;  %v990_v2 = vmax.f32 %v958_v38, 0.0 }
 0x158   : > { %9605 = vst [vmem:[#allocation48_spill] sm:$0xff] %v5649_v53  ;;  %v877_v51 = vpop.f32.mrf.mxu2  ;;  %v1020_v59 = vmin.f32 %v988_v41, 6.0  ;;  %v993_v60 = vmax.f32 %v961_v7, 0.0  ;;  %v1122_v1 = vrot.slane %v5657_v4, 7  ;;  %v1508_v42 = vmul.f32 %v5546_v26, %v5657_v4 }
 0x159   : > { %9606 = vst [vmem:[#allocation49_spill] sm:$0xff] %v5655_v32  ;;  %v906_v46 = vpop.f32.mrf.mxu3  ;;  %v5666_v17 = vadd.f32 %v877_v51, %v5534_v21  ;;  %v5677_v37 = vmul.f32 %v5566_v39, %v5657_v4  ;;  %v1125_v38 = vrot.slane %v5659_v9, 7  ;;  %v1511_v41 = vmul.f32 %v5554_v30, %v5659_v9 }
 0x15a   : > { %9607 = vst [vmem:[#allocation50_spill] sm:$0xff] %v5659_v9  ;;  %v5673_v47 = vadd.f32 %v906_v46, %v5548_v27  ;;  %v850_v51 = vpop.f32.mrf.mxu1  ;;  %v9610_v62 = vrot.slane %v5592_v0, 7  ;;  %v1051_v55 = vmul.f32 %v1019_v10, %v875_v54  ;;  %v1052_v46 = vmul.f32 %v1020_v59, %v904_v58 }
 0x15b   : > { %9608 = vst [vmem:[#allocation51_spill] sm:$0xff] %v5663_v6  ;;  %v9612_v6 = vmov 0  ;;  %v1022_v32 = vmin.f32 %v990_v2, 6.0  ;;  %v9615_v53 = vrot.slane %v5595_v8, 7  ;;  %v1025_v54 = vmin.f32 %v993_v60, 6.0  ;;  %v937_v60 = vpop.f32.mrf.mxu0 }
 0x15c   : > { %9609 = vst [vmem:[#allocation52_spill] sm:$0xff] %v5677_v37  ;;  %v1175_v61 = vsel %vm9414_vm0, %v9610_v62, %v1122_v1  ;;  %v9613_v6 = vsel %vm5689_vm2, 4294967295, %v9612_v6  ;;  %v959_v58 = vadd.f32 3.0, %v5666_v17  ;;  %v5709_v59 = vmul.f32 0.16666667, %v1051_v55 }
 0x15d   : > { %9614 = vst [vmem:[#allocation53_spill] sm:$0xff] %v9613_v6  ;;  %v5695_v7 = vsel %vm5627_vm1, %v1175_v61, 0.0  ;;  %v1178_v62 = vsel %vm9414_vm0, %v9615_v53, %v1125_v38  ;;  %v5711_v61 = vmul.f32 0.16666667, %v1052_v46  ;;  %v1054_v24 = vmul.f32 %v1022_v32, %v849_v5 }
 0x15e   : > { %v1472_v56 = vmul.f32 %v5573_v44, %v5695_v7  ;;  %v5707_v2 = vsel %vm5627_vm1, %v1178_v62, 0.0  ;;  %9617 = vst [vmem:[#allocation55_spill] sm:$0xff] %v5709_v59  ;;  %v1057_v43 = vmul.f32 %v1025_v54, %v936_v36  ;;  %v991_v53 = vmax.f32 %v959_v58, 0.0  ;;  %v5018_v62 = vld [vmem:[#allocation7 + $0x78] sm:$0xff] }
 0x15f   : > { %9616 = vst [vmem:[#allocation54_spill] sm:$0xff] %v5707_v2  ;;  %v1475_v10 = vmul.f32 %v5580_v49, %v5707_v2  ;;  %v5719_v48 = vmul.f32 %v5569_v40, %v5659_v9  ;;  %v5727_v5 = vmul.f32 %v5558_v33, %v5709_v59  ;;  %v5735_v54 = vmul.f32 0.16666667, %v1054_v24  ;;  %2359 = vmatpush.bf16.msrb.mxu2 %v5018_v62 }
 0x160   : > { %9618 = vst [vmem:[#allocation56_spill] sm:$0xff] %v5711_v61  ;;  %v879_v18 = vpop.f32.mrf.mxu2  ;;  %v5715_v37 = vadd.f32 %v1508_v42, %v1472_v56  ;;  %v5733_v42 = vmul.f32 %v5562_v35, %v5711_v61  ;;  %v5737_v58 = vmul.f32 0.16666667, %v1057_v43  ;;  %v1023_v56 = vmin.f32 %v991_v53, 6.0 }
 0x161   : > { %9620 = vst [vmem:[#allocation58_spill] sm:$0xff] %v5719_v48  ;;  %v908_v46 = vpop.f32.mrf.mxu3  ;;  %v5723_v3 = vadd.f32 %v1511_v41, %v1475_v10  ;;  %v960_v41 = vadd.f32 3.0, %v5673_v47  ;;  %v851_v10 = vadd.f32 %v850_v51, %v5513_v11  ;;  %v5742_v55 = vadd.f32 %v937_v60, %v5515_v12 }
 0x162   : > { %9619 = vst [vmem:[#allocation57_spill] sm:$0xff] %v5715_v37  ;;  %v5745_v36 = vadd.f32 %v879_v18, %v5534_v21  ;;  %v5751_v24 = vmul.f32 %v5543_v25, %v5735_v54  ;;  %v5754_v43 = vadd.f32 %v908_v46, %v5548_v27  ;;  %v5758_v51 = vmul.f32 %v5546_v26, %v5735_v54  ;;  %v853_v32 = vpop.f32.mrf.mxu1 }
 0x163   : > { %9621 = vst [vmem:[#allocation59_spill] sm:$0xff] %v5723_v3  ;;  %v1676_v53 = vmul.f32 %v5566_v39, %v5735_v54  ;;  %v9628_v46 = vrot.slane %v5735_v54, 1  ;;  %v9629_v61 = vrot.slane %v5657_v4, 1  ;;  %v5778_v18 = vmul.f32 %v5551_v29, %v5737_v58  ;;  %v5010_v3 = vld [vmem:[#allocation7 + $0x38] sm:$0xff]  ;;  %v940_v62 = vpop.f32.mrf.mxu0 }
 0x164   : > { %9622 = vst [vmem:[#allocation60_spill] sm:$0xff] %v5727_v5  ;;  %v5782_v60 = vmul.f32 %v5554_v30, %v5737_v58  ;;  %v5026_v5 = vld [vmem:[#allocation7 + $0xb8] sm:$0xff]  ;;  %v962_v48 = vadd.f32 3.0, %v851_v10  ;;  %2330 = vmatpush.bf16.msra.mxu1 %v5010_v3  ;;  %v965_v2 = vadd.f32 3.0, %v5742_v55  ;;  %v9636_v6 = vrot.slane %v5737_v58, 1 }
 0x165   : > { %9623 = vst [vmem:[#allocation61_spill] sm:$0xff] %v5733_v42  ;;  %v9627_v42 = vrot.slane %v5735_v54, 7  ;;  %2388 = vmatpush.bf16.msrb.mxu3 %v5026_v5 }
 0x166   : > { %9624 = vst [vmem:[#allocation62_spill] sm:$0xff] %v5737_v58 }
 0x167   : > { %9625 = vst [vmem:[#allocation63_spill] sm:$0xff] %v5751_v24  ;;  %v1171_v24 = vsel %vm9414_vm0, %v1122_v1, %v9627_v42  ;;  %v9633_v42 = vrot.slane %v5737_v58, 7 }
 0x168   : > { %9626 = vst [vmem:[#allocation64_spill] sm:$0xff] %v5758_v51  ;;  %v5774_v51 = vsel %vm9415_vm3, %v9629_v61, %v9628_v46  ;;  %v5786_v1 = vsel %vm5689_vm2, %v1171_v24, 0.0  ;;  %v1679_v46 = vmul.f32 %v5569_v40, %v5737_v58  ;;  %v992_v24 = vmax.f32 %v960_v41, 0.0 }
 0x169   : > { %9630 = vst [vmem:[#allocation65_spill] sm:$0xff] %v5778_v18  ;;  %v1174_v61 = vsel %vm9414_vm0, %v1125_v38, %v9633_v42  ;;  %v1055_v18 = vmul.f32 %v1023_v56, %v5666_v17  ;;  %v963_v17 = vadd.f32 3.0, %v5745_v36  ;;  %v882_v56 = vpop.f32.mrf.mxu2  ;;  %v994_v41 = vmax.f32 %v962_v48, 0.0 }
 0x16a   : > { %9631 = vst [vmem:[#allocation66_spill] sm:$0xff] %v5782_v60  ;;  %v1644_v60 = vmul.f32 %v5583_v50, %v5786_v1  ;;  %v5799_v59 = vsel %vm5689_vm2, %v1174_v61, 0.0  ;;  %v9637_v61 = vrot.slane %v5659_v9, 1  ;;  %v1024_v3 = vmin.f32 %v992_v24, 6.0 }
 0x16b   : > { %9632 = vst [vmem:[#allocation67_spill] sm:$0xff] %v5786_v1  ;;  %v1647_v38 = vmul.f32 %v5587_v57, %v5799_v59  ;;  %v5803_v42 = vmul.f32 0.16666667, %v1055_v18  ;;  %v5017_v1 = vld [vmem:[#allocation7 + $0x70] sm:$0xff]  ;;  %v964_v18 = vadd.f32 3.0, %v5754_v43  ;;  %v1026_v24 = vmin.f32 %v994_v41, 6.0 }
 0x16c   : > { %9634 = vst [vmem:[#allocation68_spill] sm:$0xff] %v5799_v59  ;;  %v5813_v5 = vsel %vm9415_vm3, %v9637_v61, %v9636_v6  ;;  %v911_v59 = vpop.f32.mrf.mxu3  ;;  %v5816_v57 = vadd.f32 %v1676_v53, %v1644_v60  ;;  %2360 = vmatpush.bf16.msrb.mxu2 %v5017_v1  ;;  %v1056_v48 = vmul.f32 %v1024_v3, %v5673_v47  ;;  %v997_v53 = vmax.f32 %v965_v2, 0.0  ;;  %v855_v3 = vpop.f32.mrf.mxu1 }
 0x16d   : > { %9635 = vst [vmem:[#allocation69_spill] sm:$0xff] %v5803_v42  ;;  %v5818_v37 = vadd.f32 %v1679_v46, %v1647_v38  ;;  %v5824_v9 = vmul.f32 %v5556_v31, %v5803_v42  ;;  %v5828_v6 = vmul.f32 %v5558_v33, %v5803_v42  ;;  %v995_v60 = vmax.f32 %v963_v17, 0.0 }
 0x16e   : > { %9638 = vst [vmem:[#allocation70_spill] sm:$0xff] %v5813_v5  ;;  %v996_v46 = vmax.f32 %v964_v18, 0.0  ;;  %v854_v38 = vadd.f32 %v853_v32, %v5513_v11  ;;  %v5832_v61 = vmul.f32 0.16666667, %v1056_v48  ;;  %v1058_v52 = vmul.f32 %v1026_v24, %v851_v10  ;;  %v5009_v5 = vld [vmem:[#allocation7 + $0x30] sm:$0xff]  ;;  %v942_v10 = vpop.f32.mrf.mxu0 }
 0x16f   : > { %9639 = vst [vmem:[#allocation71_spill] sm:$0xff] %v5816_v57  ;;  %v941_v1 = vadd.f32 %v940_v62, %v5515_v12  ;;  %v883_v22 = vadd.f32 %v882_v56, %v5534_v21  ;;  %v1029_v57 = vmin.f32 %v997_v53, 6.0  ;;  %v5838_v2 = vmul.f32 %v5590_v63, %v5803_v42  ;;  %2331 = vmatpush.bf16.msra.mxu1 %v5009_v5  ;;  %v5006_v42 = vld [vmem:[#allocation7 + $0x18] sm:$0xff] }
 0x170   : > { %9640 = vst [vmem:[#allocation72_spill] sm:$0xff] %v5818_v37  ;;  %v5034_v37 = vld [vmem:[#allocation7 + $0xf8] sm:$0xff]  ;;  %v1028_v58 = vmin.f32 %v996_v46, 6.0  ;;  %v966_v47 = vadd.f32 3.0, %v854_v38  ;;  %v5844_v17 = vmul.f32 %v5560_v34, %v5832_v61  ;;  %v5848_v62 = vmul.f32 %v5562_v35, %v5832_v61 }
 0x171   : > { %9641 = vst [vmem:[#allocation73_spill] sm:$0xff] %v5824_v9  ;;  %v5025_v9 = vld [vmem:[#allocation7 + $0xb0] sm:$0xff]  ;;  %2417 = vmatpush.bf16.msra.mxu0 %v5034_v37  ;;  %v5850_v56 = vmul.f32 0.16666667, %v1058_v52  ;;  %v1061_v41 = vmul.f32 %v1029_v57, %v5742_v55  ;;  %v969_v53 = vadd.f32 3.0, %v941_v1  ;;  %v884_v57 = vpop.f32.mrf.mxu2 }
 0x172   : > { %9642 = vst [vmem:[#allocation74_spill] sm:$0xff] %v5828_v6  ;;  %v1027_v6 = vmin.f32 %v995_v60, 6.0  ;;  %2389 = vmatpush.bf16.msrb.mxu3 %v5025_v9  ;;  %v1060_v48 = vmul.f32 %v1028_v58, %v5754_v43  ;;  %v998_v24 = vmax.f32 %v966_v47, 0.0  ;;  %v967_v60 = vadd.f32 3.0, %v883_v22 }
 0x173   : > { %9643 = vst [vmem:[#allocation75_spill] sm:$0xff] %v5832_v61  ;;  %v5857_v9 = vmul.f32 %v5597_v14, %v5832_v61  ;;  %v5860_v46 = vmul.f32 0.16666667, %v1061_v41  ;;  %v1001_v5 = vmax.f32 %v969_v53, 0.0  ;;  %v5016_v41 = vld [vmem:[#allocation7 + $0x68] sm:$0xff]  ;;  %v856_v53 = vadd.f32 %v855_v3, %v5513_v11 }
 0x174   : > { %9644 = vst [vmem:[#allocation76_spill] sm:$0xff] %v5838_v2  ;;  %v1059_v18 = vmul.f32 %v1027_v6, %v5745_v36  ;;  %v5864_v55 = vmul.f32 0.16666667, %v1060_v48  ;;  %v1030_v36 = vmin.f32 %v998_v24, 6.0  ;;  %v999_v58 = vmax.f32 %v967_v60, 0.0  ;;  %v913_v43 = vpop.f32.mrf.mxu3  ;;  %2361 = vmatpush.bf16.msrb.mxu2 %v5016_v41  ;;  %v5032_v6 = vld [vmem:[#allocation7 + $0xe8] sm:$0xff] }
 0x175   : > { %9645 = vst [vmem:[#allocation77_spill] sm:$0xff] %v5844_v17  ;;  %v1033_v48 = vmin.f32 %v1001_v5, 6.0  ;;  %v912_v24 = vadd.f32 %v911_v59, %v5548_v27  ;;  %v943_v60 = vadd.f32 %v942_v10, %v5515_v12  ;;  %v5878_v37 = vadd.f32 %v884_v57, %v5534_v21  ;;  %v5033_v59 = vld [vmem:[#allocation7 + $0xf0] sm:$0xff] }
 0x176   : > { %9646 = vst [vmem:[#allocation78_spill] sm:$0xff] %v5848_v62  ;;  %v5862_v52 = vmul.f32 0.16666667, %v1059_v18  ;;  %v1062_v17 = vmul.f32 %v1030_v36, %v854_v38  ;;  %v5881_v18 = vadd.f32 %v913_v43, %v5548_v27  ;;  %v970_v36 = vadd.f32 3.0, %v856_v53  ;;  %2418 = vmatpush.bf16.msra.mxu0 %v5033_v59  ;;  %v5008_v59 = vld [vmem:[#allocation7 + $0x28] sm:$0xff] }
 0x177   : > { %9647 = vst [vmem:[#allocation79_spill] sm:$0xff] %v5857_v9  ;;  %v1031_v9 = vmin.f32 %v999_v58, 6.0  ;;  %v1065_v32 = vmul.f32 %v1033_v48, %v941_v1  ;;  %v968_v38 = vadd.f32 3.0, %v912_v24  ;;  %v973_v5 = vadd.f32 3.0, %v943_v60  ;;  %v858_v58 = vpop.f32.mrf.mxu1  ;;  %2332 = vmatpush.bf16.msra.mxu1 %v5008_v59 }
 0x178   : > { %9648 = vst [vmem:[#allocation80_spill] sm:$0xff] %v5860_v46  ;;  %v5875_v47 = vmul.f32 0.16666667, %v1062_v17  ;;  %v971_v48 = vadd.f32 3.0, %v5878_v37  ;;  %v972_v3 = vadd.f32 3.0, %v5881_v18  ;;  %v5897_v10 = vadd.f32 %v858_v58, %v5513_v11 }
 0x179   : > { %9649 = vst [vmem:[#allocation81_spill] sm:$0xff] %v5862_v52  ;;  %v1063_v62 = vmul.f32 %v1031_v9, %v883_v22  ;;  %v5890_v57 = vmul.f32 0.16666667, %v1065_v32  ;;  %v1000_v22 = vmax.f32 %v968_v38, 0.0  ;;  %v1002_v9 = vmax.f32 %v970_v36, 0.0  ;;  %v945_v36 = vpop.f32.mrf.mxu0 }
 0x17a   : > { %9650 = vst [vmem:[#allocation82_spill] sm:$0xff] %v5864_v55  ;;  %v5888_v1 = vmul.f32 %v5543_v25, %v5875_v47  ;;  %v1005_v41 = vmax.f32 %v973_v5, 0.0  ;;  %v5901_v17 = vmul.f32 %v5546_v26, %v5875_v47  ;;  %v887_v5 = vpop.f32.mrf.mxu2  ;;  %v5024_v55 = vld [vmem:[#allocation7 + $0xa8] sm:$0xff]  ;;  %2419 = vmatpush.bf16.msra.mxu0 %v5032_v6  ;;  %v1004_v2 = vmax.f32 %v972_v3, 0.0 }
 0x17b   : > { %9651 = vst [vmem:[#allocation83_spill] sm:$0xff] %v5875_v47  ;;  %v5892_v43 = vmul.f32 0.16666667, %v1063_v62  ;;  %v5907_v38 = vmul.f32 %v5551_v29, %v5890_v57  ;;  %v5911_v58 = vmul.f32 %v5554_v30, %v5890_v57  ;;  %v1032_v29 = vmin.f32 %v1000_v22, 6.0  ;;  %2390 = vmatpush.bf16.msrb.mxu3 %v5024_v55 }
 0x17c   : > { %9652 = vst [vmem:[#allocation84_spill] sm:$0xff] %v5888_v1  ;;  %v5919_v62 = vpop.f32.mrf.mxu3  ;;  %v1037_v25 = vmin.f32 %v1005_v41, 6.0  ;;  %v1003_v47 = vmax.f32 %v971_v48, 0.0  ;;  %v5923_v1 = vadd.f32 %v945_v36, %v5515_v12  ;;  %v5023_v41 = vld [vmem:[#allocation7 + $0xa0] sm:$0xff]  ;;  %v1036_v59 = vmin.f32 %v1004_v2, 6.0  ;;  %v5014_v36 = vld [vmem:[#allocation7 + $0x58] sm:$0xff] }
 0x17d   : > { %9653 = vst [vmem:[#allocation85_spill] sm:$0xff] %v5890_v57  ;;  %v5917_v32 = vmul.f32 %v5556_v31, %v5892_v43  ;;  %v5015_v31 = vld [vmem:[#allocation7 + $0x60] sm:$0xff]  ;;  %v1064_v57 = vmul.f32 %v1032_v29, %v912_v24 }
 0x17e   : > { %9654 = vst [vmem:[#allocation86_spill] sm:$0xff] %v5892_v43  ;;  %v1069_v22 = vmul.f32 %v1037_v25, %v943_v60  ;;  %v5031_v48 = vld [vmem:[#allocation7 + $0xe0] sm:$0xff]  ;;  %v977_v3 = vadd.f32 3.0, %v5923_v1  ;;  %2362 = vmatpush.bf16.msrb.mxu2 %v5015_v31  ;;  %v1068_v2 = vmul.f32 %v1036_v59, %v5881_v18  ;;  %v5940_v31 = vmul.f32 %v5558_v33, %v5892_v43  ;;  %v9744_v43 = vld [vmem:[#allocation69_spill] sm:$0xff] }
 0x17f   : > { %9655 = vst [vmem:[#allocation87_spill] sm:$0xff] %v5901_v17  ;;  %v5926_v17 = vadd.f32 %v887_v5, %v5534_v21  ;;  %v5930_v5 = vmul.f32 0.16666667, %v1064_v57  ;;  %2420 = vmatpush.bf16.msra.mxu0 %v5031_v48  ;;  %2391 = vmatpush.bf16.msrb.mxu3 %v5023_v41 }
 0x180   : > { %9656 = vst [vmem:[#allocation88_spill] sm:$0xff] %v5907_v38  ;;  %v1034_v38 = vmin.f32 %v1002_v9, 6.0  ;;  %v1035_v9 = vmin.f32 %v1003_v47, 6.0  ;;  %v5934_v29 = vmul.f32 0.16666667, %v1069_v22  ;;  %v1009_v47 = vmax.f32 %v977_v3, 0.0 }
 0x181   : > { %9657 = vst [vmem:[#allocation89_spill] sm:$0xff] %v5911_v58  ;;  %v974_v58 = vadd.f32 3.0, %v5897_v10  ;;  %v975_v52 = vadd.f32 3.0, %v5926_v17  ;;  %v5946_v57 = vmul.f32 %v5560_v34, %v5930_v5  ;;  %v5950_v18 = vmul.f32 %v5562_v35, %v5930_v5  ;;  %v5013_v22 = vld [vmem:[#allocation7 + $0x50] sm:$0xff]  ;;  %v947_v3 = vpop.f32.mrf.mxu0 }
 0x182   : > { %9658 = vst [vmem:[#allocation90_spill] sm:$0xff] %v5917_v32  ;;  %v5007_v32 = vld [vmem:[#allocation7 + $0x20] sm:$0xff]  ;;  %v1066_v61 = vmul.f32 %v1034_v38, %v856_v53  ;;  %v1067_v25 = vmul.f32 %v1035_v9, %v5878_v37  ;;  %v5030_v53 = vld [vmem:[#allocation7 + $0xd8] sm:$0xff]  ;;  %v860_v37 = vpop.f32.mrf.mxu1  ;;  %2363 = vmatpush.bf16.msrb.mxu2 %v5014_v36  ;;  %v5005_v9 = vld [vmem:[#allocation7 + $0x10] sm:$0xff]  ;;  %v5957_v59 = vmul.f32 0.16666667, %v1068_v2  ;;  %v889_v38 = vpop.f32.mrf.mxu2 }
 0x183   : > { %v1006_v6 = vmax.f32 %v974_v58, 0.0  ;;  %9659 = vst [vmem:[#allocation91_spill] sm:$0xff] %v5930_v5  ;;  %2333 = vmatpush.bf16.msra.mxu1 %v5007_v32  ;;  %v1007_v24 = vmax.f32 %v975_v52, 0.0  ;;  %v5022_v32 = vld [vmem:[#allocation7 + $0x98] sm:$0xff]  ;;  %2421 = vmatpush.bf16.msra.mxu0 %v5030_v53  ;;  %v917_v58 = vadd.f32 %v5919_v62, %v5548_v27  ;;  %v861_v36 = vadd.f32 %v860_v37, %v5513_v11  ;;  %v5012_v11 = vld [vmem:[#allocation7 + $0x48] sm:$0xff]  ;;  %v5027_v52 = vld [vmem:[#allocation7 + $0xc0] sm:$0xff] }
 0x184   : > { %v5932_v46 = vmul.f32 0.16666667, %v1066_v61  ;;  %9660 = vst [vmem:[#allocation92_spill] sm:$0xff] %v5934_v29  ;;  %v5955_v48 = vmul.f32 0.16666667, %v1067_v25  ;;  %v5029_v61 = vld [vmem:[#allocation7 + $0xd0] sm:$0xff]  ;;  %v918_v25 = vpop.f32.mrf.mxu3  ;;  %2392 = vmatpush.bf16.msrb.mxu3 %v5022_v32  ;;  %v890_v32 = vadd.f32 %v889_v38, %v5534_v21 }
 0x185   : > { %v1038_v55 = vmin.f32 %v1006_v6, 6.0  ;;  %9661 = vst [vmem:[#allocation93_spill] sm:$0xff] %v5940_v31  ;;  %v1041_v6 = vmin.f32 %v1009_v47, 6.0  ;;  %v1039_v60 = vmin.f32 %v1007_v24, 6.0  ;;  %v976_v53 = vadd.f32 3.0, %v917_v58  ;;  %v9737_v34 = vld [vmem:[#allocation46_spill] sm:$0xff] }
 0x186   : > { %9662 = vst [vmem:[#allocation94_spill] sm:$0xff] %v5946_v57  ;;  %2364 = vmatpush.bf16.msrb.mxu2 %v5013_v22  ;;  %v9667_v37 = vand.u32 7, %v5517_v13  ;;  %v9668_v2 = vmov 0  ;;  %v9675_v22 = vand.u32 7, %v5517_v13 }
 0x187   : > { %9663 = vst [vmem:[#allocation95_spill] sm:$0xff] %v5950_v18  ;;  %v1070_v41 = vmul.f32 %v1038_v55, %v5897_v10  ;;  %2334 = vmatpush.bf16.msra.mxu1 %v5006_v42  ;;  %v5021_v55 = vld [vmem:[#allocation7 + $0x90] sm:$0xff]  ;;  %v1073_v24 = vmul.f32 %v1041_v6, %v5923_v1  ;;  %v1071_v62 = vmul.f32 %v1039_v60, %v5926_v17  ;;  %v978_v10 = vadd.f32 3.0, %v861_v36  ;;  %v5004_v17 = vld [vmem:[#allocation7 + $0x8] sm:$0xff]  ;;  %v5003_v18 = vld [vmem:[#allocation7] sm:$0xff] }
 0x188   : > { %9664 = vst [vmem:[#allocation96_spill] sm:$0xff] %v5955_v48  ;;  %vm5974_vm4 = vcmp.ne.s32.totalorder %v9667_v37, 7  ;;  %v948_v42 = vadd.f32 %v947_v3, %v5515_v12  ;;  %2422 = vmatpush.bf16.msra.mxu0 %v5029_v61  ;;  %v5028_v1 = vld [vmem:[#allocation7 + $0xc8] sm:$0xff]  ;;  %v1008_v21 = vmax.f32 %v976_v53, 0.0  ;;  %2393 = vmatpush.bf16.msrb.mxu3 %v5021_v55  ;;  %vm6001_vm5 = vcmp.ne.s32.totalorder %v9675_v22, 0 }
 0x189   : > { %9665 = vst [vmem:[#allocation97_spill] sm:$0xff] %v5957_v59  ;;  %v5968_v47 = vmul.f32 0.16666667, %v1070_v41  ;;  %v9669_v2 = vsel %vm5974_vm4, 4294967295, %v9668_v2  ;;  %v5981_v41 = vadd.f32 %v918_v25, %v5548_v27  ;;  %v5989_v37 = vmul.f32 0.16666667, %v1073_v24 }
 0x18a   : > { %9670 = vst [vmem:[#allocation99_spill] sm:$0xff] %v9669_v2  ;;  %v5991_v12 = vmul.f32 0.16666667, %v1071_v62  ;;  %v1010_v38 = vmax.f32 %v978_v10, 0.0  ;;  %v981_v27 = vadd.f32 3.0, %v948_v42  ;;  %v9676_v24 = vmov 0  ;;  %2365 = vmatpush.bf16.msrb.mxu2 %v5012_v11 }
 0x18b   : > { %9666 = vst [vmem:[#allocation98_spill] sm:$0xff] %v5968_v47  ;;  %2335 = vmatpush.bf16.msra.mxu1 %v5005_v9  ;;  %v5987_v6 = vmul.f32 %v5546_v26, %v5968_v47  ;;  %v5020_v9 = vld [vmem:[#allocation7 + $0x88] sm:$0xff]  ;;  %v5997_v25 = vmul.f32 %v5554_v30, %v5989_v37  ;;  %v9677_v24 = vsel %vm6001_vm5, 4294967295, %v9676_v24  ;;  %v979_v62 = vadd.f32 3.0, %v890_v32  ;;  %v5011_v10 = vld [vmem:[#allocation7 + $0x40] sm:$0xff]  ;;  %v9790_v2 = vld [vmem:[#allocation51_spill] sm:$0xff] }
 0x18c   : > { %9672 = vst [vmem:[#allocation101_spill] sm:$0xff] %v5989_v37  ;;  %v6009_v3 = vmul.f32 %v5558_v33, %v5991_v12  ;;  %v1040_v60 = vmin.f32 %v1008_v21, 6.0  ;;  %2423 = vmatpush.bf16.msra.mxu0 %v5028_v1  ;;  %v1042_v22 = vmin.f32 %v1010_v38, 6.0  ;;  %v1013_v61 = vmax.f32 %v981_v27, 0.0  ;;  %2394 = vmatpush.bf16.msrb.mxu3 %v5020_v9 }
 0x18d   : > { %9671 = vst [vmem:[#allocation100_spill] sm:$0xff] %v5987_v6  ;;  %v980_v6 = vadd.f32 3.0, %v5981_v41  ;;  %v9680_v55 = vand.u32 7, %v5540_v23  ;;  %v9681_v53 = vmov 0  ;;  %v9688_v1 = vrot.slane %v5850_v56, 1 }
 0x18e   : > { %9673 = vst [vmem:[#allocation102_spill] sm:$0xff] %v5991_v12  ;;  %v1072_v11 = vmul.f32 %v1040_v60, %v917_v58  ;;  %v9689_v21 = vrot.slane %v5735_v54, 1  ;;  %v1074_v60 = vmul.f32 %v1042_v22, %v861_v36  ;;  %v1045_v38 = vmin.f32 %v1013_v61, 6.0  ;;  %2366 = vmatpush.bf16.msrb.mxu2 %v5011_v10 }
 0x18f   : > { %9674 = vst [vmem:[#allocation103_spill] sm:$0xff] %v5997_v25  ;;  %2336 = vmatpush.bf16.msra.mxu1 %v5004_v17  ;;  %v1011_v25 = vmax.f32 %v979_v62, 0.0  ;;  %vm6014_vm6 = vcmp.ne.s32.totalorder %v9680_v55, 7  ;;  %v9685_v17 = vmov 0  ;;  %v1012_v27 = vmax.f32 %v980_v6, 0.0 }
 0x190   : > { %9678 = vst [vmem:[#allocation104_spill] sm:$0xff] %v9677_v24  ;;  %v9682_v53 = vsel %vm6014_vm6, 4294967295, %v9681_v53  ;;  %v1264_v58 = vsel %vm9415_vm3, %v9689_v21, %v9688_v1  ;;  %v6030_v9 = vmul.f32 0.16666667, %v1072_v11  ;;  %2424 = vmatpush.bf16.msra.mxu0 %v5027_v52  ;;  %v6041_v55 = vsel %vm6014_vm6, %v5774_v51, 0.0 }
 0x191   : > { %9679 = vst [vmem:[#allocation105_spill] sm:$0xff] %v6009_v3  ;;  %v9684_v3 = vand.u32 7, %v5576_v45  ;;  %v1043_v23 = vmin.f32 %v1011_v25, 6.0  ;;  %v9691_v45 = vrot.slane %v5657_v4, 1  ;;  %v6047_v6 = vmul.f32 0.16666667, %v1074_v60 }
 0x192   : > { %9683 = vst [vmem:[#allocation106_spill] sm:$0xff] %v9682_v53  ;;  %v1044_v61 = vmin.f32 %v1012_v27, 6.0  ;;  %v6052_v25 = vld [vmem:[%s9192_s5 + $0x20] ss:$0 sm:$0xff]  ;;  %v6058_v51 = vmul.f32 %v5562_v35, %v6030_v9  ;;  %v6078_v27 = vperm.slane %v5522_v15, 2  ;;  %v9707_v22 = vrot.slane %v5595_v8, 7 }
 0x193   : > { %vm6020_vm7 = vcmp.ne.s32.totalorder %v9684_v3, 7  ;;  %9690 = vst [vmem:[#allocation108_spill] sm:$0xff] %v6030_v9  ;;  %2337 = vmatpush.bf16.msra.mxu1 %v5003_v18  ;;  %v9692_v3 = vrot.slane %v5592_v0, 1  ;;  %v1077_v18 = vmul.f32 %v1045_v38, %v948_v42  ;;  %v1075_v52 = vmul.f32 %v1043_v23, %v890_v32 }
 0x194   : > { %v9686_v17 = vsel %vm6020_vm7, 4294967295, %v9685_v17  ;;  %v6045_v36 = vsel %vm6020_vm7, %v1264_v58, 0.0  ;;  %9693 = vst [vmem:[#allocation109_spill] sm:$0xff] %v6047_v6  ;;  %v9250_v42 = vrot.slane %v6047_v6, 7  ;;  %v6066_v1 = vmul.f32 %v5546_v26, %v6047_v6  ;;  %v5019_v58 = vld [vmem:[#allocation7 + $0x80] sm:$0xff] }
 0x195   : > { %9687 = vst [vmem:[#allocation107_spill] sm:$0xff] %v9686_v17  ;;  %v1272_v62 = vsel %vm9415_vm3, %v9692_v3, %v9691_v45  ;;  %v6070_v21 = vmul.f32 %v5566_v39, %v6047_v6  ;;  %v6072_v60 = vmul.f32 0.16666667, %v1077_v18  ;;  %v6074_v38 = vmul.f32 0.16666667, %v1075_v52  ;;  %2395 = vmatpush.bf16.msrb.mxu3 %v5019_v58  ;;  %v9731_v6 = vld [vmem:[#allocation71_spill] sm:$0xff] }
 0x196   : > { %9694 = vst [vmem:[#allocation110_spill] sm:$0xff] %v6052_v25  ;;  %v1280_v11 = vsel %vm5974_vm4, %v1272_v62, 0.0  ;;  %v1076_v23 = vmul.f32 %v1044_v61, %v5981_v41  ;;  %v9701_v45 = vrot.slane %v5592_v0, 7  ;;  %v6087_v62 = vperm.slane %v5522_v15, 5 }
 0x197   : > { %9695 = vst [vmem:[#allocation111_spill] sm:$0xff] %v6058_v51  ;;  %v1640_v18 = vmul.f32 %v5583_v50, %v5695_v7  ;;  %v1732_v52 = vmul.f32 %v6052_v25, %v6041_v55  ;;  %v1149_v61 = vrot.slane %v6072_v60, 7  ;;  %v6105_v10 = vmul.f32 %v5569_v40, %v6072_v60 }
 0x198   : > { %9696 = vst [vmem:[#allocation112_spill] sm:$0xff] %v6066_v1  ;;  %v1179_v3 = vsel %vm9414_vm0, %v9250_v42, %v9701_v45  ;;  %v6099_v45 = vmul.f32 %v5554_v30, %v6072_v60  ;;  %v1572_v9 = vmul.f32 %v6087_v62, %v1280_v11  ;;  %v9717_v1 = vld [vmem:[#allocation45_spill] sm:$0xff]  ;;  %v9745_v40 = vrot.slane %v9744_v43, 7 }
 0x199   : > { %9697 = vst [vmem:[#allocation113_spill] sm:$0xff] %v6070_v21  ;;  %v1183_v41 = vsel %vm6001_vm5, %v1179_v3, 0.0  ;;  %v9705_v3 = vrot.slane %v5989_v37, 7  ;;  %v1182_v51 = vsel %vm9414_vm0, %v1149_v61, %v9707_v22  ;;  %v9710_v21 = vrot.slane %v6074_v38, 7 }
 0x19a   : > { %9698 = vst [vmem:[#allocation114_spill] sm:$0xff] %v6072_v60  ;;  %v1316_v15 = vmul.f32 %v5602_v20, %v1183_v41  ;;  %v1468_v42 = vmul.f32 %v5573_v44, %v1183_v41  ;;  %v6121_v41 = vmul.f32 %v5558_v33, %v6074_v38  ;;  %v1186_v58 = vsel %vm6001_vm5, %v1182_v51, 0.0  ;;  %v9743_v33 = vld [vmem:[#allocation72_spill] sm:$0xff] }
 0x19b   : > { %9699 = vst [vmem:[#allocation115_spill] sm:$0xff] %v6074_v38  ;;  %v6112_v32 = vsel %vm9414_vm0, %v9705_v3, %v1149_v61  ;;  %v6135_v22 = vmul.f32 0.16666667, %v1076_v23  ;;  %v1319_v61 = vmul.f32 %v5605_v19, %v1186_v58  ;;  %v1408_v51 = vmul.f32 %v6078_v27, %v1280_v11  ;;  %v6151_v23 = vld [vmem:[#allocation6] sm:$0xf]  ;;  %v9722_v11 = vld [vmem:[#allocation80_spill] sm:$0xff] }
 0x19c   : > { %9700 = vst [vmem:[#allocation116_spill] sm:$0xff] %v6078_v27  ;;  %v9718_v31 = vrot.slane %v9717_v1, 7  ;;  %v9728_v60 = vrot.slane %v5595_v8, 1  ;;  %v6217_v5 = vperm.slane %v6151_v23, 3 }
 0x19d   : > { %9702 = vst [vmem:[#allocation117_spill] sm:$0xff] %v6087_v62  ;;  %v9719_v0 = vrot.slane %v6135_v22, 7 }
 0x19e   : > { %9703 = vst [vmem:[#allocation118_spill] sm:$0xff] %v6099_v45  ;;  %v1471_v45 = vmul.f32 %v5580_v49, %v1186_v58 }
 0x19f   : > { %9704 = vst [vmem:[#allocation119_spill] sm:$0xff] %v6105_v10  ;;  %v9709_v10 = vrot.slane %v5633_v16, 7 }
 0x1a0   : > { %9706 = vst [vmem:[#allocation120_spill] sm:$0xff] %v6112_v32  ;;  %v6133_v32 = vmul.f32 %v5590_v63, %v6074_v38  ;;  %v9720_v38 = vld [vmem:[#allocation52_spill] sm:$0xff] }
 0x1a1   : > { %9708 = vst [vmem:[#allocation121_spill] sm:$0xff] %v6121_v41  ;;  %v1180_v3 = vsel %vm9414_vm0, %v9710_v21, %v9709_v10  ;;  %v1376_v41 = vadd.f32 %v5610_v28, %v1316_v15  ;;  %v6145_v10 = vmul.f32 %v5562_v35, %v6135_v22  ;;  %v6149_v21 = vmul.f32 %v5597_v14, %v6135_v22  ;;  %v9716_v28 = vld [vmem:[#allocation41_spill] sm:$0xff] }
 0x1a2   : > { %9711 = vst [vmem:[#allocation122_spill] sm:$0xff] %v6133_v32  ;;  %v9715_v32 = vld [vmem:[#allocation42_spill] sm:$0xff]  ;;  %v1536_v15 = vadd.f32 %v9716_v28, %v1468_v42  ;;  %v1700_v12 = vadd.f32 %v9720_v38, %v1640_v18  ;;  %v6170_v42 = vperm.slane %v6151_v23, 0  ;;  %v9730_v18 = vld [vmem:[#allocation57_spill] sm:$0xff] }
 0x1a3   : > { %9712 = vst [vmem:[#allocation123_spill] sm:$0xff] %v6135_v22  ;;  %v1379_v58 = vadd.f32 %v9715_v32, %v1319_v61  ;;  %v1436_v57 = vadd.f32 %v1408_v51, %v1376_v41  ;;  %v1736_v32 = vmul.f32 %v6052_v25, %v6045_v36  ;;  %v9723_v61 = vrot.slane %v9722_v11, 1  ;;  %v9724_v51 = vld [vmem:[#allocation62_spill] sm:$0xff] }
 0x1a4   : > { %9713 = vst [vmem:[#allocation124_spill] sm:$0xff] %v6145_v10  ;;  %v6162_v10 = vsel %vm9414_vm0, %v9719_v0, %v9718_v31  ;;  %v1604_v41 = vadd.f32 %v1572_v9, %v1536_v15  ;;  %v9725_v28 = vrot.slane %v9724_v51, 1  ;;  %v9726_v31 = vld [vmem:[#allocation50_spill] sm:$0xff]  ;;  %v6187_v9 = vld [vmem:[%s9192_s5 + $0x38] ss:$0 sm:$0xff]  ;;  %v1760_v37 = vadd.f32 %v1732_v52, %v1700_v12 }
 0x1a5   : > { %9714 = vst [vmem:[#allocation125_spill] sm:$0xff] %v6149_v21  ;;  %v1576_v21 = vmul.f32 %v6087_v62, %v6041_v55  ;;  %v9727_v22 = vrot.slane %v9726_v31, 1  ;;  %v1764_v47 = vadd.f32 %v1736_v32, %v9731_v6  ;;  %v9739_v32 = vld [vmem:[#allocation54_spill] sm:$0xff] }
 0x1a6   : > { %9721 = vst [vmem:[#allocation42_spill] sm:$0xff] %v6170_v42  ;;  %v1267_v0 = vsel %vm9415_vm3, %v9725_v28, %v9723_v61  ;;  %v9732_v28 = vld [vmem:[#allocation70_spill] sm:$0xff]  ;;  %v1820_v52 = vadd.f32 %v1760_v37, %v1604_v41 }
 0x1a7   : > { %v1275_v38 = vsel %vm9415_vm3, %v9728_v60, %v9727_v22  ;;  %9729 = vst [vmem:[#allocation41_spill] sm:$0xff] %v6187_v9  ;;  %v1608_v15 = vadd.f32 %v1576_v21, %v9730_v18  ;;  %v6196_v8 = vsel %vm6014_vm6, %v9732_v28, 0.0  ;;  %v6200_v60 = vsel %vm6020_vm7, %v1267_v0, 0.0  ;;  %v9735_v22 = vld [vmem:[#allocation20_spill] sm:$0xff] }
 0x1a8   : > { %v1283_v61 = vsel %vm5974_vm4, %v1275_v38, 0.0  ;;  %9733 = vst [vmem:[#allocation52_spill] sm:$0xff] %v6196_v8  ;;  %v6203_v35 = vperm.slane %v9735_v22, 2  ;;  %v1539_v21 = vadd.f32 %v9737_v34, %v1471_v45  ;;  %v6207_v6 = vperm.slane %v9735_v22, 5  ;;  %v9740_v38 = vld [vmem:[#allocation34_spill] sm:$0xff] }
 0x1a9   : > { %9734 = vst [vmem:[#allocation62_spill] sm:$0xff] %v6200_v60  ;;  %v1792_v12 = vadd.f32 %v1608_v15, %v1436_v57  ;;  %v1643_v18 = vmul.f32 %v9740_v38, %v9739_v32  ;;  %v1735_v59 = vmul.f32 %v6187_v9, %v6196_v8  ;;  %v1739_v0 = vmul.f32 %v6187_v9, %v6200_v60  ;;  %v9742_v15 = vld [vmem:[#allocation58_spill] sm:$0xff]  ;;  %v9746_v38 = vld [vmem:[#allocation55_spill] sm:$0xff] }
 0x1aa   : > { %9736 = vst [vmem:[#allocation57_spill] sm:$0xff] %v6203_v35  ;;  %v1411_v28 = vmul.f32 %v6203_v35, %v1283_v61  ;;  %v1862_v57 = vadd.f32 %v6170_v42, %v1820_v52  ;;  %v1575_v37 = vmul.f32 %v6207_v6, %v1283_v61  ;;  %v1579_v45 = vmul.f32 %v6207_v6, %v6196_v8  ;;  %v9748_v61 = vld [vmem:[#allocation59_spill] sm:$0xff] }
 0x1ab   : > { %9738 = vst [vmem:[#allocation71_spill] sm:$0xff] %v6207_v6  ;;  %v1824_v34 = vadd.f32 %v1792_v12, %v1764_v47  ;;  %v1703_v22 = vadd.f32 %v9742_v15, %v1643_v18  ;;  %v1767_v48 = vadd.f32 %v1739_v0, %v9743_v33  ;;  %v9747_v9 = vrot.slane %v9746_v38, 7  ;;  %v9753_v15 = vld [vmem:[#allocation81_spill] sm:$0xff]  ;;  %v9764_v35 = vld [vmem:[#allocation47_spill] sm:$0xff] }
 0x1ac   : > { %9741 = vst [vmem:[#allocation70_spill] sm:$0xff] %v6217_v5  ;;  %v1439_v41 = vadd.f32 %v1411_v28, %v1379_v58  ;;  %v1894_v12 = vadd.f32 3.0, %v1862_v57  ;;  %v1607_v52 = vadd.f32 %v1575_v37, %v1539_v21  ;;  %v1611_v49 = vadd.f32 %v1579_v45, %v9748_v61 }
 0x1ad   : > { %v1172_v30 = vsel %vm9414_vm0, %v9747_v9, %v9745_v40  ;;  %v1866_v47 = vadd.f32 %v6170_v42, %v1824_v34  ;;  %v1763_v60 = vadd.f32 %v1735_v59, %v1703_v22  ;;  %v9749_v58 = vmov %v9747_v9 }
 0x1ae   : > { %v9750_v18 = vrot.slane %v5633_v16, 7  ;;  %v1184_v28 = vsel %vm6001_vm5, %v1180_v3, 0.0  ;;  %v6243_v40 = vsel %vm5689_vm2, %v1172_v30, 0.0  ;;  %v1926_v34 = vmax.f32 %v1894_v12, 0.0 }
 0x1af   : > { %v1898_v9 = vadd.f32 3.0, %v1866_v47  ;;  %v1795_v21 = vadd.f32 %v1611_v49, %v1439_v41  ;;  %v1823_v45 = vadd.f32 %v1763_v60, %v1607_v52  ;;  %v9754_v22 = vrot.slane %v9753_v15, 1 }
 0x1b0   : > { %v1176_v33 = vsel %vm9414_vm0, %v9750_v18, %v9749_v58  ;;  %v9755_v61 = vrot.slane %v9744_v43, 1  ;;  %v9757_v30 = vrot.slane %v9746_v38, 1  ;;  %v9759_v41 = vrot.slane %v5633_v16, 1 }
 0x1b1   : > { %v6247_v59 = vsel %vm5627_vm1, %v1176_v33, 0.0  ;;  %v1930_v52 = vmax.f32 %v1898_v9, 0.0  ;;  %v1958_v18 = vmin.f32 %v1926_v34, 6.0  ;;  %v1827_v33 = vadd.f32 %v1795_v21, %v1767_v48 }
 0x1b2   : > { %v1265_v58 = vsel %vm9415_vm3, %v9755_v61, %v9754_v22  ;;  %v9756_v3 = vmov %v9755_v61  ;;  %v9758_v49 = vmov %v9757_v30  ;;  %v1865_v61 = vadd.f32 %v6217_v5, %v1823_v45 }
 0x1b3   : > { %v1269_v12 = vsel %vm9415_vm3, %v9757_v30, %v9756_v3  ;;  %v1273_v60 = vsel %vm9415_vm3, %v9759_v41, %v9758_v49  ;;  %v6276_v3 = vsel %vm6020_vm7, %v1265_v58, 0.0  ;;  %v5179_v30 = vld [vmem:[%s9192_s5 + $0x8] sm:$0xff]  ;;  %v1962_v48 = vmin.f32 %v1930_v52, 6.0 }
 0x1b4   : > { %v1281_v22 = vsel %vm5974_vm4, %v1273_v60, 0.0  ;;  %v6272_v43 = vsel %vm6014_vm6, %v1269_v12, 0.0  ;;  %v6281_v9 = vperm.slane %v5179_v30, 0  ;;  %v1990_v34 = vmul.f32 %v1958_v18, %v1862_v57 }
 0x1b5   : > { %v1869_v21 = vadd.f32 %v6217_v5, %v1827_v33  ;;  %v6284_v49 = vperm.slane %v5179_v30, 2  ;;  %v1897_v45 = vadd.f32 3.0, %v1865_v61  ;;  %v6287_v41 = vperm.slane %v5179_v30, 3  ;;  %v6299_v33 = vld [vmem:[%s9192_s5 + $0x28] ss:$0 sm:$0xff] }
 0x1b6   : > { %9760 = vst [vmem:[#allocation20_spill] sm:$0xff] %v6281_v9  ;;  %v1317_v12 = vmul.f32 %v6281_v9, %v1184_v28  ;;  %v6289_v60 = vperm.slane %v5179_v30, 5  ;;  %v1994_v58 = vmul.f32 %v1962_v48, %v1866_v47  ;;  %v2022_v16 = vmul.f32 0.16666667, %v1990_v34 }
 0x1b7   : > { %9761 = vst [vmem:[#allocation46_spill] sm:$0xff] %v6284_v49  ;;  %v1901_v15 = vadd.f32 3.0, %v1869_v21  ;;  %v1409_v6 = vmul.f32 %v6284_v49, %v1281_v22  ;;  %v1929_v42 = vmax.f32 %v1897_v45, 0.0  ;;  %v1469_v57 = vmul.f32 %v6287_v41, %v1184_v28  ;;  %v9767_v28 = vld [vmem:[#allocation60_spill] sm:$0xff] }
 0x1b8   : > { %9762 = vst [vmem:[#allocation58_spill] sm:$0xff] %v6287_v41  ;;  %v1377_v52 = vadd.f32 %v9764_v35, %v1317_v12  ;;  %v1473_v18 = vmul.f32 %v6287_v41, %v6247_v59  ;;  %v2026_v5 = vmul.f32 0.16666667, %v1994_v58  ;;  %v1573_v47 = vmul.f32 %v6289_v60, %v1281_v22  ;;  %v9766_v35 = vld [vmem:[#allocation48_spill] sm:$0xff] }
 0x1b9   : > { %9763 = vst [vmem:[#allocation72_spill] sm:$0xff] %v6289_v60  ;;  %v1933_v9 = vmax.f32 %v1901_v15, 0.0  ;;  %v1577_v48 = vmul.f32 %v6289_v60, %v6272_v43  ;;  %v1961_v34 = vmin.f32 %v1929_v42, 6.0  ;;  %v1537_v12 = vadd.f32 %v9766_v35, %v1469_v57  ;;  %v9772_v57 = vld [vmem:[#allocation56_spill] sm:$0xff] }
 0x1ba   : > { %9765 = vst [vmem:[#allocation55_spill] sm:$0xff] %v6299_v33  ;;  %v1437_v45 = vadd.f32 %v1409_v6, %v1377_v52  ;;  %v1541_v49 = vadd.f32 %v9767_v28, %v1473_v18  ;;  %v2054_v8 = vpack.c.bf16 %v2026_v5, %v2022_v16  ;;  %v6306_v31 = vperm.slane %v5179_v30, 6  ;;  %v9777_v28 = vld [vmem:[#allocation82_spill] sm:$0xff] }
 0x1bb   : > { %v1965_v41 = vmin.f32 %v1933_v9, 6.0  ;;  %v1673_v19 = vmul.f32 %v5590_v63, %v9746_v38  ;;  %v1993_v58 = vmul.f32 %v1961_v34, %v1865_v61  ;;  %v1605_v15 = vadd.f32 %v1573_v47, %v1537_v12  ;;  %v9774_v47 = vld [vmem:[#allocation76_spill] sm:$0xff] }
 0x1bc   : > { %9768 = vst [vmem:[#allocation59_spill] sm:$0xff] %v6306_v31  ;;  %v1609_v32 = vadd.f32 %v1577_v48, %v1541_v49  ;;  %v1733_v22 = vmul.f32 %v6299_v33, %v6272_v43  ;;  %2338 = vmatmul.bf16.vlgmr.msra.gmra.mxu1 %v2054_v8  ;;  %v1641_v6 = vmul.f32 %v6306_v31, %v6247_v59  ;;  %v6319_v61 = vperm.slane %v6151_v23, 1  ;;  %v9770_v49 = vld [vmem:[#allocation75_spill] sm:$0xff] }
 0x1bd   : > { %v1997_v42 = vmul.f32 %v1965_v41, %v1869_v21  ;;  %v1645_v16 = vmul.f32 %v6306_v31, %v6243_v40  ;;  %v1737_v5 = vmul.f32 %v6299_v33, %v6276_v3  ;;  %v2025_v30 = vmul.f32 0.16666667, %v1993_v58 }
 0x1be   : > { %v1793_v9 = vadd.f32 %v1609_v32, %v1437_v45  ;;  %9769 = vst [vmem:[#allocation47_spill] sm:$0xff] %v6319_v61  ;;  %v9771_v52 = vrot.slane %v9770_v49, 7  ;;  %v9773_v18 = vrot.slane %v9772_v57, 7  ;;  %v1701_v41 = vadd.f32 %v1673_v19, %v1641_v6 }
 0x1bf   : > { %v2029_v21 = vmul.f32 0.16666667, %v1997_v42  ;;  %v1705_v48 = vadd.f32 %v9774_v47, %v1645_v16  ;;  %v9776_v35 = vrot.slane %v9717_v1, 7  ;;  %v1185_v45 = vsel %vm6001_vm5, %v6162_v10, 0.0 }
 0x1c0   : > { %v1173_v8 = vsel %vm9414_vm0, %v9773_v18, %v9771_v52  ;;  %v9775_v34 = vmov %v9773_v18  ;;  %v9778_v58 = vrot.slane %v9777_v28, 1  ;;  %v9779_v42 = vrot.slane %v9770_v49, 1 }
 0x1c1   : > { %v1177_v32 = vsel %vm9414_vm0, %v9776_v35, %v9775_v34  ;;  %v6343_v19 = vsel %vm5689_vm2, %v1173_v8, 0.0  ;;  %v2057_v16 = vpack.c.bf16 %v2029_v21, %v2025_v30  ;;  %v1761_v52 = vadd.f32 %v1733_v22, %v1701_v41 }
 0x1c2   : > { %v6339_v12 = vsel %vm5627_vm1, %v1177_v32, 0.0  ;;  %v1266_v6 = vsel %vm9415_vm3, %v9779_v42, %v9778_v58  ;;  %v1765_v18 = vadd.f32 %v1737_v5, %v1705_v48  ;;  %v9780_v10 = vmov %v9779_v42  ;;  %v5180_v5 = vld [vmem:[%s9192_s5 + $0x10] sm:$0xff] }
 0x1c3   : > { %v9781_v47 = vrot.slane %v9772_v57, 1  ;;  %v9783_v35 = vrot.slane %v9717_v1, 1  ;;  %v6369_v22 = vsel %vm6020_vm7, %v1266_v6, 0.0  ;;  %v6374_v30 = vperm.slane %v5180_v5, 0  ;;  %2425 = vmatmul.bf16.vlgmr.msra.gmra.mxu0 %v2057_v16  ;;  %v6395_v16 = vld [vmem:[%s9192_s5 + $0x30] ss:$0 sm:$0xff] }
 0x1c4   : > { %v1821_v21 = vadd.f32 %v1761_v52, %v1605_v15  ;;  %v1825_v41 = vadd.f32 %v1793_v9, %v1765_v18  ;;  %v6378_v42 = vperm.slane %v5180_v5, 2  ;;  %v6383_v6 = vperm.slane %v5180_v5, 5  ;;  %9788 = vst [vmem:[#allocation82_spill] sm:$0xff] %v6395_v16  ;;  %v9789_v52 = vld [vmem:[#allocation49_spill] sm:$0xff] }
 0x1c5   : > { %v1270_v34 = vsel %vm9415_vm3, %v9781_v47, %v9780_v10  ;;  %v9782_v8 = vmov %v9781_v47  ;;  %v1318_v10 = vmul.f32 %v6374_v30, %v1185_v45  ;;  %v6381_v47 = vperm.slane %v5180_v5, 3  ;;  %v9791_v1 = vld [vmem:[#allocation61_spill] sm:$0xff] }
 0x1c6   : > { %v1274_v32 = vsel %vm9415_vm3, %v9783_v35, %v9782_v8  ;;  %v6365_v58 = vsel %vm6014_vm6, %v1270_v34, 0.0  ;;  %9784 = vst [vmem:[#allocation48_spill] sm:$0xff] %v6378_v42  ;;  %v6385_v34 = vperm.slane %v5180_v5, 6  ;;  %v1863_v8 = vadd.f32 %v6319_v61, %v1821_v21 }
 0x1c7   : > { %v1282_v48 = vsel %vm5974_vm4, %v1274_v32, 0.0  ;;  %9785 = vst [vmem:[#allocation60_spill] sm:$0xff] %v6381_v47  ;;  %v1867_v35 = vadd.f32 %v6319_v61, %v1825_v41  ;;  %v1674_v9 = vmul.f32 %v5597_v14, %v9772_v57  ;;  %v1378_v18 = vadd.f32 %v9789_v52, %v1318_v10 }
 0x1c8   : > { %9786 = vst [vmem:[#allocation75_spill] sm:$0xff] %v6383_v6  ;;  %v1410_v15 = vmul.f32 %v6378_v42, %v1282_v48  ;;  %v1470_v32 = vmul.f32 %v6381_v47, %v1185_v45  ;;  %v1474_v5 = vmul.f32 %v6381_v47, %v6339_v12  ;;  %v1574_v21 = vmul.f32 %v6383_v6, %v1282_v48 }
 0x1c9   : > { %9787 = vst [vmem:[#allocation76_spill] sm:$0xff] %v6385_v34  ;;  %v1895_v41 = vadd.f32 3.0, %v1863_v8  ;;  %v1899_v24 = vadd.f32 3.0, %v1867_v35  ;;  %v1578_v17 = vmul.f32 %v6383_v6, %v6365_v58  ;;  %v1642_v53 = vmul.f32 %v6385_v34, %v6339_v12  ;;  %v9792_v6 = vld [vmem:[#allocation79_spill] sm:$0xff] }
 0x1ca   : > { %v1438_v0 = vadd.f32 %v1410_v15, %v1378_v18  ;;  %v1538_v37 = vadd.f32 %v9790_v2, %v1470_v32  ;;  %v1542_v10 = vadd.f32 %v9791_v1, %v1474_v5  ;;  %v1646_v45 = vmul.f32 %v6385_v34, %v6343_v19 }
 0x1cb   : > { %v1927_v52 = vmax.f32 %v1895_v41, 0.0  ;;  %v1931_v14 = vmax.f32 %v1899_v24, 0.0  ;;  %v1702_v47 = vadd.f32 %v1674_v9, %v1642_v53  ;;  %v1734_v48 = vmul.f32 %v6395_v16, %v6365_v58 }
 0x1cc   : > { %v1606_v61 = vadd.f32 %v1574_v21, %v1538_v37  ;;  %v1610_v42 = vadd.f32 %v1578_v17, %v1542_v10  ;;  %v1706_v57 = vadd.f32 %v9792_v6, %v1646_v45  ;;  %v1738_v15 = vmul.f32 %v6395_v16, %v6369_v22  ;;  %v9794_v21 = vld [vmem:[#allocation83_spill] sm:$0xff] }
 0x1cd   : > { %v1959_v18 = vmin.f32 %v1927_v52, 6.0  ;;  %v1963_v2 = vmin.f32 %v1931_v14, 6.0  ;;  %v1762_v32 = vadd.f32 %v1734_v48, %v1702_v47  ;;  %v6416_v1 = vperm.slane %v6151_v23, 2 }
 0x1ce   : > { %v1766_v5 = vadd.f32 %v1738_v15, %v1706_v57  ;;  %v1794_v41 = vadd.f32 %v1610_v42, %v1438_v0  ;;  %v511_v24 = vadd.s32 24, %v5517_v13  ;;  %v512_v53 = vadd.s32 32, %v5517_v13 }
 0x1cf   : > { %9793 = vst [vmem:[#allocation49_spill] sm:$0xff] %v6416_v1  ;;  %v1991_v9 = vmul.f32 %v1959_v18, %v1863_v8  ;;  %v1995_v37 = vmul.f32 %v1963_v2, %v1867_v35  ;;  %v1822_v17 = vadd.f32 %v1762_v32, %v1606_v61  ;;  %v9795_v6 = vrot.slane %v9794_v21, 7 }
 0x1d0   : > { %v9796_v10 = vrot.slane %v5850_v56, 7  ;;  %v1826_v47 = vadd.f32 %v1794_v41, %v1766_v5  ;;  %v541_v45 = vand.u32 7, %v511_v24  ;;  %v548_v23 = vand.u32 7, %v512_v53 }
 0x1d1   : > { %v9798_v0 = vrot.slane %v5735_v54, 7  ;;  %v2023_v8 = vmul.f32 0.16666667, %v1991_v9  ;;  %v2027_v35 = vmul.f32 0.16666667, %v1995_v37  ;;  %v1864_v61 = vadd.f32 %v6416_v1, %v1822_v17 }
 0x1d2   : > { %v1163_v14 = vsel %vm9414_vm0, %v9796_v10, %v9795_v6  ;;  %v9797_v57 = vmov %v9796_v10  ;;  %v9799_v52 = vrot.slane %v5932_v46, 1  ;;  %v9800_v48 = vrot.slane %v9794_v21, 1 }
 0x1d3   : > { %v1167_v42 = vsel %vm9414_vm0, %v9798_v0, %v9797_v57  ;;  %v1868_v18 = vadd.f32 %v6416_v1, %v1826_v47  ;;  %vm6440_vm8 = vcmp.ne.s32.totalorder %v541_v45, 0  ;;  %v9801_v2 = vmov 0  ;;  %v9815_v57 = vld [vmem:[#allocation67_spill] sm:$0xff] }
 0x1d4   : > { %v1256_v15 = vsel %vm9415_vm3, %v9800_v48, %v9799_v52  ;;  %v9802_v2 = vsel %vm6440_vm8, 4294967295, %v9801_v2  ;;  %vm6444_vm9 = vcmp.ne.s32.totalorder %v548_v23, 0  ;;  %v9804_v54 = vmov 0 }
 0x1d5   : > { %9803 = vst [vmem:[#allocation51_spill] sm:$0xff] %v9802_v2  ;;  %v9805_v54 = vsel %vm6444_vm9, 4294967295, %v9804_v54  ;;  %vm6448_vm10 = vcmp.ne.s32.totalorder %v541_v45, 7  ;;  %v9807_v32 = vmov 0  ;;  %v2055_v5 = vpack.c.bf16 %v2027_v35, %v2023_v8  ;;  %v9816_v8 = vld [vmem:[#allocation21_spill] sm:$0xff] }
 0x1d6   : > { %9806 = vst [vmem:[#allocation61_spill] sm:$0xff] %v9805_v54  ;;  %v9808_v32 = vsel %vm6448_vm10, 4294967295, %v9807_v32  ;;  %v1896_v41 = vadd.f32 3.0, %v1864_v61  ;;  %vm6452_vm11 = vcmp.ne.s32.totalorder %v548_v23, 7  ;;  %v9810_v24 = vmov 0 }
 0x1d7   : > { %9809 = vst [vmem:[#allocation79_spill] sm:$0xff] %v9808_v32  ;;  %v9811_v24 = vsel %vm6452_vm11, 4294967295, %v9810_v24  ;;  %v6458_v53 = vsel %vm6440_vm8, %v1167_v42, 0.0  ;;  %v1900_v9 = vadd.f32 3.0, %v1868_v18  ;;  %v6462_v37 = vsel %vm6444_vm9, %v1163_v14, 0.0  ;;  %2367 = vmatmul.bf16.vlgmr.msrb.gmra.mxu2 %v2055_v5  ;;  %v9817_v5 = vld [vmem:[#allocation63_spill] sm:$0xff] }
 0x1d8   : > { %9812 = vst [vmem:[#allocation83_spill] sm:$0xff] %v9811_v24  ;;  %v9813_v17 = vmov %v9800_v48  ;;  %v9814_v6 = vrot.slane %v5850_v56, 1  ;;  %v6472_v47 = vsel %vm6452_vm11, %v1256_v15, 0.0  ;;  %v1928_v45 = vmax.f32 %v1896_v41, 0.0 }
 0x1d9   : > { %v1320_v14 = vmul.f32 %v5602_v20, %v5695_v7  ;;  %v1324_v0 = vmul.f32 %v5602_v20, %v9815_v57  ;;  %v1932_v42 = vmax.f32 %v1900_v9, 0.0  ;;  %v1352_v35 = vmul.f32 %v9816_v8, %v5657_v4 }
 0x1da   : > { %v1260_v10 = vsel %vm9415_vm3, %v9814_v6, %v9813_v17  ;;  %v1412_v52 = vmul.f32 %v6078_v27, %v6041_v55  ;;  %v1416_v48 = vmul.f32 %v6078_v27, %v6045_v36  ;;  %v1960_v15 = vmin.f32 %v1928_v45, 6.0  ;;  %v9818_v27 = vld [vmem:[#allocation64_spill] sm:$0xff] }
 0x1db   : > { %v6476_v23 = vsel %vm6448_vm10, %v1260_v10, 0.0  ;;  %v1384_v41 = vadd.f32 %v9817_v5, %v1324_v0  ;;  %v1476_v17 = vmul.f32 %v5573_v44, %v9815_v57  ;;  %v1480_v7 = vmul.f32 %v5573_v44, %v6458_v53 }
 0x1dc   : > { %v1964_v6 = vmin.f32 %v1932_v42, 6.0  ;;  %v1380_v9 = vadd.f32 %v1352_v35, %v1320_v14  ;;  %v1516_v4 = vmul.f32 %v5546_v26, %v5850_v56  ;;  %v1580_v55 = vmul.f32 %v6087_v62, %v6045_v36 }
 0x1dd   : > { %v1992_v10 = vmul.f32 %v1960_v15, %v1864_v61  ;;  %v1444_v8 = vadd.f32 %v1416_v48, %v1384_v41  ;;  %v1544_v45 = vadd.f32 %v9818_v27, %v1476_v17  ;;  %v1584_v0 = vmul.f32 %v6087_v62, %v6476_v23  ;;  %v9819_v17 = vld [vmem:[#allocation85_spill] sm:$0xff] }
 0x1de   : > { %v1996_v5 = vmul.f32 %v1964_v6, %v1868_v18  ;;  %v1440_v57 = vadd.f32 %v1412_v52, %v1380_v9  ;;  %v1548_v20 = vadd.f32 %v1516_v4, %v1480_v7  ;;  %v1648_v42 = vmul.f32 %v5583_v50, %v6458_v53 }
 0x1df   : > { %v2024_v14 = vmul.f32 0.16666667, %v1992_v10  ;;  %v1612_v35 = vadd.f32 %v1580_v55, %v1544_v45  ;;  %v1652_v26 = vmul.f32 %v5583_v50, %v6462_v37  ;;  %v1680_v36 = vmul.f32 %v5566_v39, %v5850_v56 }
 0x1e0   : > { %v2028_v61 = vmul.f32 0.16666667, %v1996_v5  ;;  %v1616_v48 = vadd.f32 %v1584_v0, %v1548_v20  ;;  %v1684_v27 = vmul.f32 %v5566_v39, %v9794_v21  ;;  %v1740_v18 = vmul.f32 %v6052_v25, %v6476_v23 }
 0x1e1   : > { %v1708_v52 = vadd.f32 %v1680_v36, %v1648_v42  ;;  %v1744_v15 = vmul.f32 %v6052_v25, %v6472_v47  ;;  %v1796_v41 = vadd.f32 %v1612_v35, %v1440_v57  ;;  %v9820_v7 = vrot.slane %v9819_v17, 7 }
 0x1e2   : > { %v9821_v6 = vrot.slane %v9722_v11, 7  ;;  %v2056_v4 = vpack.c.bf16 %v2028_v61, %v2024_v14  ;;  %v1712_v20 = vadd.f32 %v1684_v27, %v1652_v26  ;;  %v1800_v55 = vadd.f32 %v1616_v48, %v1444_v8  ;;  %v9830_v27 = vld [vmem:[#allocation54_spill] sm:$0xff] }
 0x1e3   : > { %v9823_v45 = vrot.slane %v9724_v51, 7  ;;  %v1768_v5 = vadd.f32 %v1740_v18, %v1708_v52  ;;  %v9826_v14 = vrot.slane %v5934_v29, 1  ;;  %v9827_v26 = vrot.slane %v9819_v17, 1  ;;  %v9831_v18 = vld [vmem:[#allocation40_spill] sm:$0xff]  ;;  %v9840_v29 = vld [vmem:[#allocation65_spill] sm:$0xff] }
 0x1e4   : > { %v1166_v9 = vsel %vm9414_vm0, %v9821_v6, %v9820_v7  ;;  %v9822_v10 = vmov %v9821_v6  ;;  %2396 = vmatmul.bf16.vlgmr.msrb.gmra.mxu3 %v2056_v4  ;;  %v1772_v51 = vadd.f32 %v1744_v15, %v1712_v20  ;;  %v9829_v36 = vrot.slane %v9722_v11, 1  ;;  %v9832_v15 = vld [vmem:[#allocation68_spill] sm:$0xff]  ;;  %v9833_v4 = vld [vmem:[#allocation50_spill] sm:$0xff]  ;;  %v9834_v20 = vld [vmem:[#allocation23_spill] sm:$0xff] }
 0x1e5   : > { %v1170_v0 = vsel %vm9414_vm0, %v9823_v45, %v9822_v10  ;;  %v6530_v42 = vsel %vm6444_vm9, %v1166_v9, 0.0  ;;  %v1259_v8 = vsel %vm9415_vm3, %v9827_v26, %v9826_v14  ;;  %v9828_v35 = vmov %v9827_v26  ;;  %v9836_v14 = vld [vmem:[#allocation57_spill] sm:$0xff] }
 0x1e6   : > { %v6526_v57 = vsel %vm6440_vm8, %v1170_v0, 0.0  ;;  %9825 = vst [vmem:[#allocation63_spill] sm:$0xff] %v6530_v42  ;;  %v1263_v61 = vsel %vm9415_vm3, %v9829_v36, %v9828_v35  ;;  %v6546_v48 = vsel %vm6452_vm11, %v1259_v8, 0.0  ;;  %v1323_v52 = vmul.f32 %v9831_v18, %v9830_v27  ;;  %v9835_v0 = vld [vmem:[#allocation52_spill] sm:$0xff]  ;;  %v9837_v8 = vld [vmem:[#allocation62_spill] sm:$0xff] }
 0x1e7   : > { %9824 = vst [vmem:[#allocation67_spill] sm:$0xff] %v6526_v57  ;;  %v1828_v7 = vadd.f32 %v1796_v41, %v1768_v5  ;;  %v6552_v6 = vsel %vm6448_vm10, %v1263_v61, 0.0  ;;  %v1327_v9 = vmul.f32 %v9831_v18, %v9832_v15  ;;  %v1355_v10 = vmul.f32 %v9834_v20, %v9833_v4  ;;  %v9838_v36 = vld [vmem:[#allocation32_spill] sm:$0xff]  ;;  %v9839_v5 = vld [vmem:[#allocation42_spill] sm:$0xff] }
 0x1e8   : > { %v1832_v45 = vadd.f32 %v1800_v55, %v1772_v51  ;;  %v1415_v26 = vmul.f32 %v9836_v14, %v9835_v0  ;;  %v1419_v35 = vmul.f32 %v9836_v14, %v9837_v8  ;;  %v1479_v41 = vmul.f32 %v9838_v36, %v9832_v15  ;;  %v9841_v55 = vld [vmem:[#allocation24_spill] sm:$0xff]  ;;  %v9842_v0 = vld [vmem:[#allocation66_spill] sm:$0xff]  ;;  %v9843_v14 = vld [vmem:[#allocation71_spill] sm:$0xff] }
 0x1e9   : > { %v1870_v27 = vadd.f32 %v9839_v5, %v1828_v7  ;;  %v1383_v61 = vadd.f32 %v1355_v10, %v1323_v52  ;;  %v1387_v25 = vadd.f32 %v9840_v29, %v1327_v9  ;;  %v1483_v18 = vmul.f32 %v9838_v36, %v6526_v57  ;;  %v9844_v10 = vld [vmem:[#allocation34_spill] sm:$0xff] }
 0x1ea   : > { %v1874_v4 = vadd.f32 %v9839_v5, %v1832_v45  ;;  %v1519_v51 = vmul.f32 %v9841_v55, %v9722_v11  ;;  %v1547_v20 = vadd.f32 %v9842_v0, %v1479_v41  ;;  %v1583_v39 = vmul.f32 %v9843_v14, %v9837_v8  ;;  %v9845_v41 = vld [vmem:[#allocation30_spill] sm:$0xff] }
 0x1eb   : > { %v1902_v50 = vadd.f32 3.0, %v1870_v27  ;;  %v1443_v15 = vadd.f32 %v1415_v26, %v1383_v61  ;;  %v1447_v62 = vadd.f32 %v1419_v35, %v1387_v25  ;;  %v1587_v52 = vmul.f32 %v9843_v14, %v6552_v6  ;;  %v9846_v35 = vld [vmem:[#allocation41_spill] sm:$0xff]  ;;  %v9847_v36 = vld [vmem:[#allocation86_spill] sm:$0xff] }
 0x1ec   : > { %v1906_v29 = vadd.f32 3.0, %v1874_v4  ;;  %v1551_v7 = vadd.f32 %v1519_v51, %v1483_v18  ;;  %v1615_v9 = vadd.f32 %v1583_v39, %v1547_v20  ;;  %v1651_v45 = vmul.f32 %v9844_v10, %v6526_v57 }
 0x1ed   : > { %v1934_v5 = vmax.f32 %v1902_v50, 0.0  ;;  %v1655_v55 = vmul.f32 %v9844_v10, %v6530_v42  ;;  %v1683_v0 = vmul.f32 %v9845_v41, %v9722_v11  ;;  %v1687_v26 = vmul.f32 %v9845_v41, %v9819_v17  ;;  %v9849_v11 = vld [vmem:[#allocation81_spill] sm:$0xff] }
 0x1ee   : > { %v1938_v25 = vmax.f32 %v1906_v29, 0.0  ;;  %v1619_v8 = vadd.f32 %v1587_v52, %v1551_v7  ;;  %v1743_v61 = vmul.f32 %v9846_v35, %v6552_v6  ;;  %v1747_v39 = vmul.f32 %v9846_v35, %v6546_v48  ;;  %v9852_v7 = vld [vmem:[#allocation69_spill] sm:$0xff] }
 0x1ef   : > { %v1966_v18 = vmin.f32 %v1934_v5, 6.0  ;;  %v1711_v20 = vadd.f32 %v1683_v0, %v1651_v45  ;;  %v1715_v50 = vadd.f32 %v1687_v26, %v1655_v55  ;;  %v1799_v51 = vadd.f32 %v1615_v9, %v1443_v15 }
 0x1f0   : > { %v1970_v14 = vmin.f32 %v1938_v25, 6.0  ;;  %v1803_v10 = vadd.f32 %v1619_v8, %v1447_v62  ;;  %v9848_v42 = vrot.slane %v9847_v36, 7  ;;  %v9850_v57 = vrot.slane %v9849_v11, 7 }
 0x1f1   : > { %v9853_v41 = vrot.slane %v9852_v7, 7  ;;  %v1998_v5 = vmul.f32 %v1966_v18, %v1870_v27  ;;  %v1771_v45 = vadd.f32 %v1743_v61, %v1711_v20  ;;  %v1775_v55 = vadd.f32 %v1747_v39, %v1715_v50  ;;  %v9859_v18 = vld [vmem:[#allocation20_spill] sm:$0xff] }
 0x1f2   : > { %v1164_v29 = vsel %vm9414_vm0, %v9850_v57, %v9848_v42  ;;  %v9851_v52 = vmov %v9850_v57  ;;  %v2002_v15 = vmul.f32 %v1970_v14, %v1874_v4  ;;  %v9854_v57 = vld [vmem:[#allocation96_spill] sm:$0xff]  ;;  %v9856_v0 = vrot.slane %v9847_v36, 1 }
 0x1f3   : > { %v1168_v35 = vsel %vm9414_vm0, %v9853_v41, %v9851_v52  ;;  %v6606_v9 = vsel %vm6444_vm9, %v1164_v29, 0.0  ;;  %v9855_v42 = vrot.slane %v9854_v57, 1  ;;  %v9858_v41 = vrot.slane %v9849_v11, 1  ;;  %v9860_v29 = vld [vmem:[#allocation70_spill] sm:$0xff] }
 0x1f4   : > { %v6602_v62 = vsel %vm6440_vm8, %v1168_v35, 0.0  ;;  %v9857_v27 = vmov %v9856_v0  ;;  %v2030_v8 = vmul.f32 0.16666667, %v1998_v5  ;;  %v1831_v14 = vadd.f32 %v1799_v51, %v1771_v45  ;;  %v9862_v5 = vld [vmem:[#allocation46_spill] sm:$0xff] }
 0x1f5   : > { %v1257_v26 = vsel %vm9415_vm3, %v9856_v0, %v9855_v42  ;;  %v1261_v25 = vsel %vm9415_vm3, %v9858_v41, %v9857_v27  ;;  %v1835_v4 = vadd.f32 %v1803_v10, %v1775_v55  ;;  %v2034_v61 = vmul.f32 0.16666667, %v2002_v15  ;;  %v9861_v10 = vld [vmem:[#allocation25_spill] sm:$0xff] }
 0x1f6   : > { %v6622_v35 = vsel %vm6448_vm10, %v1261_v25, 0.0  ;;  %v6626_v39 = vsel %vm6452_vm11, %v1257_v26, 0.0  ;;  %v1321_v20 = vmul.f32 %v9859_v18, %v6247_v59  ;;  %v1325_v50 = vmul.f32 %v9859_v18, %v6243_v40  ;;  %v9863_v15 = vld [vmem:[#allocation73_spill] sm:$0xff]  ;;  %v9864_v59 = vld [vmem:[#allocation58_spill] sm:$0xff] }
 0x1f7   : > { %v1873_v52 = vadd.f32 %v9860_v29, %v1831_v14  ;;  %v1877_v51 = vadd.f32 %v9860_v29, %v1835_v4  ;;  %v1353_v7 = vmul.f32 %v9861_v10, %v9746_v38  ;;  %v1413_v45 = vmul.f32 %v9862_v5, %v6272_v43  ;;  %v9865_v4 = vld [vmem:[#allocation26_spill] sm:$0xff] }
 0x1f8   : > { %v2058_v55 = vpack.c.bf16 %v2034_v61, %v2030_v8  ;;  %v1385_v42 = vadd.f32 %v9863_v15, %v1325_v50  ;;  %v1417_v0 = vmul.f32 %v9862_v5, %v6276_v3  ;;  %v1477_v26 = vmul.f32 %v9864_v59, %v6243_v40  ;;  %v9866_v8 = vld [vmem:[#allocation74_spill] sm:$0xff] }
 0x1f9   : > { %v1905_v27 = vadd.f32 3.0, %v1873_v52  ;;  %v1909_v41 = vadd.f32 3.0, %v1877_v51  ;;  %v1381_v25 = vadd.f32 %v1353_v7, %v1321_v20  ;;  %v1481_v14 = vmul.f32 %v9864_v59, %v6602_v62 }
 0x1fa   : > { %2343 = vmatmul.bf16.gmra.mxu1 %v2058_v55  ;;  %v1445_v38 = vadd.f32 %v1417_v0, %v1385_v42  ;;  %v1517_v43 = vmul.f32 %v9865_v4, %v9849_v11  ;;  %v1545_v61 = vadd.f32 %v9866_v8, %v1477_v26  ;;  %v1581_v50 = vmul.f32 %v6289_v60, %v6276_v3 }
 0x1fb   : > { %v1937_v15 = vmax.f32 %v1905_v27, 0.0  ;;  %v1941_v5 = vmax.f32 %v1909_v41, 0.0  ;;  %v1441_v10 = vadd.f32 %v1413_v45, %v1381_v25  ;;  %v1585_v40 = vmul.f32 %v6289_v60, %v6622_v35 }
 0x1fc   : > { %v1549_v20 = vadd.f32 %v1517_v43, %v1481_v14  ;;  %v1613_v7 = vadd.f32 %v1581_v50, %v1545_v61  ;;  %v1649_v55 = vmul.f32 %v6306_v31, %v6602_v62  ;;  %v1653_v42 = vmul.f32 %v6306_v31, %v6606_v9 }
 0x1fd   : > { %v1969_v0 = vmin.f32 %v1937_v15, 6.0  ;;  %v1973_v4 = vmin.f32 %v1941_v5, 6.0  ;;  %v1681_v26 = vmul.f32 %v5590_v63, %v9849_v11  ;;  %v1685_v3 = vmul.f32 %v5590_v63, %v9847_v36  ;;  %v9867_v5 = vld [vmem:[#allocation91_spill] sm:$0xff] }
 0x1fe   : > { %v1617_v45 = vadd.f32 %v1585_v40, %v1549_v20  ;;  %v1741_v27 = vmul.f32 %v6299_v33, %v6622_v35  ;;  %v1745_v41 = vmul.f32 %v6299_v33, %v6626_v39  ;;  %v1797_v25 = vadd.f32 %v1613_v7, %v1441_v10  ;;  %v9872_v10 = vld [vmem:[#allocation97_spill] sm:$0xff] }
 0x1ff   : > { %v2001_v14 = vmul.f32 %v1969_v0, %v1873_v52  ;;  %v2005_v43 = vmul.f32 %v1973_v4, %v1877_v51  ;;  %v1709_v8 = vadd.f32 %v1681_v26, %v1649_v55  ;;  %v1713_v61 = vadd.f32 %v1685_v3, %v1653_v42 }
 0x200   : > { %v1801_v50 = vadd.f32 %v1617_v45, %v1445_v38  ;;  %v9868_v15 = vrot.slane %v9867_v5, 7  ;;  %v9869_v31 = vrot.slane %v9777_v28, 7  ;;  %v9871_v20 = vrot.slane %v9770_v49, 7 }
 0x201   : > { %v9873_v52 = vrot.slane %v9872_v10, 1  ;;  %v9874_v51 = vrot.slane %v9867_v5, 1  ;;  %v2033_v4 = vmul.f32 0.16666667, %v2001_v14  ;;  %v2037_v7 = vmul.f32 0.16666667, %v2005_v43 }
 0x202   : > { %v1165_v63 = vsel %vm9414_vm0, %v9869_v31, %v9868_v15  ;;  %v9870_v40 = vmov %v9869_v31  ;;  %v1769_v55 = vadd.f32 %v1741_v27, %v1709_v8  ;;  %v1773_v42 = vadd.f32 %v1745_v41, %v1713_v61  ;;  %v9877_v8 = vld [vmem:[#allocation56_spill] sm:$0xff]  ;;  %v9878_v61 = vld [vmem:[#allocation27_spill] sm:$0xff] }
 0x203   : > { %v1169_v33 = vsel %vm9414_vm0, %v9871_v20, %v9870_v40  ;;  %v1258_v38 = vsel %vm9415_vm3, %v9874_v51, %v9873_v52  ;;  %v6688_v49 = vsel %vm6444_vm9, %v1165_v63, 0.0  ;;  %v9875_v0 = vmov %v9874_v51  ;;  %v9879_v40 = vld [vmem:[#allocation48_spill] sm:$0xff]  ;;  %v9880_v52 = vld [vmem:[#allocation47_spill] sm:$0xff] }
 0x204   : > { %v6684_v31 = vsel %vm6440_vm8, %v1169_v33, 0.0  ;;  %v9876_v26 = vrot.slane %v9777_v28, 1  ;;  %v6698_v45 = vsel %vm6452_vm11, %v1258_v38, 0.0  ;;  %v2061_v27 = vpack.c.bf16 %v2037_v7, %v2033_v4  ;;  %v9881_v38 = vld [vmem:[#allocation60_spill] sm:$0xff]  ;;  %v9882_v7 = vld [vmem:[#allocation77_spill] sm:$0xff] }
 0x205   : > { %v1829_v41 = vadd.f32 %v1797_v25, %v1769_v55  ;;  %v1833_v14 = vadd.f32 %v1801_v50, %v1773_v42  ;;  %v1322_v63 = vmul.f32 %v6374_v30, %v6339_v12  ;;  %v1326_v43 = vmul.f32 %v6374_v30, %v6343_v19 }
 0x206   : > { %v1262_v3 = vsel %vm9415_vm3, %v9876_v26, %v9875_v0  ;;  %v1354_v15 = vmul.f32 %v9878_v61, %v9877_v8  ;;  %v1414_v20 = vmul.f32 %v9879_v40, %v6365_v58  ;;  %2430 = vmatmul.bf16.gmra.mxu0 %v2061_v27  ;;  %v1418_v51 = vmul.f32 %v9879_v40, %v6369_v22  ;;  %v9883_v0 = vld [vmem:[#allocation28_spill] sm:$0xff]  ;;  %v9884_v27 = vld [vmem:[#allocation78_spill] sm:$0xff] }
 0x207   : > { %v6702_v33 = vsel %vm6448_vm10, %v1262_v3, 0.0  ;;  %v1871_v25 = vadd.f32 %v9880_v52, %v1829_v41  ;;  %v1875_v50 = vadd.f32 %v9880_v52, %v1833_v14  ;;  %v1478_v12 = vmul.f32 %v9881_v38, %v6343_v19  ;;  %v9885_v14 = vld [vmem:[#allocation75_spill] sm:$0xff] }
 0x208   : > { %v1382_v4 = vadd.f32 %v1354_v15, %v1322_v63  ;;  %v1386_v55 = vadd.f32 %v9882_v7, %v1326_v43  ;;  %v1482_v42 = vmul.f32 %v9881_v38, %v6684_v31  ;;  %v1518_v58 = vmul.f32 %v9883_v0, %v9777_v28 }
 0x209   : > { %v1903_v26 = vadd.f32 3.0, %v1871_v25  ;;  %v1907_v3 = vadd.f32 3.0, %v1875_v50  ;;  %v1546_v41 = vadd.f32 %v9884_v27, %v1478_v12  ;;  %v1582_v8 = vmul.f32 %v9885_v14, %v6369_v22  ;;  %v9886_v12 = vld [vmem:[#allocation38_spill] sm:$0xff] }
 0x20a   : > { %v1442_v24 = vadd.f32 %v1414_v20, %v1382_v4  ;;  %v1446_v32 = vadd.f32 %v1418_v51, %v1386_v55  ;;  %v1550_v54 = vadd.f32 %v1518_v58, %v1482_v42  ;;  %v1586_v19 = vmul.f32 %v9885_v14, %v6702_v33 }
 0x20b   : > { %v1935_v63 = vmax.f32 %v1903_v26, 0.0  ;;  %v1939_v43 = vmax.f32 %v1907_v3, 0.0  ;;  %v1614_v15 = vadd.f32 %v1582_v8, %v1546_v41  ;;  %v1650_v7 = vmul.f32 %v6385_v34, %v6684_v31 }
 0x20c   : > { %v1618_v2 = vadd.f32 %v1586_v19, %v1550_v54  ;;  %v1654_v0 = vmul.f32 %v6385_v34, %v6688_v49  ;;  %v1682_v27 = vmul.f32 %v9886_v12, %v9777_v28  ;;  %v1686_v22 = vmul.f32 %v9886_v12, %v9867_v5 }
 0x20d   : > { %v1967_v20 = vmin.f32 %v1935_v63, 6.0  ;;  %v1971_v51 = vmin.f32 %v1939_v43, 6.0  ;;  %v1742_v4 = vmul.f32 %v6395_v16, %v6702_v33  ;;  %v1746_v55 = vmul.f32 %v6395_v16, %v6698_v45  ;;  %v9887_v63 = vld [vmem:[#allocation98_spill] sm:$0xff] }
 0x20e   : > { %v1710_v42 = vadd.f32 %v1682_v27, %v1650_v7  ;;  %v1714_v58 = vadd.f32 %v1686_v22, %v1654_v0  ;;  %v1798_v54 = vadd.f32 %v1614_v15, %v1442_v24  ;;  %v1802_v26 = vadd.f32 %v1618_v2, %v1446_v32  ;;  %v9892_v22 = vld [vmem:[#allocation109_spill] sm:$0xff] }
 0x20f   : > { %v1999_v3 = vmul.f32 %v1967_v20, %v1871_v25  ;;  %v2003_v41 = vmul.f32 %v1971_v51, %v1875_v50  ;;  %v513_v8 = vadd.s32 40, %v5517_v13  ;;  %v514_v19 = vadd.s32 48, %v5517_v13 }
 0x210   : > { %v1770_v34 = vadd.f32 %v1742_v4, %v1710_v42  ;;  %v1774_v12 = vadd.f32 %v1746_v55, %v1714_v58  ;;  %v9888_v43 = vrot.slane %v9887_v63, 7  ;;  %v9889_v14 = vrot.slane %v5932_v46, 7 }
 0x211   : > { %v9891_v24 = vrot.slane %v9794_v21, 7  ;;  %v2031_v32 = vmul.f32 0.16666667, %v1999_v3  ;;  %v2035_v25 = vmul.f32 0.16666667, %v2003_v41  ;;  %v555_v50 = vand.u32 7, %v513_v8 }
 0x212   : > { %v1155_v38 = vsel %vm9414_vm0, %v9889_v14, %v9888_v43  ;;  %v9890_v7 = vmov %v9889_v14  ;;  %v562_v0 = vand.u32 7, %v514_v19  ;;  %v1830_v15 = vadd.f32 %v1798_v54, %v1770_v34 }
 0x213   : > { %v1159_v2 = vsel %vm9414_vm0, %v9891_v24, %v9890_v7  ;;  %v1834_v27 = vadd.f32 %v1802_v26, %v1774_v12  ;;  %v9893_v20 = vrot.slane %v9892_v22, 1  ;;  %v9894_v51 = vrot.slane %v9887_v63, 1  ;;  %v9910_v7 = vld [vmem:[#allocation39_spill] sm:$0xff] }
 0x214   : > { %v9896_v21 = vrot.slane %v5932_v46, 1  ;;  %v2059_v42 = vpack.c.bf16 %v2035_v25, %v2031_v32  ;;  %vm6766_vm12 = vcmp.ne.s32.totalorder %v555_v50, 0  ;;  %v9897_v58 = vmov 0 }
 0x215   : > { %v1248_v14 = vsel %vm9415_vm3, %v9894_v51, %v9893_v20  ;;  %v9895_v4 = vmov %v9894_v51  ;;  %v9898_v58 = vsel %vm6766_vm12, 4294967295, %v9897_v58  ;;  %vm6770_vm13 = vcmp.ne.s32.totalorder %v562_v0, 0 }
 0x216   : > { %v1252_v55 = vsel %vm9415_vm3, %v9896_v21, %v9895_v4  ;;  %9899 = vst [vmem:[#allocation64_spill] sm:$0xff] %v9898_v58  ;;  %v9900_v34 = vmov 0  ;;  %vm6774_vm14 = vcmp.ne.s32.totalorder %v555_v50, 7  ;;  %v9903_v12 = vmov 0  ;;  %2372 = vmatmul.bf16.gmra.mxu2 %v2059_v42  ;;  %v9911_v50 = vld [vmem:[#allocation21_spill] sm:$0xff]  ;;  %v9913_v21 = vld [vmem:[#allocation84_spill] sm:$0xff] }
 0x217   : > { %v9901_v34 = vsel %vm6770_vm13, 4294967295, %v9900_v34  ;;  %v9904_v12 = vsel %vm6774_vm14, 4294967295, %v9903_v12  ;;  %v1872_v54 = vadd.f32 %v6416_v1, %v1830_v15  ;;  %v1876_v26 = vadd.f32 %v6416_v1, %v1834_v27  ;;  %v9914_v42 = vld [vmem:[#allocation22_spill] sm:$0xff]  ;;  %v9915_v1 = vld [vmem:[#allocation87_spill] sm:$0xff] }
 0x218   : > { %9902 = vst [vmem:[#allocation85_spill] sm:$0xff] %v9901_v34  ;;  %vm6780_vm15 = vcmp.ne.s32.totalorder %v562_v0, 7  ;;  %v9906_v3 = vmov 0  ;;  %v6786_v41 = vsel %vm6766_vm12, %v1159_v2, 0.0  ;;  %v6790_v8 = vsel %vm6770_vm13, %v1155_v38, 0.0  ;;  %v9912_v0 = vld [vmem:[#allocation116_spill] sm:$0xff] }
 0x219   : > { %9905 = vst [vmem:[#allocation54_spill] sm:$0xff] %v9904_v12  ;;  %v9907_v3 = vsel %vm6780_vm15, 4294967295, %v9906_v3  ;;  %v6794_v19 = vsel %vm6774_vm14, %v1252_v55, 0.0  ;;  %v6798_v43 = vsel %vm6780_vm15, %v1248_v14, 0.0  ;;  %v1328_v24 = vmul.f32 %v9910_v7, %v6458_v53 }
 0x21a   : > { %9908 = vst [vmem:[#allocation68_spill] sm:$0xff] %v9907_v3  ;;  %v1904_v32 = vadd.f32 3.0, %v1872_v54  ;;  %v1908_v25 = vadd.f32 3.0, %v1876_v26  ;;  %v1332_v2 = vmul.f32 %v9910_v7, %v6462_v37  ;;  %v1360_v38 = vmul.f32 %v9911_v50, %v5850_v56  ;;  %v9982_v3 = vld [vmem:[#allocation109_spill] sm:$0xff] }
 0x21b   : > { %9909 = vst [vmem:[#allocation50_spill] sm:$0xff] %v6798_v43  ;;  %v1420_v15 = vmul.f32 %v9912_v0, %v6476_v23  ;;  %v1424_v27 = vmul.f32 %v9912_v0, %v6472_v47  ;;  %v1484_v20 = vmul.f32 %v5573_v44, %v6462_v37  ;;  %v1488_v53 = vmul.f32 %v5573_v44, %v6786_v41  ;;  %v9916_v23 = vld [vmem:[#allocation117_spill] sm:$0xff] }
 0x21c   : > { %v1936_v51 = vmax.f32 %v1904_v32, 0.0  ;;  %v1940_v14 = vmax.f32 %v1908_v25, 0.0  ;;  %v1388_v4 = vadd.f32 %v1360_v38, %v1328_v24  ;;  %v1392_v55 = vadd.f32 %v9913_v21, %v1332_v2  ;;  %v9917_v24 = vld [vmem:[#allocation33_spill] sm:$0xff] }
 0x21d   : > { %v1524_v56 = vmul.f32 %v9914_v42, %v5932_v46  ;;  %v1552_v50 = vadd.f32 %v9915_v1, %v1484_v20  ;;  %v1588_v7 = vmul.f32 %v9916_v23, %v6472_v47  ;;  %v1592_v0 = vmul.f32 %v9916_v23, %v6794_v19  ;;  %v9918_v20 = vld [vmem:[#allocation29_spill] sm:$0xff] }
 0x21e   : > { %v1968_v37 = vmin.f32 %v1936_v51, 6.0  ;;  %v1972_v22 = vmin.f32 %v1940_v14, 6.0  ;;  %v1448_v16 = vadd.f32 %v1420_v15, %v1388_v4  ;;  %v1452_v44 = vadd.f32 %v1424_v27, %v1392_v55  ;;  %v9919_v15 = vld [vmem:[#allocation110_spill] sm:$0xff] }
 0x21f   : > { %v1556_v32 = vadd.f32 %v1524_v56, %v1488_v53  ;;  %v1620_v25 = vadd.f32 %v1588_v7, %v1552_v50  ;;  %v1656_v2 = vmul.f32 %v9917_v24, %v6786_v41  ;;  %v1660_v38 = vmul.f32 %v9917_v24, %v6790_v8  ;;  %v9922_v56 = vld [vmem:[#allocation92_spill] sm:$0xff] }
 0x220   : > { %v2000_v21 = vmul.f32 %v1968_v37, %v1872_v54  ;;  %v2004_v1 = vmul.f32 %v1972_v22, %v1876_v26  ;;  %v1688_v47 = vmul.f32 %v9918_v20, %v5932_v46  ;;  %v1692_v42 = vmul.f32 %v9918_v20, %v9887_v63  ;;  %v9920_v22 = vld [vmem:[#allocation101_spill] sm:$0xff] }
 0x221   : > { %v1624_v51 = vadd.f32 %v1592_v0, %v1556_v32  ;;  %v1748_v27 = vmul.f32 %v9919_v15, %v6794_v19  ;;  %v1752_v7 = vmul.f32 %v9919_v15, %v6798_v43  ;;  %v1804_v50 = vadd.f32 %v1620_v25, %v1448_v16  ;;  %v9926_v16 = vld [vmem:[#allocation114_spill] sm:$0xff] }
 0x222   : > { %v2032_v53 = vmul.f32 0.16666667, %v2000_v21  ;;  %v2036_v14 = vmul.f32 0.16666667, %v2004_v1  ;;  %v1716_v4 = vadd.f32 %v1688_v47, %v1656_v2  ;;  %v1720_v55 = vadd.f32 %v1692_v42, %v1660_v38 }
 0x223   : > { %v1808_v54 = vadd.f32 %v1624_v51, %v1452_v44  ;;  %v9921_v26 = vrot.slane %v9920_v22, 7  ;;  %v9923_v37 = vrot.slane %v9922_v56, 7  ;;  %v9925_v32 = vrot.slane %v9819_v17, 7 }
 0x224   : > { %v9927_v25 = vrot.slane %v9926_v16, 1  ;;  %v9928_v2 = vrot.slane %v9920_v22, 1  ;;  %v2060_v38 = vpack.c.bf16 %v2036_v14, %v2032_v53  ;;  %v1776_v21 = vadd.f32 %v1748_v27, %v1716_v4  ;;  %v9931_v27 = vld [vmem:[#allocation67_spill] sm:$0xff] }
 0x225   : > { %v1158_v20 = vsel %vm9414_vm0, %v9923_v37, %v9921_v26  ;;  %v9924_v0 = vmov %v9923_v37  ;;  %v1780_v1 = vadd.f32 %v1752_v7, %v1720_v55  ;;  %v9930_v51 = vrot.slane %v9922_v56, 1  ;;  %v9932_v7 = vld [vmem:[#allocation40_spill] sm:$0xff] }
 0x226   : > { %v1162_v15 = vsel %vm9414_vm0, %v9925_v32, %v9924_v0  ;;  %v1251_v44 = vsel %vm9415_vm3, %v9928_v2, %v9927_v25  ;;  %v6858_v17 = vsel %vm6770_vm13, %v1158_v20, 0.0  ;;  %v9929_v42 = vmov %v9928_v2  ;;  %2401 = vmatmul.bf16.gmra.mxu3 %v2060_v38  ;;  %v9933_v20 = vld [vmem:[#allocation63_spill] sm:$0xff]  ;;  %v9934_v32 = vld [vmem:[#allocation80_spill] sm:$0xff]  ;;  %v9936_v2 = vld [vmem:[#allocation57_spill] sm:$0xff] }
 0x227   : > { %v6854_v47 = vsel %vm6766_vm12, %v1162_v15, 0.0  ;;  %v1255_v26 = vsel %vm9415_vm3, %v9930_v51, %v9929_v42  ;;  %v6868_v53 = vsel %vm6780_vm15, %v1251_v44, 0.0  ;;  %v1331_v14 = vmul.f32 %v9932_v7, %v9931_v27  ;;  %v9935_v15 = vld [vmem:[#allocation23_spill] sm:$0xff]  ;;  %v9937_v38 = vld [vmem:[#allocation32_spill] sm:$0xff] }
 0x228   : > { %v1836_v4 = vadd.f32 %v1804_v50, %v1776_v21  ;;  %v1840_v55 = vadd.f32 %v1808_v54, %v1780_v1  ;;  %v6874_v37 = vsel %vm6774_vm14, %v1255_v26, 0.0  ;;  %v1335_v0 = vmul.f32 %v9932_v7, %v9933_v20  ;;  %v9938_v54 = vld [vmem:[#allocation42_spill] sm:$0xff]  ;;  %v9939_v51 = vld [vmem:[#allocation88_spill] sm:$0xff] }
 0x229   : > { %v1363_v25 = vmul.f32 %v9935_v15, %v9934_v32  ;;  %v1423_v44 = vmul.f32 %v9936_v2, %v6552_v6  ;;  %v1427_v42 = vmul.f32 %v9936_v2, %v6546_v48  ;;  %v1487_v50 = vmul.f32 %v9937_v38, %v9933_v20  ;;  %v9940_v32 = vld [vmem:[#allocation24_spill] sm:$0xff]  ;;  %v9941_v6 = vld [vmem:[#allocation89_spill] sm:$0xff]  ;;  %v9942_v2 = vld [vmem:[#allocation71_spill] sm:$0xff] }
 0x22a   : > { %v1878_v21 = vadd.f32 %v9938_v54, %v1836_v4  ;;  %v1882_v1 = vadd.f32 %v9938_v54, %v1840_v55  ;;  %v1395_v26 = vadd.f32 %v9939_v51, %v1335_v0  ;;  %v1491_v27 = vmul.f32 %v9937_v38, %v6854_v47  ;;  %v9943_v38 = vld [vmem:[#allocation34_spill] sm:$0xff] }
 0x22b   : > { %v1391_v7 = vadd.f32 %v1363_v25, %v1331_v14  ;;  %v1527_v15 = vmul.f32 %v9940_v32, %v9922_v56  ;;  %v1555_v16 = vadd.f32 %v9941_v6, %v1487_v50  ;;  %v1591_v24 = vmul.f32 %v9942_v2, %v6546_v48  ;;  %v9944_v32 = vld [vmem:[#allocation30_spill] sm:$0xff] }
 0x22c   : > { %v1910_v23 = vadd.f32 3.0, %v1878_v21  ;;  %v1914_v20 = vadd.f32 3.0, %v1882_v1  ;;  %v1455_v43 = vadd.f32 %v1427_v42, %v1395_v26  ;;  %v1595_v4 = vmul.f32 %v9942_v2, %v6874_v37  ;;  %v9945_v26 = vld [vmem:[#allocation41_spill] sm:$0xff] }
 0x22d   : > { %v1451_v55 = vadd.f32 %v1423_v44, %v1391_v7  ;;  %v1559_v0 = vadd.f32 %v1527_v15, %v1491_v27  ;;  %v1623_v51 = vadd.f32 %v1591_v24, %v1555_v16  ;;  %v1659_v14 = vmul.f32 %v9943_v38, %v6854_v47 }
 0x22e   : > { %v1942_v25 = vmax.f32 %v1910_v23, 0.0  ;;  %v1946_v54 = vmax.f32 %v1914_v20, 0.0  ;;  %v1663_v50 = vmul.f32 %v9943_v38, %v6858_v17  ;;  %v1691_v48 = vmul.f32 %v9944_v32, %v9922_v56  ;;  %v9946_v38 = vld [vmem:[#allocation102_spill] sm:$0xff] }
 0x22f   : > { %v1627_v6 = vadd.f32 %v1595_v4, %v1559_v0  ;;  %v1695_v42 = vmul.f32 %v9944_v32, %v9920_v22  ;;  %v1751_v7 = vmul.f32 %v9945_v26, %v6874_v37  ;;  %v1755_v24 = vmul.f32 %v9945_v26, %v6868_v53 }
 0x230   : > { %v1974_v16 = vmin.f32 %v1942_v25, 6.0  ;;  %v1978_v15 = vmin.f32 %v1946_v54, 6.0  ;;  %v1719_v23 = vadd.f32 %v1691_v48, %v1659_v14  ;;  %v1807_v44 = vadd.f32 %v1623_v51, %v1451_v55 }
 0x231   : > { %v1723_v27 = vadd.f32 %v1695_v42, %v1663_v50  ;;  %v1811_v20 = vadd.f32 %v1627_v6, %v1455_v43  ;;  %v9947_v2 = vrot.slane %v9946_v38, 7  ;;  %v9948_v56 = vrot.slane %v9854_v57, 7 }
 0x232   : > { %v9950_v32 = vrot.slane %v9847_v36, 7  ;;  %v2006_v25 = vmul.f32 %v1974_v16, %v1878_v21  ;;  %v2010_v54 = vmul.f32 %v1978_v15, %v1882_v1  ;;  %v1779_v14 = vadd.f32 %v1751_v7, %v1719_v23 }
 0x233   : > { %v1156_v4 = vsel %vm9414_vm0, %v9948_v56, %v9947_v2  ;;  %v9949_v0 = vmov %v9948_v56  ;;  %v1783_v55 = vadd.f32 %v1755_v24, %v1723_v27  ;;  %v9951_v56 = vld [vmem:[#allocation115_spill] sm:$0xff]  ;;  %v9953_v50 = vrot.slane %v9946_v38, 1 }
 0x234   : > { %v1160_v26 = vsel %vm9414_vm0, %v9950_v32, %v9949_v0  ;;  %v6928_v51 = vsel %vm6770_vm13, %v1156_v4, 0.0  ;;  %v9952_v2 = vrot.slane %v9951_v56, 1  ;;  %v9955_v1 = vrot.slane %v9854_v57, 1 }
 0x235   : > { %v6924_v43 = vsel %vm6766_vm12, %v1160_v26, 0.0  ;;  %v9954_v21 = vmov %v9953_v50  ;;  %v2038_v6 = vmul.f32 0.16666667, %v2006_v25  ;;  %v2042_v42 = vmul.f32 0.16666667, %v2010_v54  ;;  %v9957_v26 = vld [vmem:[#allocation46_spill] sm:$0xff] }
 0x236   : > { %v1249_v36 = vsel %vm9415_vm3, %v9953_v50, %v9952_v2  ;;  %v1253_v48 = vsel %vm9415_vm3, %v9955_v1, %v9954_v21  ;;  %v1839_v7 = vadd.f32 %v1807_v44, %v1779_v14  ;;  %v1843_v16 = vadd.f32 %v1811_v20, %v1783_v55  ;;  %v9956_v44 = vld [vmem:[#allocation25_spill] sm:$0xff]  ;;  %v9958_v54 = vld [vmem:[#allocation90_spill] sm:$0xff] }
 0x237   : > { %v6944_v24 = vsel %vm6774_vm14, %v1253_v48, 0.0  ;;  %v6948_v15 = vsel %vm6780_vm15, %v1249_v36, 0.0  ;;  %v1329_v23 = vmul.f32 %v9859_v18, %v6602_v62  ;;  %v1333_v27 = vmul.f32 %v9859_v18, %v6606_v9  ;;  %v9960_v48 = vld [vmem:[#allocation93_spill] sm:$0xff] }
 0x238   : > { %v2062_v4 = vpack.c.bf16 %v2042_v42, %v2038_v6  ;;  %v1881_v0 = vadd.f32 %v9860_v29, %v1839_v7  ;;  %v1361_v32 = vmul.f32 %v9956_v44, %v9849_v11  ;;  %v1421_v25 = vmul.f32 %v9957_v26, %v6622_v35  ;;  %v9959_v11 = vld [vmem:[#allocation26_spill] sm:$0xff] }
 0x239   : > { %v1885_v20 = vadd.f32 %v9860_v29, %v1843_v16  ;;  %v1393_v14 = vadd.f32 %v9958_v54, %v1333_v27  ;;  %v1425_v55 = vmul.f32 %v9957_v26, %v6626_v39  ;;  %v1485_v62 = vmul.f32 %v9864_v59, %v6606_v9 }
 0x23a   : > { %2348 = vmatmul.bf16.gmra.mxu1 %v2062_v4  ;;  %v1913_v2 = vadd.f32 3.0, %v1881_v0  ;;  %v1389_v50 = vadd.f32 %v1361_v32, %v1329_v23  ;;  %v1489_v36 = vmul.f32 %v9864_v59, %v6924_v43  ;;  %v1525_v21 = vmul.f32 %v9959_v11, %v9854_v57  ;;  %v9961_v32 = vld [vmem:[#allocation59_spill] sm:$0xff] }
 0x23b   : > { %v1917_v35 = vadd.f32 3.0, %v1885_v20  ;;  %v1453_v1 = vadd.f32 %v1425_v55, %v1393_v14  ;;  %v1553_v6 = vadd.f32 %v9960_v48, %v1485_v62  ;;  %v1589_v42 = vmul.f32 %v6289_v60, %v6626_v39  ;;  %v9962_v62 = vld [vmem:[#allocation35_spill] sm:$0xff] }
 0x23c   : > { %v1945_v7 = vmax.f32 %v1913_v2, 0.0  ;;  %v1449_v16 = vadd.f32 %v1421_v25, %v1389_v50  ;;  %v1557_v27 = vadd.f32 %v1525_v21, %v1489_v36  ;;  %v1593_v9 = vmul.f32 %v6289_v60, %v6944_v24  ;;  %v9963_v2 = vld [vmem:[#allocation55_spill] sm:$0xff] }
 0x23d   : > { %v1949_v23 = vmax.f32 %v1917_v35, 0.0  ;;  %v1621_v4 = vadd.f32 %v1589_v42, %v1553_v6  ;;  %v1657_v54 = vmul.f32 %v9961_v32, %v6924_v43  ;;  %v1661_v11 = vmul.f32 %v9961_v32, %v6928_v51 }
 0x23e   : > { %v1977_v14 = vmin.f32 %v1945_v7, 6.0  ;;  %v1625_v55 = vadd.f32 %v1593_v9, %v1557_v27  ;;  %v1689_v48 = vmul.f32 %v9962_v62, %v9854_v57  ;;  %v1693_v39 = vmul.f32 %v9962_v62, %v9946_v38  ;;  %v9964_v27 = vld [vmem:[#allocation108_spill] sm:$0xff] }
 0x23f   : > { %v1981_v25 = vmin.f32 %v1949_v23, 6.0  ;;  %v1749_v50 = vmul.f32 %v9963_v2, %v6944_v24  ;;  %v1753_v36 = vmul.f32 %v9963_v2, %v6948_v15  ;;  %v1805_v21 = vadd.f32 %v1621_v4, %v1449_v16  ;;  %v9969_v16 = vld [vmem:[#allocation123_spill] sm:$0xff] }
 0x240   : > { %v2009_v35 = vmul.f32 %v1977_v14, %v1881_v0  ;;  %v1717_v6 = vadd.f32 %v1689_v48, %v1657_v54  ;;  %v1721_v42 = vadd.f32 %v1693_v39, %v1661_v11  ;;  %v1809_v32 = vadd.f32 %v1625_v55, %v1453_v1 }
 0x241   : > { %v2013_v7 = vmul.f32 %v1981_v25, %v1885_v20  ;;  %v9965_v9 = vrot.slane %v9964_v27, 7  ;;  %v9966_v60 = vrot.slane %v9872_v10, 7  ;;  %v9968_v59 = vrot.slane %v9867_v5, 7 }
 0x242   : > { %v9970_v0 = vrot.slane %v9969_v16, 1  ;;  %v9971_v4 = vrot.slane %v9964_v27, 1  ;;  %v2041_v1 = vmul.f32 0.16666667, %v2009_v35  ;;  %v1777_v54 = vadd.f32 %v1749_v50, %v1717_v6 }
 0x243   : > { %v1157_v62 = vsel %vm9414_vm0, %v9966_v60, %v9965_v9  ;;  %v9967_v23 = vmov %v9966_v60  ;;  %v1781_v11 = vadd.f32 %v1753_v36, %v1721_v42  ;;  %v2045_v14 = vmul.f32 0.16666667, %v2013_v7 }
 0x244   : > { %v1161_v2 = vsel %vm9414_vm0, %v9968_v59, %v9967_v23  ;;  %v1250_v20 = vsel %vm9415_vm3, %v9971_v4, %v9970_v0  ;;  %v7010_v5 = vsel %vm6770_vm13, %v1157_v62, 0.0  ;;  %v9972_v59 = vmov %v9971_v4  ;;  %v9974_v23 = vld [vmem:[#allocation60_spill] sm:$0xff]  ;;  %v9975_v0 = vld [vmem:[#allocation94_spill] sm:$0xff] }
 0x245   : > { %v7006_v60 = vsel %vm6766_vm12, %v1161_v2, 0.0  ;;  %v9973_v55 = vrot.slane %v9872_v10, 1  ;;  %v7020_v39 = vsel %vm6780_vm15, %v1250_v20, 0.0  ;;  %v1837_v25 = vadd.f32 %v1805_v21, %v1777_v54  ;;  %v9976_v20 = vld [vmem:[#allocation28_spill] sm:$0xff] }
 0x246   : > { %v1841_v50 = vadd.f32 %v1809_v32, %v1781_v11  ;;  %v1330_v35 = vmul.f32 %v6374_v30, %v6684_v31  ;;  %v2065_v6 = vpack.c.bf16 %v2045_v14, %v2041_v1  ;;  %v1334_v42 = vmul.f32 %v6374_v30, %v6688_v49  ;;  %v9977_v11 = vld [vmem:[#allocation95_spill] sm:$0xff] }
 0x247   : > { %v1254_v48 = vsel %vm9415_vm3, %v9973_v55, %v9972_v59  ;;  %v1362_v7 = vmul.f32 %v9878_v61, %v9777_v28  ;;  %v1422_v9 = vmul.f32 %v9879_v40, %v6702_v33  ;;  %v1879_v21 = vadd.f32 %v9880_v52, %v1837_v25  ;;  %v9978_v59 = vld [vmem:[#allocation75_spill] sm:$0xff] }
 0x248   : > { %v7024_v36 = vsel %vm6774_vm14, %v1254_v48, 0.0  ;;  %v1883_v32 = vadd.f32 %v9880_v52, %v1841_v50  ;;  %v1426_v62 = vmul.f32 %v9879_v40, %v6698_v45  ;;  %v1486_v31 = vmul.f32 %v9974_v23, %v6688_v49  ;;  %2435 = vmatmul.bf16.gmra.mxu0 %v2065_v6 }
 0x249   : > { %v1390_v2 = vadd.f32 %v1362_v7, %v1330_v35  ;;  %v1394_v4 = vadd.f32 %v9975_v0, %v1334_v42  ;;  %v1490_v28 = vmul.f32 %v9974_v23, %v7006_v60  ;;  %v1526_v33 = vmul.f32 %v9976_v20, %v9872_v10  ;;  %v9979_v7 = vld [vmem:[#allocation76_spill] sm:$0xff] }
 0x24a   : > { %v1911_v1 = vadd.f32 3.0, %v1879_v21  ;;  %v1915_v54 = vadd.f32 3.0, %v1883_v32  ;;  %v1554_v14 = vadd.f32 %v9977_v11, %v1486_v31  ;;  %v1590_v55 = vmul.f32 %v9978_v59, %v6698_v45  ;;  %v9980_v31 = vld [vmem:[#allocation38_spill] sm:$0xff] }
 0x24b   : > { %v1450_v48 = vadd.f32 %v1422_v9, %v1390_v2  ;;  %v1454_v25 = vadd.f32 %v1426_v62, %v1394_v4  ;;  %v1558_v49 = vadd.f32 %v1526_v33, %v1490_v28  ;;  %v1594_v50 = vmul.f32 %v9978_v59, %v7024_v36  ;;  %v9981_v2 = vld [vmem:[#allocation82_spill] sm:$0xff] }
 0x24c   : > { %v1943_v35 = vmax.f32 %v1911_v1, 0.0  ;;  %v1947_v6 = vmax.f32 %v1915_v54, 0.0  ;;  %v1622_v42 = vadd.f32 %v1590_v55, %v1554_v14  ;;  %v1658_v0 = vmul.f32 %v9979_v7, %v7006_v60 }
 0x24d   : > { %v1626_v20 = vadd.f32 %v1594_v50, %v1558_v49  ;;  %v1662_v12 = vmul.f32 %v9979_v7, %v7010_v5  ;;  %v1690_v11 = vmul.f32 %v9980_v31, %v9872_v10  ;;  %v1694_v45 = vmul.f32 %v9980_v31, %v9964_v27  ;;  %v9985_v7 = vld [vmem:[#allocation36_spill] sm:$0xff] }
 0x24e   : > { %v1975_v9 = vmin.f32 %v1943_v35, 6.0  ;;  %v1979_v62 = vmin.f32 %v1947_v6, 6.0  ;;  %v1750_v4 = vmul.f32 %v9981_v2, %v7024_v36  ;;  %v1754_v28 = vmul.f32 %v9981_v2, %v7020_v39 }
 0x24f   : > { %v1718_v33 = vadd.f32 %v1690_v11, %v1658_v0  ;;  %v1722_v1 = vadd.f32 %v1694_v45, %v1662_v12  ;;  %v1806_v54 = vadd.f32 %v1622_v42, %v1450_v48  ;;  %v1810_v14 = vadd.f32 %v1626_v20, %v1454_v25  ;;  %v9989_v45 = vld [vmem:[#allocation21_spill] sm:$0xff] }
 0x250   : > { %v2007_v55 = vmul.f32 %v1975_v9, %v1879_v21  ;;  %v2011_v49 = vmul.f32 %v1979_v62, %v1883_v32  ;;  %v515_v50 = vadd.s32 56, %v5517_v13  ;;  %v9983_v34 = vrot.slane %v9982_v3, 7  ;;  %v9988_v21 = vld [vmem:[#allocation39_spill] sm:$0xff]  ;;  %v9996_v62 = vld [vmem:[#allocation116_spill] sm:$0xff] }
 0x251   : > { %v9984_v31 = vrot.slane %v9887_v63, 7  ;;  %v1778_v6 = vadd.f32 %v1750_v4, %v1718_v33  ;;  %v1782_v58 = vadd.f32 %v1754_v28, %v1722_v1  ;;  %v9986_v59 = vrot.slane %v9985_v7, 1  ;;  %v9997_v4 = vld [vmem:[#allocation49_spill] sm:$0xff] }
 0x252   : > { %v9987_v0 = vrot.slane %v9982_v3, 1  ;;  %v1336_v32 = vmul.f32 %v9988_v21, %v6786_v41  ;;  %v2039_v48 = vmul.f32 0.16666667, %v2007_v55  ;;  %v2043_v25 = vmul.f32 0.16666667, %v2011_v49  ;;  %v9999_v55 = vld [vmem:[#allocation31_spill] sm:$0xff] }
 0x253   : > { %v1151_v35 = vsel %vm9414_vm0, %v9984_v31, %v9983_v34  ;;  %v569_v42 = vand.u32 7, %v515_v50  ;;  %v1340_v20 = vmul.f32 %v9988_v21, %v6790_v8  ;;  %v1838_v11 = vadd.f32 %v1806_v54, %v1778_v6  ;;  %v9998_v54 = vld [vmem:[#allocation50_spill] sm:$0xff]  ;;  %v10000_v6 = vld [vmem:[#allocation117_spill] sm:$0xff] }
 0x254   : > { %v1276_v12 = vsel %vm9415_vm3, %v9987_v0, %v9986_v59  ;;  %v1842_v34 = vadd.f32 %v1810_v14, %v1782_v58  ;;  %v1368_v9 = vmul.f32 %v9989_v45, %v5932_v46  ;;  %v1372_v3 = vmul.f32 %v9989_v45, %v9887_v63 }
 0x255   : > { %v2063_v7 = vpack.c.bf16 %v2043_v25, %v2039_v48  ;;  %vm7083_vm0 = vcmp.ne.s32.totalorder %v569_v42, 0  ;;  %v9990_v59 = vmov 0  ;;  %vm7087_vm3 = vcmp.ne.s32.totalorder %v569_v42, 7  ;;  %v10001_v48 = vld [vmem:[#allocation100_spill] sm:$0xff] }
 0x256   : > { %v9991_v59 = vsel %vm7083_vm0, 4294967295, %v9990_v59  ;;  %v9993_v41 = vmov 0  ;;  %v1428_v2 = vmul.f32 %v9996_v62, %v6794_v19  ;;  %v1880_v58 = vadd.f32 %v9997_v4, %v1838_v11 }
 0x257   : > { %9992 = vst [vmem:[#allocation52_spill] sm:$0xff] %v9991_v59  ;;  %v9994_v41 = vsel %vm7087_vm3, 4294967295, %v9993_v41  ;;  %v1884_v28 = vadd.f32 %v9997_v4, %v1842_v34  ;;  %v1211_v46 = vsel %vm7083_vm0, %v1151_v35, 0.0  ;;  %v1308_v63 = vsel %vm7087_vm3, %v1276_v12, 0.0  ;;  %2377 = vmatmul.bf16.gmra.mxu2 %v2063_v7  ;;  %v10003_v34 = vld [vmem:[#allocation33_spill] sm:$0xff]  ;;  %v10004_v7 = vld [vmem:[#allocation120_spill] sm:$0xff] }
 0x258   : > { %9995 = vst [vmem:[#allocation62_spill] sm:$0xff] %v9994_v41  ;;  %v1396_v33 = vadd.f32 %v1368_v9, %v1336_v32  ;;  %v1400_v1 = vadd.f32 %v1372_v3, %v1340_v20  ;;  %v1432_v14 = vmul.f32 %v9996_v62, %v9998_v54  ;;  %v1492_v49 = vmul.f32 %v9999_v55, %v6790_v8  ;;  %v10002_v20 = vld [vmem:[#allocation112_spill] sm:$0xff]  ;;  %v5181_v9 = vld [vmem:[%s9192_s5 + $0x20] ss:$0 sm:$0xff] }
 0x259   : > { %v1912_v19 = vadd.f32 3.0, %v1880_v58  ;;  %v1916_v50 = vadd.f32 3.0, %v1884_v28  ;;  %v1496_v31 = vmul.f32 %v9999_v55, %v1211_v46  ;;  %v1596_v0 = vmul.f32 %v10000_v6, %v9998_v54 }
 0x25a   : > { %v1456_v35 = vadd.f32 %v1428_v2, %v1396_v33  ;;  %v1460_v21 = vadd.f32 %v1432_v14, %v1400_v1  ;;  %v1560_v12 = vadd.f32 %v10001_v48, %v1492_v49  ;;  %v1600_v32 = vmul.f32 %v10000_v6, %v1308_v63  ;;  %v10005_v2 = vld [vmem:[#allocation37_spill] sm:$0xff]  ;;  %v10007_v1 = vld [vmem:[#allocation114_spill] sm:$0xff]  ;;  %v10011_v6 = vld [vmem:[#allocation40_spill] sm:$0xff] }
 0x25b   : > { %v1944_v25 = vmax.f32 %v1912_v19, 0.0  ;;  %v1948_v42 = vmax.f32 %v1916_v50, 0.0  ;;  %v1564_v11 = vadd.f32 %v10002_v20, %v1496_v31  ;;  %v1664_v45 = vmul.f32 %v10003_v34, %v1211_v46  ;;  %v10010_v19 = vld [vmem:[#allocation113_spill] sm:$0xff] }
 0x25c   : > { %v1628_v8 = vadd.f32 %v1596_v0, %v1560_v12  ;;  %v1756_v3 = vmul.f32 %v5181_v9, %v1308_v63  ;;  %v1214_v62 = vsel %vm7083_vm0, %v10004_v7, 0.0  ;;  %v10006_v33 = vrot.slane %v10005_v2, 1  ;;  %v10012_v7 = vld [vmem:[#allocation92_spill] sm:$0xff] }
 0x25d   : > { %v10008_v54 = vrot.slane %v10007_v1, 1  ;;  %vm10009_vm14 = vcmp.lt.s32.totalorder %v5517_v13, 7  ;;  %v1976_v55 = vmin.f32 %v1944_v25, 6.0  ;;  %v1980_v49 = vmin.f32 %v1948_v42, 6.0  ;;  %v10013_v25 = vld [vmem:[#allocation23_spill] sm:$0xff] }
 0x25e   : > { %v1632_v46 = vadd.f32 %v1600_v32, %v1564_v11  ;;  %v1724_v50 = vadd.f32 %v10010_v19, %v1664_v45  ;;  %v1812_v31 = vadd.f32 %v1628_v8, %v1456_v35  ;;  %v1339_v0 = vmul.f32 %v10011_v6, %v6854_v47  ;;  %v10014_v35 = vld [vmem:[#allocation57_spill] sm:$0xff] }
 0x25f   : > { %v1279_v14 = vsel %vm10009_vm14, %v10008_v54, %v10006_v33  ;;  %v1343_v48 = vmul.f32 %v10011_v6, %v6858_v17  ;;  %v2008_v12 = vmul.f32 %v1976_v55, %v1880_v58  ;;  %v2012_v20 = vmul.f32 %v1980_v49, %v1884_v28  ;;  %v10015_v33 = vld [vmem:[#allocation42_spill] sm:$0xff] }
 0x260   : > { %v1311_v63 = vsel %vm7087_vm3, %v1279_v14, 0.0  ;;  %v1784_v34 = vadd.f32 %v1756_v3, %v1724_v50  ;;  %v1816_v9 = vadd.f32 %v1632_v46, %v1460_v21  ;;  %v1371_v42 = vmul.f32 %v10013_v25, %v10012_v7  ;;  %v10016_v21 = vld [vmem:[#allocation32_spill] sm:$0xff]  ;;  %v10018_v50 = vld [vmem:[#allocation103_spill] sm:$0xff]  ;;  %v10019_v6 = vld [vmem:[#allocation118_spill] sm:$0xff] }
 0x261   : > { %v1375_v32 = vmul.f32 %v10013_v25, %v9920_v22  ;;  %v1431_v11 = vmul.f32 %v10014_v35, %v6874_v37  ;;  %v1435_v45 = vmul.f32 %v10014_v35, %v6868_v53  ;;  %v2040_v47 = vmul.f32 0.16666667, %v2008_v12  ;;  %v10017_v37 = vld [vmem:[#allocation71_spill] sm:$0xff]  ;;  %v5182_v7 = vld [vmem:[%s9192_s5 + $0x38] ss:$0 sm:$0xff]  ;;  %v10024_v35 = vld [vmem:[#allocation44_spill] sm:$0xff] }
 0x262   : > { %v2044_v8 = vmul.f32 0.16666667, %v2012_v20  ;;  %v1844_v2 = vadd.f32 %v1812_v31, %v1784_v34  ;;  %v1890_v58 = vadd.f32 %v10015_v33, %v1816_v9  ;;  %v1399_v28 = vadd.f32 %v1371_v42, %v1339_v0  ;;  %v10020_v20 = vld [vmem:[#allocation34_spill] sm:$0xff] }
 0x263   : > { %v1403_v3 = vadd.f32 %v1375_v32, %v1343_v48  ;;  %v1495_v1 = vmul.f32 %v10016_v21, %v6858_v17  ;;  %v1499_v54 = vmul.f32 %v10016_v21, %v1214_v62  ;;  %v1599_v49 = vmul.f32 %v10017_v37, %v6868_v53 }
 0x264   : > { %v2064_v14 = vpack.c.bf16 %v2044_v8, %v2040_v47  ;;  %v1886_v22 = vadd.f32 %v10015_v33, %v1844_v2  ;;  %v1922_v55 = vadd.f32 3.0, %v1890_v58  ;;  %v1459_v46 = vadd.f32 %v1431_v11, %v1399_v28  ;;  %v10028_v33 = vld [vmem:[#allocation119_spill] sm:$0xff] }
 0x265   : > { %v1463_v19 = vadd.f32 %v1435_v45, %v1403_v3  ;;  %v1563_v31 = vadd.f32 %v10018_v50, %v1495_v1  ;;  %v1567_v12 = vadd.f32 %v10019_v6, %v1499_v54  ;;  %v1603_v17 = vmul.f32 %v10017_v37, %v1311_v63 }
 0x266   : > { %2406 = vmatmul.bf16.gmra.mxu3 %v2064_v14  ;;  %v1918_v0 = vadd.f32 3.0, %v1886_v22  ;;  %v1954_v48 = vmax.f32 %v1922_v55, 0.0  ;;  %v1667_v34 = vmul.f32 %v10020_v20, %v1214_v62  ;;  %v1759_v25 = vmul.f32 %v5182_v7, %v1311_v63  ;;  %v10030_v20 = vld [vmem:[#allocation105_spill] sm:$0xff] }
 0x267   : > { %v1631_v9 = vadd.f32 %v1599_v49, %v1563_v31  ;;  %v10021_v53 = vrot.slane %v9951_v56, 7  ;;  %v10022_v42 = vrot.slane %v9946_v38, 7  ;;  %vm10023_vm14 = vcmp.lt.s32.totalorder %v5517_v13, 1 }
 0x268   : > { %v10025_v11 = vrot.slane %v10024_v35, 1  ;;  %v10026_v45 = vrot.slane %v9951_v56, 1  ;;  %vm10027_vm11 = vcmp.lt.s32.totalorder %v5517_v13, 7  ;;  %v1950_v47 = vmax.f32 %v1918_v0, 0.0 }
 0x269   : > { %v1152_v32 = vsel %vm10023_vm14, %v10022_v42, %v10021_v53  ;;  %v1986_v8 = vmin.f32 %v1954_v48, 6.0  ;;  %v1635_v2 = vadd.f32 %v1603_v17, %v1567_v12  ;;  %v1727_v28 = vadd.f32 %v10028_v33, %v1667_v34 }
 0x26a   : > { %v1277_v62 = vsel %vm10027_vm11, %v10026_v45, %v10025_v11  ;;  %v1815_v63 = vadd.f32 %v1631_v9, %v1459_v46  ;;  %v1212_v3 = vsel %vm7083_vm0, %v1152_v32, 0.0  ;;  %v1337_v1 = vmul.f32 %v9859_v18, %v6924_v43  ;;  %v10031_v9 = vld [vmem:[#allocation72_spill] sm:$0xff]  ;;  %v10033_v11 = vld [vmem:[#allocation59_spill] sm:$0xff]  ;;  %vm10036_vm11 = vmmov %vm10023_vm14 }
 0x26b   : > { %v1309_v21 = vsel %vm7087_vm3, %v1277_v62, 0.0  ;;  %v1982_v54 = vmin.f32 %v1950_v47, 6.0  ;;  %v2018_v56 = vmul.f32 %v1986_v8, %v1890_v58  ;;  %v1787_v14 = vadd.f32 %v1759_v25, %v1727_v28  ;;  %v5183_v45 = vld [vmem:[%s9192_s5 + $0x28] ss:$0 sm:$0xff]  ;;  %v10037_v28 = vld [vmem:[#allocation45_spill] sm:$0xff] }
 0x26c   : > { %v1819_v55 = vadd.f32 %v1635_v2, %v1463_v19  ;;  %v1341_v37 = vmul.f32 %v9859_v18, %v6928_v51  ;;  %v1369_v49 = vmul.f32 %v9956_v44, %v9854_v57  ;;  %v1373_v46 = vmul.f32 %v9956_v44, %v9946_v38  ;;  %v10029_v18 = vld [vmem:[#allocation58_spill] sm:$0xff] }
 0x26d   : > { %v1429_v50 = vmul.f32 %v9957_v26, %v6944_v24  ;;  %v2014_v31 = vmul.f32 %v1982_v54, %v1886_v22  ;;  %v2050_v6 = vmul.f32 0.16666667, %v2018_v56  ;;  %v1847_v12 = vadd.f32 %v1815_v63, %v1787_v14  ;;  %v10041_v56 = vld [vmem:[#allocation122_spill] sm:$0xff] }
 0x26e   : > { %v1893_v43 = vadd.f32 %v9860_v29, %v1819_v55  ;;  %v1397_v58 = vadd.f32 %v1369_v49, %v1337_v1  ;;  %v1401_v0 = vadd.f32 %v1373_v46, %v1341_v37  ;;  %v1433_v19 = vmul.f32 %v9957_v26, %v6948_v15  ;;  %v10032_v26 = vld [vmem:[#allocation121_spill] sm:$0xff] }
 0x26f   : > { %v1493_v48 = vmul.f32 %v10029_v18, %v6928_v51  ;;  %v2046_v57 = vmul.f32 0.16666667, %v2014_v31  ;;  %v1889_v17 = vadd.f32 %v9860_v29, %v1847_v12  ;;  %v1497_v44 = vmul.f32 %v10029_v18, %v1212_v3 }
 0x270   : > { %v1925_v38 = vadd.f32 3.0, %v1893_v43  ;;  %v1457_v24 = vadd.f32 %v1429_v50, %v1397_v58  ;;  %v1461_v22 = vadd.f32 %v1433_v19, %v1401_v0  ;;  %v1597_v7 = vmul.f32 %v10031_v9, %v6948_v15 }
 0x271   : > { %v1561_v34 = vadd.f32 %v10030_v20, %v1493_v48  ;;  %v2066_v25 = vpack.c.bf16 %v2050_v6, %v2046_v57  ;;  %v1921_v53 = vadd.f32 3.0, %v1889_v17  ;;  %v1565_v32 = vadd.f32 %v10032_v26, %v1497_v44  ;;  %v5063_v44 = vld [vmem:[#allocation4 + $0x1e4] sm:$0xf]  ;;  %v4810_v20 = vld [vmem:[#allocation4 + $0x1f0] sm:$0xf0] }
 0x272   : > { %v1957_v42 = vmax.f32 %v1925_v38, 0.0  ;;  %v1601_v51 = vmul.f32 %v10031_v9, %v1309_v21  ;;  %v1665_v29 = vmul.f32 %v10033_v11, %v1212_v3  ;;  %v1757_v62 = vmul.f32 %v5183_v45, %v1309_v21  ;;  %v4794_v26 = vld [vmem:[#allocation4 + $0x1d0] sm:$0xf0]  ;;  %v10045_v11 = vld [vmem:[#allocation76_spill] sm:$0xff]  ;;  %v5065_v45 = vld [vmem:[#allocation4 + $0x1ec] sm:$0xf0] }
 0x273   : > { %v1629_v35 = vadd.f32 %v1597_v7, %v1561_v34  ;;  %2353 = vmatmul.bf16.gmra.mxu1 %v2066_v25  ;;  %v1953_v47 = vmax.f32 %v1921_v53, 0.0  ;;  %v10034_v15 = vrot.slane %v9969_v16, 7  ;;  %v10035_v2 = vrot.slane %v9964_v27, 7  ;;  %v5059_v34 = vld [vmem:[#allocation4 + $0x1c4] sm:$0xf]  ;;  %v10044_v53 = vld [vmem:[#allocation124_spill] sm:$0xff] }
 0x274   : > { %v1989_v8 = vmin.f32 %v1957_v42, 6.0  ;;  %v10038_v63 = vrot.slane %v10037_v28, 1  ;;  %v10039_v1 = vrot.slane %v9969_v16, 1  ;;  %vm10040_vm14 = vcmp.lt.s32.totalorder %v5517_v13, 7  ;;  %v7239_v28 = vpop.f32.mrf.mxu2 }
 0x275   : > { %v1153_v33 = vsel %vm10036_vm11, %v10035_v2, %v10034_v15  ;;  %v1633_v54 = vadd.f32 %v1601_v51, %v1565_v32  ;;  %v1725_v21 = vadd.f32 %v10041_v56, %v1665_v29  ;;  %v1813_v14 = vadd.f32 %v1629_v35, %v1457_v24  ;;  %v5066_v32 = vld [vmem:[#allocation4 + $0x1f4] sm:$0xf0]  ;;  %v4800_v2 = vld [vmem:[#allocation4 + $0x1c8] sm:$0xf] }
 0x276   : > { %v1278_v3 = vsel %vm10040_vm14, %v10039_v1, %v10038_v63  ;;  %v1213_v55 = vsel %vm7083_vm0, %v1153_v33, 0.0  ;;  %v1985_v37 = vmin.f32 %v1953_v47, 6.0  ;;  %v2021_v49 = vmul.f32 %v1989_v8, %v1893_v43  ;;  %v5184_v47 = vld [vmem:[%s9192_s5 + $0x30] ss:$0 sm:$0xff]  ;;  %v5062_v33 = vld [vmem:[#allocation4 + $0x1d4] sm:$0xf0] }
 0x277   : > { %v1310_v46 = vsel %vm7087_vm3, %v1278_v3, 0.0  ;;  %v1338_v50 = vmul.f32 %v6374_v30, %v7006_v60  ;;  %v1785_v31 = vadd.f32 %v1757_v62, %v1725_v21  ;;  %v1817_v16 = vadd.f32 %v1633_v54, %v1461_v22  ;;  %v10046_v54 = vld [vmem:[#allocation125_spill] sm:$0xff]  ;;  %v4792_v21 = vld [vmem:[#allocation4 + $0x1c0] sm:$0xf] }
 0x278   : > { %v1342_v6 = vmul.f32 %v6374_v30, %v7010_v5  ;;  %v1370_v12 = vmul.f32 %v9878_v61, %v9872_v10  ;;  %v2017_v58 = vmul.f32 %v1985_v37, %v1889_v17  ;;  %v2053_v0 = vmul.f32 0.16666667, %v2021_v49 }
 0x279   : > { %v1374_v19 = vmul.f32 %v9878_v61, %v9964_v27  ;;  %v1430_v43 = vmul.f32 %v9879_v40, %v7024_v36  ;;  %v1845_v18 = vadd.f32 %v1813_v14, %v1785_v31  ;;  %v1891_v48 = vadd.f32 %v9880_v52, %v1817_v16  ;;  %v10042_v36 = vld [vmem:[#allocation75_spill] sm:$0xff]  ;;  %v5061_v14 = vld [vmem:[#allocation4 + $0x1cc] sm:$0xf0]  ;;  %v4778_v31 = vld [vmem:[#allocation4 + $0x1b0] sm:$0xf0] }
 0x27a   : > { %v1398_v60 = vadd.f32 %v1370_v12, %v1338_v50  ;;  %v1434_v57 = vmul.f32 %v9879_v40, %v7020_v39  ;;  %v2049_v38 = vmul.f32 0.16666667, %v2017_v58  ;;  %v1494_v10 = vmul.f32 %v9974_v23, %v7010_v5  ;;  %v10043_v40 = vld [vmem:[#allocation111_spill] sm:$0xff]  ;;  %v4816_v5 = vld [vmem:[#allocation4 + $0x1e8] sm:$0xf] }
 0x27b   : > { %v1402_v30 = vadd.f32 %v1374_v19, %v1342_v6  ;;  %v1498_v17 = vmul.f32 %v9974_v23, %v1213_v55  ;;  %v1887_v61 = vadd.f32 %v9880_v52, %v1845_v18  ;;  %v1923_v27 = vadd.f32 3.0, %v1891_v48  ;;  %v7232_v23 = vpop.f32.mrf.mxu1  ;;  %v5055_v50 = vld [vmem:[#allocation4 + $0x1a4] sm:$0xf]  ;;  %v4818_v19 = vld [vmem:[#allocation4 + $0x1f8] sm:$0xf0] }
 0x27c   : > { %v1458_v24 = vadd.f32 %v1430_v43, %v1398_v60  ;;  %v1598_v22 = vmul.f32 %v10042_v36, %v7020_v39  ;;  %v2069_v9 = vpack.c.bf16 %v2053_v0, %v2049_v38  ;;  %v1562_v25 = vadd.f32 %v10043_v40, %v1494_v10  ;;  %v4808_v39 = vld [vmem:[#allocation4 + $0x1e0] sm:$0xf]  ;;  %v5064_v0 = vld [vmem:[#allocation4 + $0x1ec] sm:$0xf]  ;;  %v4784_v60 = vld [vmem:[#allocation4 + $0x1a8] sm:$0xf] }
 0x27d   : > { %v1462_v7 = vadd.f32 %v1434_v57, %v1402_v30  ;;  %v1566_v42 = vadd.f32 %v10044_v53, %v1498_v17  ;;  %v1919_v51 = vadd.f32 3.0, %v1887_v61  ;;  %v1955_v52 = vmax.f32 %v1923_v27, 0.0  ;;  %v5058_v57 = vld [vmem:[#allocation4 + $0x1b4] sm:$0xf0]  ;;  %v5057_v27 = vld [vmem:[#allocation4 + $0x1ac] sm:$0xf0] }
 0x27e   : > { %v1602_v35 = vmul.f32 %v10042_v36, %v1310_v46  ;;  %v1666_v29 = vmul.f32 %v10045_v11, %v1213_v55  ;;  %2440 = vmatmul.bf16.gmra.mxu0 %v2069_v9  ;;  %v1630_v62 = vadd.f32 %v1598_v22, %v1562_v25  ;;  %v1758_v8 = vmul.f32 %v5184_v47, %v1310_v46  ;;  %v5060_v22 = vld [vmem:[#allocation4 + $0x1cc] sm:$0xf]  ;;  %v4762_v25 = vld [vmem:[#allocation4 + $0x190] sm:$0xf0]  ;;  %v7249_v53 = vld [vmem:[%s9195_s8] ss:$0 sm:$0xff] }
 0x27f   : > { %v4813_v15 = vor.u32 %v5063_v44, %v4810_v20  ;;  %v1951_v63 = vmax.f32 %v1919_v51, 0.0  ;;  %v1987_v1 = vmin.f32 %v1955_v52, 6.0  ;;  %v4797_v37 = vor.u32 %v5059_v34, %v4794_v26  ;;  %v4776_v44 = vld [vmem:[#allocation4 + $0x1a0] sm:$0xf]  ;;  %v4802_v20 = vld [vmem:[#allocation4 + $0x1d8] sm:$0xf0]  ;;  %v7243_v34 = vpop.f32.mrf.mxu3 }
 0x280   : > { %v1634_v3 = vadd.f32 %v1602_v35, %v1566_v42  ;;  %v1726_v56 = vadd.f32 %v10046_v54, %v1666_v29  ;;  %v1814_v55 = vadd.f32 %v1630_v62, %v1458_v24  ;;  %v4817_v49 = vor.u32 %v5066_v32, %v4816_v5  ;;  %v4768_v26 = vld [vmem:[#allocation4 + $0x188] sm:$0xf]  ;;  %v5054_v5 = vld [vmem:[#allocation4 + $0x194] sm:$0xf0]  ;;  %v5053_v29 = vld [vmem:[#allocation4 + $0x18c] sm:$0xf0] }
 0x281   : > { %2691 = vmatpush.bf16.msra.mxu2 %v4813_v15  ;;  %v4809_v16 = vor.u32 %v5065_v45, %v4808_v39  ;;  %v1983_v46 = vmin.f32 %v1951_v63, 6.0  ;;  %v2019_v6 = vmul.f32 %v1987_v1, %v1891_v48  ;;  %v4801_v43 = vor.u32 %v5062_v33, %v4800_v2  ;;  %v5051_v48 = vld [vmem:[#allocation4 + $0x184] sm:$0xf]  ;;  %v7251_v45 = vpop.f32.mrf.mxu0  ;;  %v5056_v62 = vld [vmem:[#allocation4 + $0x1ac] sm:$0xf] }
 0x282   : > { %v1786_v12 = vadd.f32 %v1758_v8, %v1726_v56  ;;  %v1818_v58 = vadd.f32 %v1634_v3, %v1462_v7  ;;  %2720 = vmatpush.bf16.msra.mxu3 %v4817_v49  ;;  %v4793_v18 = vor.u32 %v5061_v14, %v4792_v21  ;;  %v4781_v24 = vor.u32 %v5055_v50, %v4778_v31  ;;  %v4786_v47 = vld [vmem:[#allocation4 + $0x1b8] sm:$0xf0]  ;;  %v2370_v8 = vpop.f32.mrf.mxu2  ;;  %v5047_v33 = vld [vmem:[#allocation4 + $0x164] sm:$0xf]  ;;  %v4746_v63 = vld [vmem:[#allocation4 + $0x170] sm:$0xf0] }
 0x283   : > { %2662 = vmatpush.bf16.msrb.mxu1 %v4809_v16  ;;  %v2015_v38 = vmul.f32 %v1983_v46, %v1887_v61  ;;  %v2051_v30 = vmul.f32 0.16666667, %v2019_v6  ;;  %v4821_v36 = vor.u32 %v5064_v0, %v4818_v19  ;;  %v4785_v61 = vor.u32 %v5058_v57, %v4784_v60  ;;  %v2341_v32 = vpop.f32.mrf.mxu1  ;;  %v4752_v21 = vld [vmem:[#allocation4 + $0x168] sm:$0xf]  ;;  %v5050_v14 = vld [vmem:[#allocation4 + $0x174] sm:$0xf0] }
 0x284   : > { %v1846_v10 = vadd.f32 %v1814_v55, %v1786_v12  ;;  %v1892_v17 = vadd.f32 %v9997_v4, %v1818_v58  ;;  %v4777_v42 = vor.u32 %v5057_v27, %v4776_v44  ;;  %v4805_v11 = vor.u32 %v5060_v22, %v4802_v20  ;;  %v4744_v50 = vld [vmem:[#allocation4 + $0x160] sm:$0xf]  ;;  %v5049_v31 = vld [vmem:[#allocation4 + $0x16c] sm:$0xf0]  ;;  %v5052_v6 = vld [vmem:[#allocation4 + $0x18c] sm:$0xf] }
 0x285   : > { %2692 = vmatpush.bf16.msra.mxu2 %v4797_v37  ;;  %v2047_v9 = vmul.f32 0.16666667, %v2015_v38  ;;  %2749 = vmatpush.bf16.msrb.mxu0 %v4821_v36  ;;  %v4765_v39 = vor.u32 %v5051_v48, %v4762_v25  ;;  %v2342_v1 = vadd.f32 %v7249_v53, %v2341_v32  ;;  %v2340_v3 = vadd.f32 %v7249_v53, %v7232_v23  ;;  %v4770_v12 = vld [vmem:[#allocation4 + $0x198] sm:$0xf0]  ;;  %v5043_v19 = vld [vmem:[#allocation4 + $0x144] sm:$0xf] }
 0x286   : > { %v1888_v7 = vadd.f32 %v9997_v4, %v1846_v10  ;;  %v1924_v40 = vadd.f32 3.0, %v1892_v17  ;;  %2721 = vmatpush.bf16.msra.mxu3 %v4801_v43  ;;  %v4760_v4 = vld [vmem:[#allocation4 + $0x180] sm:$0xf]  ;;  %v4769_v54 = vor.u32 %v5054_v5, %v4768_v26  ;;  %v4789_v49 = vor.u32 %v5056_v62, %v4786_v47  ;;  %v4730_v23 = vld [vmem:[#allocation4 + $0x150] sm:$0xf0] }
 0x287   : > { %2663 = vmatpush.bf16.msrb.mxu1 %v4793_v18  ;;  %v2067_v51 = vpack.c.bf16 %v2051_v30, %v2047_v9  ;;  %v4761_v56 = vor.u32 %v5053_v29, %v4760_v4  ;;  %v2371_v16 = vadd.f32 %v2370_v8, %v2342_v1  ;;  %v4749_v46 = vor.u32 %v5047_v33, %v4746_v63  ;;  %v2399_v57 = vpop.f32.mrf.mxu3  ;;  %v4728_v38 = vld [vmem:[#allocation4 + $0x140] sm:$0xf]  ;;  %v5045_v30 = vld [vmem:[#allocation4 + $0x14c] sm:$0xf0]  ;;  %v4736_v27 = vld [vmem:[#allocation4 + $0x148] sm:$0xf] }
 0x288   : > { %v1920_v52 = vadd.f32 3.0, %v1888_v7  ;;  %v1956_v35 = vmax.f32 %v1924_v40, 0.0  ;;  %v2369_v43 = vadd.f32 %v7239_v28, %v2340_v3  ;;  %v4753_v18 = vor.u32 %v5050_v14, %v4752_v21  ;;  %v5048_v36 = vld [vmem:[#allocation4 + $0x16c] sm:$0xf]  ;;  %v4754_v22 = vld [vmem:[#allocation4 + $0x178] sm:$0xf0] }
 0x289   : > { %2693 = vmatpush.bf16.msra.mxu2 %v4781_v24  ;;  %2750 = vmatpush.bf16.msrb.mxu0 %v4805_v11  ;;  %v4745_v60 = vor.u32 %v5049_v31, %v4744_v50  ;;  %v2400_v44 = vadd.f32 %v2399_v57, %v2371_v16  ;;  %v5046_v24 = vld [vmem:[#allocation4 + $0x154] sm:$0xf0]  ;;  %v4733_v48 = vor.u32 %v5043_v19, %v4730_v23  ;;  %v5039_v9 = vld [vmem:[#allocation4 + $0x124] sm:$0xf]  ;;  %v2428_v40 = vpop.f32.mrf.mxu0  ;;  %v5041_v32 = vld [vmem:[#allocation4 + $0x12c] sm:$0xf0] }
 0x28a   : > { %2382 = vmatmul.bf16.gmra.mxu2 %v2067_v51  ;;  %v1952_v15 = vmax.f32 %v1920_v52, 0.0  ;;  %v1988_v2 = vmin.f32 %v1956_v35, 6.0  ;;  %2722 = vmatpush.bf16.msra.mxu3 %v4785_v61  ;;  %v2398_v28 = vadd.f32 %v7243_v34, %v2369_v43  ;;  %v4729_v25 = vor.u32 %v5045_v30, %v4728_v38  ;;  %v4720_v51 = vld [vmem:[#allocation4 + $0x128] sm:$0xf]  ;;  %v5042_v52 = vld [vmem:[#allocation4 + $0x134] sm:$0xf0] }
 0x28b   : > { %2664 = vmatpush.bf16.msrb.mxu1 %v4777_v42  ;;  %v4737_v61 = vor.u32 %v5046_v24, %v4736_v27  ;;  %v4712_v42 = vld [vmem:[#allocation4 + $0x120] sm:$0xf]  ;;  %v4757_v26 = vor.u32 %v5048_v36, %v4754_v22  ;;  %v2429_v5 = vadd.f32 %v2428_v40, %v2400_v44  ;;  %v5044_v11 = vld [vmem:[#allocation4 + $0x14c] sm:$0xf]  ;;  %v4738_v4 = vld [vmem:[#allocation4 + $0x158] sm:$0xf0]  ;;  %v4721_v47 = vor.u32 %v5042_v52, %v4720_v51 }
 0x28c   : > { %v1984_v55 = vmin.f32 %v1952_v15, 6.0  ;;  %v2020_v37 = vmul.f32 %v1988_v2, %v1892_v17  ;;  %v4773_v17 = vor.u32 %v5052_v6, %v4770_v12  ;;  %v2427_v34 = vadd.f32 %v7251_v45, %v2398_v28  ;;  %v5035_v29 = vld [vmem:[#allocation4 + $0x104] sm:$0xf]  ;;  %v10047_v8 = vld [vmem:[#allocation13_spill] sm:$0xff]  ;;  %v5040_v63 = vld [vmem:[#allocation4 + $0x12c] sm:$0xf]  ;;  %v2344_v6 = vpop.f32.mrf.mxu1 }
 0x28d   : > { %2694 = vmatpush.bf16.msra.mxu2 %v4765_v39  ;;  %2751 = vmatpush.bf16.msrb.mxu0 %v4789_v49  ;;  %v4698_v39 = vld [vmem:[#allocation4 + $0x110] sm:$0xf0]  ;;  %v4713_v62 = vor.u32 %v5041_v32, %v4712_v42  ;;  %v7260_v15 = vadd.f32 %v2429_v5, %v10047_v8  ;;  %v4741_v2 = vor.u32 %v5044_v11, %v4738_v4  ;;  %v4722_v1 = vld [vmem:[#allocation4 + $0x138] sm:$0xf0]  ;;  %v10049_v3 = vld [vmem:[#allocation12_spill] sm:$0xff] }
 0x28e   : > { %v2016_v58 = vmul.f32 %v1984_v55, %v1888_v7  ;;  %v2052_v0 = vmul.f32 0.16666667, %v2020_v37  ;;  %2723 = vmatpush.bf16.msra.mxu3 %v4769_v54  ;;  %v4714_v7 = vld [vmem:[#allocation4 + $0x130] sm:$0xf0]  ;;  %v4701_v33 = vor.u32 %v5035_v29, %v4698_v39  ;;  %v7263_v54 = vadd.f32 %v2427_v34, %v10049_v3  ;;  %v5037_v45 = vld [vmem:[#allocation4 + $0x10c] sm:$0xf0] }
 0x28f   : > { %2665 = vmatpush.bf16.msrb.mxu1 %v4761_v56  ;;  %v4717_v35 = vor.u32 %v5039_v9, %v4714_v7  ;;  %10048 = vst [vmem:[#allocation65_spill] sm:$0xff] %v7260_v15  ;;  %v4696_v56 = vld [vmem:[#allocation4 + $0x100] sm:$0xf]  ;;  %v4704_v21 = vld [vmem:[#allocation4 + $0x108] sm:$0xf]  ;;  %v4725_v49 = vor.u32 %v5040_v63, %v4722_v1  ;;  %v10051_v24 = vld [vmem:[#allocation14_spill] sm:$0xff] }
 0x290   : > { %v2048_v10 = vmul.f32 0.16666667, %v2016_v58  ;;  %10050 = vst [vmem:[#allocation66_spill] sm:$0xff] %v7263_v54  ;;  %v4697_v14 = vor.u32 %v5037_v45, %v4696_v56  ;;  %v5038_v55 = vld [vmem:[#allocation4 + $0x114] sm:$0xf0]  ;;  %v2454_v37 = vpack.c.bf16 %v7260_v15, %v7263_v54  ;;  %v2345_v58 = vadd.f32 %v7249_v53, %v2344_v6  ;;  %v10053_v36 = vld [vmem:[#allocation15_spill] sm:$0xff] }
 0x291   : > { %2695 = vmatpush.bf16.msra.mxu2 %v4749_v46  ;;  %2752 = vmatpush.bf16.msrb.mxu0 %v4773_v17  ;;  %v4705_v50 = vor.u32 %v5038_v55, %v4704_v21  ;;  %v5036_v31 = vld [vmem:[#allocation4 + $0x10c] sm:$0xf]  ;;  %v4706_v16 = vld [vmem:[#allocation4 + $0x118] sm:$0xf0]  ;;  %v2431_v19 = vpop.f32.mrf.mxu0 }
 0x292   : > { %v2068_v20 = vpack.c.bf16 %v2052_v0, %v2048_v10  ;;  %2724 = vmatpush.bf16.msra.mxu3 %v4753_v18  ;;  %v4709_v46 = vor.u32 %v5036_v31, %v4706_v16  ;;  %v10055_v29 = vld [vmem:[#allocation16_spill] sm:$0xff]  ;;  %v10059_v6 = vld [vmem:[#allocation18_spill] sm:$0xff] }
 0x293   : > { %2666 = vmatpush.bf16.msrb.mxu1 %v4745_v60 }
 0x294   : > { %2411 = vmatmul.bf16.gmra.mxu3 %v2068_v20  ;;  %v2346_v0 = vpop.f32.mrf.mxu1 }
 0x295   : > { %2696 = vmatpush.bf16.msra.mxu2 %v4733_v48  ;;  %2753 = vmatpush.bf16.msrb.mxu0 %v4757_v26  ;;  %v2347_v60 = vadd.f32 %v7249_v53, %v2346_v0 }
 0x296   : > { %2725 = vmatpush.bf16.msra.mxu3 %v4737_v61 }
 0x297   : > { %2667 = vmatpush.bf16.msrb.mxu1 %v4729_v25 }
 0x299   : > { %2697 = vmatpush.bf16.msra.mxu2 %v4717_v35  ;;  %2754 = vmatpush.bf16.msrb.mxu0 %v4741_v2  ;;  %v2373_v12 = vpop.f32.mrf.mxu2  ;;  %v2433_v44 = vpop.f32.mrf.mxu0 }
 0x29a   : > { %2726 = vmatpush.bf16.msra.mxu3 %v4721_v47  ;;  %v2374_v43 = vadd.f32 %v2373_v12, %v2345_v58  ;;  %v10061_v58 = vld [vmem:[#allocation19_spill] sm:$0xff] }
 0x29b   : > { %2668 = vmatpush.bf16.msrb.mxu1 %v4713_v62  ;;  %v10057_v62 = vld [vmem:[#allocation17_spill] sm:$0xff] }
 0x29d   : > { %2698 = vmatpush.bf16.msra.mxu2 %v4701_v33  ;;  %2755 = vmatpush.bf16.msrb.mxu0 %v4725_v49 }
 0x29e   : > { %2727 = vmatpush.bf16.msra.mxu3 %v4705_v50 }
 0x29f   : > { %2669 = vmatpush.bf16.msrb.mxu1 %v4697_v14 }
 0x2a0   : > { %2699 = vmatmul.bf16.vlgmr.msra.gmra.mxu2 %v2454_v37 }
 0x2a1   : > { %2756 = vmatpush.bf16.msrb.mxu0 %v4709_v46  ;;  %v2375_v18 = vpop.f32.mrf.mxu2 }
 0x2a2   : > { %2670 = vmatmul.bf16.vlgmr.msrb.gmra.mxu1 %v2454_v37  ;;  %v2376_v38 = vadd.f32 %v2375_v18, %v2347_v60 }
 0x2a4   : > { %2728 = vmatmul.bf16.vlgmr.msra.gmra.mxu3 %v2454_v37  ;;  %2757 = vmatmul.bf16.vlgmr.msrb.gmra.mxu0 %v2454_v37 }
 0x2a9   : > { %v2402_v23 = vpop.f32.mrf.mxu3 }
 0x2aa   : > { %v2403_v57 = vadd.f32 %v2402_v23, %v2374_v43  ;;  %v4693_v23 = vld [vmem:[%s9191_s4 + $0x4] sm:$0xf] }
 0x2ab   : > { %v7300_v43 = vperm.slane %v4693_v23, 0 }
 0x2ac   : > { %v2432_v10 = vadd.f32 %v2431_v19, %v2403_v57 }
 0x2ae   : > { %v7270_v48 = vadd.f32 %v2432_v10, %v10051_v24 }
 0x2b0   : > { %10052 = vst [vmem:[#allocation86_spill] sm:$0xff] %v7270_v48 }
 0x2b1   : > { %v2404_v30 = vpop.f32.mrf.mxu3 }
 0x2b2   : > { %v2405_v17 = vadd.f32 %v2404_v30, %v2376_v38  ;;  %v7303_v30 = vperm.slane %v4693_v23, 3 }
 0x2b4   : > { %v2434_v27 = vadd.f32 %v2433_v44, %v2405_v17  ;;  %v7306_v17 = vperm.slane %v4693_v23, 1 }
 0x2b6   : > { %v7273_v22 = vadd.f32 %v2434_v27, %v10053_v36  ;;  %v7308_v27 = vperm.slane %v4693_v23, 2 }
 0x2b7   : > { %v2349_v28 = vpop.f32.mrf.mxu1 }
 0x2b8   : > { %10054 = vst [vmem:[#allocation81_spill] sm:$0xff] %v7273_v22  ;;  %v2455_v20 = vpack.c.bf16 %v7273_v22, %v7270_v48  ;;  %v2350_v7 = vadd.f32 %v7249_v53, %v2349_v28 }
 0x2ba   : > { %2675 = vmatmul.bf16.gmra.mxu1 %v2455_v20  ;;  %2704 = vmatmul.bf16.gmra.mxu2 %v2455_v20 }
 0x2bb   : > { %2733 = vmatmul.bf16.gmra.mxu3 %v2455_v20  ;;  %2762 = vmatmul.bf16.gmra.mxu0 %v2455_v20 }
 0x2bf   : > { %v2351_v40 = vpop.f32.mrf.mxu1 }
 0x2c0   : > { %v2352_v5 = vadd.f32 %v7249_v53, %v2351_v40 }
 0x2c5   : > { %v2436_v25 = vpop.f32.mrf.mxu0 }
 0x2cd   : > { %v2438_v4 = vpop.f32.mrf.mxu0 }
 0x2da   : > { %v2378_v9 = vpop.f32.mrf.mxu2 }
 0x2db   : > { %v2379_v42 = vadd.f32 %v2378_v9, %v2350_v7 }
 0x2e2   : > { %v2380_v26 = vpop.f32.mrf.mxu2 }
 0x2e3   : > { %v2381_v51 = vadd.f32 %v2380_v26, %v2352_v5  ;;  %v7324_v5 = vld [vmem:[%s9192_s5 + $0x58] sm:$0xff] }
 0x2e9   : > { %v2407_v61 = vpop.f32.mrf.mxu3 }
 0x2ea   : > { %v2408_v32 = vadd.f32 %v2407_v61, %v2379_v42  ;;  %v7316_v61 = vld [vmem:[%s9192_s5 + $0x40] sm:$0xff] }
 0x2eb   : > { %10063 = vst [vmem:[#allocation73_spill] sm:$0xff] %v7316_v61  ;;  %v7378_v23 = vperm.slane %v7316_v61, 6 }
 0x2ec   : > { %v2437_v35 = vadd.f32 %v2436_v25, %v2408_v32 }
 0x2ed   : > { %10069 = vst [vmem:[#allocation48_spill] sm:$0xff] %v7378_v23 }
 0x2ee   : > { %v7280_v39 = vadd.f32 %v2437_v35, %v10055_v29  ;;  %v7340_v29 = vld [vmem:[%s9192_s5 + $0x50] sm:$0xff] }
 0x2ef   : > { %10065 = vst [vmem:[#allocation91_spill] sm:$0xff] %v7340_v29 }
 0x2f0   : > { %10056 = vst [vmem:[#allocation69_spill] sm:$0xff] %v7280_v39  ;;  %v2354_v2 = vpop.f32.mrf.mxu1 }
 0x2f1   : > { %v2409_v52 = vpop.f32.mrf.mxu3  ;;  %v2355_v63 = vadd.f32 %v7249_v53, %v2354_v2  ;;  %v7346_v2 = vperm.slane %v7324_v5, 1 }
 0x2f2   : > { %v2410_v11 = vadd.f32 %v2409_v52, %v2381_v51  ;;  %v7329_v52 = vld [vmem:[%s9192_s5 + $0x48] sm:$0xff] }
 0x2f3   : > { %10064 = vst [vmem:[#allocation74_spill] sm:$0xff] %v7329_v52 }
 0x2f4   : > { %v2439_v34 = vadd.f32 %v2438_v4, %v2410_v11  ;;  %v7335_v4 = vperm.slane %v7316_v61, 1 }
 0x2f6   : > { %v7283_v47 = vadd.f32 %v2439_v34, %v10057_v62  ;;  %v7343_v62 = vperm.slane %v7316_v61, 4 }
 0x2f8   : > { %10058 = vst [vmem:[#allocation96_spill] sm:$0xff] %v7283_v47  ;;  %v2456_v8 = vpack.c.bf16 %v7283_v47, %v7280_v39  ;;  %v2356_v1 = vpop.f32.mrf.mxu1  ;;  %v7457_v47 = vperm.slane %v7340_v29, 7 }
 0x2f9   : > { %v2357_v14 = vadd.f32 %v7249_v53, %v2356_v1  ;;  %v7353_v1 = vperm.slane %v7329_v52, 1 }
 0x2fa   : > { %2680 = vmatmul.bf16.gmra.mxu1 %v2456_v8  ;;  %2709 = vmatmul.bf16.gmra.mxu2 %v2456_v8 }
 0x2fb   : > { %2738 = vmatmul.bf16.gmra.mxu3 %v2456_v8  ;;  %2767 = vmatmul.bf16.gmra.mxu0 %v2456_v8  ;;  %v2441_v3 = vpop.f32.mrf.mxu0 }
 0x303   : > { %v2443_v16 = vpop.f32.mrf.mxu0 }
 0x30d   : > { %v2383_v33 = vpop.f32.mrf.mxu2 }
 0x30e   : > { %v2384_v45 = vadd.f32 %v2383_v33, %v2355_v63  ;;  %v7350_v63 = vperm.slane %v7324_v5, 4 }
 0x315   : > { %v2385_v21 = vpop.f32.mrf.mxu2 }
 0x316   : > { %v2386_v37 = vadd.f32 %v2385_v21, %v2357_v14  ;;  %v7359_v14 = vperm.slane %v7340_v29, 1 }
 0x317   : > { %v2412_v56 = vpop.f32.mrf.mxu3 }
 0x318   : > { %v2413_v55 = vadd.f32 %v2412_v56, %v2384_v45 }
 0x31a   : > { %v2442_v50 = vadd.f32 %v2441_v3, %v2413_v55  ;;  %v7356_v3 = vperm.slane %v7329_v52, 4  ;;  %v7362_v55 = vperm.slane %v7340_v29, 4 }
 0x31c   : > { %v7290_v12 = vadd.f32 %v2442_v50, %v10059_v6  ;;  %v7372_v6 = vperm.slane %v7316_v61, 5 }
 0x31e   : > { %10060 = vst [vmem:[#allocation20_spill] sm:$0xff] %v7290_v12 }
 0x31f   : > { %v2414_v49 = vpop.f32.mrf.mxu3  ;;  %v2671_v53 = vpop.f32.mrf.mxu1  ;;  %10068 = vst [vmem:[#allocation27_spill] sm:$0xff] %v7372_v6 }
 0x320   : > { %v2415_v31 = vadd.f32 %v2414_v49, %v2386_v37  ;;  %v2672_v38 = vadd.f32 %v2671_v53, %v7300_v43 }
 0x321   : > { %v2758_v18 = vpop.f32.mrf.mxu0 }
 0x322   : > { %v2444_v46 = vadd.f32 %v2443_v16, %v2415_v31  ;;  %v2778_v44 = vadd.f32 3.0, %v2672_v38  ;;  %v2759_v36 = vadd.f32 %v2758_v18, %v7303_v30  ;;  %v7366_v31 = vperm.slane %v7316_v61, 2 }
 0x323   : > { %v2700_v60 = vpop.f32.mrf.mxu2  ;;  %v7369_v16 = vperm.slane %v7316_v61, 3  ;;  %v7381_v18 = vperm.slane %v7316_v61, 7 }
 0x324   : > { %v7293_v0 = vadd.f32 %v2444_v46, %v10061_v58  ;;  %v2701_v9 = vadd.f32 %v2700_v60, %v7306_v17  ;;  %v2810_v7 = vmax.f32 %v2778_v44, 0.0  ;;  %v2781_v42 = vadd.f32 3.0, %v2759_v36  ;;  %10066 = vst [vmem:[#allocation97_spill] sm:$0xff] %v7366_v31 }
 0x325   : > { %10067 = vst [vmem:[#allocation56_spill] sm:$0xff] %v7369_v16  ;;  %v7384_v60 = vperm.slane %v7324_v5, 2  ;;  %v7390_v44 = vperm.slane %v7324_v5, 5 }
 0x326   : > { %10062 = vst [vmem:[#allocation70_spill] sm:$0xff] %v7293_v0  ;;  %v2457_v19 = vpack.c.bf16 %v7293_v0, %v7290_v12  ;;  %v2779_v51 = vadd.f32 3.0, %v2701_v9  ;;  %v2842_v11 = vmin.f32 %v2810_v7, 6.0  ;;  %v2813_v8 = vmax.f32 %v2781_v42, 0.0 }
 0x327   : > { %v2673_v57 = vpop.f32.mrf.mxu1  ;;  %v2729_v24 = vpop.f32.mrf.mxu3  ;;  %10070 = vst [vmem:[#allocation47_spill] sm:$0xff] %v7384_v60  ;;  %v7398_v7 = vperm.slane %v7324_v5, 7 }
 0x328   : > { %2685 = vmatmul.bf16.gmra.mxu1 %v2457_v19  ;;  %2714 = vmatmul.bf16.gmra.mxu2 %v2457_v19  ;;  %v2674_v10 = vadd.f32 %v2673_v57, %v7300_v43  ;;  %v2730_v40 = vadd.f32 %v2729_v24, %v7308_v27  ;;  %v2811_v21 = vmax.f32 %v2779_v51, 0.0  ;;  %v2874_v49 = vmul.f32 %v2842_v11, %v2672_v38 }
 0x329   : > { %2743 = vmatmul.bf16.gmra.mxu3 %v2457_v19  ;;  %2772 = vmatmul.bf16.gmra.mxu0 %v2457_v19  ;;  %v2760_v28 = vpop.f32.mrf.mxu0  ;;  %v2845_v46 = vmin.f32 %v2813_v8, 6.0  ;;  %v7387_v38 = vperm.slane %v7324_v5, 3  ;;  %10072 = vst [vmem:[#allocation78_spill] sm:$0xff] %v7390_v44  ;;  %v7407_v8 = vperm.slane %v7329_v52, 3 }
 0x32a   : > { %v2782_v20 = vadd.f32 3.0, %v2674_v10  ;;  %v7319_v26 = vadd.f32 %v2760_v28, %v7303_v30  ;;  %v2780_v34 = vadd.f32 3.0, %v2730_v40  ;;  %v2843_v57 = vmin.f32 %v2811_v21, 6.0 }
 0x32b   : > { %v2702_v25 = vpop.f32.mrf.mxu2  ;;  %10071 = vst [vmem:[#allocation77_spill] sm:$0xff] %v7387_v38  ;;  %v7395_v28 = vperm.slane %v7324_v5, 6  ;;  %v7416_v21 = vperm.slane %v7329_v52, 7 }
 0x32c   : > { %v2814_v32 = vmax.f32 %v2782_v20, 0.0  ;;  %v7332_v35 = vadd.f32 %v2702_v25, %v7306_v17  ;;  %v2785_v33 = vadd.f32 3.0, %v7319_v26  ;;  %v2812_v50 = vmax.f32 %v2780_v34, 0.0  ;;  %10076 = vst [vmem:[#allocation87_spill] sm:$0xff] %v7407_v8 }
 0x32d   : > { %v7392_v20 = vmul.f32 0.16666667, %v2874_v49  ;;  %10074 = vst [vmem:[#allocation84_spill] sm:$0xff] %v7395_v28  ;;  %v2877_v25 = vmul.f32 %v2845_v46, %v2759_v36 }
 0x32e   : > { %v2846_v56 = vmin.f32 %v2814_v32, 6.0  ;;  %v2783_v37 = vadd.f32 3.0, %v7332_v35  ;;  %v2817_v58 = vmax.f32 %v2785_v33, 0.0  ;;  %v7401_v32 = vperm.slane %v7329_v52, 2 }
 0x32f   : > { %v2731_v45 = vpop.f32.mrf.mxu3  ;;  %10073 = vst [vmem:[#allocation98_spill] sm:$0xff] %v7392_v20  ;;  %v7410_v33 = vperm.slane %v7329_v52, 5  ;;  %v7434_v12 = vmul.f32 %v7335_v4, %v7392_v20  ;;  %v10090_v22 = vrot.slane %v7392_v20, 7 }
 0x330   : > { %v7375_v19 = vadd.f32 %v2731_v45, %v7308_v27  ;;  %v2878_v53 = vmul.f32 %v2846_v56, %v2674_v10  ;;  %v2815_v24 = vmax.f32 %v2783_v37, 0.0  ;;  %v2844_v10 = vmin.f32 %v2812_v50, 6.0  ;;  %10075 = vst [vmem:[#allocation22_spill] sm:$0xff] %v7401_v32 }
 0x331   : > { %v2849_v42 = vmin.f32 %v2817_v58, 6.0  ;;  %10077 = vst [vmem:[#allocation29_spill] sm:$0xff] %v7410_v33  ;;  %v7413_v56 = vperm.slane %v7329_v52, 6  ;;  %v2875_v45 = vmul.f32 %v2843_v57, %v2701_v9  ;;  %v7419_v37 = vperm.slane %v7340_v29, 2 }
 0x332   : > { %v2784_v51 = vadd.f32 3.0, %v7375_v19  ;;  %v7404_v34 = vmul.f32 0.16666667, %v2878_v53  ;;  %v2847_v36 = vmin.f32 %v2815_v24, 6.0  ;;  %v2876_v46 = vmul.f32 %v2844_v10, %v2730_v40  ;;  %10082 = vst [vmem:[#allocation80_spill] sm:$0xff] %v7434_v12 }
 0x333   : > { %10078 = vst [vmem:[#allocation110_spill] sm:$0xff] %v7413_v56  ;;  %v7423_v58 = vperm.slane %v7340_v29, 3  ;;  %v7429_v9 = vmul.f32 0.16666667, %v2877_v25  ;;  %v2881_v57 = vmul.f32 %v2849_v42, %v7319_v26  ;;  %v7438_v40 = vmul.f32 %v7343_v62, %v7392_v20 }
 0x334   : > { %10079 = vst [vmem:[#allocation101_spill] sm:$0xff] %v7419_v37  ;;  %v2816_v24 = vmax.f32 %v2784_v51, 0.0  ;;  %v7444_v50 = vmul.f32 0.16666667, %v2875_v45  ;;  %v2879_v25 = vmul.f32 %v2847_v36, %v7332_v35  ;;  %v7448_v26 = vperm.slane %v7340_v29, 5 }
 0x335   : > { %10080 = vst [vmem:[#allocation67_spill] sm:$0xff] %v7423_v58  ;;  %v7451_v42 = vperm.slane %v7340_v29, 6  ;;  %v7453_v51 = vmul.f32 0.16666667, %v2876_v46  ;;  %v7462_v35 = vmul.f32 0.16666667, %v2881_v57  ;;  %v7466_v39 = vmul.f32 %v7346_v2, %v7429_v9 }
 0x336   : > { %10081 = vst [vmem:[#allocation63_spill] sm:$0xff] %v7429_v9  ;;  %v2848_v36 = vmin.f32 %v2816_v24, 6.0  ;;  %v7470_v46 = vmul.f32 %v7350_v63, %v7429_v9  ;;  %v10089_v0 = vrot.slane %v7404_v34, 7  ;;  %v7483_v48 = vmul.f32 %v7353_v1, %v7444_v50 }
 0x337   : > { %v2676_v11 = vpop.f32.mrf.mxu1  ;;  %10083 = vst [vmem:[#allocation88_spill] sm:$0xff] %v7438_v40  ;;  %v7485_v15 = vmul.f32 0.16666667, %v2879_v25  ;;  %v7489_v54 = vmul.f32 %v7356_v3, %v7444_v50  ;;  %v7511_v12 = vmul.f32 %v7362_v55, %v7453_v51  ;;  %v10106_v52 = vrot.slane %v7462_v35, 1 }
 0x338   : > { %v2763_v49 = vpop.f32.mrf.mxu0  ;;  %v7426_v53 = vadd.f32 %v2676_v11, %v7300_v43  ;;  %10084 = vst [vmem:[#allocation24_spill] sm:$0xff] %v7444_v50  ;;  %v3003_v45 = vsel %vm10036_vm11, %v10090_v22, %v10089_v0  ;;  %v10093_v22 = vrot.slane %v7404_v34, 1  ;;  %v10094_v0 = vrot.slane %v7392_v20, 1 }
 0x339   : > { %v7442_v11 = vadd.f32 %v2763_v49, %v7303_v30  ;;  %10085 = vst [vmem:[#allocation89_spill] sm:$0xff] %v7448_v26  ;;  %v7501_v25 = vsel %vm5627_vm1, %v3003_v45, 0.0  ;;  %v10102_v20 = vrot.slane %v7429_v9, 7 }
 0x33a   : > { %10086 = vst [vmem:[#allocation30_spill] sm:$0xff] %v7453_v51  ;;  %v2786_v49 = vadd.f32 3.0, %v7426_v53  ;;  %v3099_v57 = vsel %vm10040_vm14, %v10094_v0, %v10093_v22 }
 0x33b   : > { %10087 = vst [vmem:[#allocation41_spill] sm:$0xff] %v7466_v39  ;;  %v2789_v10 = vadd.f32 3.0, %v7442_v11  ;;  %v3107_v39 = vsel %vm5974_vm4, %v3099_v57, 0.0  ;;  %v3467_v57 = vmul.f32 %v7378_v23, %v7501_v25 }
 0x33c   : > { %10088 = vst [vmem:[#allocation102_spill] sm:$0xff] %v7470_v46  ;;  %v2818_v24 = vmax.f32 %v2786_v49, 0.0  ;;  %v7507_v46 = vmul.f32 %v7359_v14, %v7453_v51  ;;  %v7515_v49 = vmul.f32 %v7335_v4, %v7404_v34 }
 0x33d   : > { %10091 = vst [vmem:[#allocation115_spill] sm:$0xff] %v7483_v48  ;;  %v2705_v40 = vpop.f32.mrf.mxu2  ;;  %v2821_v22 = vmax.f32 %v2789_v10, 0.0 }
 0x33e   : > { %10092 = vst [vmem:[#allocation25_spill] sm:$0xff] %v7489_v54  ;;  %v2880_v54 = vmul.f32 %v2848_v36, %v7375_v19  ;;  %v2734_v45 = vpop.f32.mrf.mxu3  ;;  %v3335_v19 = vmul.f32 %v7343_v62, %v7404_v34  ;;  %v2850_v59 = vmin.f32 %v2818_v24, 6.0  ;;  %v7528_v10 = vadd.f32 %v2705_v40, %v7306_v17 }
 0x33f   : > { %10096 = vst [vmem:[#allocation46_spill] sm:$0xff] %v7501_v25  ;;  %v7544_v24 = vmul.f32 %v7366_v31, %v3107_v39  ;;  %v7547_v40 = vmul.f32 %v7372_v6, %v3107_v39  ;;  %v2853_v29 = vmin.f32 %v2821_v22, 6.0  ;;  %v10109_v39 = vrot.slane %v7444_v50, 7 }
 0x340   : > { %10097 = vst [vmem:[#allocation90_spill] sm:$0xff] %v7507_v46  ;;  %v3299_v46 = vmul.f32 %v7369_v16, %v7501_v25  ;;  %v7538_v36 = vmul.f32 0.16666667, %v2880_v54  ;;  %v7541_v16 = vadd.f32 %v2734_v45, %v7308_v27  ;;  %v7551_v25 = vmul.f32 %v7346_v2, %v7462_v35 }
 0x341   : > { %10098 = vst [vmem:[#allocation26_spill] sm:$0xff] %v7511_v12  ;;  %v3499_v12 = vmul.f32 %v7381_v18, %v7404_v34  ;;  %v10108_v45 = vrot.slane %v7485_v15, 7 }
 0x342   : > { %10099 = vst [vmem:[#allocation93_spill] sm:$0xff] %v7515_v49  ;;  %v10101_v49 = vrot.slane %v7462_v35, 7  ;;  %v7568_v22 = vadd.f32 %v3335_v19, %v3299_v46  ;;  %v5082_v19 = vld [vmem:[#allocation7 + $0x178] sm:$0xff]  ;;  %v7661_v41 = vmul.f32 %v7359_v14, %v7538_v36 }
 0x343   : > { %10103 = vst [vmem:[#allocation35_spill] sm:$0xff] %v7544_v24  ;;  %v3004_v31 = vsel %vm10036_vm11, %v10109_v39, %v10108_v45  ;;  %v7576_v24 = vadd.f32 %v3499_v12, %v3467_v57  ;;  %v2788_v45 = vadd.f32 3.0, %v7541_v16  ;;  %v2678_v39 = vpop.f32.mrf.mxu1  ;;  %v2885_v12 = vmul.f32 %v2853_v29, %v7442_v11  ;;  %4189 = vmatpush.bf16.msrb.mxu2 %v5082_v19 }
 0x344   : > { %v3006_v48 = vsel %vm10036_vm11, %v10102_v20, %v10101_v49  ;;  %10104 = vst [vmem:[#allocation55_spill] sm:$0xff] %v7547_v40  ;;  %v10107_v20 = vrot.slane %v7429_v9, 1  ;;  %v3338_v49 = vmul.f32 %v7350_v63, %v7462_v35  ;;  %v3502_v9 = vmul.f32 %v7398_v7, %v7462_v35 }
 0x345   : > { %10105 = vst [vmem:[#allocation108_spill] sm:$0xff] %v7551_v25  ;;  %v9447_v25 = vrot.slane %v7485_v15, 1  ;;  %v7572_v40 = vsel %vm5627_vm1, %v3006_v48, 0.0  ;;  %v7586_v48 = vsel %vm5627_vm1, %v3004_v31, 0.0  ;;  %v3336_v29 = vmul.f32 %v7356_v3, %v7485_v15 }
 0x346   : > { %v3102_v54 = vsel %vm10040_vm14, %v10107_v20, %v10106_v52  ;;  %10110 = vst [vmem:[#allocation123_spill] sm:$0xff] %v7568_v22  ;;  %v2882_v52 = vmul.f32 %v2850_v59, %v7426_v53  ;;  %v2787_v20 = vadd.f32 3.0, %v7528_v10  ;;  %v7590_v59 = vmul.f32 %v7353_v1, %v7485_v15  ;;  %v2765_v53 = vpop.f32.mrf.mxu0 }
 0x347   : > { %10111 = vst [vmem:[#allocation60_spill] sm:$0xff] %v7572_v40  ;;  %v3110_v46 = vsel %vm5974_vm4, %v3102_v54, 0.0  ;;  %v3302_v57 = vmul.f32 %v7387_v38, %v7572_v40  ;;  %v3470_v61 = vmul.f32 %v7395_v28, %v7572_v40  ;;  %v10115_v54 = vrot.slane %v7444_v50, 1 }
 0x348   : > { %10112 = vst [vmem:[#allocation94_spill] sm:$0xff] %v7576_v24  ;;  %v7606_v11 = vmul.f32 0.16666667, %v2882_v52  ;;  %v7609_v22 = vadd.f32 %v2678_v39, %v7300_v43  ;;  %v7612_v40 = vmul.f32 %v7384_v60, %v3110_v46  ;;  %v3300_v50 = vmul.f32 %v7407_v8, %v7586_v48 }
 0x349   : > { %10113 = vst [vmem:[#allocation28_spill] sm:$0xff] %v7586_v48  ;;  %v3100_v31 = vsel %vm10040_vm14, %v10115_v54, %v9447_v25  ;;  %v10118_v54 = vrot.slane %v7538_v36, 7  ;;  %v10119_v25 = vrot.slane %v7453_v51, 7  ;;  %v2820_v52 = vmax.f32 %v2788_v45, 0.0 }
 0x34a   : > { %10114 = vst [vmem:[#allocation95_spill] sm:$0xff] %v7590_v59  ;;  %v2819_v59 = vmax.f32 %v2787_v20, 0.0  ;;  %v7623_v20 = vmul.f32 %v7390_v44, %v3110_v46  ;;  %v3108_v39 = vsel %vm5974_vm4, %v3100_v31, 0.0  ;;  %v3468_v19 = vmul.f32 %v7413_v56, %v7586_v48 }
 0x34b   : > { %10116 = vst [vmem:[#allocation38_spill] sm:$0xff] %v7606_v11  ;;  %v3005_v24 = vsel %vm10036_vm11, %v10119_v25, %v10118_v54  ;;  %v7631_v8 = vadd.f32 %v3338_v49, %v3302_v57  ;;  %v7633_v60 = vadd.f32 %v3502_v9, %v3470_v61  ;;  %v3500_v38 = vmul.f32 %v7416_v21, %v7485_v15 }
 0x34c   : > { %10117 = vst [vmem:[#allocation82_spill] sm:$0xff] %v7612_v40  ;;  %v7629_v40 = vmul.f32 0.16666667, %v2885_v12  ;;  %v10122_v25 = vrot.slane %v7538_v36, 1  ;;  %v10123_v45 = vrot.slane %v7453_v51, 1  ;;  %v7645_v31 = vsel %vm5627_vm1, %v3005_v24, 0.0  ;;  %vm10131_vm1 = vmmov %vm10036_vm11 }
 0x34d   : > { %10121 = vst [vmem:[#allocation36_spill] sm:$0xff] %v7633_v60  ;;  %v9460_v12 = vrot.slane %v7606_v11, 7  ;;  %v2851_v49 = vmin.f32 %v2819_v59, 6.0  ;;  %v2790_v61 = vadd.f32 3.0, %v7609_v22  ;;  %v7650_v9 = vmul.f32 %v7401_v32, %v3108_v39  ;;  %vm10143_vm11 = vmmov %vm10040_vm14 }
 0x34e   : > { %10120 = vst [vmem:[#allocation109_spill] sm:$0xff] %v7629_v40  ;;  %v3101_v46 = vsel %vm10040_vm14, %v10123_v45, %v10122_v25  ;;  %v7652_v57 = vadd.f32 %v3336_v29, %v3300_v50  ;;  %v7655_v54 = vmul.f32 %v7410_v33, %v3108_v39  ;;  %v2852_v48 = vmin.f32 %v2820_v52, 6.0  ;;  %vm10146_vm14 = vmmov %vm10143_vm11 }
 0x34f   : > { %10124 = vst [vmem:[#allocation39_spill] sm:$0xff] %v7645_v31  ;;  %v7657_v51 = vadd.f32 %v3500_v38, %v3468_v19  ;;  %v7665_v59 = vadd.f32 %v2765_v53, %v7303_v30  ;;  %v3109_v25 = vsel %vm5974_vm4, %v3101_v46, 0.0  ;;  %v3301_v50 = vmul.f32 %v7423_v58, %v7645_v31  ;;  %v5081_v46 = vld [vmem:[#allocation7 + $0x170] sm:$0xff]  ;;  %vm10136_vm4 = vmmov %vm10131_vm1 }
 0x350   : > { %10125 = vst [vmem:[#allocation21_spill] sm:$0xff] %v7650_v9  ;;  %v3469_v29 = vmul.f32 %v7451_v42, %v7645_v31  ;;  %v10130_v52 = vrot.slane %v7404_v34, 7  ;;  %v2883_v0 = vmul.f32 %v2851_v49, %v7528_v10  ;;  %v2822_v19 = vmax.f32 %v2790_v61, 0.0  ;;  %v2707_v31 = vpop.f32.mrf.mxu2  ;;  %4190 = vmatpush.bf16.msrb.mxu2 %v5081_v46 }
 0x351   : > { %10126 = vst [vmem:[#allocation116_spill] sm:$0xff] %v7652_v57  ;;  %v3337_v24 = vmul.f32 %v7362_v55, %v7538_v36  ;;  %v3501_v38 = vmul.f32 %v7457_v47, %v7538_v36  ;;  %v7694_v10 = vmul.f32 %v7448_v26, %v3109_v25  ;;  %v10134_v49 = vrot.slane %v7629_v40, 7  ;;  %v2736_v57 = vpop.f32.mrf.mxu3 }
 0x352   : > { %10127 = vst [vmem:[#allocation49_spill] sm:$0xff] %v7655_v54  ;;  %v2999_v39 = vsel %vm10131_vm1, %v10130_v52, %v9460_v12  ;;  %v7691_v52 = vmul.f32 %v7419_v37, %v3109_v25  ;;  %v10135_v61 = vrot.slane %v7462_v35, 7  ;;  %v2793_v53 = vadd.f32 3.0, %v7665_v59 }
 0x353   : > { %10128 = vst [vmem:[#allocation50_spill] sm:$0xff] %v7657_v51  ;;  %v7709_v37 = vsel %vm5689_vm2, %v2999_v39, 0.0  ;;  %v10141_v25 = vrot.slane %v7606_v11, 1  ;;  %v10145_v46 = vrot.slane %v7462_v35, 1 }
 0x354   : > { %10129 = vst [vmem:[#allocation31_spill] sm:$0xff] %v7661_v41  ;;  %v2884_v41 = vmul.f32 %v2852_v48, %v7541_v16  ;;  %v3002_v12 = vsel %vm10136_vm4, %v10135_v61, %v10134_v49  ;;  %v7703_v16 = vadd.f32 %v3337_v24, %v3301_v50  ;;  %v7705_v48 = vadd.f32 %v3501_v38, %v3469_v29  ;;  %vm10162_vm4 = vmmov %vm10143_vm11 }
 0x355   : > { %10132 = vst [vmem:[#allocation117_spill] sm:$0xff] %v7691_v52  ;;  %v10144_v49 = vrot.slane %v7629_v40, 1  ;;  %v7723_v50 = vmul.f32 0.16666667, %v2883_v0  ;;  %v2854_v29 = vmin.f32 %v2822_v19, 6.0  ;;  %v7726_v38 = vadd.f32 %v2707_v31, %v7306_v17 }
 0x356   : > { %10133 = vst [vmem:[#allocation100_spill] sm:$0xff] %v7694_v10  ;;  %v10142_v10 = vrot.slane %v7404_v34, 1  ;;  %v7730_v34 = vmul.f32 %v7335_v4, %v7606_v11  ;;  %v7734_v39 = vsel %vm5689_vm2, %v3002_v12, 0.0  ;;  %v7741_v0 = vmul.f32 %v7343_v62, %v7606_v11 }
 0x357   : > { %10137 = vst [vmem:[#allocation112_spill] sm:$0xff] %v7703_v16  ;;  %v3098_v24 = vsel %vm10146_vm14, %v10145_v46, %v10144_v49  ;;  %v3503_v31 = vmul.f32 %v7381_v18, %v7606_v11  ;;  %v7747_v19 = vmul.f32 %v7346_v2, %v7629_v40  ;;  %v2825_v61 = vmax.f32 %v2793_v53, 0.0  ;;  %vm10169_vm14 = vmmov %vm10162_vm4 }
 0x358   : > { %10138 = vst [vmem:[#allocation33_spill] sm:$0xff] %v7705_v48  ;;  %v3095_v51 = vsel %vm10143_vm11, %v10142_v10, %v10141_v25  ;;  %v7736_v10 = vmul.f32 0.16666667, %v2884_v41  ;;  %v3471_v41 = vmul.f32 %v7378_v23, %v7709_v37  ;;  %v7757_v49 = vsel %vm6014_vm6, %v3098_v24, 0.0  ;;  %vm10165_vm11 = vmmov %vm10131_vm1 }
 0x359   : > { %10140 = vst [vmem:[#allocation120_spill] sm:$0xff] %v7709_v37  ;;  %v7751_v12 = vsel %vm6014_vm6, %v3095_v51, 0.0  ;;  %v7760_v46 = vadd.f32 %v2736_v57, %v7308_v27  ;;  %v2886_v53 = vmul.f32 %v2854_v29, %v7609_v22  ;;  %v2791_v51 = vadd.f32 3.0, %v7726_v38 }
 0x35a   : > { %10147 = vst [vmem:[#allocation37_spill] sm:$0xff] %v7723_v50  ;;  %v7772_v57 = vmul.f32 %v7350_v63, %v7629_v40  ;;  %v2857_v29 = vmin.f32 %v2825_v61, 6.0  ;;  %v7783_v16 = vmul.f32 %v7390_v44, %v7757_v49  ;;  %v7786_v52 = vadd.f32 %v3503_v31, %v3471_v41 }
 0x35b   : > { %10148 = vst [vmem:[#allocation114_spill] sm:$0xff] %v7730_v34  ;;  %v7790_v58 = vmul.f32 0.16666667, %v2886_v53  ;;  %v2823_v22 = vmax.f32 %v2791_v51, 0.0  ;;  %v10158_v61 = vrot.slane %v7723_v50, 7  ;;  %v10160_v60 = vrot.slane %v7723_v50, 1 }
 0x35c   : > { %10149 = vst [vmem:[#allocation113_spill] sm:$0xff] %v7734_v39 }
 0x35d   : > { %10150 = vst [vmem:[#allocation40_spill] sm:$0xff] %v7736_v10 }
 0x35e   : > { %10151 = vst [vmem:[#allocation92_spill] sm:$0xff] %v7741_v0  ;;  %v3474_v0 = vmul.f32 %v7395_v28, %v7734_v39  ;;  %v7779_v39 = vmul.f32 %v7372_v6, %v7751_v12  ;;  %v10159_v6 = vrot.slane %v7485_v15, 7 }
 0x35f   : > { %10152 = vst [vmem:[#allocation23_spill] sm:$0xff] %v7747_v19  ;;  %v3506_v19 = vmul.f32 %v7398_v7, %v7629_v40 }
 0x360   : > { %10154 = vst [vmem:[#allocation57_spill] sm:$0xff] %v7757_v49  ;;  %v3000_v9 = vsel %vm10131_vm1, %v10159_v6, %v10158_v61  ;;  %v10161_v49 = vrot.slane %v7485_v15, 1  ;;  %v10167_v6 = vrot.slane %v7736_v10, 1  ;;  %v10168_v15 = vrot.slane %v7538_v36, 1 }
 0x361   : > { %10155 = vst [vmem:[#allocation42_spill] sm:$0xff] %v7772_v57  ;;  %v7788_v57 = vadd.f32 %v3506_v19, %v3474_v0  ;;  %v10163_v0 = vrot.slane %v7736_v10, 7  ;;  %v10164_v19 = vrot.slane %v7538_v36, 7  ;;  %v7832_v36 = vsel %vm5689_vm2, %v3000_v9, 0.0 }
 0x362   : > { %10157 = vst [vmem:[#allocation71_spill] sm:$0xff] %v7790_v58  ;;  %v3096_v31 = vsel %vm10162_vm4, %v10161_v49, %v10160_v60  ;;  %v3097_v60 = vsel %vm10169_vm14, %v10168_v15, %v10167_v6  ;;  %v2889_v49 = vmul.f32 %v2857_v29, %v7665_v59  ;;  %v7852_v15 = vmul.f32 %v7359_v14, %v7736_v10 }
 0x363   : > { %10156 = vst [vmem:[#allocation32_spill] sm:$0xff] %v7788_v57  ;;  %v3001_v41 = vsel %vm10165_vm11, %v10164_v19, %v10163_v0  ;;  %v7812_v57 = vmul.f32 %v7353_v1, %v7723_v50  ;;  %v3504_v0 = vmul.f32 %v7416_v21, %v7723_v50  ;;  %v7836_v6 = vsel %vm6014_vm6, %v3096_v31, 0.0 }
 0x364   : > { %10171 = vst [vmem:[#allocation34_spill] sm:$0xff] %v7832_v36  ;;  %v7840_v59 = vsel %vm5689_vm2, %v3001_v41, 0.0  ;;  %v7844_v29 = vsel %vm6014_vm6, %v3097_v60, 0.0  ;;  %vm10187_vm2 = vmmov %vm10162_vm4 }
 0x365   : > { %10166 = vst [vmem:[#allocation103_spill] sm:$0xff] %v7812_v57  ;;  %v7872_v60 = vmul.f32 %v7448_v26, %v7844_v29  ;;  %vm10189_vm6 = vmmov %vm10131_vm1 }
 0x366   : > { %10172 = vst [vmem:[#allocation44_spill] sm:$0xff] %v7836_v6  ;;  %vm10197_vm1 = vmmov %vm10187_vm2 }
 0x367   : > { %10173 = vst [vmem:[#allocation119_spill] sm:$0xff] %v7840_v59  ;;  %vm10204_vm4 = vmmov %vm10197_vm1 }
 0x368   : > { %10174 = vst [vmem:[#allocation58_spill] sm:$0xff] %v7844_v29  ;;  %vm10211_vm11 = vmmov %vm10197_vm1 }
 0x369   : > { %10175 = vst [vmem:[#allocation105_spill] sm:$0xff] %v7852_v15  ;;  %vm10271_vm14 = vmmov %vm10189_vm6 }
 0x36a   : > { %10177 = vst [vmem:[#allocation121_spill] sm:$0xff] %v7872_v60 }
 0x377   : > { %v2681_v34 = vpop.f32.mrf.mxu1 }
 0x378   : > { %v2768_v45 = vpop.f32.mrf.mxu0  ;;  %v7822_v61 = vadd.f32 %v2681_v34, %v7300_v43  ;;  %v2855_v34 = vmin.f32 %v2823_v22, 6.0  ;;  %v3505_v22 = vmul.f32 %v7457_v47, %v7736_v10 }
 0x379   : > { %v7688_v32 = vadd.f32 %v2768_v45, %v7303_v30  ;;  %v7856_v45 = vmul.f32 %v7362_v55, %v7736_v10 }
 0x37a   : > { %v2794_v25 = vadd.f32 3.0, %v7822_v61  ;;  %v2887_v15 = vmul.f32 %v2855_v34, %v7726_v38  ;;  %v7893_v38 = vmul.f32 %v7335_v4, %v7790_v58 }
 0x37b   : > { %v2797_v35 = vadd.f32 3.0, %v7688_v32  ;;  %10176 = vst [vmem:[#allocation72_spill] sm:$0xff] %v7856_v45  ;;  %v3473_v45 = vmul.f32 %v7451_v42, %v7840_v59 }
 0x37c   : > { %v2826_v26 = vmax.f32 %v2794_v25, 0.0  ;;  %10182 = vst [vmem:[#allocation111_spill] sm:$0xff] %v7893_v38  ;;  %v7905_v25 = vmul.f32 0.16666667, %v2887_v15  ;;  %v10186_v38 = vrot.slane %v7606_v11, 1  ;;  %v7932_v11 = vperm.slane %v7324_v5, 0 }
 0x37d   : > { %v2829_v24 = vmax.f32 %v2797_v35, 0.0  ;;  %v2710_v35 = vpop.f32.mrf.mxu2 }
 0x37e   : > { %v2739_v51 = vpop.f32.mrf.mxu3  ;;  %10185 = vst [vmem:[#allocation125_spill] sm:$0xff] %v7905_v25 }
 0x37f   : > { %v2861_v53 = vmin.f32 %v2829_v24, 6.0  ;;  %v7826_v24 = vmul.f32 %v7356_v3, %v7723_v50  ;;  %v2683_v31 = vpop.f32.mrf.mxu1  ;;  %10190 = vst [vmem:[#allocation12_spill] sm:$0xff] %v7932_v11 }
 0x380   : > { %v2770_v48 = vpop.f32.mrf.mxu0 }
 0x381   : > { %v2771_v54 = vadd.f32 %v2770_v48, %v7303_v30  ;;  %v2792_v48 = vadd.f32 3.0, %v7760_v46  ;;  %10170 = vst [vmem:[#allocation118_spill] sm:$0xff] %v7826_v24  ;;  %v7899_v24 = vmul.f32 %v7343_v62, %v7790_v58 }
 0x383   : > { %v2801_v37 = vadd.f32 3.0, %v2771_v54  ;;  %v2824_v19 = vmax.f32 %v2792_v48, 0.0  ;;  %v2893_v48 = vmul.f32 %v2861_v53, %v7688_v32  ;;  %v3472_v32 = vmul.f32 %v7413_v56, %v7832_v36  ;;  %10183 = vst [vmem:[#allocation124_spill] sm:$0xff] %v7899_v24 }
 0x384   : > { %v7868_v53 = vmul.f32 %v7410_v33, %v7836_v6  ;;  %v9486_v33 = vrot.slane %v7790_v58, 1  ;;  %v7885_v36 = vmul.f32 0.16666667, %v2889_v49  ;;  %v7903_v49 = vmul.f32 %v7381_v18, %v7790_v58 }
 0x385   : > { %v2833_v57 = vmax.f32 %v2801_v37, 0.0  ;;  %v7848_v37 = vadd.f32 %v2710_v35, %v7306_v17  ;;  %v2856_v35 = vmin.f32 %v2824_v19, 6.0  ;;  %v7878_v19 = vmul.f32 0.16666667, %v2893_v48 }
 0x386   : > { %10179 = vst [vmem:[#allocation45_spill] sm:$0xff] %v7885_v36  ;;  %v7889_v59 = vadd.f32 %v3504_v0, %v3472_v32  ;;  %v3091_v24 = vsel %vm10187_vm2, %v10186_v38, %v9486_v33  ;;  %v7934_v38 = vadd.f32 %v3505_v22, %v3473_v45  ;;  %v10195_v22 = vrot.slane %v7885_v36, 1  ;;  %v5074_v33 = vld [vmem:[#allocation7 + $0x138] sm:$0xff]  ;;  %vm10274_vm2 = vmmov %vm10189_vm6 }
 0x387   : > { %v2865_v9 = vmin.f32 %v2833_v57, 6.0  ;;  %v7864_v57 = vadd.f32 %v2739_v51, %v7308_v27  ;;  %10178 = vst [vmem:[#allocation59_spill] sm:$0xff] %v7878_v19  ;;  %v2795_v51 = vadd.f32 3.0, %v7848_v37  ;;  %v2888_v34 = vmul.f32 %v2856_v35, %v7760_v46  ;;  %4160 = vmatpush.bf16.msra.mxu1 %v5074_v33 }
 0x388   : > { %10181 = vst [vmem:[#allocation75_spill] sm:$0xff] %v7889_v59  ;;  %v9487_v32 = vrot.slane %v7878_v19, 7  ;;  %v7948_v45 = vsel %vm6020_vm7, %v3091_v24, 0.0  ;;  %v7964_v24 = vmul.f32 %v7346_v2, %v7885_v36 }
 0x389   : > { %v2897_v41 = vmul.f32 %v2865_v9, %v2771_v54  ;;  %v7882_v54 = vadd.f32 %v2683_v31, %v7300_v43  ;;  %v2712_v9 = vpop.f32.mrf.mxu2  ;;  %v2796_v48 = vadd.f32 3.0, %v7864_v57  ;;  %v2741_v31 = vpop.f32.mrf.mxu3  ;;  %10184 = vst [vmem:[#allocation76_spill] sm:$0xff] %v7903_v49  ;;  %v2858_v49 = vmin.f32 %v2826_v26, 6.0  ;;  %v5090_v26 = vld [vmem:[#allocation7 + $0x1b8] sm:$0xff] }
 0x38a   : > { %v7908_v0 = vadd.f32 %v2712_v9, %v7306_v17  ;;  %v7921_v9 = vadd.f32 %v2741_v31, %v7308_v27  ;;  %v7923_v60 = vmul.f32 0.16666667, %v2888_v34  ;;  %10191 = vst [vmem:[#allocation14_spill] sm:$0xff] %v7934_v38  ;;  %4218 = vmatpush.bf16.msrb.mxu3 %v5090_v26  ;;  %v7991_v26 = vmul.f32 %v7356_v3, %v7905_v25 }
 0x38b   : > { %v7887_v29 = vmul.f32 0.16666667, %v2897_v41  ;;  %v2827_v41 = vmax.f32 %v2795_v51, 0.0  ;;  %v2798_v46 = vadd.f32 3.0, %v7882_v54  ;;  %v2828_v51 = vmax.f32 %v2796_v48, 0.0  ;;  %10199 = vst [vmem:[#allocation17_spill] sm:$0xff] %v7964_v24 }
 0x38c   : > { %10188 = vst [vmem:[#allocation13_spill] sm:$0xff] %v7923_v60  ;;  %v2799_v34 = vadd.f32 3.0, %v7908_v0 }
 0x38d   : > { %10180 = vst [vmem:[#allocation122_spill] sm:$0xff] %v7887_v29  ;;  %v9488_v35 = vrot.slane %v7887_v29, 7  ;;  %v2859_v48 = vmin.f32 %v2827_v41, 6.0  ;;  %v2830_v15 = vmax.f32 %v2798_v46, 0.0  ;;  %v2890_v41 = vmul.f32 %v2858_v49, %v7822_v61 }
 0x38e   : > { %v2800_v46 = vadd.f32 3.0, %v7921_v9  ;;  %v2860_v38 = vmin.f32 %v2828_v51, 6.0  ;;  %v7972_v61 = vmul.f32 %v7398_v7, %v7885_v36  ;;  %v2831_v49 = vmax.f32 %v2799_v34, 0.0  ;;  %10206 = vst [vmem:[#allocation99_spill] sm:$0xff] %v7991_v26 }
 0x38f   : > { %v2990_v58 = vsel %vm10189_vm6, %v9487_v32, %v9488_v35  ;;  %v3198_v32 = vmul.f32 %v7346_v2, %v7887_v29  ;;  %v10196_v35 = vrot.slane %v7629_v40, 1  ;;  %v7968_v40 = vmul.f32 %v7350_v63, %v7885_v36 }
 0x390   : > { %v7939_v31 = vsel %vm6766_vm12, %v2990_v58, 0.0  ;;  %10201 = vst [vmem:[#allocation19_spill] sm:$0xff] %v7972_v61  ;;  %v7987_v34 = vmul.f32 %v7353_v1, %v7905_v25  ;;  %v2832_v24 = vmax.f32 %v2800_v46, 0.0 }
 0x391   : > { %10193 = vst [vmem:[#allocation15_spill] sm:$0xff] %v7939_v31  ;;  %v3166_v59 = vmul.f32 %v7932_v11, %v7939_v31  ;;  %v3094_v58 = vsel %vm10197_vm1, %v10196_v35, %v10195_v22  ;;  %v2891_v22 = vmul.f32 %v2859_v48, %v7848_v37  ;;  %v2862_v31 = vmin.f32 %v2830_v15, 6.0 }
 0x392   : > { %10200 = vst [vmem:[#allocation18_spill] sm:$0xff] %v7968_v40  ;;  %v7976_v35 = vsel %vm6020_vm7, %v3094_v58, 0.0  ;;  %v7993_v58 = vmul.f32 0.16666667, %v2890_v41  ;;  %v10209_v37 = vrot.slane %v7923_v60, 1  ;;  %v10210_v15 = vrot.slane %v7736_v10, 1 }
 0x393   : > { %v7960_v6 = vadd.f32 %v3198_v32, %v3166_v59  ;;  %v10202_v59 = vrot.slane %v7905_v25, 1  ;;  %v10203_v32 = vrot.slane %v7723_v50, 1  ;;  %10205 = vst [vmem:[#allocation43_spill] sm:$0xff] %v7987_v34  ;;  %v8014_v50 = vmul.f32 %v7359_v14, %v7923_v60  ;;  %v10259_v40 = vld [vmem:[#allocation77_spill] sm:$0xff] }
 0x394   : > { %10207 = vst [vmem:[#allocation53_spill] sm:$0xff] %v7993_v58  ;;  %v3093_v48 = vsel %vm10211_vm11, %v10210_v15, %v10209_v37  ;;  %v2863_v34 = vmin.f32 %v2831_v49, 6.0  ;;  %v8018_v10 = vmul.f32 %v7362_v55, %v7923_v60  ;;  %v8024_v33 = vmul.f32 0.16666667, %v2891_v22  ;;  %vm10288_vm11 = vmmov %vm10274_vm2 }
 0x395   : > { %10198 = vst [vmem:[#allocation16_spill] sm:$0xff] %v7960_v6  ;;  %v3092_v51 = vsel %vm10204_vm4, %v10203_v32, %v10202_v59  ;;  %v5080_v6 = vld [vmem:[#allocation7 + $0x168] sm:$0xff]  ;;  %v7998_v59 = vmul.f32 %v7416_v21, %v7905_v25  ;;  %v2892_v32 = vmul.f32 %v2860_v38, %v7864_v57  ;;  %v8022_v57 = vmul.f32 %v7457_v47, %v7923_v60  ;;  %vm10284_vm4 = vmmov %vm10274_vm2 }
 0x396   : > { %4191 = vmatpush.bf16.msrb.mxu2 %v5080_v6  ;;  %v8009_v41 = vsel %vm6020_vm7, %v3092_v51, 0.0  ;;  %10213 = vst [vmem:[#allocation126_spill] sm:$0xff] %v8014_v50  ;;  %v2894_v6 = vmul.f32 %v2862_v31, %v7882_v54  ;;  %v8029_v38 = vsel %vm6020_vm7, %v3093_v48, 0.0  ;;  %v2864_v37 = vmin.f32 %v2832_v24, 6.0  ;;  %vm10254_vm7 = vmmov %vm10189_vm6 }
 0x397   : > { %10208 = vst [vmem:[#allocation106_spill] sm:$0xff] %v7998_v59  ;;  %v8035_v15 = vmul.f32 %v7335_v4, %v7993_v58  ;;  %v8039_v46 = vmul.f32 %v7343_v62, %v7993_v58  ;;  %v8043_v54 = vmul.f32 %v7381_v18, %v7993_v58  ;;  %v8045_v31 = vmul.f32 0.16666667, %v2892_v32  ;;  %vm10276_vm6 = vmmov %vm10197_vm1 }
 0x398   : > { %10212 = vst [vmem:[#allocation107_spill] sm:$0xff] %v8009_v41  ;;  %v8050_v22 = vmul.f32 %v7346_v2, %v7878_v19  ;;  %v8054_v24 = vmul.f32 %v7350_v63, %v7878_v19  ;;  %v2895_v48 = vmul.f32 %v2863_v34, %v7908_v0  ;;  %v8059_v49 = vmul.f32 %v7398_v7, %v7878_v19 }
 0x399   : > { %10214 = vst [vmem:[#allocation127_spill] sm:$0xff] %v8018_v10  ;;  %v8063_v50 = vmul.f32 0.16666667, %v2894_v6  ;;  %v8067_v5 = vmul.f32 %v7353_v1, %v8024_v33  ;;  %v8075_v0 = vmul.f32 %v7416_v21, %v8024_v33  ;;  %v2896_v34 = vmul.f32 %v2864_v37, %v7921_v9  ;;  %v5089_v6 = vld [vmem:[#allocation7 + $0x1b0] sm:$0xff] }
 0x39a   : > { %10215 = vst [vmem:[#allocation128_spill] sm:$0xff] %v8022_v57  ;;  %v8082_v32 = vmul.f32 %v7359_v14, %v8045_v31  ;;  %v8093_v9 = vmul.f32 0.16666667, %v2895_v48  ;;  %v8115_v51 = vmul.f32 %v7350_v63, %v7887_v29  ;;  %4219 = vmatpush.bf16.msrb.mxu3 %v5089_v6 }
 0x39b   : > { %10216 = vst [vmem:[#allocation129_spill] sm:$0xff] %v8024_v33  ;;  %v8110_v48 = vmul.f32 0.16666667, %v2896_v34 }
 0x39c   : > { %10217 = vst [vmem:[#allocation130_spill] sm:$0xff] %v8029_v38  ;;  %v8125_v34 = vmul.f32 %v7353_v1, %v8093_v9  ;;  %v10294_v38 = vld [vmem:[#allocation88_spill] sm:$0xff] }
 0x39d   : > { %10218 = vst [vmem:[#allocation131_spill] sm:$0xff] %v8035_v15  ;;  %v8091_v15 = vmul.f32 %v7457_v47, %v8045_v31  ;;  %v8151_v6 = vmul.f32 %v7457_v47, %v8110_v48 }
 0x39e   : > { %10219 = vst [vmem:[#allocation132_spill] sm:$0xff] %v8039_v46 }
 0x39f   : > { %10220 = vst [vmem:[#allocation133_spill] sm:$0xff] %v8043_v54 }
 0x3a0   : > { %10221 = vst [vmem:[#allocation134_spill] sm:$0xff] %v8045_v31 }
 0x3a1   : > { %10222 = vst [vmem:[#allocation135_spill] sm:$0xff] %v8050_v22  ;;  %v8071_v22 = vmul.f32 %v7356_v3, %v8024_v33 }
 0x3a2   : > { %10223 = vst [vmem:[#allocation136_spill] sm:$0xff] %v8054_v24 }
 0x3a3   : > { %10224 = vst [vmem:[#allocation137_spill] sm:$0xff] %v8059_v49 }
 0x3a4   : > { %10225 = vst [vmem:[#allocation138_spill] sm:$0xff] %v8063_v50 }
 0x3a5   : > { %10226 = vst [vmem:[#allocation139_spill] sm:$0xff] %v8067_v5  ;;  %v2686_v24 = vpop.f32.mrf.mxu1 }
 0x3a6   : > { %10227 = vst [vmem:[#allocation140_spill] sm:$0xff] %v8071_v22  ;;  %v2687_v5 = vadd.f32 %v2686_v24, %v7300_v43  ;;  %v2773_v46 = vpop.f32.mrf.mxu0  ;;  %v8087_v22 = vmul.f32 %v7362_v55, %v8045_v31  ;;  %v8100_v24 = vmul.f32 %v7335_v4, %v8063_v50  ;;  %v8129_v31 = vmul.f32 %v7356_v3, %v8093_v9 }
 0x3a7   : > { %10228 = vst [vmem:[#allocation141_spill] sm:$0xff] %v8075_v0  ;;  %v2774_v37 = vadd.f32 %v2773_v46, %v7303_v30 }
 0x3a8   : > { %10229 = vst [vmem:[#allocation142_spill] sm:$0xff] %v8082_v32  ;;  %v2802_v32 = vadd.f32 3.0, %v2687_v5 }
 0x3a9   : > { %10230 = vst [vmem:[#allocation143_spill] sm:$0xff] %v8087_v22  ;;  %v8104_v22 = vmul.f32 %v7343_v62, %v8063_v50  ;;  %v2805_v46 = vadd.f32 3.0, %v2774_v37 }
 0x3aa   : > { %10231 = vst [vmem:[#allocation144_spill] sm:$0xff] %v8091_v15  ;;  %v8108_v15 = vmul.f32 %v7381_v18, %v8063_v50  ;;  %v2834_v57 = vmax.f32 %v2802_v32, 0.0 }
 0x3ab   : > { %10232 = vst [vmem:[#allocation145_spill] sm:$0xff] %v8093_v9  ;;  %v2715_v60 = vpop.f32.mrf.mxu2 }
 0x3ac   : > { %10233 = vst [vmem:[#allocation146_spill] sm:$0xff] %v8100_v24  ;;  %v8119_v24 = vmul.f32 %v7398_v7, %v7887_v29  ;;  %v2866_v32 = vmin.f32 %v2834_v57, 6.0 }
 0x3ad   : > { %10234 = vst [vmem:[#allocation147_spill] sm:$0xff] %v8104_v22  ;;  %v2716_v22 = vadd.f32 %v2715_v60, %v7306_v17  ;;  %v2688_v59 = vpop.f32.mrf.mxu1  ;;  %v8146_v60 = vmul.f32 %v7362_v55, %v8110_v48 }
 0x3ae   : > { %10235 = vst [vmem:[#allocation148_spill] sm:$0xff] %v8108_v15  ;;  %v2837_v15 = vmax.f32 %v2805_v46, 0.0  ;;  %v2898_v26 = vmul.f32 %v2866_v32, %v2687_v5  ;;  %v2689_v57 = vadd.f32 %v2688_v59, %v7300_v43  ;;  %v10246_v5 = vld [vmem:[#allocation73_spill] sm:$0xff] }
 0x3af   : > { %10236 = vst [vmem:[#allocation149_spill] sm:$0xff] %v8110_v48  ;;  %v8156_v32 = vperm.slane %v10246_v5, 0 }
 0x3b0   : > { %10237 = vst [vmem:[#allocation150_spill] sm:$0xff] %v8115_v51  ;;  %v8133_v51 = vmul.f32 %v7416_v21, %v8093_v9  ;;  %v2803_v9 = vadd.f32 3.0, %v2716_v22  ;;  %v2806_v25 = vadd.f32 3.0, %v2689_v57 }
 0x3b1   : > { %10238 = vst [vmem:[#allocation151_spill] sm:$0xff] %v8119_v24  ;;  %v2744_v24 = vpop.f32.mrf.mxu3 }
 0x3b2   : > { %10239 = vst [vmem:[#allocation152_spill] sm:$0xff] %v8125_v34  ;;  %v2869_v34 = vmin.f32 %v2837_v15, 6.0  ;;  %v2745_v46 = vadd.f32 %v2744_v24, %v7308_v27  ;;  %v8153_v24 = vmul.f32 0.16666667, %v2898_v26 }
 0x3b3   : > { %10240 = vst [vmem:[#allocation153_spill] sm:$0xff] %v8129_v31  ;;  %v8141_v31 = vmul.f32 %v7359_v14, %v8110_v48  ;;  %v2717_v5 = vpop.f32.mrf.mxu2 }
 0x3b4   : > { %10241 = vst [vmem:[#allocation154_spill] sm:$0xff] %v8133_v51  ;;  %v2775_v51 = vpop.f32.mrf.mxu0  ;;  %v2901_v10 = vmul.f32 %v2869_v34, %v2774_v37  ;;  %v2804_v0 = vadd.f32 3.0, %v2745_v46  ;;  %v8168_v26 = vmul.f32 %v7343_v62, %v8153_v24 }
 0x3b5   : > { %10242 = vst [vmem:[#allocation155_spill] sm:$0xff] %v8141_v31  ;;  %v2776_v15 = vadd.f32 %v2775_v51, %v7303_v30  ;;  %v2835_v31 = vmax.f32 %v2803_v9, 0.0  ;;  %v8164_v30 = vmul.f32 %v7335_v4, %v8153_v24  ;;  %v8172_v51 = vmul.f32 %v7381_v18, %v8153_v24 }
 0x3b6   : > { %10243 = vst [vmem:[#allocation156_spill] sm:$0xff] %v8146_v60  ;;  %v8158_v43 = vmul.f32 0.16666667, %v2901_v10  ;;  %v2836_v59 = vmax.f32 %v2804_v0, 0.0 }
 0x3b7   : > { %10244 = vst [vmem:[#allocation157_spill] sm:$0xff] %v8151_v6  ;;  %v2809_v33 = vadd.f32 3.0, %v2776_v15  ;;  %v2867_v37 = vmin.f32 %v2835_v31, 6.0  ;;  %v2838_v6 = vmax.f32 %v2806_v25, 0.0  ;;  %v10257_v31 = vld [vmem:[#allocation74_spill] sm:$0xff] }
 0x3b8   : > { %10245 = vst [vmem:[#allocation158_spill] sm:$0xff] %v8153_v24  ;;  %v9508_v10 = vrot.slane %v8158_v43, 7  ;;  %v3202_v9 = vmul.f32 %v7346_v2, %v8158_v43  ;;  %v3358_v4 = vmul.f32 %v7350_v63, %v8158_v43  ;;  %v8182_v34 = vmul.f32 %v7398_v7, %v8158_v43 }
 0x3b9   : > { %10247 = vst [vmem:[#allocation73_spill] sm:$0xff] %v8156_v32  ;;  %v2841_v60 = vmax.f32 %v2809_v33, 0.0  ;;  %v8191_v2 = vadd.f32 %v2717_v5, %v7306_v17  ;;  %v2899_v49 = vmul.f32 %v2867_v37, %v2716_v22  ;;  %v2870_v25 = vmin.f32 %v2838_v6, 6.0 }
 0x3ba   : > { %10248 = vst [vmem:[#allocation159_spill] sm:$0xff] %v8158_v43 }
 0x3bb   : > { %10249 = vst [vmem:[#allocation160_spill] sm:$0xff] %v8164_v30  ;;  %v10253_v30 = vrot.slane %v7887_v29, 7  ;;  %v2873_v33 = vmin.f32 %v2841_v60, 6.0  ;;  %v8204_v17 = vmul.f32 0.16666667, %v2899_v49  ;;  %v10268_v60 = vld [vmem:[#allocation91_spill] sm:$0xff] }
 0x3bc   : > { %10250 = vst [vmem:[#allocation161_spill] sm:$0xff] %v8168_v26  ;;  %v2868_v26 = vmin.f32 %v2836_v59, 6.0  ;;  %v8198_v59 = vperm.slane %v10257_v31, 0  ;;  %v8253_v6 = vperm.slane %v10268_v60, 0 }
 0x3bd   : > { %10251 = vst [vmem:[#allocation162_spill] sm:$0xff] %v8172_v51  ;;  %v2986_v0 = vsel %vm10254_vm7, %v10253_v30, %v9508_v10  ;;  %v2746_v10 = vpop.f32.mrf.mxu3  ;;  %v2905_v31 = vmul.f32 %v2873_v33, %v2776_v15  ;;  %v8222_v49 = vmul.f32 %v7353_v1, %v8204_v17  ;;  %v8238_v1 = vld [vmem:[#allocation7 + $0x1f8] sm:$0xff]  ;;  %v5087_v51 = vld [vmem:[#allocation7 + $0x1a0] sm:$0xff]  ;;  %vm10290_vm7 = vmmov %vm10197_vm1 }
 0x3be   : > { %10252 = vst [vmem:[#allocation163_spill] sm:$0xff] %v8182_v34  ;;  %v8195_v48 = vsel %vm6770_vm13, %v2986_v0, 0.0  ;;  %v2900_v34 = vmul.f32 %v2868_v26, %v2745_v46  ;;  %v8209_v0 = vadd.f32 3.0, %v8191_v2  ;;  %v8212_v22 = vadd.f32 %v2746_v10, %v7308_v27  ;;  %v5073_v10 = vld [vmem:[#allocation7 + $0x130] sm:$0xff]  ;;  %4247 = vmatpush.bf16.msra.mxu0 %v8238_v1 }
 0x3bf   : > { %10256 = vst [vmem:[#allocation164_spill] sm:$0xff] %v8195_v48  ;;  %v3170_v61 = vmul.f32 %v7932_v11, %v8195_v48  ;;  %v3322_v30 = vmul.f32 %v10259_v40, %v8195_v48  ;;  %v2902_v26 = vmul.f32 %v2870_v25, %v2689_v57  ;;  %v8230_v27 = vmul.f32 %v7416_v21, %v8204_v17 }
 0x3c0   : > { %10258 = vst [vmem:[#allocation74_spill] sm:$0xff] %v8198_v59  ;;  %v8206_v5 = vmul.f32 0.16666667, %v2900_v34  ;;  %v8226_v34 = vmul.f32 %v7356_v3, %v8204_v17  ;;  %v2937_v33 = vmul.f32 0.16666667, %v2905_v31  ;;  %4161 = vmatpush.bf16.msra.mxu1 %v5073_v10 }
 0x3c1   : > { %10260 = vst [vmem:[#allocation165_spill] sm:$0xff] %v8204_v17  ;;  %v8214_v46 = vadd.f32 %v3202_v9, %v3170_v61  ;;  %v8216_v37 = vadd.f32 %v3358_v4, %v3322_v30  ;;  %v5079_v9 = vld [vmem:[#allocation7 + $0x160] sm:$0xff]  ;;  %v2934_v25 = vmul.f32 0.16666667, %v2902_v26  ;;  %v5088_v61 = vld [vmem:[#allocation7 + $0x1a8] sm:$0xff] }
 0x3c2   : > { %10261 = vst [vmem:[#allocation166_spill] sm:$0xff] %v8206_v5  ;;  %v8236_v15 = vmul.f32 %v7359_v14, %v8206_v5  ;;  %v8242_v4 = vmul.f32 %v7362_v55, %v8206_v5  ;;  %v8246_v30 = vmul.f32 %v7457_v47, %v8206_v5  ;;  %v8250_v14 = vadd.f32 3.0, %v8212_v22  ;;  %4192 = vmatpush.bf16.msrb.mxu2 %v5079_v9 }
 0x3c3   : > { %10262 = vst [vmem:[#allocation167_spill] sm:$0xff] %v8222_v49  ;;  %v3071_v26 = vrot.slane %v2934_v25, 1  ;;  %v3359_v31 = vmul.f32 %v7343_v62, %v2934_v25  ;;  %v3523_v57 = vmul.f32 %v7381_v18, %v2934_v25  ;;  %4220 = vmatpush.bf16.msrb.mxu3 %v5088_v61  ;;  %v2978_v60 = vrot.slane %v2937_v33, 7  ;;  %v10272_v62 = vld [vmem:[#allocation98_spill] sm:$0xff] }
 0x3c4   : > { %10263 = vst [vmem:[#allocation168_spill] sm:$0xff] %v8226_v34  ;;  %v5078_v34 = vld [vmem:[#allocation7 + $0x158] sm:$0xff]  ;;  %v3074_v10 = vrot.slane %v2937_v33, 1  ;;  %v3362_v9 = vmul.f32 %v7350_v63, %v2937_v33  ;;  %v3526_v48 = vmul.f32 %v7398_v7, %v2937_v33  ;;  %v10273_v29 = vrot.slane %v10272_v62, 7  ;;  %v10337_v33 = vld [vmem:[#allocation21_spill] sm:$0xff] }
 0x3c5   : > { %10264 = vst [vmem:[#allocation169_spill] sm:$0xff] %v8230_v27  ;;  %v8262_v27 = vld [vmem:[#allocation7 + $0x1f0] sm:$0xff]  ;;  %v10275_v61 = vrot.slane %v8153_v24, 1  ;;  %v10277_v63 = vrot.slane %v10272_v62, 1  ;;  %v5071_v62 = vld [vmem:[#allocation7 + $0x120] sm:$0xff] }
 0x3c6   : > { %10265 = vst [vmem:[#allocation170_spill] sm:$0xff] %v8236_v15  ;;  %v5072_v15 = vld [vmem:[#allocation7 + $0x128] sm:$0xff]  ;;  %4193 = vmatpush.bf16.msrb.mxu2 %v5078_v34  ;;  %4248 = vmatpush.bf16.msra.mxu0 %v8262_v27 }
 0x3c7   : > { %10266 = vst [vmem:[#allocation171_spill] sm:$0xff] %v8242_v4  ;;  %v10269_v4 = vld [vmem:[#allocation123_spill] sm:$0xff]  ;;  %v8282_v7 = vsel %vm10197_vm1, %v3071_v26, %v10277_v63  ;;  %4162 = vmatpush.bf16.msra.mxu1 %v5072_v15  ;;  %4221 = vmatpush.bf16.msrb.mxu3 %v5087_v51 }
 0x3c8   : > { %10267 = vst [vmem:[#allocation172_spill] sm:$0xff] %v8246_v30  ;;  %v8257_v49 = vadd.f32 %v7779_v39, %v10269_v4  ;;  %v2975_v30 = vrot.slane %v2934_v25, 7  ;;  %v10270_v39 = vrot.slane %v8153_v24, 7  ;;  %v3075_v25 = vsel %vm10276_vm6, %v10275_v61, %v3071_v26  ;;  %v5077_v26 = vld [vmem:[#allocation7 + $0x150] sm:$0xff]  ;;  %vm10316_vm6 = vmmov %vm10274_vm2 }
 0x3c9   : > { %10278 = vst [vmem:[#allocation91_spill] sm:$0xff] %v8282_v7  ;;  %v10285_v7 = vld [vmem:[#allocation56_spill] sm:$0xff] }
 0x3ca   : > { %v2979_v4 = vsel %vm10271_vm14, %v10270_v39, %v2975_v30  ;;  %v3007_v18 = vsel %vm10274_vm2, %v2975_v30, %v10273_v29  ;;  %v8290_v29 = vsel %vm6780_vm15, %v3075_v25, 0.0  ;;  %v10283_v30 = vrot.slane %v8158_v43, 7  ;;  %v8301_v25 = vld [vmem:[#allocation7 + $0x1e8] sm:$0xff]  ;;  %vm10292_vm14 = vmmov %vm10197_vm1  ;;  %4194 = vmatpush.bf16.msrb.mxu2 %v5077_v26 }
 0x3cb   : > { %v3011_v36 = vsel %vm6001_vm5, %v3007_v18, 0.0  ;;  %v3039_v19 = vsel %vm7083_vm0, %v2979_v4, 0.0  ;;  %10282 = vst [vmem:[#allocation123_spill] sm:$0xff] %v8290_v29  ;;  %v10286_v29 = vld [vmem:[#allocation63_spill] sm:$0xff]  ;;  %4163 = vmatpush.bf16.msra.mxu1 %v5071_v62  ;;  %4249 = vmatpush.bf16.msra.mxu0 %v8301_v25  ;;  %v8343_v62 = vld [vmem:[#allocation7 + $0x1e0] sm:$0xff] }
 0x3cc   : > { %v2982_v61 = vsel %vm10284_vm4, %v10283_v30, %v2978_v60  ;;  %v3143_v63 = vmul.f32 %v8156_v32, %v3011_v36  ;;  %v3295_v18 = vmul.f32 %v10285_v7, %v3011_v36  ;;  %v3323_v24 = vmul.f32 %v10285_v7, %v3039_v19  ;;  %v10293_v32 = vld [vmem:[#allocation80_spill] sm:$0xff]  ;;  %vm10319_vm4 = vmmov %vm10197_vm1 }
 0x3cd   : > { %v3491_v4 = vmul.f32 %v7378_v23, %v3039_v19  ;;  %v10287_v50 = vrot.slane %v10286_v29, 7  ;;  %v3042_v34 = vsel %vm7083_vm0, %v2982_v61, 0.0  ;;  %v10289_v30 = vrot.slane %v8158_v43, 1  ;;  %v5086_v23 = vld [vmem:[#allocation7 + $0x198] sm:$0xff] }
 0x3ce   : > { %v10291_v7 = vrot.slane %v10286_v29, 1  ;;  %v3203_v58 = vadd.f32 %v10293_v32, %v3143_v63  ;;  %v3363_v41 = vadd.f32 %v10294_v38, %v3295_v18  ;;  %v3326_v51 = vmul.f32 %v10259_v40, %v3042_v34  ;;  %v5070_v32 = vld [vmem:[#allocation7 + $0x118] sm:$0xff]  ;;  %v5076_v38 = vld [vmem:[#allocation7 + $0x148] sm:$0xff]  ;;  %4222 = vmatpush.bf16.msrb.mxu3 %v5086_v23  ;;  %v10302_v29 = vld [vmem:[#allocation102_spill] sm:$0xff] }
 0x3cf   : > { %v3010_v15 = vsel %vm10288_vm11, %v2978_v60, %v10287_v50  ;;  %v3078_v36 = vsel %vm10290_vm7, %v10289_v30, %v3074_v10  ;;  %v8319_v50 = vadd.f32 %v3359_v31, %v3323_v24  ;;  %v8321_v60 = vadd.f32 %v3523_v57, %v3491_v4  ;;  %v10299_v24 = vld [vmem:[#allocation35_spill] sm:$0xff]  ;;  %v8340_v4 = vld [vmem:[%s9192_s5 + $0x78] ss:$0 sm:$0xff]  ;;  %4164 = vmatpush.bf16.msra.mxu1 %v5070_v32  ;;  %v5075_v23 = vld [vmem:[#allocation7 + $0x140] sm:$0xff] }
 0x3d0   : > { %v3106_v19 = vsel %vm10292_vm14, %v3074_v10, %v10291_v7  ;;  %v3014_v61 = vsel %vm6001_vm5, %v3010_v15, 0.0  ;;  %v8327_v30 = vsel %vm6780_vm15, %v3078_v36, 0.0  ;;  %v3263_v31 = vadd.f32 %v10299_v24, %v3203_v58  ;;  %v10300_v7 = vld [vmem:[#allocation47_spill] sm:$0xff]  ;;  %v8348_v58 = vld [vmem:[%s9192_s5 + $0x60] ss:$0 sm:$0xff]  ;;  %v10301_v24 = vld [vmem:[#allocation41_spill] sm:$0xff]  ;;  %4195 = vmatpush.bf16.msrb.mxu2 %v5076_v38  ;;  %4250 = vmatpush.bf16.msra.mxu0 %v8343_v62 }
 0x3d1   : > { %10295 = vst [vmem:[#allocation98_spill] sm:$0xff] %v8319_v50  ;;  %v3138_v10 = vsel %vm7087_vm3, %v3106_v19, 0.0  ;;  %v3146_v57 = vmul.f32 %v7932_v11, %v3014_v61  ;;  %v3262_v63 = vmul.f32 %v10300_v7, %v8327_v30  ;;  %v3298_v18 = vmul.f32 %v10259_v40, %v3014_v61  ;;  %v5085_v61 = vld [vmem:[#allocation7 + $0x190] sm:$0xff]  ;;  %vm10324_vm11 = vmmov %vm10274_vm2 }
 0x3d2   : > { %10296 = vst [vmem:[#allocation104_spill] sm:$0xff] %v8321_v60  ;;  %v3394_v26 = vadd.f32 %v3362_v9, %v3326_v51  ;;  %v3426_v15 = vmul.f32 %v7390_v44, %v8327_v30  ;;  %v3430_v36 = vmul.f32 %v7390_v44, %v3138_v10  ;;  %v3494_v19 = vmul.f32 %v7395_v28, %v3042_v34  ;;  %v5069_v34 = vld [vmem:[#allocation7 + $0x110] sm:$0xff]  ;;  %v8363_v28 = vld [vmem:[#allocation6 + $0x4] sm:$0xf]  ;;  %vm10327_vm7 = vmmov %vm10274_vm2 }
 0x3d3   : > { %10297 = vst [vmem:[#allocation52_spill] sm:$0xff] %v8327_v30  ;;  %v3206_v60 = vadd.f32 %v10301_v24, %v3146_v57  ;;  %v3290_v50 = vadd.f32 %v3262_v63, %v8214_v46  ;;  %v3366_v43 = vadd.f32 %v10302_v29, %v3298_v18  ;;  %v3586_v40 = vmul.f32 %v8340_v4, %v3138_v10  ;;  %v10305_v57 = vld [vmem:[#allocation82_spill] sm:$0xff]  ;;  %v10306_v10 = vld [vmem:[#allocation55_spill] sm:$0xff]  ;;  %vm10333_vm14 = vmmov %vm10197_vm1 }
 0x3d4   : > { %v8359_v7 = vadd.f32 %v3426_v15, %v8216_v37  ;;  %v3462_v9 = vadd.f32 %v3430_v36, %v3394_v26  ;;  %v3554_v51 = vadd.f32 %v3526_v48, %v3494_v19  ;;  %v10304_v30 = vmax.f32 %v8209_v0, 0.0  ;;  %v8370_v37 = vld [vmem:[#allocation7 + $0x1d8] sm:$0xff]  ;;  %4223 = vmatpush.bf16.msrb.mxu3 %v5085_v61  ;;  %v10309_v18 = vld [vmem:[#allocation94_spill] sm:$0xff]  ;;  %4165 = vmatpush.bf16.msra.mxu1 %v5069_v34  ;;  %v10311_v61 = vld [vmem:[#allocation57_spill] sm:$0xff] }
 0x3d5   : > { %v8366_v46 = vadd.f32 %v10305_v57, %v3206_v60  ;;  %v2840_v29 = vmax.f32 %v8250_v14, 0.0  ;;  %v3431_v48 = vadd.f32 %v10306_v10, %v3363_v41  ;;  %v3559_v0 = vmul.f32 %v8348_v58, %v7751_v12  ;;  %v5084_v60 = vld [vmem:[#allocation7 + $0x188] sm:$0xff]  ;;  %4196 = vmatpush.bf16.msrb.mxu2 %v5075_v23  ;;  %4251 = vmatpush.bf16.msra.mxu0 %v8370_v37  ;;  %v10312_v23 = vld [vmem:[#allocation36_spill] sm:$0xff] }
 0x3d6   : > { %10303 = vst [vmem:[#allocation68_spill] sm:$0xff] %v8359_v7  ;;  %v2871_v44 = vmin.f32 %v10304_v30, 6.0  ;;  %v8375_v30 = vadd.f32 %v3586_v40, %v3554_v51  ;;  %v8377_v32 = vadd.f32 %v3462_v9, %v3290_v50  ;;  %v3563_v14 = vmul.f32 %v8348_v58, %v7948_v45  ;;  %v5068_v40 = vld [vmem:[#allocation7 + $0x108] sm:$0xff] }
 0x3d7   : > { %v2872_v63 = vmin.f32 %v2840_v29, 6.0  ;;  %v3587_v26 = vadd.f32 %v3559_v0, %v10309_v18  ;;  %v3619_v15 = vadd.f32 %v8257_v49, %v3263_v31  ;;  %v8385_v41 = vperm.slane %v8363_v28, 0  ;;  %v8397_v49 = vld [vmem:[#allocation7 + $0x1d0] sm:$0xff] }
 0x3d8   : > { %10307 = vst [vmem:[#allocation63_spill] sm:$0xff] %v8375_v30  ;;  %v2903_v38 = vmul.f32 %v2871_v44, %v8191_v2  ;;  %v3591_v50 = vadd.f32 %v3563_v14, %v7786_v52  ;;  %v8389_v44 = vadd.f32 %v7623_v20, %v3366_v43  ;;  %v8393_v2 = vadd.f32 %v7783_v16, %v7631_v8  ;;  %v5083_v16 = vld [vmem:[#allocation7 + $0x180] sm:$0xff] }
 0x3d9   : > { %10308 = vst [vmem:[#allocation80_spill] sm:$0xff] %v8377_v32  ;;  %v2904_v19 = vmul.f32 %v2872_v63, %v8212_v22  ;;  %v3647_v31 = vadd.f32 %v3587_v26, %v3431_v48  ;;  %v3562_v24 = vmul.f32 %v8340_v4, %v10311_v61  ;;  %v3566_v52 = vmul.f32 %v8340_v4, %v7976_v35  ;;  %v10314_v48 = vld [vmem:[#allocation24_spill] sm:$0xff] }
 0x3da   : > { %10310 = vst [vmem:[#allocation88_spill] sm:$0xff] %v8385_v41  ;;  %v2935_v36 = vmul.f32 0.16666667, %v2903_v38  ;;  %4224 = vmatpush.bf16.msrb.mxu3 %v5084_v60  ;;  %5107 = vmatpush.bf16.msra.mxu2 %v8238_v1  ;;  %v3651_v51 = vadd.f32 %v3619_v15, %v3591_v50  ;;  %v10313_v29 = vrot.slane %v8204_v17, 7  ;;  %v10317_v0 = vrot.slane %v8204_v17, 1  ;;  %v5067_v14 = vld [vmem:[#allocation7 + $0x100] sm:$0xff] }
 0x3db   : > { %v2936_v22 = vmul.f32 0.16666667, %v2904_v19  ;;  %v8407_v34 = vadd.f32 %v8385_v41, %v3647_v31  ;;  %v3590_v57 = vadd.f32 %v3562_v24, %v10312_v23  ;;  %v10318_v38 = vrot.slane %v10314_v48, 1  ;;  %4166 = vmatpush.bf16.msra.mxu1 %v5068_v40  ;;  %4252 = vmatpush.bf16.msra.mxu0 %v8397_v49  ;;  %v10322_v19 = vld [vmem:[#allocation87_spill] sm:$0xff]  ;;  %v10325_v23 = vld [vmem:[#allocation30_spill] sm:$0xff] }
 0x3dc   : > { %v2976_v9 = vrot.slane %v2935_v36, 7  ;;  %v3072_v20 = vrot.slane %v2935_v36, 1  ;;  %v3360_v43 = vmul.f32 %v7356_v3, %v2935_v36  ;;  %v3524_v8 = vmul.f32 %v7416_v21, %v2935_v36  ;;  %v8437_v36 = vld [vmem:[#allocation7 + $0x1c8] sm:$0xff] }
 0x3dd   : > { %v10315_v3 = vrot.slane %v10314_v48, 7  ;;  %v2977_v15 = vrot.slane %v2936_v22, 7  ;;  %v3073_v48 = vrot.slane %v2936_v22, 1 }
 0x3de   : > { %v2980_v10 = vsel %vm10274_vm2, %v10313_v29, %v2976_v9  ;;  %v3076_v1 = vsel %vm10197_vm1, %v10317_v0, %v3072_v20  ;;  %v8426_v60 = vsel %vm10319_vm4, %v3072_v20, %v10318_v38  ;;  %4225 = vmatpush.bf16.msrb.mxu3 %v5083_v16  ;;  %v10326_v29 = vrot.slane %v10325_v23, 7  ;;  %5108 = vmatpush.bf16.msra.mxu2 %v8262_v27  ;;  %vm10335_vm2 = vmmov %vm10197_vm1 }
 0x3df   : > { %v3008_v21 = vsel %vm10316_vm6, %v2976_v9, %v10315_v3  ;;  %10320 = vst [vmem:[#allocation35_spill] sm:$0xff] %v8426_v60  ;;  %v3040_v18 = vsel %vm7083_vm0, %v2980_v10, 0.0  ;;  %v8434_v26 = vsel %vm6780_vm15, %v3076_v1, 0.0  ;;  %v10323_v9 = vrot.slane %v8206_v5, 7  ;;  %v10329_v1 = vld [vmem:[#allocation25_spill] sm:$0xff]  ;;  %4167 = vmatpush.bf16.msra.mxu1 %v5067_v14  ;;  %4253 = vmatpush.bf16.msra.mxu0 %v8437_v36 }
 0x3e0   : > { %v3012_v63 = vsel %vm6001_vm5, %v3008_v21, 0.0  ;;  %10321 = vst [vmem:[#allocation41_spill] sm:$0xff] %v8434_v26  ;;  %v3324_v31 = vmul.f32 %v10322_v19, %v3040_v18  ;;  %v3492_v24 = vmul.f32 %v7413_v56, %v3040_v18  ;;  %v3009_v10 = vsel %vm10327_vm7, %v2977_v15, %v10326_v29  ;;  %v10328_v21 = vld [vmem:[#allocation115_spill] sm:$0xff]  ;;  %v10401_v26 = vld [vmem:[#allocation109_spill] sm:$0xff]  ;;  %vm10408_vm7 = vmmov %vm10335_vm2 }
 0x3e1   : > { %v3144_v50 = vmul.f32 %v8198_v59, %v3012_v63  ;;  %v3296_v40 = vmul.f32 %v10322_v19, %v3012_v63  ;;  %v2981_v20 = vsel %vm10324_vm11, %v10323_v9, %v2977_v15  ;;  %v3361_v3 = vmul.f32 %v7362_v55, %v2936_v22 }
 0x3e2   : > { %v8455_v16 = vadd.f32 %v3360_v43, %v3324_v31  ;;  %v8457_v63 = vadd.f32 %v3524_v8, %v3492_v24  ;;  %v3013_v18 = vsel %vm6001_vm5, %v3009_v10, 0.0  ;;  %v3041_v15 = vsel %vm7083_vm0, %v2981_v20, 0.0  ;;  %v8474_v8 = vld [vmem:[#allocation7 + $0x1c0] sm:$0xff]  ;;  %5109 = vmatpush.bf16.msra.mxu2 %v8301_v25  ;;  %v10340_v10 = vld [vmem:[#allocation90_spill] sm:$0xff]  ;;  %vm10365_vm0 = vmmov %vm10316_vm6 }
 0x3e3   : > { %v3204_v0 = vadd.f32 %v10328_v21, %v3144_v50  ;;  %v3364_v38 = vadd.f32 %v10329_v1, %v3296_v40  ;;  %v10332_v9 = vrot.slane %v8206_v5, 1  ;;  %v10334_v27 = vrot.slane %v10325_v23, 1  ;;  %v10339_v40 = vld [vmem:[#allocation67_spill] sm:$0xff]  ;;  %v10341_v21 = vld [vmem:[#allocation26_spill] sm:$0xff]  ;;  %v10342_v1 = vld [vmem:[#allocation32_spill] sm:$0xff]  ;;  %4254 = vmatpush.bf16.msra.mxu0 %v8474_v8 }
 0x3e4   : > { %10330 = vst [vmem:[#allocation102_spill] sm:$0xff] %v8455_v16  ;;  %v3145_v50 = vmul.f32 %v8253_v6, %v3013_v18  ;;  %v3297_v31 = vmul.f32 %v10339_v40, %v3013_v18  ;;  %v3325_v24 = vmul.f32 %v10339_v40, %v3041_v15  ;;  %v3493_v20 = vmul.f32 %v7451_v42, %v3041_v15  ;;  %v8495_v18 = vld [vmem:[%s9192_s5 + $0x68] ss:$0 sm:$0xff]  ;;  %vm10369_vm5 = vmmov %vm10365_vm0  ;;  %v10388_v16 = vld [vmem:[#allocation56_spill] sm:$0xff] }
 0x3e5   : > { %10331 = vst [vmem:[#allocation82_spill] sm:$0xff] %v8457_v63  ;;  %v3077_v55 = vsel %vm10333_vm14, %v10332_v9, %v3073_v48  ;;  %v8471_v43 = vsel %vm10335_vm2, %v3073_v48, %v10334_v27  ;;  %v3264_v14 = vadd.f32 %v10337_v33, %v3204_v0  ;;  %v3525_v23 = vmul.f32 %v7457_v47, %v2936_v22  ;;  %vm10378_vm6 = vmmov %vm10197_vm1 }
 0x3e6   : > { %10336 = vst [vmem:[#allocation55_spill] sm:$0xff] %v8471_v43  ;;  %v8479_v39 = vsel %vm6780_vm15, %v3077_v55, 0.0  ;;  %v3694_v29 = vadd.f32 %v8385_v41, %v3651_v51  ;;  %v3205_v48 = vadd.f32 %v10340_v10, %v3145_v50  ;;  %v3365_v54 = vadd.f32 %v10341_v21, %v3297_v31  ;;  %v10345_v51 = vld [vmem:[#allocation117_spill] sm:$0xff]  ;;  %5110 = vmatpush.bf16.msra.mxu2 %v8343_v62  ;;  %v10350_v21 = vld [vmem:[#allocation107_spill] sm:$0xff]  ;;  %vm10375_vm15 = vmmov %vm10197_vm1 }
 0x3e7   : > { %10338 = vst [vmem:[#allocation94_spill] sm:$0xff] %v8479_v39  ;;  %v3722_v0 = vadd.f32 3.0, %v8407_v34  ;;  %v3594_v9 = vadd.f32 %v3566_v52, %v10342_v1  ;;  %v8497_v15 = vadd.f32 %v3361_v3, %v3325_v24  ;;  %v8499_v47 = vadd.f32 %v3525_v23, %v3493_v20  ;;  %v10347_v3 = vld [vmem:[#allocation49_spill] sm:$0xff]  ;;  %v10348_v20 = vld [vmem:[#allocation116_spill] sm:$0xff]  ;;  %vm10399_vm4 = vmmov %vm10365_vm0 }
 0x3e8   : > { %v3726_v25 = vadd.f32 3.0, %v3694_v29  ;;  %v3622_v22 = vadd.f32 %v8393_v2, %v8366_v46  ;;  %v3265_v55 = vadd.f32 %v10345_v51, %v3205_v48  ;;  %v3650_v52 = vadd.f32 %v3590_v57, %v8389_v44  ;;  %v10349_v2 = vld [vmem:[#allocation44_spill] sm:$0xff]  ;;  %v10352_v51 = vld [vmem:[#allocation75_spill] sm:$0xff]  ;;  %vm10403_vm11 = vmmov %vm10365_vm0 }
 0x3e9   : > { %10343 = vst [vmem:[#allocation57_spill] sm:$0xff] %v8497_v15  ;;  %v3754_v27 = vmax.f32 %v3722_v0, 0.0  ;;  %v8507_v33 = vperm.slane %v8363_v28, 3  ;;  %v3432_v24 = vadd.f32 %v10347_v3, %v3364_v38  ;;  %v3436_v23 = vadd.f32 %v7868_v53, %v10348_v20  ;;  %v8525_v53 = vld [vmem:[%s9192_s5 + $0x70] ss:$0 sm:$0xff]  ;;  %v10355_v20 = vld [vmem:[#allocation121_spill] sm:$0xff]  ;;  %vm10411_vm14 = vmmov %vm10335_vm2 }
 0x3ea   : > { %10344 = vst [vmem:[#allocation36_spill] sm:$0xff] %v8499_v47  ;;  %v3758_v50 = vmax.f32 %v3726_v25, 0.0  ;;  %v3654_v31 = vadd.f32 %v3622_v22, %v3594_v9  ;;  %v3560_v48 = vmul.f32 %v8495_v18, %v10349_v2  ;;  %v3564_v44 = vmul.f32 %v8495_v18, %v10350_v21  ;;  %v10351_v25 = vld [vmem:[#allocation50_spill] sm:$0xff]  ;;  %v10353_v3 = vld [vmem:[#allocation100_spill] sm:$0xff]  ;;  %5111 = vmatpush.bf16.msra.mxu2 %v8370_v37  ;;  %vm10428_vm2 = vmmov %vm10365_vm0 }
 0x3eb   : > { %10346 = vst [vmem:[#allocation24_spill] sm:$0xff] %v8507_v33  ;;  %v3786_v10 = vmin.f32 %v3754_v27, 6.0  ;;  %v3693_v46 = vadd.f32 %v8507_v33, %v3650_v52  ;;  %v3620_v1 = vadd.f32 %v3436_v23, %v3264_v14  ;;  %v8520_v38 = vperm.slane %v8363_v28, 1  ;;  %v10354_v14 = vld [vmem:[#allocation112_spill] sm:$0xff] }
 0x3ec   : > { %v3790_v57 = vmin.f32 %v3758_v50, 6.0  ;;  %v3697_v0 = vadd.f32 %v8507_v33, %v3654_v31  ;;  %v3588_v22 = vadd.f32 %v3560_v48, %v10351_v25  ;;  %v3592_v27 = vadd.f32 %v3564_v44, %v10352_v51  ;;  %v10357_v25 = vld [vmem:[#allocation130_spill] sm:$0xff] }
 0x3ed   : > { %v3818_v62 = vmul.f32 %v3786_v10, %v8407_v34  ;;  %v3725_v9 = vadd.f32 3.0, %v3693_v46  ;;  %v3433_v31 = vadd.f32 %v10353_v3, %v3365_v54  ;;  %v3437_v23 = vadd.f32 %v10355_v20, %v10354_v14  ;;  %v10356_v10 = vld [vmem:[#allocation58_spill] sm:$0xff] }
 0x3ee   : > { %v3822_v52 = vmul.f32 %v3790_v57, %v3694_v29  ;;  %v3729_v50 = vadd.f32 3.0, %v3697_v0  ;;  %v3648_v15 = vadd.f32 %v3588_v22, %v3432_v24  ;;  %v3652_v32 = vadd.f32 %v3620_v1, %v3592_v27  ;;  %v10359_v24 = vld [vmem:[#allocation14_spill] sm:$0xff]  ;;  %5112 = vmatpush.bf16.msra.mxu2 %v8397_v49 }
 0x3ef   : > { %v3850_v30 = vmul.f32 0.16666667, %v3818_v62  ;;  %v3757_v47 = vmax.f32 %v3725_v9, 0.0  ;;  %v3561_v48 = vmul.f32 %v8525_v53, %v10356_v10  ;;  %v3565_v29 = vmul.f32 %v8525_v53, %v10357_v25  ;;  %v10358_v62 = vld [vmem:[#allocation33_spill] sm:$0xff] }
 0x3f0   : > { %v3854_v7 = vmul.f32 0.16666667, %v3822_v52  ;;  %v3761_v34 = vmax.f32 %v3729_v50, 0.0  ;;  %v3691_v54 = vadd.f32 %v8520_v38, %v3648_v15  ;;  %v3695_v57 = vadd.f32 %v8520_v38, %v3652_v32  ;;  %v10361_v32 = vld [vmem:[#allocation53_spill] sm:$0xff] }
 0x3f1   : > { %v3789_v44 = vmin.f32 %v3757_v47, 6.0  ;;  %v3621_v51 = vadd.f32 %v3437_v23, %v3265_v55  ;;  %v3589_v9 = vadd.f32 %v3561_v48, %v10358_v62  ;;  %v3593_v1 = vadd.f32 %v3565_v29, %v10359_v24  ;;  %v10367_v48 = vld [vmem:[#allocation38_spill] sm:$0xff] }
 0x3f2   : > { %v3882_v3 = vpack.c.bf16 %v3854_v7, %v3850_v30  ;;  %v3793_v37 = vmin.f32 %v3761_v34, 6.0  ;;  %v3723_v27 = vadd.f32 3.0, %v3691_v54  ;;  %v3727_v52 = vadd.f32 3.0, %v3695_v57  ;;  %v10363_v7 = vld [vmem:[#allocation71_spill] sm:$0xff]  ;;  %5113 = vmatpush.bf16.msra.mxu2 %v8437_v36 }
 0x3f3   : > { %v3821_v22 = vmul.f32 %v3789_v44, %v3693_v46  ;;  %v8544_v50 = vperm.slane %v8363_v28, 2  ;;  %v3649_v15 = vadd.f32 %v3589_v9, %v3433_v31  ;;  %v3653_v14 = vadd.f32 %v3621_v51, %v3593_v1  ;;  %v10372_v1 = vld [vmem:[#allocation138_spill] sm:$0xff] }
 0x3f4   : > { %4168 = vmatmul.bf16.vlgmr.msra.gmra.mxu1 %v3882_v3  ;;  %v3825_v47 = vmul.f32 %v3793_v37, %v3697_v0  ;;  %v10362_v55 = vrot.slane %v10361_v32, 7  ;;  %v10364_v30 = vrot.slane %v10363_v7, 7  ;;  %v3755_v34 = vmax.f32 %v3723_v27, 0.0 }
 0x3f5   : > { %10360 = vst [vmem:[#allocation30_spill] sm:$0xff] %v8544_v50  ;;  %v3853_v23 = vmul.f32 0.16666667, %v3821_v22  ;;  %v3759_v49 = vmax.f32 %v3727_v52, 0.0  ;;  %v10368_v29 = vrot.slane %v10367_v48, 7  ;;  %v3692_v31 = vadd.f32 %v8544_v50, %v3649_v15  ;;  %v10380_v48 = vld [vmem:[#allocation83_spill] sm:$0xff] }
 0x3f6   : > { %v2991_v20 = vsel %vm10365_vm0, %v10364_v30, %v10362_v55  ;;  %v10366_v46 = vmov %v10364_v30  ;;  %v3857_v0 = vmul.f32 0.16666667, %v3825_v47  ;;  %v3696_v44 = vadd.f32 %v8544_v50, %v3653_v14  ;;  %5114 = vmatpush.bf16.msra.mxu2 %v8474_v8 }
 0x3f7   : > { %v2995_v28 = vsel %vm10369_vm5, %v10368_v29, %v10366_v46  ;;  %v3787_v37 = vmin.f32 %v3755_v34, 6.0  ;;  %v3791_v62 = vmin.f32 %v3759_v49, 6.0  ;;  %v8567_v24 = vsel %vm6444_vm9, %v2991_v20, 0.0  ;;  %vm10435_vm5 = vmmov %vm10378_vm6  ;;  %v10469_v49 = vld [vmem:[#allocation31_spill] sm:$0xff] }
 0x3f8   : > { %v8562_v3 = vsel %vm6440_vm8, %v2995_v28, 0.0  ;;  %v10373_v22 = vrot.slane %v10372_v1, 1  ;;  %v10374_v27 = vrot.slane %v10361_v32, 1  ;;  %v3885_v47 = vpack.c.bf16 %v3857_v0, %v3853_v23  ;;  %v10382_v0 = vld [vmem:[#allocation46_spill] sm:$0xff] }
 0x3f9   : > { %v3724_v15 = vadd.f32 3.0, %v3692_v31  ;;  %v3728_v14 = vadd.f32 3.0, %v3696_v44  ;;  %v10377_v36 = vrot.slane %v10363_v7, 1  ;;  %v3819_v34 = vmul.f32 %v3787_v37, %v3691_v54  ;;  %v10384_v7 = vld [vmem:[#allocation120_spill] sm:$0xff]  ;;  %v10385_v37 = vld [vmem:[#allocation97_spill] sm:$0xff] }
 0x3fa   : > { %v3083_v52 = vsel %vm10375_vm15, %v10374_v27, %v10373_v22  ;;  %v10376_v55 = vmov %v10374_v27  ;;  %v3823_v20 = vmul.f32 %v3791_v62, %v3695_v57  ;;  %vm10381_vm1 = vnez %v10380_v48  ;;  %4255 = vmatmul.bf16.vlgmr.msra.gmra.mxu0 %v3885_v47  ;;  %v10383_v22 = vld [vmem:[#allocation73_spill] sm:$0xff]  ;;  %vm10438_vm15 = vmmov %vm10435_vm5 }
 0x3fb   : > { %v3087_v30 = vsel %vm10378_vm6, %v10377_v36, %v10376_v55  ;;  %v8587_v29 = vsel %vm10381_vm1, %v3083_v52, 0.0  ;;  %v3756_v23 = vmax.f32 %v3724_v15, 0.0  ;;  %v3760_v28 = vmax.f32 %v3728_v14, 0.0  ;;  %v10386_v15 = vld [vmem:[#allocation93_spill] sm:$0xff]  ;;  %v10387_v36 = vld [vmem:[#allocation114_spill] sm:$0xff]  ;;  %vm10454_vm6 = vmmov %vm10365_vm0 }
 0x3fc   : > { %v8583_v46 = vsel %vm6448_vm10, %v3087_v30, 0.0  ;;  %v3147_v27 = vmul.f32 %v10383_v22, %v10382_v0  ;;  %v3151_v63 = vmul.f32 %v10383_v22, %v10384_v7  ;;  %v3851_v54 = vmul.f32 0.16666667, %v3819_v34  ;;  %v10389_v34 = vld [vmem:[#allocation27_spill] sm:$0xff] }
 0x3fd   : > { %v3855_v57 = vmul.f32 0.16666667, %v3823_v20  ;;  %v3239_v62 = vmul.f32 %v10385_v37, %v7751_v12  ;;  %v3243_v52 = vmul.f32 %v10385_v37, %v7948_v45  ;;  %v3788_v55 = vmin.f32 %v3756_v23, 6.0  ;;  %v10390_v23 = vld [vmem:[#allocation92_spill] sm:$0xff] }
 0x3fe   : > { %v3792_v47 = vmin.f32 %v3760_v28, 6.0  ;;  %v3207_v14 = vadd.f32 %v10386_v15, %v3147_v27  ;;  %v3211_v30 = vadd.f32 %v10387_v36, %v3151_v63  ;;  %v3303_v43 = vmul.f32 %v10388_v16, %v10384_v7  ;;  %v10391_v27 = vld [vmem:[#allocation124_spill] sm:$0xff] }
 0x3ff   : > { %v3883_v0 = vpack.c.bf16 %v3855_v57, %v3851_v54  ;;  %v3307_v8 = vmul.f32 %v10388_v16, %v8562_v3  ;;  %v3407_v20 = vmul.f32 %v10389_v34, %v7948_v45  ;;  %v3820_v12 = vmul.f32 %v3788_v55, %v3692_v31  ;;  %v10392_v7 = vld [vmem:[#allocation48_spill] sm:$0xff] }
 0x400   : > { %v3824_v60 = vmul.f32 %v3792_v47, %v3696_v44  ;;  %v3267_v39 = vadd.f32 %v3239_v62, %v3207_v14  ;;  %v3271_v5 = vadd.f32 %v3243_v52, %v3211_v30  ;;  %v3371_v28 = vadd.f32 %v10390_v23, %v3303_v43  ;;  %v10393_v52 = vld [vmem:[#allocation76_spill] sm:$0xff]  ;;  %v10394_v14 = vld [vmem:[#allocation133_spill] sm:$0xff] }
 0x401   : > { %4197 = vmatmul.bf16.vlgmr.msrb.gmra.mxu2 %v3883_v0  ;;  %v3375_v15 = vadd.f32 %v10391_v27, %v3307_v8  ;;  %v3411_v63 = vmul.f32 %v10389_v34, %v8583_v46  ;;  %v3475_v54 = vmul.f32 %v10392_v7, %v8562_v3  ;;  %v3852_v57 = vmul.f32 0.16666667, %v3820_v12  ;;  %v10395_v0 = vld [vmem:[#allocation59_spill] sm:$0xff]  ;;  %v10397_v12 = vld [vmem:[#allocation45_spill] sm:$0xff] }
 0x402   : > { %v3856_v36 = vmul.f32 0.16666667, %v3824_v60  ;;  %v3479_v45 = vmul.f32 %v10392_v7, %v8567_v24  ;;  %v3567_v31 = vmul.f32 %v8348_v58, %v8583_v46  ;;  %v3439_v44 = vadd.f32 %v3407_v20, %v3371_v28 }
 0x403   : > { %v3443_v62 = vadd.f32 %v3411_v63, %v3375_v15  ;;  %v3535_v43 = vadd.f32 %v10393_v52, %v3475_v54  ;;  %v3571_v55 = vmul.f32 %v8348_v58, %v8587_v29  ;;  %v10396_v8 = vrot.slane %v10395_v0, 7  ;;  %v10405_v52 = vld [vmem:[#allocation122_spill] sm:$0xff] }
 0x404   : > { %v3884_v47 = vpack.c.bf16 %v3856_v36, %v3852_v57  ;;  %v3539_v30 = vadd.f32 %v10394_v14, %v3479_v45  ;;  %v10398_v60 = vrot.slane %v10397_v12, 7  ;;  %v10402_v20 = vrot.slane %v10401_v26, 7 }
 0x405   : > { %v3595_v15 = vadd.f32 %v3567_v31, %v3535_v43  ;;  %v3623_v63 = vadd.f32 %v3439_v44, %v3267_v39  ;;  %v3627_v54 = vadd.f32 %v3443_v62, %v3271_v5  ;;  %v10406_v14 = vrot.slane %v10405_v52, 1 }
 0x406   : > { %v2994_v23 = vsel %vm10399_vm4, %v10398_v60, %v10396_v8  ;;  %v10400_v27 = vmov %v10398_v60  ;;  %4226 = vmatmul.bf16.vlgmr.msrb.gmra.mxu3 %v3884_v47  ;;  %v3599_v36 = vadd.f32 %v3571_v55, %v3539_v30  ;;  %v10407_v26 = vrot.slane %v10395_v0, 1  ;;  %v10412_v55 = vld [vmem:[#allocation60_spill] sm:$0xff]  ;;  %v10413_v60 = vld [vmem:[#allocation113_spill] sm:$0xff]  ;;  %vm10458_vm4 = vmmov %vm10365_vm0 }
 0x407   : > { %v2998_v28 = vsel %vm10403_vm11, %v10402_v20, %v10400_v27  ;;  %v8638_v45 = vsel %vm6444_vm9, %v2994_v23, 0.0  ;;  %v10410_v5 = vrot.slane %v10397_v12, 1  ;;  %v3655_v44 = vadd.f32 %v3623_v63, %v3595_v15  ;;  %v10414_v12 = vld [vmem:[#allocation47_spill] sm:$0xff]  ;;  %v10416_v63 = vld [vmem:[#allocation77_spill] sm:$0xff]  ;;  %vm10462_vm11 = vmmov %vm10435_vm5 }
 0x408   : > { %v8634_v57 = vsel %vm6440_vm8, %v2998_v28, 0.0  ;;  %v3086_v8 = vsel %vm10408_vm7, %v10407_v26, %v10406_v14  ;;  %v10409_v39 = vmov %v10407_v26  ;;  %v3150_v47 = vmul.f32 %v7932_v11, %v10412_v55  ;;  %v10415_v28 = vld [vmem:[#allocation108_spill] sm:$0xff]  ;;  %v10419_v55 = vld [vmem:[#allocation42_spill] sm:$0xff] }
 0x409   : > { %10404 = vst [vmem:[#allocation115_spill] sm:$0xff] %v8634_v57  ;;  %v3090_v31 = vsel %vm10411_vm14, %v10410_v5, %v10409_v39  ;;  %v8658_v43 = vsel %vm10381_vm1, %v3086_v8, 0.0  ;;  %v3659_v30 = vadd.f32 %v3627_v54, %v3599_v36  ;;  %v3154_v0 = vmul.f32 %v7932_v11, %v10413_v60  ;;  %v10417_v36 = vld [vmem:[#allocation23_spill] sm:$0xff]  ;;  %v10418_v39 = vld [vmem:[#allocation78_spill] sm:$0xff] }
 0x40a   : > { %v8654_v62 = vsel %vm6448_vm10, %v3090_v31, 0.0  ;;  %v3242_v23 = vmul.f32 %v10414_v12, %v10311_v61  ;;  %v3246_v27 = vmul.f32 %v10414_v12, %v7976_v35  ;;  %v3698_v20 = vadd.f32 %v8385_v41, %v3655_v44 }
 0x40b   : > { %v3210_v15 = vadd.f32 %v10415_v28, %v3150_v47  ;;  %v3306_v14 = vmul.f32 %v10416_v63, %v10413_v60  ;;  %v3310_v26 = vmul.f32 %v10416_v63, %v8634_v57  ;;  %v3702_v54 = vadd.f32 %v8385_v41, %v3659_v30  ;;  %v10420_v28 = vld [vmem:[#allocation18_spill] sm:$0xff]  ;;  %v10421_v63 = vld [vmem:[#allocation84_spill] sm:$0xff] }
 0x40c   : > { %v3214_v8 = vadd.f32 %v10417_v36, %v3154_v0  ;;  %v3410_v61 = vmul.f32 %v10418_v39, %v7976_v35  ;;  %v3414_v5 = vmul.f32 %v10418_v39, %v8654_v62  ;;  %v3730_v31 = vadd.f32 3.0, %v3698_v20 }
 0x40d   : > { %v3270_v44 = vadd.f32 %v3242_v23, %v3210_v15  ;;  %v3374_v47 = vadd.f32 %v10419_v55, %v3306_v14  ;;  %v3378_v17 = vadd.f32 %v10420_v28, %v3310_v26  ;;  %v3734_v60 = vadd.f32 3.0, %v3702_v54  ;;  %v10422_v23 = vld [vmem:[#allocation19_spill] sm:$0xff]  ;;  %v10423_v14 = vld [vmem:[#allocation137_spill] sm:$0xff] }
 0x40e   : > { %v3274_v12 = vadd.f32 %v3246_v27, %v3214_v8  ;;  %v3478_v11 = vmul.f32 %v10421_v63, %v8634_v57  ;;  %v3482_v30 = vmul.f32 %v10421_v63, %v8638_v45  ;;  %v3762_v0 = vmax.f32 %v3730_v31, 0.0  ;;  %v10424_v57 = vld [vmem:[#allocation129_spill] sm:$0xff] }
 0x40f   : > { %v3442_v36 = vadd.f32 %v3410_v61, %v3374_v47  ;;  %v3446_v35 = vadd.f32 %v3414_v5, %v3378_v17  ;;  %v3570_v39 = vmul.f32 %v8340_v4, %v8654_v62  ;;  %v3766_v41 = vmax.f32 %v3734_v60, 0.0  ;;  %v10426_v63 = vld [vmem:[#allocation125_spill] sm:$0xff] }
 0x410   : > { %v3538_v15 = vadd.f32 %v10422_v23, %v3478_v11  ;;  %v3542_v55 = vadd.f32 %v10423_v14, %v3482_v30  ;;  %v3574_v27 = vmul.f32 %v8340_v4, %v8658_v43  ;;  %v3794_v26 = vmin.f32 %v3762_v0, 6.0  ;;  %v10430_v60 = vld [vmem:[#allocation37_spill] sm:$0xff] }
 0x411   : > { %v3626_v8 = vadd.f32 %v3442_v36, %v3270_v44  ;;  %v3630_v28 = vadd.f32 %v3446_v35, %v3274_v12  ;;  %v10425_v52 = vrot.slane %v10424_v57, 7  ;;  %v10427_v31 = vrot.slane %v10426_v63, 7 }
 0x412   : > { %v3798_v61 = vmin.f32 %v3766_v41, 6.0  ;;  %v3598_v5 = vadd.f32 %v3570_v39, %v3538_v15  ;;  %v3602_v47 = vadd.f32 %v3574_v27, %v3542_v55  ;;  %v10431_v30 = vrot.slane %v10430_v60, 7 }
 0x413   : > { %v2992_v17 = vsel %vm10428_vm2, %v10427_v31, %v10425_v52  ;;  %v10429_v11 = vmov %v10427_v31  ;;  %v3826_v0 = vmul.f32 %v3794_v26, %v3698_v20  ;;  %v10432_v52 = vld [vmem:[#allocation145_spill] sm:$0xff]  ;;  %v10434_v39 = vrot.slane %v10424_v57, 1  ;;  %vm10522_vm2 = vmmov %vm10365_vm0 }
 0x414   : > { %v2996_v23 = vsel %vm10365_vm0, %v10431_v30, %v10429_v11  ;;  %v8710_v44 = vsel %vm6444_vm9, %v2992_v17, 0.0  ;;  %v10433_v41 = vrot.slane %v10432_v52, 1  ;;  %v3830_v35 = vmul.f32 %v3798_v61, %v3702_v54  ;;  %v10440_v11 = vld [vmem:[#allocation28_spill] sm:$0xff]  ;;  %v10441_v61 = vld [vmem:[#allocation34_spill] sm:$0xff] }
 0x415   : > { %v8706_v12 = vsel %vm6440_vm8, %v2996_v23, 0.0  ;;  %v3658_v15 = vadd.f32 %v3626_v8, %v3598_v5  ;;  %v3662_v14 = vadd.f32 %v3630_v28, %v3602_v47  ;;  %v10436_v20 = vmov %v10434_v39  ;;  %v10442_v47 = vld [vmem:[#allocation95_spill] sm:$0xff]  ;;  %v10443_v30 = vld [vmem:[#allocation22_spill] sm:$0xff] }
 0x416   : > { %v3084_v36 = vsel %vm10435_vm5, %v10434_v39, %v10433_v41  ;;  %v10437_v55 = vrot.slane %v10426_v63, 1  ;;  %v3858_v26 = vmul.f32 0.16666667, %v3826_v0  ;;  %v3148_v54 = vmul.f32 %v8198_v59, %v10440_v11 }
 0x417   : > { %v8730_v17 = vsel %vm10381_vm1, %v3084_v36, 0.0  ;;  %v3862_v8 = vmul.f32 0.16666667, %v3830_v35  ;;  %v3701_v28 = vadd.f32 %v8507_v33, %v3658_v15  ;;  %v3705_v63 = vadd.f32 %v8507_v33, %v3662_v14  ;;  %v10444_v15 = vld [vmem:[#allocation103_spill] sm:$0xff] }
 0x418   : > { %v3088_v27 = vsel %vm10438_vm15, %v10437_v55, %v10436_v20  ;;  %v3152_v5 = vmul.f32 %v8198_v59, %v10441_v61  ;;  %v3208_v60 = vadd.f32 %v10442_v47, %v3148_v54  ;;  %v3240_v23 = vmul.f32 %v10443_v30, %v10349_v2  ;;  %v10446_v54 = vld [vmem:[#allocation29_spill] sm:$0xff]  ;;  %vm10545_vm15 = vmmov %vm10365_vm0 }
 0x419   : > { %v8726_v31 = vsel %vm6448_vm10, %v3088_v27, 0.0  ;;  %v3244_v0 = vmul.f32 %v10443_v30, %v10350_v21  ;;  %v3304_v41 = vmul.f32 %v10322_v19, %v10441_v61  ;;  %v3886_v39 = vpack.c.bf16 %v3862_v8, %v3858_v26  ;;  %v10445_v27 = vld [vmem:[#allocation118_spill] sm:$0xff]  ;;  %v10447_v8 = vld [vmem:[#allocation99_spill] sm:$0xff] }
 0x41a   : > { %10439 = vst [vmem:[#allocation25_spill] sm:$0xff] %v8726_v31  ;;  %v3733_v36 = vadd.f32 3.0, %v3701_v28  ;;  %v3737_v35 = vadd.f32 3.0, %v3705_v63  ;;  %v3212_v20 = vadd.f32 %v10444_v15, %v3152_v5  ;;  %v3268_v14 = vadd.f32 %v3240_v23, %v3208_v60  ;;  %v10449_v15 = vld [vmem:[#allocation141_spill] sm:$0xff] }
 0x41b   : > { %v3308_v55 = vmul.f32 %v10322_v19, %v8706_v12  ;;  %v3372_v11 = vadd.f32 %v10445_v27, %v3304_v41  ;;  %v3408_v2 = vmul.f32 %v10446_v54, %v10350_v21  ;;  %4173 = vmatmul.bf16.gmra.mxu1 %v3886_v39  ;;  %v3412_v26 = vmul.f32 %v10446_v54, %v8726_v31  ;;  %v10452_v54 = vld [vmem:[#allocation13_spill] sm:$0xff]  ;;  %v10456_v19 = vld [vmem:[#allocation40_spill] sm:$0xff] }
 0x41c   : > { %v3765_v47 = vmax.f32 %v3733_v36, 0.0  ;;  %v3769_v33 = vmax.f32 %v3737_v35, 0.0  ;;  %v3272_v30 = vadd.f32 %v3244_v0, %v3212_v20  ;;  %v3476_v5 = vmul.f32 %v7413_v56, %v8706_v12  ;;  %v10448_v36 = vld [vmem:[#allocation106_spill] sm:$0xff] }
 0x41d   : > { %v3376_v61 = vadd.f32 %v10447_v8, %v3308_v55  ;;  %v3440_v59 = vadd.f32 %v3408_v2, %v3372_v11  ;;  %v3480_v60 = vmul.f32 %v7413_v56, %v8710_v44  ;;  %v3568_v21 = vmul.f32 %v8495_v18, %v8726_v31  ;;  %v10450_v2 = vld [vmem:[#allocation134_spill] sm:$0xff] }
 0x41e   : > { %v3797_v23 = vmin.f32 %v3765_v47, 6.0  ;;  %v3801_v41 = vmin.f32 %v3769_v33, 6.0  ;;  %v3572_v0 = vmul.f32 %v8495_v18, %v8730_v17  ;;  %v3536_v35 = vadd.f32 %v10448_v36, %v3476_v5 }
 0x41f   : > { %v3444_v39 = vadd.f32 %v3412_v26, %v3376_v61  ;;  %v3540_v20 = vadd.f32 %v10449_v15, %v3480_v60  ;;  %v3624_v55 = vadd.f32 %v3440_v59, %v3268_v14  ;;  %v10451_v8 = vrot.slane %v10450_v2, 7 }
 0x420   : > { %v3829_v27 = vmul.f32 %v3797_v23, %v3701_v28  ;;  %v3833_v11 = vmul.f32 %v3801_v41, %v3705_v63  ;;  %v10453_v56 = vrot.slane %v10452_v54, 7  ;;  %v10457_v31 = vrot.slane %v10456_v19, 7 }
 0x421   : > { %v3596_v61 = vadd.f32 %v3568_v21, %v3536_v35  ;;  %v3600_v5 = vadd.f32 %v3572_v0, %v3540_v20  ;;  %v3628_v60 = vadd.f32 %v3444_v39, %v3272_v30  ;;  %v10461_v19 = vrot.slane %v10450_v2, 1  ;;  %v10466_v35 = vld [vmem:[#allocation39_spill] sm:$0xff] }
 0x422   : > { %v2993_v33 = vsel %vm10454_vm6, %v10453_v56, %v10451_v8  ;;  %v10455_v47 = vmov %v10453_v56  ;;  %v3861_v28 = vmul.f32 0.16666667, %v3829_v27  ;;  %v3865_v63 = vmul.f32 0.16666667, %v3833_v11  ;;  %v10459_v56 = vld [vmem:[#allocation149_spill] sm:$0xff]  ;;  %v10467_v20 = vld [vmem:[#allocation119_spill] sm:$0xff]  ;;  %vm10548_vm6 = vmmov %vm10365_vm0 }
 0x423   : > { %v2997_v26 = vsel %vm10458_vm4, %v10457_v31, %v10455_v47  ;;  %v8782_v14 = vsel %vm6444_vm9, %v2993_v33, 0.0  ;;  %v10460_v23 = vrot.slane %v10459_v56, 1  ;;  %v3656_v41 = vadd.f32 %v3624_v55, %v3596_v61  ;;  %v10468_v11 = vld [vmem:[#allocation101_spill] sm:$0xff]  ;;  %vm10479_vm9 = vmmov %vm10365_vm0 }
 0x424   : > { %v8778_v59 = vsel %vm6440_vm8, %v2997_v26, 0.0  ;;  %v3660_v21 = vadd.f32 %v3628_v60, %v3600_v5  ;;  %v10463_v30 = vmov %v10461_v19  ;;  %v10464_v51 = vrot.slane %v10452_v54, 1  ;;  %vm10465_vm8 = vmmov %vm10435_vm5  ;;  %v10470_v47 = vld [vmem:[#allocation105_spill] sm:$0xff] }
 0x425   : > { %v3085_v31 = vsel %vm10462_vm11, %v10461_v19, %v10460_v23  ;;  %v3889_v39 = vpack.c.bf16 %v3865_v63, %v3861_v28  ;;  %v3149_v15 = vmul.f32 %v8253_v6, %v10466_v35  ;;  %v3153_v55 = vmul.f32 %v8253_v6, %v10467_v20  ;;  %v10471_v63 = vld [vmem:[#allocation89_spill] sm:$0xff] }
 0x426   : > { %v3089_v0 = vsel %vm10465_vm8, %v10464_v51, %v10463_v30  ;;  %v8798_v9 = vsel %vm10381_vm1, %v3085_v31, 0.0  ;;  %v3699_v54 = vadd.f32 %v8520_v38, %v3656_v41  ;;  %v3703_v27 = vadd.f32 %v8520_v38, %v3660_v21  ;;  %v10472_v41 = vld [vmem:[#allocation72_spill] sm:$0xff]  ;;  %v10473_v30 = vld [vmem:[#allocation127_spill] sm:$0xff]  ;;  %vm10487_vm1 = vmmov %vm10435_vm5 }
 0x427   : > { %v8802_v36 = vsel %vm6448_vm10, %v3089_v0, 0.0  ;;  %v3241_v48 = vmul.f32 %v10468_v11, %v10356_v10  ;;  %v3245_v8 = vmul.f32 %v10468_v11, %v10357_v25  ;;  %4260 = vmatmul.bf16.gmra.mxu0 %v3889_v39  ;;  %v3209_v33 = vadd.f32 %v10469_v49, %v3149_v15  ;;  %vm10482_vm10 = vmmov %vm10365_vm0 }
 0x428   : > { %v3213_v26 = vadd.f32 %v10470_v47, %v3153_v55  ;;  %v3305_v61 = vmul.f32 %v10339_v40, %v10467_v20  ;;  %v3309_v5 = vmul.f32 %v10339_v40, %v8778_v59  ;;  %v3731_v60 = vadd.f32 3.0, %v3699_v54  ;;  %vm10501_vm14 = vmmov %vm10487_vm1 }
 0x429   : > { %v3735_v28 = vadd.f32 3.0, %v3703_v27  ;;  %v3409_v23 = vmul.f32 %v10471_v63, %v10357_v25  ;;  %v3413_v10 = vmul.f32 %v10471_v63, %v8802_v36  ;;  %v3269_v19 = vadd.f32 %v3241_v48, %v3209_v33  ;;  %v10474_v33 = vld [vmem:[#allocation128_spill] sm:$0xff]  ;;  %vm10527_vm5 = vmmov %vm10487_vm1 }
 0x42a   : > { %v3273_v31 = vadd.f32 %v3245_v8, %v3213_v26  ;;  %v3373_v21 = vadd.f32 %v10472_v41, %v3305_v61  ;;  %v3377_v51 = vadd.f32 %v10473_v30, %v3309_v5  ;;  %v3763_v0 = vmax.f32 %v3731_v60, 0.0  ;;  %v10475_v26 = vld [vmem:[#allocation144_spill] sm:$0xff]  ;;  %vm10551_vm4 = vmmov %vm10487_vm1 }
 0x42b   : > { %v3767_v39 = vmax.f32 %v3735_v28, 0.0  ;;  %v3477_v35 = vmul.f32 %v7451_v42, %v8778_v59  ;;  %v3481_v15 = vmul.f32 %v7451_v42, %v8782_v14  ;;  %v3569_v25 = vmul.f32 %v8525_v53, %v8802_v36  ;;  %v10476_v28 = vld [vmem:[#allocation158_spill] sm:$0xff] }
 0x42c   : > { %v3441_v20 = vadd.f32 %v3409_v23, %v3373_v21  ;;  %v3445_v55 = vadd.f32 %v3413_v10, %v3377_v51  ;;  %v3573_v48 = vmul.f32 %v8525_v53, %v8798_v9  ;;  %v3795_v8 = vmin.f32 %v3763_v0, 6.0 }
 0x42d   : > { %v3799_v49 = vmin.f32 %v3767_v39, 6.0  ;;  %v3537_v47 = vadd.f32 %v10474_v33, %v3477_v35  ;;  %v3541_v61 = vadd.f32 %v10475_v26, %v3481_v15  ;;  %v10477_v41 = vrot.slane %v10476_v28, 7 }
 0x42e   : > { %v3625_v5 = vadd.f32 %v3441_v20, %v3269_v19  ;;  %v3629_v60 = vadd.f32 %v3445_v55, %v3273_v31  ;;  %v10478_v30 = vrot.slane %v10372_v1, 7  ;;  %v10481_v21 = vrot.slane %v10361_v32, 7 }
 0x42f   : > { %v3827_v0 = vmul.f32 %v3795_v8, %v3699_v54  ;;  %v3831_v39 = vmul.f32 %v3799_v49, %v3703_v27  ;;  %v3597_v35 = vadd.f32 %v3569_v25, %v3537_v47  ;;  %v3601_v15 = vadd.f32 %v3573_v48, %v3541_v61  ;;  %v10488_v49 = vld [vmem:[#allocation54_spill] sm:$0xff] }
 0x430   : > { %v2983_v23 = vsel %vm10479_vm9, %v10478_v30, %v10477_v41  ;;  %v10480_v10 = vmov %v10478_v30  ;;  %v10485_v33 = vrot.slane %v10476_v28, 1  ;;  %v10486_v26 = vrot.slane %v10372_v1, 1  ;;  %v10490_v28 = vld [vmem:[#allocation111_spill] sm:$0xff] }
 0x431   : > { %v2987_v51 = vsel %vm10482_vm10, %v10481_v21, %v10480_v10  ;;  %v8854_v55 = vsel %vm6770_vm13, %v2983_v23, 0.0  ;;  %v3155_v54 = vmul.f32 %v10383_v22, %v8562_v3  ;;  %v3859_v27 = vmul.f32 0.16666667, %v3827_v0 }
 0x432   : > { %v8850_v31 = vsel %vm6766_vm12, %v2987_v51, 0.0  ;;  %v3079_v32 = vsel %vm10487_vm1, %v10486_v26, %v10485_v33  ;;  %v3863_v25 = vmul.f32 0.16666667, %v3831_v39  ;;  %v3657_v48 = vadd.f32 %v3625_v5, %v3597_v35  ;;  %v10492_v26 = vld [vmem:[#allocation132_spill] sm:$0xff] }
 0x433   : > { %v3661_v8 = vadd.f32 %v3629_v60, %v3601_v15  ;;  %vm10489_vm7 = vnez %v10488_v49  ;;  %v3159_v61 = vmul.f32 %v10383_v22, %v8567_v24  ;;  %v3215_v41 = vadd.f32 %v10490_v28, %v3155_v54  ;;  %v10491_v60 = vld [vmem:[#allocation131_spill] sm:$0xff] }
 0x434   : > { %v8866_v47 = vsel %vm10489_vm7, %v3079_v32, 0.0  ;;  %v3247_v1 = vmul.f32 %v10385_v37, %v8583_v46  ;;  %v3887_v30 = vpack.c.bf16 %v3863_v25, %v3859_v27  ;;  %v3700_v23 = vadd.f32 %v8544_v50, %v3657_v48  ;;  %v10493_v54 = vld [vmem:[#allocation147_spill] sm:$0xff] }
 0x435   : > { %v3704_v3 = vadd.f32 %v8544_v50, %v3661_v8  ;;  %v3251_v5 = vmul.f32 %v10385_v37, %v8587_v29  ;;  %v3219_v10 = vadd.f32 %v10491_v60, %v3159_v61  ;;  %v3311_v51 = vmul.f32 %v10388_v16, %v8567_v24 }
 0x436   : > { %v3275_v21 = vadd.f32 %v3247_v1, %v3215_v41  ;;  %v3315_v0 = vmul.f32 %v10388_v16, %v8850_v31  ;;  %4202 = vmatmul.bf16.gmra.mxu2 %v3887_v30  ;;  %v3732_v39 = vadd.f32 3.0, %v3700_v23  ;;  %v3415_v35 = vmul.f32 %v10389_v34, %v8587_v29  ;;  %v10494_v41 = vld [vmem:[#allocation148_spill] sm:$0xff]  ;;  %v10495_v30 = vld [vmem:[#allocation123_spill] sm:$0xff] }
 0x437   : > { %v3736_v46 = vadd.f32 3.0, %v3704_v3  ;;  %v3419_v15 = vmul.f32 %v10389_v34, %v8866_v47  ;;  %v3279_v33 = vadd.f32 %v3251_v5, %v3219_v10  ;;  %v3379_v32 = vadd.f32 %v10492_v26, %v3311_v51  ;;  %v10496_v51 = vld [vmem:[#allocation162_spill] sm:$0xff]  ;;  %v10497_v26 = vld [vmem:[#allocation159_spill] sm:$0xff] }
 0x438   : > { %v3383_v27 = vadd.f32 %v10493_v54, %v3315_v0  ;;  %v3483_v24 = vmul.f32 %v10392_v7, %v8850_v31  ;;  %v3764_v25 = vmax.f32 %v3732_v39, 0.0  ;;  %v3487_v8 = vmul.f32 %v10392_v7, %v8854_v55 }
 0x439   : > { %v3768_v48 = vmax.f32 %v3736_v46, 0.0  ;;  %v3575_v61 = vmul.f32 %v8348_v58, %v8866_v47  ;;  %v3447_v29 = vadd.f32 %v3415_v35, %v3379_v32  ;;  %v3579_v5 = vmul.f32 %v8348_v58, %v10495_v30  ;;  %v10499_v46 = vld [vmem:[#allocation122_spill] sm:$0xff] }
 0x43a   : > { %v3451_v28 = vadd.f32 %v3419_v15, %v3383_v27  ;;  %v3543_v1 = vadd.f32 %v10494_v41, %v3483_v24  ;;  %v3796_v60 = vmin.f32 %v3764_v25, 6.0  ;;  %v3547_v0 = vadd.f32 %v10496_v51, %v3487_v8  ;;  %v10502_v24 = vld [vmem:[#allocation115_spill] sm:$0xff]  ;;  %v10503_v25 = vld [vmem:[#allocation12_spill] sm:$0xff] }
 0x43b   : > { %v3800_v10 = vmin.f32 %v3768_v48, 6.0  ;;  %v10498_v39 = vrot.slane %v10497_v26, 1  ;;  %v10500_v54 = vrot.slane %v10499_v46, 1  ;;  %v3631_v50 = vadd.f32 %v3447_v29, %v3275_v21  ;;  %v10504_v51 = vld [vmem:[#allocation47_spill] sm:$0xff] }
 0x43c   : > { %v3603_v34 = vadd.f32 %v3575_v61, %v3543_v1  ;;  %v3635_v35 = vadd.f32 %v3451_v28, %v3279_v33  ;;  %v3828_v32 = vmul.f32 %v3796_v60, %v3700_v23  ;;  %v3607_v58 = vadd.f32 %v3579_v5, %v3547_v0  ;;  %v10505_v28 = vld [vmem:[#allocation17_spill] sm:$0xff]  ;;  %v10507_v5 = vld [vmem:[#allocation135_spill] sm:$0xff] }
 0x43d   : > { %v3082_v7 = vsel %vm10501_vm14, %v10500_v54, %v10498_v39  ;;  %v3832_v27 = vmul.f32 %v3800_v10, %v3704_v3  ;;  %v3158_v48 = vmul.f32 %v10503_v25, %v10502_v24  ;;  %v3162_v41 = vmul.f32 %v10503_v25, %v8638_v45  ;;  %v10506_v3 = vld [vmem:[#allocation88_spill] sm:$0xff]  ;;  %v10509_v46 = vld [vmem:[#allocation15_spill] sm:$0xff] }
 0x43e   : > { %v3130_v15 = vsel %vm10489_vm7, %v3082_v7, 0.0  ;;  %v3663_v8 = vadd.f32 %v3631_v50, %v3603_v34  ;;  %v3250_v26 = vmul.f32 %v10504_v51, %v8654_v62  ;;  %v3254_v21 = vmul.f32 %v10504_v51, %v8658_v43  ;;  %v10508_v34 = vld [vmem:[#allocation77_spill] sm:$0xff] }
 0x43f   : > { %v3860_v33 = vmul.f32 0.16666667, %v3828_v32  ;;  %v3864_v61 = vmul.f32 0.16666667, %v3832_v27  ;;  %v3667_v29 = vadd.f32 %v3635_v35, %v3607_v58  ;;  %v3218_v23 = vadd.f32 %v10505_v28, %v3158_v48  ;;  %v10510_v32 = vld [vmem:[#allocation16_spill] sm:$0xff]  ;;  %v10512_v48 = vld [vmem:[#allocation150_spill] sm:$0xff] }
 0x440   : > { %v3706_v1 = vadd.f32 %v10506_v3, %v3663_v8  ;;  %v3222_v60 = vadd.f32 %v10507_v5, %v3162_v41  ;;  %v3258_v50 = vmul.f32 %v10504_v51, %v3130_v15  ;;  %v3314_v10 = vmul.f32 %v10508_v34, %v8638_v45  ;;  %v10511_v58 = vld [vmem:[#allocation136_spill] sm:$0xff]  ;;  %v10513_v45 = vld [vmem:[#allocation78_spill] sm:$0xff] }
 0x441   : > { %v3888_v0 = vpack.c.bf16 %v3864_v61, %v3860_v33  ;;  %v3710_v62 = vadd.f32 %v10506_v3, %v3667_v29  ;;  %v3278_v39 = vadd.f32 %v3250_v26, %v3218_v23  ;;  %v3318_v54 = vmul.f32 %v10508_v34, %v10509_v46  ;;  %v10514_v33 = vld [vmem:[#allocation84_spill] sm:$0xff] }
 0x442   : > { %v3738_v7 = vadd.f32 3.0, %v3706_v1  ;;  %v3282_v35 = vadd.f32 %v3254_v21, %v3222_v60  ;;  %v8924_v27 = vadd.f32 %v3258_v50, %v10510_v32  ;;  %v3382_v24 = vadd.f32 %v10511_v58, %v3314_v10  ;;  %v10515_v29 = vld [vmem:[#allocation164_spill] sm:$0xff] }
 0x443   : > { %4231 = vmatmul.bf16.gmra.mxu3 %v3888_v0  ;;  %v3742_v25 = vadd.f32 3.0, %v3710_v62  ;;  %v3386_v8 = vadd.f32 %v10512_v48, %v3318_v54  ;;  %v3418_v41 = vmul.f32 %v10513_v45, %v8658_v43  ;;  %v3422_v51 = vmul.f32 %v10513_v45, %v3130_v15  ;;  %v10516_v50 = vld [vmem:[#allocation52_spill] sm:$0xff]  ;;  %v10517_v0 = vld [vmem:[#allocation151_spill] sm:$0xff] }
 0x444   : > { %v3770_v26 = vmax.f32 %v3738_v7, 0.0  ;;  %v3486_v61 = vmul.f32 %v10514_v33, %v10509_v46  ;;  %v3490_v21 = vmul.f32 %v10514_v33, %v10515_v29  ;;  %v3578_v28 = vmul.f32 %v8340_v4, %v3130_v15  ;;  %v10518_v54 = vld [vmem:[#allocation163_spill] sm:$0xff]  ;;  %v10519_v7 = vld [vmem:[#allocation165_spill] sm:$0xff] }
 0x445   : > { %v3774_v23 = vmax.f32 %v3742_v25, 0.0  ;;  %v3450_v5 = vadd.f32 %v3418_v41, %v3382_v24  ;;  %v3454_v60 = vadd.f32 %v3422_v51, %v3386_v8  ;;  %v3582_v34 = vmul.f32 %v8340_v4, %v10516_v50 }
 0x446   : > { %v3802_v10 = vmin.f32 %v3770_v26, 6.0  ;;  %v3546_v43 = vadd.f32 %v10517_v0, %v3486_v61  ;;  %v3550_v32 = vadd.f32 %v10518_v54, %v3490_v21  ;;  %v10520_v58 = vrot.slane %v10519_v7, 7  ;;  %v10531_v0 = vld [vmem:[#allocation22_spill] sm:$0xff]  ;;  %v10532_v54 = vld [vmem:[#allocation24_spill] sm:$0xff] }
 0x447   : > { %v10521_v46 = vrot.slane %v10432_v52, 7  ;;  %v3806_v45 = vmin.f32 %v3774_v23, 6.0  ;;  %v3634_v15 = vadd.f32 %v3450_v5, %v3278_v39  ;;  %v3638_v25 = vadd.f32 %v3454_v60, %v3282_v35 }
 0x448   : > { %v10524_v8 = vrot.slane %v10424_v57, 7  ;;  %v3834_v41 = vmul.f32 %v3802_v10, %v3706_v1  ;;  %v3606_v51 = vadd.f32 %v3578_v28, %v3546_v43  ;;  %v3610_v26 = vadd.f32 %v3582_v34, %v3550_v32  ;;  %v10528_v1 = vld [vmem:[#allocation74_spill] sm:$0xff]  ;;  %v10529_v34 = vld [vmem:[#allocation43_spill] sm:$0xff] }
 0x449   : > { %v2984_v48 = vsel %vm10522_vm2, %v10521_v46, %v10520_v58  ;;  %v10523_v24 = vmov %v10521_v46  ;;  %v3838_v61 = vmul.f32 %v3806_v45, %v3710_v62  ;;  %v10525_v39 = vrot.slane %v10519_v7, 1  ;;  %v10533_v58 = vld [vmem:[#allocation87_spill] sm:$0xff] }
 0x44a   : > { %v2988_v4 = vsel %vm10365_vm0, %v10524_v8, %v10523_v24  ;;  %v8958_v29 = vsel %vm6770_vm13, %v2984_v48, 0.0  ;;  %v10526_v35 = vrot.slane %v10432_v52, 1  ;;  %v3156_v21 = vmul.f32 %v10528_v1, %v8706_v12  ;;  %v10530_v52 = vld [vmem:[#allocation25_spill] sm:$0xff]  ;;  %v10534_v45 = vld [vmem:[#allocation139_spill] sm:$0xff] }
 0x44b   : > { %v8954_v33 = vsel %vm6766_vm12, %v2988_v4, 0.0  ;;  %v3866_v28 = vmul.f32 0.16666667, %v3834_v41  ;;  %v3666_v23 = vadd.f32 %v3634_v15, %v3606_v51  ;;  %v3670_v5 = vadd.f32 %v3638_v25, %v3610_v26  ;;  %v10535_v41 = vld [vmem:[#allocation140_spill] sm:$0xff]  ;;  %v10536_v26 = vld [vmem:[#allocation29_spill] sm:$0xff] }
 0x44c   : > { %v3080_v57 = vsel %vm10527_vm5, %v10526_v35, %v10525_v39  ;;  %v3870_v60 = vmul.f32 0.16666667, %v3838_v61  ;;  %v3160_v50 = vmul.f32 %v10528_v1, %v8710_v44  ;;  %v3216_v10 = vadd.f32 %v10529_v34, %v3156_v21  ;;  %v10537_v35 = vld [vmem:[#allocation153_spill] sm:$0xff]  ;;  %v10538_v21 = vld [vmem:[#allocation110_spill] sm:$0xff] }
 0x44d   : > { %v8970_v62 = vsel %vm10489_vm7, %v3080_v57, 0.0  ;;  %v3248_v43 = vmul.f32 %v10531_v0, %v10530_v52  ;;  %v3709_v32 = vadd.f32 %v10532_v54, %v3666_v23  ;;  %v3713_v12 = vadd.f32 %v10532_v54, %v3670_v5 }
 0x44e   : > { %v3252_v7 = vmul.f32 %v10531_v0, %v8730_v17  ;;  %v3312_v46 = vmul.f32 %v10533_v58, %v8710_v44  ;;  %v3890_v48 = vpack.c.bf16 %v3870_v60, %v3866_v28  ;;  %v3220_v15 = vadd.f32 %v10534_v45, %v3160_v50  ;;  %v10541_v45 = vld [vmem:[#allocation169_spill] sm:$0xff] }
 0x44f   : > { %v3276_v25 = vadd.f32 %v3248_v43, %v3216_v10  ;;  %v3316_v24 = vmul.f32 %v10533_v58, %v8954_v33  ;;  %v3741_v8 = vadd.f32 3.0, %v3709_v32  ;;  %v3745_v4 = vadd.f32 3.0, %v3713_v12  ;;  %v10539_v10 = vld [vmem:[#allocation154_spill] sm:$0xff]  ;;  %v10540_v43 = vld [vmem:[#allocation41_spill] sm:$0xff] }
 0x450   : > { %v3380_v51 = vadd.f32 %v10535_v41, %v3312_v46  ;;  %v3416_v61 = vmul.f32 %v10536_v26, %v8730_v17  ;;  %4178 = vmatmul.bf16.gmra.mxu1 %v3890_v48  ;;  %v3280_v39 = vadd.f32 %v3252_v7, %v3220_v15  ;;  %v3420_v44 = vmul.f32 %v10536_v26, %v8970_v62  ;;  %v10542_v41 = vld [vmem:[#allocation166_spill] sm:$0xff] }
 0x451   : > { %v3384_v57 = vadd.f32 %v10537_v35, %v3316_v24  ;;  %v3484_v28 = vmul.f32 %v10538_v21, %v8954_v33  ;;  %v3773_v23 = vmax.f32 %v3741_v8, 0.0  ;;  %v3777_v5 = vmax.f32 %v3745_v4, 0.0 }
 0x452   : > { %v3448_v60 = vadd.f32 %v3416_v61, %v3380_v51  ;;  %v3488_v50 = vmul.f32 %v10538_v21, %v8958_v29  ;;  %v3576_v17 = vmul.f32 %v8495_v18, %v8970_v62  ;;  %v3580_v7 = vmul.f32 %v8495_v18, %v10540_v43 }
 0x453   : > { %v3452_v34 = vadd.f32 %v3420_v44, %v3384_v57  ;;  %v3544_v52 = vadd.f32 %v10539_v10, %v3484_v28  ;;  %v3805_v46 = vmin.f32 %v3773_v23, 6.0  ;;  %v3809_v48 = vmin.f32 %v3777_v5, 6.0 }
 0x454   : > { %v3548_v15 = vadd.f32 %v10541_v45, %v3488_v50  ;;  %v3632_v24 = vadd.f32 %v3448_v60, %v3276_v25  ;;  %v10543_v51 = vrot.slane %v10542_v41, 7  ;;  %v10544_v61 = vrot.slane %v10459_v56, 7 }
 0x455   : > { %v3604_v8 = vadd.f32 %v3576_v17, %v3544_v52  ;;  %v3636_v4 = vadd.f32 %v3452_v34, %v3280_v39  ;;  %v10547_v44 = vrot.slane %v10450_v2, 7  ;;  %v3837_v28 = vmul.f32 %v3805_v46, %v3709_v32 }
 0x456   : > { %v2985_v35 = vsel %vm10545_vm15, %v10544_v61, %v10543_v51  ;;  %v10546_v57 = vmov %v10544_v61  ;;  %v3841_v23 = vmul.f32 %v3809_v48, %v3713_v12  ;;  %v3608_v5 = vadd.f32 %v3580_v7, %v3548_v15  ;;  %v10552_v7 = vld [vmem:[#allocation126_spill] sm:$0xff]  ;;  %v10554_v51 = vld [vmem:[#allocation143_spill] sm:$0xff] }
 0x457   : > { %v2989_v21 = vsel %vm10548_vm6, %v10547_v44, %v10546_v57  ;;  %v3664_v39 = vadd.f32 %v3632_v24, %v3604_v8  ;;  %v9020_v60 = vsel %vm6770_vm13, %v2985_v35, 0.0  ;;  %v10549_v50 = vrot.slane %v10542_v41, 1  ;;  %v10553_v15 = vld [vmem:[#allocation142_spill] sm:$0xff] }
 0x458   : > { %v9016_v25 = vsel %vm6766_vm12, %v2989_v21, 0.0  ;;  %v10550_v34 = vrot.slane %v10459_v56, 1  ;;  %v3157_v32 = vmul.f32 %v8253_v6, %v8778_v59  ;;  %v3869_v12 = vmul.f32 0.16666667, %v3837_v28 }
 0x459   : > { %v3873_v10 = vmul.f32 0.16666667, %v3841_v23  ;;  %v3668_v19 = vadd.f32 %v3636_v4, %v3608_v5  ;;  %v3707_v20 = vadd.f32 %v8520_v38, %v3664_v39  ;;  %v3161_v17 = vmul.f32 %v8253_v6, %v8782_v14 }
 0x45a   : > { %v3081_v2 = vsel %vm10551_vm4, %v10550_v34, %v10549_v50  ;;  %v3217_v56 = vadd.f32 %v10552_v7, %v3157_v32  ;;  %v3249_v13 = vmul.f32 %v10468_v11, %v8802_v36  ;;  %v3253_v48 = vmul.f32 %v10468_v11, %v8798_v9 }
 0x45b   : > { %v9032_v52 = vsel %vm10489_vm7, %v3081_v2, 0.0  ;;  %v3893_v46 = vpack.c.bf16 %v3873_v10, %v3869_v12  ;;  %v3711_v59 = vadd.f32 %v8520_v38, %v3668_v19  ;;  %v3313_v49 = vmul.f32 %v10339_v40, %v8782_v14  ;;  %v10555_v14 = vld [vmem:[#allocation156_spill] sm:$0xff]  ;;  %v10556_v2 = vld [vmem:[#allocation157_spill] sm:$0xff]  ;;  %v10557_v12 = vld [vmem:[#allocation94_spill] sm:$0xff] }
 0x45c   : > { %v3739_v45 = vadd.f32 3.0, %v3707_v20  ;;  %v3221_v24 = vadd.f32 %v10553_v15, %v3161_v17  ;;  %v3277_v8 = vadd.f32 %v3249_v13, %v3217_v56  ;;  %v3317_v4 = vmul.f32 %v10339_v40, %v9016_v25  ;;  %v10558_v17 = vld [vmem:[#allocation172_spill] sm:$0xff]  ;;  %v10559_v13 = vld [vmem:[#allocation91_spill] sm:$0xff] }
 0x45d   : > { %4265 = vmatmul.bf16.gmra.mxu0 %v3893_v46  ;;  %v3743_v41 = vadd.f32 3.0, %v3711_v59  ;;  %v3381_v36 = vadd.f32 %v10554_v51, %v3313_v49  ;;  %v3417_v61 = vmul.f32 %v10471_v63, %v8798_v9  ;;  %v3421_v35 = vmul.f32 %v10471_v63, %v9032_v52 }
 0x45e   : > { %v3771_v57 = vmax.f32 %v3739_v45, 0.0  ;;  %v3281_v44 = vadd.f32 %v3253_v48, %v3221_v24  ;;  %v3385_v21 = vadd.f32 %v10555_v14, %v3317_v4  ;;  %v3485_v28 = vmul.f32 %v7451_v42, %v9016_v25 }
 0x45f   : > { %v3775_v23 = vmax.f32 %v3743_v41, 0.0  ;;  %v3449_v5 = vadd.f32 %v3417_v61, %v3381_v36  ;;  %v3489_v39 = vmul.f32 %v7451_v42, %v9020_v60  ;;  %v3577_v50 = vmul.f32 %v8525_v53, %v9032_v52  ;;  %v10561_v36 = vld [vmem:[#allocation146_spill] sm:$0xff] }
 0x460   : > { %v3803_v34 = vmin.f32 %v3771_v57, 6.0  ;;  %v3453_v9 = vadd.f32 %v3421_v35, %v3385_v21  ;;  %v3545_v32 = vadd.f32 %v10556_v2, %v3485_v28  ;;  %v3581_v10 = vmul.f32 %v8525_v53, %v10557_v12  ;;  %v10564_v28 = vld [vmem:[#allocation27_spill] sm:$0xff]  ;;  %v10566_v2 = vld [vmem:[#allocation98_spill] sm:$0xff] }
 0x461   : > { %v3807_v19 = vmin.f32 %v3775_v23, 6.0  ;;  %v3549_v7 = vadd.f32 %v10558_v17, %v3489_v39  ;;  %v3633_v56 = vadd.f32 %v3449_v5, %v3277_v8  ;;  %v3135_v48 = vsel %vm7087_vm3, %v10559_v13, 0.0 }
 0x462   : > { %v3835_v49 = vmul.f32 %v3803_v34, %v3707_v20  ;;  %v3605_v42 = vadd.f32 %v3577_v50, %v3545_v32  ;;  %v3637_v45 = vadd.f32 %v3453_v9, %v3281_v44  ;;  %v3163_v15 = vmul.f32 %v10383_v22, %v8850_v31  ;;  %v10562_v44 = vld [vmem:[#allocation160_spill] sm:$0xff] }
 0x463   : > { %v3839_v24 = vmul.f32 %v3807_v19, %v3711_v59  ;;  %v3609_v4 = vadd.f32 %v3581_v10, %v3549_v7  ;;  %v3167_v41 = vmul.f32 %v10383_v22, %v8854_v55  ;;  %v3255_v53 = vmul.f32 %v10385_v37, %v8866_v47  ;;  %v10563_v59 = vld [vmem:[#allocation30_spill] sm:$0xff]  ;;  %v10567_v10 = vld [vmem:[#allocation35_spill] sm:$0xff] }
 0x464   : > { %v3867_v51 = vmul.f32 0.16666667, %v3835_v49  ;;  %v3665_v8 = vadd.f32 %v3633_v56, %v3605_v42  ;;  %v3223_v61 = vadd.f32 %v10561_v36, %v3163_v15  ;;  %v3259_v20 = vmul.f32 %v10385_v37, %v10495_v30  ;;  %v10565_v37 = vld [vmem:[#allocation161_spill] sm:$0xff]  ;;  %v10568_v49 = vld [vmem:[#allocation104_spill] sm:$0xff] }
 0x465   : > { %v3871_v35 = vmul.f32 0.16666667, %v3839_v24  ;;  %v3669_v57 = vadd.f32 %v3637_v45, %v3609_v4  ;;  %v3227_v14 = vadd.f32 %v10562_v44, %v3167_v41  ;;  %v3319_v31 = vmul.f32 %v10388_v16, %v8854_v55  ;;  %v5185_v16 = vld [vmem:[%s9192_s5 + $0x60] ss:$0 sm:$0xff]  ;;  %v10569_v4 = vld [vmem:[#allocation152_spill] sm:$0xff] }
 0x466   : > { %v3708_v21 = vadd.f32 %v10563_v59, %v3665_v8  ;;  %v3283_v22 = vadd.f32 %v3255_v53, %v3223_v61  ;;  %v3423_v47 = vmul.f32 %v10564_v28, %v10495_v30  ;;  %v3427_v23 = vmul.f32 %v10564_v28, %v3135_v48  ;;  %v10570_v53 = vld [vmem:[#allocation167_spill] sm:$0xff] }
 0x467   : > { %v3891_v5 = vpack.c.bf16 %v3871_v35, %v3867_v51  ;;  %v3712_v39 = vadd.f32 %v10563_v59, %v3669_v57  ;;  %v3287_v50 = vadd.f32 %v3259_v20, %v3227_v14  ;;  %v3387_v34 = vadd.f32 %v10565_v37, %v3319_v31  ;;  %v10571_v31 = vld [vmem:[#allocation168_spill] sm:$0xff] }
 0x468   : > { %v3740_v9 = vadd.f32 3.0, %v3708_v21  ;;  %v3459_v32 = vadd.f32 %v3427_v23, %v10566_v2  ;;  %v3583_v55 = vmul.f32 %v5185_v16, %v3135_v48  ;;  %v3136_v30 = vsel %vm7087_vm3, %v10567_v10, 0.0  ;;  %v10574_v2 = vld [vmem:[#allocation82_spill] sm:$0xff] }
 0x469   : > { %4207 = vmatmul.bf16.gmra.mxu2 %v3891_v5  ;;  %v3744_v19 = vadd.f32 3.0, %v3712_v39  ;;  %v3455_v17 = vadd.f32 %v3423_v47, %v3387_v34  ;;  %v3164_v7 = vmul.f32 %v10528_v1, %v8954_v33  ;;  %v3168_v56 = vmul.f32 %v10528_v1, %v8958_v29  ;;  %v10573_v34 = vld [vmem:[#allocation102_spill] sm:$0xff] }
 0x46a   : > { %v3772_v13 = vmax.f32 %v3740_v9, 0.0  ;;  %v3611_v42 = vadd.f32 %v3583_v55, %v10568_v49  ;;  %v3643_v45 = vadd.f32 %v3459_v32, %v3287_v50  ;;  %v3256_v48 = vmul.f32 %v10531_v0, %v8970_v62  ;;  %v10572_v50 = vld [vmem:[#allocation55_spill] sm:$0xff] }
 0x46b   : > { %v3776_v15 = vmax.f32 %v3744_v19, 0.0  ;;  %v3639_v24 = vadd.f32 %v3455_v17, %v3283_v22  ;;  %v3224_v41 = vadd.f32 %v10569_v4, %v3164_v7  ;;  %v3228_v51 = vadd.f32 %v10570_v53, %v3168_v56  ;;  %v10575_v17 = vld [vmem:[#allocation155_spill] sm:$0xff]  ;;  %v10576_v56 = vld [vmem:[#allocation170_spill] sm:$0xff] }
 0x46c   : > { %v3804_v8 = vmin.f32 %v3772_v13, 6.0  ;;  %v3718_v36 = vadd.f32 %v10506_v3, %v3643_v45  ;;  %v3260_v33 = vmul.f32 %v10531_v0, %v10540_v43  ;;  %v3320_v1 = vmul.f32 %v10533_v58, %v8958_v29  ;;  %v10577_v53 = vld [vmem:[#allocation171_spill] sm:$0xff] }
 0x46d   : > { %v3808_v61 = vmin.f32 %v3776_v15, 6.0  ;;  %v3671_v20 = vadd.f32 %v3639_v24, %v3611_v42  ;;  %v3284_v35 = vadd.f32 %v3256_v48, %v3224_v41  ;;  %v3424_v62 = vmul.f32 %v10536_v26, %v10540_v43 }
 0x46e   : > { %v3836_v57 = vmul.f32 %v3804_v8, %v3708_v21  ;;  %v3750_v44 = vadd.f32 3.0, %v3718_v36  ;;  %v3288_v14 = vadd.f32 %v3260_v33, %v3228_v51  ;;  %v3388_v22 = vadd.f32 %v10571_v31, %v3320_v1 }
 0x46f   : > { %v3840_v28 = vmul.f32 %v3808_v61, %v3712_v39  ;;  %v3714_v47 = vadd.f32 %v10506_v3, %v3671_v20  ;;  %v3428_v23 = vmul.f32 %v10536_v26, %v3136_v30  ;;  %v3584_v0 = vmul.f32 %v8495_v18, %v3136_v30 }
 0x470   : > { %v3868_v5 = vmul.f32 0.16666667, %v3836_v57  ;;  %v3782_v29 = vmax.f32 %v3750_v44, 0.0  ;;  %v3456_v58 = vadd.f32 %v3424_v62, %v3388_v22  ;;  %v3137_v37 = vsel %vm7087_vm3, %v10572_v50, 0.0  ;;  %v10580_v62 = vld [vmem:[#allocation57_spill] sm:$0xff]  ;;  %v10581_v44 = vld [vmem:[#allocation36_spill] sm:$0xff] }
 0x471   : > { %v3872_v43 = vmul.f32 0.16666667, %v3840_v28  ;;  %v3746_v21 = vadd.f32 3.0, %v3714_v47  ;;  %v3460_v9 = vadd.f32 %v3428_v23, %v10573_v34  ;;  %v3612_v32 = vadd.f32 %v3584_v0, %v10574_v2 }
 0x472   : > { %v3814_v39 = vmin.f32 %v3782_v29, 6.0  ;;  %v3640_v16 = vadd.f32 %v3456_v58, %v3284_v35  ;;  %v3165_v3 = vmul.f32 %v8253_v6, %v9016_v25  ;;  %v3169_v18 = vmul.f32 %v8253_v6, %v9020_v60 }
 0x473   : > { %v3892_v26 = vpack.c.bf16 %v3872_v43, %v3868_v5  ;;  %v3778_v55 = vmax.f32 %v3746_v21, 0.0  ;;  %v3644_v10 = vadd.f32 %v3460_v9, %v3288_v14  ;;  %v3257_v46 = vmul.f32 %v10468_v11, %v9032_v52 }
 0x474   : > { %v3846_v30 = vmul.f32 %v3814_v39, %v3718_v36  ;;  %v3672_v19 = vadd.f32 %v3640_v16, %v3612_v32  ;;  %v3225_v7 = vadd.f32 %v10575_v17, %v3165_v3  ;;  %v3229_v13 = vadd.f32 %v10576_v56, %v3169_v18 }
 0x475   : > { %4236 = vmatmul.bf16.gmra.mxu3 %v3892_v26  ;;  %v3810_v49 = vmin.f32 %v3778_v55, 6.0  ;;  %v3719_v42 = vadd.f32 %v8520_v38, %v3644_v10  ;;  %v3261_v25 = vmul.f32 %v10468_v11, %v10557_v12  ;;  %v3321_v6 = vmul.f32 %v10339_v40, %v9020_v60  ;;  %v5186_v11 = vld [vmem:[%s9192_s5 + $0x70] ss:$0 sm:$0xff] }
 0x476   : > { %v3878_v45 = vmul.f32 0.16666667, %v3846_v30  ;;  %v3715_v48 = vadd.f32 %v8520_v38, %v3672_v19  ;;  %v3285_v52 = vadd.f32 %v3257_v46, %v3225_v7  ;;  %v3425_v15 = vmul.f32 %v10471_v63, %v10557_v12  ;;  %v10578_v60 = vld [vmem:[#allocation68_spill] sm:$0xff] }
 0x477   : > { %v3842_v24 = vmul.f32 %v3810_v49, %v3714_v47  ;;  %v3751_v4 = vadd.f32 3.0, %v3719_v42  ;;  %v3289_v41 = vadd.f32 %v3261_v25, %v3229_v13  ;;  %v3389_v51 = vadd.f32 %v10577_v53, %v3321_v6  ;;  %v10579_v12 = vld [vmem:[#allocation80_spill] sm:$0xff]  ;;  %v4169_v25 = vpop.f32.mrf.mxu1 }
 0x478   : > { %v3747_v8 = vadd.f32 3.0, %v3715_v48  ;;  %v3429_v36 = vmul.f32 %v10471_v63, %v3137_v37  ;;  %v3585_v40 = vmul.f32 %v5186_v11, %v3137_v37  ;;  %v3642_v38 = vadd.f32 %v10578_v60, %v8924_v27  ;;  %v10582_v63 = vld [vmem:[#allocation63_spill] sm:$0xff]  ;;  %v10583_v11 = vld [vmem:[#allocation66_spill] sm:$0xff] }
 0x479   : > { %v3874_v33 = vmul.f32 0.16666667, %v3842_v24  ;;  %v3783_v1 = vmax.f32 %v3751_v4, 0.0  ;;  %v3457_v61 = vadd.f32 %v3425_v15, %v3389_v51  ;;  %v3721_v20 = vadd.f32 %v10532_v54, %v10579_v12  ;;  %v4256_v24 = vpop.f32.mrf.mxu0  ;;  %v10584_v12 = vld [vmem:[#allocation65_spill] sm:$0xff] }
 0x47a   : > { %v3779_v35 = vmax.f32 %v3747_v8, 0.0  ;;  %v3461_v57 = vadd.f32 %v3429_v36, %v10580_v62  ;;  %v3613_v14 = vadd.f32 %v3585_v40, %v10581_v44  ;;  %v3674_v31 = vadd.f32 %v3642_v38, %v10582_v63 }
 0x47b   : > { %v3894_v22 = vpack.c.bf16 %v3878_v45, %v3874_v33  ;;  %v3815_v28 = vmin.f32 %v3783_v1, 6.0  ;;  %v3641_v47 = vadd.f32 %v3457_v61, %v3285_v52  ;;  %v3753_v23 = vadd.f32 3.0, %v3721_v20  ;;  %v9151_v45 = vld [vmem:[%s9195_s8 + $0x1] ss:$0 sm:$0xff] }
 0x47c   : > { %v3811_v0 = vmin.f32 %v3779_v35, 6.0  ;;  %v3645_v5 = vadd.f32 %v3461_v57, %v3289_v41  ;;  %v3717_v27 = vadd.f32 %v10532_v54, %v3674_v31 }
 0x47d   : > { %4183 = vmatmul.bf16.gmra.mxu1 %v3894_v22  ;;  %v3847_v29 = vmul.f32 %v3815_v28, %v3719_v42  ;;  %v3673_v58 = vadd.f32 %v3641_v47, %v3613_v14  ;;  %v3785_v50 = vmax.f32 %v3753_v23, 0.0 }
 0x47e   : > { %v3843_v37 = vmul.f32 %v3811_v0, %v3715_v48  ;;  %v3720_v43 = vadd.f32 %v10563_v59, %v3645_v5  ;;  %v3749_v21 = vadd.f32 3.0, %v3717_v27  ;;  %v4170_v48 = vadd.f32 %v9151_v45, %v4169_v25  ;;  %v10585_v0 = vld [vmem:[#allocation86_spill] sm:$0xff] }
 0x47f   : > { %v3879_v34 = vmul.f32 0.16666667, %v3847_v29  ;;  %v3716_v9 = vadd.f32 %v10563_v59, %v3673_v58  ;;  %v3817_v2 = vmin.f32 %v3785_v50, 6.0  ;;  %v4171_v4 = vpop.f32.mrf.mxu1 }
 0x480   : > { %v3875_v32 = vmul.f32 0.16666667, %v3843_v37  ;;  %v3752_v39 = vadd.f32 3.0, %v3720_v43  ;;  %v3781_v16 = vmax.f32 %v3749_v21, 0.0  ;;  %v4172_v51 = vadd.f32 %v9151_v45, %v4171_v4 }
 0x481   : > { %v3748_v3 = vadd.f32 3.0, %v3716_v9  ;;  %v3849_v18 = vmul.f32 %v3817_v2, %v3721_v20  ;;  %v4258_v1 = vpop.f32.mrf.mxu0 }
 0x482   : > { %v3895_v26 = vpack.c.bf16 %v3879_v34, %v3875_v32  ;;  %v3784_v55 = vmax.f32 %v3752_v39, 0.0  ;;  %v3813_v54 = vmin.f32 %v3781_v16, 6.0 }
 0x483   : > { %v3780_v10 = vmax.f32 %v3748_v3, 0.0  ;;  %v3881_v19 = vmul.f32 0.16666667, %v3849_v18 }
 0x484   : > { %4212 = vmatmul.bf16.gmra.mxu2 %v3895_v26  ;;  %v3816_v46 = vmin.f32 %v3784_v55, 6.0  ;;  %v3845_v30 = vmul.f32 %v3813_v54, %v3717_v27  ;;  %v4198_v52 = vpop.f32.mrf.mxu2 }
 0x485   : > { %v3812_v17 = vmin.f32 %v3780_v10, 6.0  ;;  %v4199_v15 = vadd.f32 %v4198_v52, %v4170_v48  ;;  %v10587_v10 = vld [vmem:[#allocation69_spill] sm:$0xff] }
 0x486   : > { %v3848_v7 = vmul.f32 %v3816_v46, %v3720_v43  ;;  %v3877_v56 = vmul.f32 0.16666667, %v3845_v30  ;;  %v10586_v43 = vld [vmem:[#allocation81_spill] sm:$0xff] }
 0x487   : > { %v3844_v13 = vmul.f32 %v3812_v17, %v3716_v9 }
 0x488   : > { %v3880_v49 = vmul.f32 0.16666667, %v3848_v7  ;;  %v3897_v59 = vpack.c.bf16 %v3881_v19, %v3877_v56 }
 0x489   : > { %v3876_v42 = vmul.f32 0.16666667, %v3844_v13  ;;  %v4227_v41 = vpop.f32.mrf.mxu3  ;;  %v10588_v13 = vld [vmem:[#allocation96_spill] sm:$0xff] }
 0x48a   : > { %v4228_v53 = vadd.f32 %v4227_v41, %v4199_v15 }
 0x48b   : > { %v3896_v6 = vpack.c.bf16 %v3880_v49, %v3876_v42 }
 0x48c   : > { %v4257_v8 = vadd.f32 %v4256_v24, %v4228_v53  ;;  %v4200_v36 = vpop.f32.mrf.mxu2 }
 0x48d   : > { %4241 = vmatmul.bf16.gmra.mxu3 %v3896_v6  ;;  %v4201_v60 = vadd.f32 %v4200_v36, %v4172_v51 }
 0x48e   : > { %v4276_v40 = vadd.f32 %v4257_v8, %v10583_v11  ;;  %v10589_v8 = vld [vmem:[#allocation20_spill] sm:$0xff] }
 0x490   : > { %4284 = vst [vmem:[%s9160_s22] sm:$0xff] %v4276_v40 }
 0x491   : > { %v4229_v38 = vpop.f32.mrf.mxu3 }
 0x492   : > { %v4230_v33 = vadd.f32 %v4229_v38, %v4201_v60 }
 0x494   : > { %4270 = vmatmul.bf16.vlgmr.msra.gmra.mxu2 %v3897_v59  ;;  %v4259_v61 = vadd.f32 %v4258_v1, %v4230_v33  ;;  %v10590_v33 = vld [vmem:[#allocation70_spill] sm:$0xff] }
 0x496   : > { %v4277_v20 = vadd.f32 %v4259_v61, %v10584_v12 }
 0x498   : > { %4285 = vst [vmem:[%s9160_s22 + $0x8] sm:$0xff] %v4277_v20  ;;  %v4174_v35 = vpop.f32.mrf.mxu1 }
 0x499   : > { %v4175_v57 = vadd.f32 %v9151_v45, %v4174_v35 }
 0x4a0   : > { %v4176_v14 = vpop.f32.mrf.mxu1 }
 0x4a1   : > { %v4177_v47 = vadd.f32 %v9151_v45, %v4176_v14 }
 0x4a4   : > { %v4261_v63 = vpop.f32.mrf.mxu0 }
 0x4ac   : > { %v4263_v50 = vpop.f32.mrf.mxu0 }
 0x4b9   : > { %v4203_v62 = vpop.f32.mrf.mxu2 }
 0x4ba   : > { %v4204_v44 = vadd.f32 %v4203_v62, %v4175_v57 }
 0x4c1   : > { %v4205_v28 = vpop.f32.mrf.mxu2 }
 0x4c2   : > { %v4206_v27 = vadd.f32 %v4205_v28, %v4177_v47 }
 0x4c6   : > { %v4232_v31 = vpop.f32.mrf.mxu3 }
 0x4c7   : > { %v4233_v22 = vadd.f32 %v4232_v31, %v4204_v44 }
 0x4c9   : > { %v4262_v23 = vadd.f32 %v4261_v63, %v4233_v22 }
 0x4cb   : > { %v4278_v5 = vadd.f32 %v4262_v23, %v10585_v0 }
 0x4cd   : > { %4286 = vst [vmem:[%s9160_s22 + $0x10] sm:$0xff] %v4278_v5  ;;  %v4179_v34 = vpop.f32.mrf.mxu1 }
 0x4ce   : > { %v4234_v29 = vpop.f32.mrf.mxu3  ;;  %v4180_v2 = vadd.f32 %v9151_v45, %v4179_v34 }
 0x4cf   : > { %v4235_v58 = vadd.f32 %v4234_v29, %v4206_v27 }
 0x4d1   : > { %v4264_v37 = vadd.f32 %v4263_v50, %v4235_v58 }
 0x4d3   : > { %v4279_v21 = vadd.f32 %v4264_v37, %v10586_v43 }
 0x4d5   : > { %4287 = vst [vmem:[%s9160_s22 + $0x18] sm:$0xff] %v4279_v21  ;;  %v4181_v39 = vpop.f32.mrf.mxu1 }
 0x4d6   : > { %v4182_v55 = vadd.f32 %v9151_v45, %v4181_v39 }
 0x4da   : > { %v4266_v16 = vpop.f32.mrf.mxu0 }
 0x4e2   : > { %v4268_v7 = vpop.f32.mrf.mxu0 }
 0x4ec   : > { %v4208_v9 = vpop.f32.mrf.mxu2 }
 0x4ed   : > { %v4209_v32 = vadd.f32 %v4208_v9, %v4180_v2 }
 0x4f4   : > { %v4210_v26 = vpop.f32.mrf.mxu2 }
 0x4f5   : > { %v4211_v30 = vadd.f32 %v4210_v26, %v4182_v55 }
 0x4f8   : > { %v4237_v3 = vpop.f32.mrf.mxu3 }
 0x4f9   : > { %v4238_v18 = vadd.f32 %v4237_v3, %v4209_v32 }
 0x4fa   : > { %v4184_v42 = vpop.f32.mrf.mxu1 }
 0x4fb   : > { %v4267_v54 = vadd.f32 %v4266_v16, %v4238_v18  ;;  %v4185_v6 = vadd.f32 %v9151_v45, %v4184_v42 }
 0x4fd   : > { %v4280_v46 = vadd.f32 %v4267_v54, %v10587_v10 }
 0x4ff   : > { %4288 = vst [vmem:[%s9160_s22 + $0x20] sm:$0xff] %v4280_v46 }
 0x500   : > { %v4239_v19 = vpop.f32.mrf.mxu3 }
 0x501   : > { %v4240_v17 = vadd.f32 %v4239_v19, %v4211_v30 }
 0x502   : > { %v4186_v15 = vpop.f32.mrf.mxu1 }
 0x503   : > { %v4269_v56 = vadd.f32 %v4268_v7, %v4240_v17  ;;  %v4187_v41 = vadd.f32 %v9151_v45, %v4186_v15 }
 0x505   : > { %v4281_v49 = vadd.f32 %v4269_v56, %v10588_v13 }
 0x507   : > { %4289 = vst [vmem:[%s9160_s22 + $0x28] sm:$0xff] %v4281_v49  ;;  %v4213_v59 = vpop.f32.mrf.mxu2 }
 0x508   : > { %v4214_v48 = vadd.f32 %v4213_v59, %v4185_v6 }
 0x50f   : > { %v4215_v25 = vpop.f32.mrf.mxu2 }
 0x510   : > { %v4242_v52 = vpop.f32.mrf.mxu3  ;;  %v4216_v51 = vadd.f32 %v4215_v25, %v4187_v41 }
 0x511   : > { %v4243_v24 = vadd.f32 %v4242_v52, %v4214_v48 }
 0x517   : > { %v4271_v4 = vpop.f32.mrf.mxu2 }
 0x518   : > { %v4272_v53 = vadd.f32 %v4271_v4, %v4243_v24  ;;  %v4244_v11 = vpop.f32.mrf.mxu3 }
 0x519   : > { %v4245_v40 = vadd.f32 %v4244_v11, %v4216_v51 }
 0x51a   : > { %v4282_v36 = vadd.f32 %v4272_v53, %v10589_v8 }
 0x51c   : > { %4290 = vst [vmem:[%s9160_s22 + $0x30] sm:$0xff] %v4282_v36 }
 0x51f   : > { %v4273_v60 = vpop.f32.mrf.mxu2 }
 0x520   : > { %v4274_v38 = vadd.f32 %v4273_v60, %v4245_v40 }
 0x522   : > { %v4283_v1 = vadd.f32 %v4274_v38, %v10590_v33 }
 0x524   : > { %4291 = vst [vmem:[%s9160_s22 + $0x38] sm:$0xff] %v4283_v1 }
 0x525 PF: > { %s22_s30 = sadd.s32 1, %s5325_s30  }
 0x526   : > { %p19_p7 = scmp.ge.s32.totalorder %s22_s30, 4  }
 0x528   :  { %21 = sbr.rel (!%p19_p7) target bundleno = 3 (0x3), region = 109 }
 0x52d   :  { %4313 = vsyncpa [#allocation3], 1 }
 0x52e   :  { %4315 = vsyncpa [#allocation3 + $0x1], 1 }
 0x52f   :  { %4316 = vsyncpa [#allocation5], 1 }
 0x530   :  { %4317 = vsyncpa [#allocation8], 1 }

</bundles_post_ra>
